<compile_context>
chip_gen: v7x
topology: tpu7x:2x2x1
jax: 0.10.0
libtpu: 0.0.40
codegen_flags: <defaults>
</compile_context>

<pallas_src>
import functools

import jax
import jax.numpy as jnp
from jax import lax
from jax.experimental import pallas as pl
from jax.experimental.pallas import tpu as pltpu

# make the pure-JAX reference use full f32 matmul precision (matches the in-kernel MXU path)
jax.config.update("jax_default_matmul_precision", "highest")

_VMEM = pl.BlockSpec(memory_space=pltpu.MemorySpace.VMEM)

_SE = 32   # static embedding dim
_DE = 32   # dynamic embedding dim


def _round8(n):
    return -(-n // 8) * 8


# ----------------------------------------------------------------------------
# Packed-parameter layouts (pure-Python, static — shared by packer and kernel)
# ----------------------------------------------------------------------------
def _mlp_layout(stat_dim, dyn_dim, H, n_cmal_out=12):
    """Row layout of the packed MLP slab: per layer [W (pin rows, zero-padded); bias row; pad]."""
    specs = [("s1", stat_dim, 80), ("s2", 80, _SE),
             ("d1", dyn_dim, 64), ("d2", 64, _DE),
             ("ht", H, H), ("ct", H, H),
             ("c1", H, 100), ("c2", 100, n_cmal_out)]
    lay, off, lanes = {}, 0, 128
    for name, nin, nout in specs:
        pin, pout = _round8(nin), _round8(nout)
        lay[name] = (off, off + pin, pin, pout, nin, nout)   # (w_off, b_off, pin, pout, nin, nout)
        off += pin + 8                                       # 8-row-aligned bias block
        lanes = max(lanes, pout)
    return lay, off, lanes


def _lstm_layout(H):
    """Row layout of the packed LSTM slab (lane width = 4H)."""
    entries = [("h_wih_s", _SE), ("h_wih_d", _DE), ("h_whh", _round8(H)),
               ("f_wih_s", _SE), ("f_wih_d", _DE), ("f_whh", _round8(H)),
               ("h_bias", 8), ("f_bias", 8)]
    lay, off = {}, 0
    for name, rows in entries:
        lay[name] = off
        off += rows
    return lay, off


# ----------------------------------------------------------------------------
# One-time parameter packing (outside the jitted forward)
# ----------------------------------------------------------------------------
def prepare_params(p, hidden_dim):
    H = hidden_dim
    f32 = jnp.float32
    stat_dim = p["s1_w"].shape[0]
    dyn_dim = p["d1_w"].shape[0]

    # ---- MLP / head / transfer-net slab ----
    mlp_lay, mlp_rows, mlp_lanes = _mlp_layout(stat_dim, dyn_dim, H, p["c2_w"].shape[1])
    mlp = jnp.zeros((mlp_rows, mlp_lanes), f32)
    for name in ("s1", "s2", "d1", "d2", "ht", "ct", "c1", "c2"):
        w_off, b_off, _, _, nin, nout = mlp_lay[name]
        mlp = mlp.at[w_off:w_off + nin, :nout].set(p[name + "_w"].astype(f32))
        mlp = mlp.at[b_off, :nout].set(p[name + "_b"].astype(f32))

    # ---- LSTM slab (g-gate columns pre-scaled by 2 so tanh(a) == 2*sigmoid(2a)-1) ----
    lstm_lay, lstm_rows = _lstm_layout(H)
    lstm = jnp.zeros((lstm_rows, 4 * H), f32)

    def scale_g(w):
        return w.at[..., 2 * H:3 * H].multiply(2.0)

    for pre in ("h", "f"):
        wih = scale_g(p[pre + "_wih"].astype(f32))                       # (SE+DE, 4H)
        whh = scale_g(p[pre + "_whh"].astype(f32))                       # (H, 4H)
        bias = scale_g((p[pre + "_bih"] + p[pre + "_bhh"]).astype(f32))  # (4H,)
        lstm = lstm.at[lstm_lay[pre + "_wih_s"]:lstm_lay[pre + "_wih_s"] + _SE, :].set(wih[:_SE])
        lstm = lstm.at[lstm_lay[pre + "_wih_d"]:lstm_lay[pre + "_wih_d"] + _DE, :].set(wih[_SE:])
        lstm = lstm.at[lstm_lay[pre + "_whh"]:lstm_lay[pre + "_whh"] + H, :].set(whh)
        lstm = lstm.at[lstm_lay[pre + "_bias"], :].set(bias)

    return {"mlp": mlp, "lstm": lstm}


# ----------------------------------------------------------------------------
# Single fused forward kernel
# ----------------------------------------------------------------------------
def _fused_forward_kernel(
    x_s_ref, x_dyn_ref, lstm_ref, mlp_ref,   # inputs (VMEM resident)
    out_ref,                                  # output
    *, Th, Tf, B, H, num_dist, eps, mlp_lay, lstm_lay,
):
    f32 = jnp.float32

    def mm(a, b):
        return jnp.dot(a, b, preferred_element_type=f32)

    def lin(x, name):
        w_off, b_off, pin, pout, _, _ = mlp_lay[name]
        w = mlp_ref[w_off:w_off + pin, :pout]
        b = mlp_ref[b_off:b_off + 1, :pout]
        return mm(x, w) + b

    # ---- static embedding net: (B, stat) -> (B, 32)   [Dropout = identity in eval] ----
    s = lin(jnp.tanh(lin(x_s_ref[...], "s1")), "s2")

    # ---- dynamic embedding net, hindcast+forecast rows batched together ----
    e = lin(jnp.tanh(lin(x_dyn_ref[...], "d1")), "d2")        # ((Th+Tf)*B, 32)
    e_h = e[:Th * B, :]
    e_f = e[Th * B:, :]

    # ---- LSTM weight/bias views (static, 8-row-aligned slices of the packed slab) ----
    o = lstm_lay
    wih_s_h = lstm_ref[o["h_wih_s"]:o["h_wih_s"] + _SE, :]
    wih_d_h = lstm_ref[o["h_wih_d"]:o["h_wih_d"] + _DE, :]
    whh_h = lstm_ref[o["h_whh"]:o["h_whh"] + H, :]
    bias_h = lstm_ref[o["h_bias"]:o["h_bias"] + 1, :]
    wih_s_f = lstm_ref[o["f_wih_s"]:o["f_wih_s"] + _SE, :]
    wih_d_f = lstm_ref[o["f_wih_d"]:o["f_wih_d"] + _DE, :]
    whh_f = lstm_ref[o["f_whh"]:o["f_whh"] + H, :]
    bias_f = lstm_ref[o["f_bias"]:o["f_bias"] + 1, :]

    # ---- gate pre-activations: static part computed once, folded into the dynamic part
    #      before the serial loops (parallel pre-loop work) ----
    gs_h = mm(s, wih_s_h) + bias_h                             # (B, 4H)
    gs_f = mm(s, wih_s_f) + bias_f                             # (B, 4H)
    gd_h = mm(e_h, wih_d_h).reshape(Th, B, 4 * H) + gs_h[None]  # (Th, B, 4H)
    gd_f = mm(e_f, wih_d_f).reshape(Tf, B, 4 * H) + gs_f[None]  # (Tf, B, 4H)

    def lstm_cell(gates, c_prev):
        # one full-(B,4H) sigmoid; g recovered via tanh(a) = 2*sigmoid(2a)-1 (inputs pre-scaled)
        sig = jax.nn.sigmoid(gates)
        i_g = sig[:, 0:H]
        f_g = sig[:, H:2 * H]
        g_g = 2.0 * sig[:, 2 * H:3 * H] - 1.0
        o_g = sig[:, 3 * H:4 * H]
        c_new = f_g * c_prev + i_g * g_g
        h_new = o_g * jnp.tanh(c_new)
        return h_new, c_new

    # ---- hindcast LSTM (only the final state is needed); h0 = c0 = 0 so step 0 skips h@Whh ----
    h, c = lstm_cell(gd_h[0], jnp.zeros((B, H), f32))
    for t in range(1, Th):                       # fully unrolled: Th is a small static constant
        h, c = lstm_cell(gd_h[t] + mm(h, whh_h), c)

    # ---- state-transfer nets (fused between the two LSTM loops) ----
    h = jnp.tanh(lin(h, "ht"))                   # hidden_transfer: Linear + Tanh
    c = lin(c, "ct")                             # cell_transfer:   Linear

    # ---- forecast LSTM; hidden states stay register resident ----
    hs = []
    for t in range(Tf):
        h, c = lstm_cell(gd_f[t] + mm(h, whh_f), c)
        hs.append(h)
    hf = jnp.concatenate(hs, axis=0)             # (Tf*B, H), time-major rows

    # ---- CMAL head, batched over all Tf*B forecast rows ----
    hh = jnp.maximum(lin(hf, "c1"), 0.0)
    z = lin(hf := hh, "c2")                      # (Tf*B, >=4*num_dist)

    k = num_dist
    mu = z[:, 0:k]
    b_lat = z[:, k:2 * k]
    t_lat = z[:, 2 * k:3 * k]
    p_lat = z[:, 3 * k:4 * k]

    # PyTorch Softplus(beta=2) with threshold=20: linear when beta*x > 20
    sp = jnp.where(2.0 * b_lat > 20.0, b_lat, jax.nn.softplus(2.0 * b_lat) * 0.5)
    p_max = jnp.max(p_lat, axis=-1, keepdims=True)
    p_exp = jnp.exp(p_lat - p_max)
    p_soft = p_exp / jnp.sum(p_exp, axis=-1, keepdims=True)

    out = jnp.concatenate(
        [mu,
         sp + eps,
         (1.0 - eps) * jax.nn.sigmoid(t_lat) + eps,
         (1.0 - eps) * p_soft + eps],
        axis=-1)
    out_ref[...] = out.astype(out_ref.dtype)     # single store of the full (Tf*B, 4k) slab


# ----------------------------------------------------------------------------
# JAX wrapper: one pallas_call for the whole forward pass
# ----------------------------------------------------------------------------
@functools.partial(jax.jit, static_argnames=("hidden_dim", "num_dist", "eps"))
def forward(packed, x_s, x_h, x_f, hidden_dim, num_dist=3, eps=1e-5):
    Th, B, dyn_dim = x_h.shape
    Tf = x_f.shape[0]
    stat_dim = x_s.shape[1]
    H = hidden_dim
    Bp = _round8(B)                               # pad batch to a full 8-sublane vreg

    mlp_lay, _, _ = _mlp_layout(stat_dim, dyn_dim, H, 4 * num_dist)
    lstm_lay, _ = _lstm_layout(H)

    # zero-pad batch rows and feature lanes (static shapes; padded rows/cols are inert)
    sd_p, dd_p = _round8(stat_dim), _round8(dyn_dim)
    x_s_p = jnp.pad(x_s, ((0, Bp - B), (0, sd_p - stat_dim)))
    x_h_p = jnp.pad(x_h, ((0, 0), (0, Bp - B), (0, dd_p - dyn_dim)))
    x_f_p = jnp.pad(x_f, ((0, 0), (0, Bp - B), (0, dd_p - dyn_dim)))
    x_dyn = jnp.concatenate([x_h_p.reshape(Th * Bp, dd_p),
                             x_f_p.reshape(Tf * Bp, dd_p)], axis=0)

    kernel = functools.partial(_fused_forward_kernel, Th=Th, Tf=Tf, B=Bp, H=H,
                               num_dist=num_dist, eps=eps,
                               mlp_lay=mlp_lay, lstm_lay=lstm_lay)

    z = pl.pallas_call(
        kernel,
        out_shape=jax.ShapeDtypeStruct((Tf * Bp, 4 * num_dist), jnp.float32),
        in_specs=[_VMEM] * 4,
        out_specs=_VMEM,
    )(x_s_p, x_dyn, packed["lstm"], packed["mlp"])

    # rows are time-major (t, b); drop batch padding, reorder to (B, Tf, .) and split
    z = z.reshape(Tf, Bp, 4 * num_dist)[:, :B].transpose(1, 0, 2)
    k = num_dist
    return {"mu": z[..., 0:k], "b": z[..., k:2 * k],
            "tau": z[..., 2 * k:3 * k], "pi": z[..., 3 * k:4 * k]}


# ----------------------------------------------------------------------------
# Parameter initialization (deterministic, synthetic)
# ----------------------------------------------------------------------------
def _dense(key, n_in, n_out, scale=0.1):
    kw, kb = jax.random.split(key)
    w = scale * jax.random.normal(kw, (n_in, n_out), jnp.float32)
    b = scale * jax.random.normal(kb, (n_out,), jnp.float32)
    return w, b


def init_params(key, dyn_dim, stat_dim, hidden_dim):
    keys = jax.random.split(key, 16)
    H = hidden_dim
    p = {}
    # static embd net: stat_dim -> 80 -> 32
    p["s1_w"], p["s1_b"] = _dense(keys[0], stat_dim, 80)
    p["s2_w"], p["s2_b"] = _dense(keys[1], 80, 32)
    # dynamic embd net: dyn_dim -> 64 -> 32
    p["d1_w"], p["d1_b"] = _dense(keys[2], dyn_dim, 64)
    p["d2_w"], p["d2_b"] = _dense(keys[3], 64, 32)
    # hindcast LSTM (input 64 = [static_embd(32), dynamic_embd(32)])
    p["h_wih"], p["h_bih"] = _dense(keys[4], 64, 4 * H)
    p["h_whh"], p["h_bhh"] = _dense(keys[5], H, 4 * H)
    # forecast LSTM (input 64)
    p["f_wih"], p["f_bih"] = _dense(keys[6], 64, 4 * H)
    p["f_whh"], p["f_bhh"] = _dense(keys[7], H, 4 * H)
    # transfer nets
    p["ct_w"], p["ct_b"] = _dense(keys[8], H, H)    # cell_transfer (linear)
    p["ht_w"], p["ht_b"] = _dense(keys[9], H, H)    # hidden_transfer (linear + tanh)
    # CMAL head: H -> 100 -> 12
    p["c1_w"], p["c1_b"] = _dense(keys[10], H, 100)
    p["c2_w"], p["c2_b"] = _dense(keys[11], 100, 12)
    return p


# ----------------------------------------------------------------------------
# Pure-JAX reference of the same forward pass (for correctness cross-check)
# ----------------------------------------------------------------------------
def forward_ref(params, x_s, x_h, x_f, hidden_dim, num_dist=3, eps=1e-5):
    p = params
    Th, B, _ = x_h.shape
    Tf = x_f.shape[0]
    H = hidden_dim

    s = jnp.tanh(x_s @ p["s1_w"] + p["s1_b"]) @ p["s2_w"] + p["s2_b"]

    def dyn_embd(x):
        return jnp.tanh(x @ p["d1_w"] + p["d1_b"]) @ p["d2_w"] + p["d2_b"]

    eh = dyn_embd(x_h)
    ef = dyn_embd(x_f)
    xh = jnp.concatenate([jnp.broadcast_to(s[None], (Th, B, 32)), eh], axis=-1)
    xf = jnp.concatenate([jnp.broadcast_to(s[None], (Tf, B, 32)), ef], axis=-1)

    def lstm(x_seq, w_ih, b_ih, w_hh, b_hh, h0, c0):
        def step(carry, x_t):
            h, c = carry
            g = x_t @ w_ih + b_ih + h @ w_hh + b_hh
            i = jax.nn.sigmoid(g[:, 0:H])
            f = jax.nn.sigmoid(g[:, H:2 * H])
            gg = jnp.tanh(g[:, 2 * H:3 * H])
            o = jax.nn.sigmoid(g[:, 3 * H:4 * H])
            c = f * c + i * gg
            h = o * jnp.tanh(c)
            return (h, c), h
        (hT, cT), hs = lax.scan(step, (h0, c0), x_seq)
        return hs, hT, cT

    zeros = jnp.zeros((B, H), jnp.float32)
    _, h_hind, c_hind = lstm(xh, p["h_wih"], p["h_bih"], p["h_whh"], p["h_bhh"], zeros, zeros)
    h0f = jnp.tanh(h_hind @ p["ht_w"] + p["ht_b"])
    c0f = c_hind @ p["ct_w"] + p["ct_b"]
    hf, _, _ = lstm(xf, p["f_wih"], p["f_bih"], p["f_whh"], p["f_bhh"], h0f, c0f)

    fo = jnp.transpose(hf, (1, 0, 2))                       # (B, Tf, H)
    hh = jnp.maximum(fo @ p["c1_w"] + p["c1_b"], 0.0)
    z = hh @ p["c2_w"] + p["c2_b"]
    k = num_dist
    b_lat = z[..., k:2 * k]
    sp = jnp.where(2.0 * b_lat > 20.0, b_lat, jax.nn.softplus(2.0 * b_lat) * 0.5)
    return {
        "mu": z[..., 0:k],
        "b": sp + eps,
        "tau": (1.0 - eps) * jax.nn.sigmoid(z[..., 2 * k:3 * k]) + eps,
        "pi": (1.0 - eps) * jax.nn.softmax(z[..., 3 * k:4 * k], axis=-1) + eps,
    }


# ----------------------------------------------------------------------------
if __name__ == "__main__":
    dynamic_input_dim = 8
    static_input_dim = 6
    hidden_dim = 32
    hindcast_length = 16
    forecast_horizon = 8
    batch = 4

    key = jax.random.PRNGKey(0)
    k_param, k_s, k_h, k_f = jax.random.split(key, 4)

    params = init_params(k_param, dynamic_input_dim, static_input_dim, hidden_dim)
    packed = jax.block_until_ready(prepare_params(params, hidden_dim))   # one-time packing

    x_s = jax.random.normal(k_s, (batch, static_input_dim), jnp.float32)
    x_h = jax.random.normal(k_h, (hindcast_length, batch, dynamic_input_dim), jnp.float32)
    x_f = jax.random.normal(k_f, (forecast_horizon, batch, dynamic_input_dim), jnp.float32)

    out = forward(packed, x_s, x_h, x_f, hidden_dim=hidden_dim)
    out = jax.block_until_ready(out)

    # shape / sanity checks (same semantics as the PyTorch module in eval mode)
    for name in ("mu", "b", "tau", "pi"):
        assert out[name].shape == (batch, forecast_horizon, 3), name
        assert bool(jnp.all(jnp.isfinite(out[name]))), name
    assert bool(jnp.all(out["b"] > 0))
    assert bool(jnp.all((out["tau"] > 0) & (out["tau"] < 1)))

    # cross-check against a pure-JAX reference of the same forward pass
    ref = forward_ref(params, x_s, x_h, x_f, hidden_dim)
    for name in ("mu", "b", "tau", "pi"):
        assert bool(jnp.allclose(out[name], ref[name], atol=2e-3, rtol=2e-3)), name

    print("KERNEL_OK")
</pallas_src>

<mosaic_0001>
module attributes {stable_mosaic.version = 11 : i64} {
  func.func @_fused_forward_kernel(%arg0: memref<8x8xf32, #tpu.memory_space<vmem>>, %arg1: memref<192x8xf32, #tpu.memory_space<vmem>>, %arg2: memref<208x128xf32, #tpu.memory_space<vmem>>, %arg3: memref<424x128xf32, #tpu.memory_space<vmem>>, %arg4: memref<64x12xf32, #tpu.memory_space<vmem>>) attributes {dimension_semantics = [], scalar_prefetch = 0 : i64, scratch_operands = 0 : i64, tpu.core_type = #tpu.core_type<tc>} {
    %c0 = arith.constant 0 : index
    %c0_0 = arith.constant 0 : index
    %0 = vector.load %arg0[%c0, %c0_0] : memref<8x8xf32, #tpu.memory_space<vmem>>, vector<8x8xf32>
    %c0_1 = arith.constant 0 : index
    %c0_2 = arith.constant 0 : index
    %1 = vector.load %arg3[%c0_1, %c0_2] : memref<424x128xf32, #tpu.memory_space<vmem>>, vector<8x80xf32>
    %c8 = arith.constant 8 : index
    %c0_3 = arith.constant 0 : index
    %2 = vector.load %arg3[%c8, %c0_3] : memref<424x128xf32, #tpu.memory_space<vmem>>, vector<1x80xf32>
    %cst = arith.constant dense<0.000000e+00> : vector<8x80xf32>
    %3 = tpu.matmul %0, %1, %cst {dimension_numbers = #tpu.dot_dimension_numbers<[1], [0], [0], [1], [0, 0, 1, 1], [], []>, precision = #tpu.contract_precision<fp32>} : vector<8x8xf32>, vector<8x80xf32>, vector<8x80xf32> -> vector<8x80xf32>
    %4 = vector.broadcast %2 : vector<1x80xf32> to vector<8x80xf32>
    %5 = arith.addf %3, %4 : vector<8x80xf32>
    %6 = math.tanh %5 : vector<8x80xf32>
    %c16 = arith.constant 16 : index
    %c0_4 = arith.constant 0 : index
    %7 = vector.load %arg3[%c16, %c0_4] : memref<424x128xf32, #tpu.memory_space<vmem>>, vector<80x32xf32>
    %c96 = arith.constant 96 : index
    %c0_5 = arith.constant 0 : index
    %8 = vector.load %arg3[%c96, %c0_5] : memref<424x128xf32, #tpu.memory_space<vmem>>, vector<1x32xf32>
    %cst_6 = arith.constant dense<0.000000e+00> : vector<8x32xf32>
    %9 = tpu.matmul %6, %7, %cst_6 {dimension_numbers = #tpu.dot_dimension_numbers<[1], [0], [0], [1], [0, 0, 1, 1], [], []>, precision = #tpu.contract_precision<fp32>} : vector<8x80xf32>, vector<80x32xf32>, vector<8x32xf32> -> vector<8x32xf32>
    %10 = vector.broadcast %8 : vector<1x32xf32> to vector<8x32xf32>
    %11 = arith.addf %9, %10 : vector<8x32xf32>
    %c0_7 = arith.constant 0 : index
    %c0_8 = arith.constant 0 : index
    %12 = vector.load %arg1[%c0_7, %c0_8] : memref<192x8xf32, #tpu.memory_space<vmem>>, vector<192x8xf32>
    %c104 = arith.constant 104 : index
    %c0_9 = arith.constant 0 : index
    %13 = vector.load %arg3[%c104, %c0_9] : memref<424x128xf32, #tpu.memory_space<vmem>>, vector<8x64xf32>
    %c112 = arith.constant 112 : index
    %c0_10 = arith.constant 0 : index
    %14 = vector.load %arg3[%c112, %c0_10] : memref<424x128xf32, #tpu.memory_space<vmem>>, vector<1x64xf32>
    %cst_11 = arith.constant dense<0.000000e+00> : vector<192x64xf32>
    %15 = tpu.matmul %12, %13, %cst_11 {dimension_numbers = #tpu.dot_dimension_numbers<[1], [0], [0], [1], [0, 0, 1, 1], [], []>, precision = #tpu.contract_precision<fp32>} : vector<192x8xf32>, vector<8x64xf32>, vector<192x64xf32> -> vector<192x64xf32>
    %16 = vector.broadcast %14 : vector<1x64xf32> to vector<192x64xf32>
    %17 = arith.addf %15, %16 : vector<192x64xf32>
    %18 = math.tanh %17 : vector<192x64xf32>
    %c120 = arith.constant 120 : index
    %c0_12 = arith.constant 0 : index
    %19 = vector.load %arg3[%c120, %c0_12] : memref<424x128xf32, #tpu.memory_space<vmem>>, vector<64x32xf32>
    %c184 = arith.constant 184 : index
    %c0_13 = arith.constant 0 : index
    %20 = vector.load %arg3[%c184, %c0_13] : memref<424x128xf32, #tpu.memory_space<vmem>>, vector<1x32xf32>
    %cst_14 = arith.constant dense<0.000000e+00> : vector<192x32xf32>
    %21 = tpu.matmul %18, %19, %cst_14 {dimension_numbers = #tpu.dot_dimension_numbers<[1], [0], [0], [1], [0, 0, 1, 1], [], []>, precision = #tpu.contract_precision<fp32>} : vector<192x64xf32>, vector<64x32xf32>, vector<192x32xf32> -> vector<192x32xf32>
    %22 = vector.broadcast %20 : vector<1x32xf32> to vector<192x32xf32>
    %23 = arith.addf %21, %22 : vector<192x32xf32>
    %24 = vector.extract_strided_slice %23 {offsets = [0, 0], sizes = [128, 32], strides = [1, 1]} : vector<192x32xf32> to vector<128x32xf32>
    %25 = vector.extract_strided_slice %23 {offsets = [128, 0], sizes = [64, 32], strides = [1, 1]} : vector<192x32xf32> to vector<64x32xf32>
    %c0_15 = arith.constant 0 : index
    %c0_16 = arith.constant 0 : index
    %26 = vector.load %arg2[%c0_15, %c0_16] : memref<208x128xf32, #tpu.memory_space<vmem>>, vector<32x128xf32>
    %c32 = arith.constant 32 : index
    %c0_17 = arith.constant 0 : index
    %27 = vector.load %arg2[%c32, %c0_17] : memref<208x128xf32, #tpu.memory_space<vmem>>, vector<32x128xf32>
    %c64 = arith.constant 64 : index
    %c0_18 = arith.constant 0 : index
    %28 = vector.load %arg2[%c64, %c0_18] : memref<208x128xf32, #tpu.memory_space<vmem>>, vector<32x128xf32>
    %c192 = arith.constant 192 : index
    %c0_19 = arith.constant 0 : index
    %29 = vector.load %arg2[%c192, %c0_19] : memref<208x128xf32, #tpu.memory_space<vmem>>, vector<1x128xf32>
    %c96_20 = arith.constant 96 : index
    %c0_21 = arith.constant 0 : index
    %30 = vector.load %arg2[%c96_20, %c0_21] : memref<208x128xf32, #tpu.memory_space<vmem>>, vector<32x128xf32>
    %c128 = arith.constant 128 : index
    %c0_22 = arith.constant 0 : index
    %31 = vector.load %arg2[%c128, %c0_22] : memref<208x128xf32, #tpu.memory_space<vmem>>, vector<32x128xf32>
    %c160 = arith.constant 160 : index
    %c0_23 = arith.constant 0 : index
    %32 = vector.load %arg2[%c160, %c0_23] : memref<208x128xf32, #tpu.memory_space<vmem>>, vector<32x128xf32>
    %c200 = arith.constant 200 : index
    %c0_24 = arith.constant 0 : index
    %33 = vector.load %arg2[%c200, %c0_24] : memref<208x128xf32, #tpu.memory_space<vmem>>, vector<1x128xf32>
    %cst_25 = arith.constant dense<0.000000e+00> : vector<8x128xf32>
    %34 = tpu.matmul %11, %26, %cst_25 {dimension_numbers = #tpu.dot_dimension_numbers<[1], [0], [0], [1], [0, 0, 1, 1], [], []>, precision = #tpu.contract_precision<fp32>} : vector<8x32xf32>, vector<32x128xf32>, vector<8x128xf32> -> vector<8x128xf32>
    %35 = vector.broadcast %29 : vector<1x128xf32> to vector<8x128xf32>
    %36 = arith.addf %34, %35 : vector<8x128xf32>
    %cst_26 = arith.constant dense<0.000000e+00> : vector<8x128xf32>
    %37 = tpu.matmul %11, %30, %cst_26 {dimension_numbers = #tpu.dot_dimension_numbers<[1], [0], [0], [1], [0, 0, 1, 1], [], []>, precision = #tpu.contract_precision<fp32>} : vector<8x32xf32>, vector<32x128xf32>, vector<8x128xf32> -> vector<8x128xf32>
    %38 = vector.broadcast %33 : vector<1x128xf32> to vector<8x128xf32>
    %39 = arith.addf %37, %38 : vector<8x128xf32>
    %cst_27 = arith.constant dense<0.000000e+00> : vector<128x128xf32>
    %40 = tpu.matmul %24, %27, %cst_27 {dimension_numbers = #tpu.dot_dimension_numbers<[1], [0], [0], [1], [0, 0, 1, 1], [], []>, precision = #tpu.contract_precision<fp32>} : vector<128x32xf32>, vector<32x128xf32>, vector<128x128xf32> -> vector<128x128xf32>
    %41 = vector.shape_cast %40 : vector<128x128xf32> to vector<16x8x128xf32>
    %42 = vector.shape_cast %36 : vector<8x128xf32> to vector<1x8x128xf32>
    %43 = vector.broadcast %42 : vector<1x8x128xf32> to vector<16x8x128xf32>
    %44 = arith.addf %41, %43 : vector<16x8x128xf32>
    %cst_28 = arith.constant dense<0.000000e+00> : vector<64x128xf32>
    %45 = tpu.matmul %25, %31, %cst_28 {dimension_numbers = #tpu.dot_dimension_numbers<[1], [0], [0], [1], [0, 0, 1, 1], [], []>, precision = #tpu.contract_precision<fp32>} : vector<64x32xf32>, vector<32x128xf32>, vector<64x128xf32> -> vector<64x128xf32>
    %46 = vector.shape_cast %45 : vector<64x128xf32> to vector<8x8x128xf32>
    %47 = vector.shape_cast %39 : vector<8x128xf32> to vector<1x8x128xf32>
    %48 = vector.broadcast %47 : vector<1x8x128xf32> to vector<8x8x128xf32>
    %49 = arith.addf %46, %48 : vector<8x8x128xf32>
    %50 = vector.extract_strided_slice %44 {offsets = [0, 0, 0], sizes = [1, 8, 128], strides = [1, 1, 1]} : vector<16x8x128xf32> to vector<1x8x128xf32>
    %51 = vector.shape_cast %50 : vector<1x8x128xf32> to vector<8x128xf32>
    %cst_29 = arith.constant 0.000000e+00 : f32
    %52 = vector.broadcast %cst_29 : f32 to vector<8x32xf32>
    %53 = arith.negf %51 : vector<8x128xf32>
    %54 = math.exp %53 : vector<8x128xf32>
    %cst_30 = arith.constant 1.000000e+00 : f32
    %55 = vector.broadcast %cst_30 : f32 to vector<8x128xf32>
    %56 = arith.addf %55, %54 : vector<8x128xf32>
    %57 = arith.divf %55, %56 : vector<8x128xf32>
    %58 = vector.extract_strided_slice %57 {offsets = [0, 0], sizes = [8, 32], strides = [1, 1]} : vector<8x128xf32> to vector<8x32xf32>
    %59 = vector.extract_strided_slice %57 {offsets = [0, 32], sizes = [8, 32], strides = [1, 1]} : vector<8x128xf32> to vector<8x32xf32>
    %60 = vector.extract_strided_slice %57 {offsets = [0, 64], sizes = [8, 32], strides = [1, 1]} : vector<8x128xf32> to vector<8x32xf32>
    %cst_31 = arith.constant 2.000000e+00 : f32
    %61 = vector.broadcast %cst_31 : f32 to vector<8x32xf32>
    %62 = arith.mulf %61, %60 : vector<8x32xf32>
    %cst_32 = arith.constant 1.000000e+00 : f32
    %63 = vector.broadcast %cst_32 : f32 to vector<8x32xf32>
    %64 = arith.subf %62, %63 : vector<8x32xf32>
    %65 = vector.extract_strided_slice %57 {offsets = [0, 96], sizes = [8, 32], strides = [1, 1]} : vector<8x128xf32> to vector<8x32xf32>
    %66 = arith.mulf %59, %52 : vector<8x32xf32>
    %67 = arith.mulf %58, %64 : vector<8x32xf32>
    %68 = arith.addf %66, %67 : vector<8x32xf32>
    %69 = math.tanh %68 : vector<8x32xf32>
    %70 = arith.mulf %65, %69 : vector<8x32xf32>
    %71 = vector.extract_strided_slice %44 {offsets = [1, 0, 0], sizes = [1, 8, 128], strides = [1, 1, 1]} : vector<16x8x128xf32> to vector<1x8x128xf32>
    %72 = vector.shape_cast %71 : vector<1x8x128xf32> to vector<8x128xf32>
    %cst_33 = arith.constant dense<0.000000e+00> : vector<8x128xf32>
    %73 = tpu.matmul %70, %28, %cst_33 {dimension_numbers = #tpu.dot_dimension_numbers<[1], [0], [0], [1], [0, 0, 1, 1], [], []>, precision = #tpu.contract_precision<fp32>} : vector<8x32xf32>, vector<32x128xf32>, vector<8x128xf32> -> vector<8x128xf32>
    %74 = arith.addf %72, %73 : vector<8x128xf32>
    %75 = arith.negf %74 : vector<8x128xf32>
    %76 = math.exp %75 : vector<8x128xf32>
    %cst_34 = arith.constant 1.000000e+00 : f32
    %77 = vector.broadcast %cst_34 : f32 to vector<8x128xf32>
    %78 = arith.addf %77, %76 : vector<8x128xf32>
    %79 = arith.divf %77, %78 : vector<8x128xf32>
    %80 = vector.extract_strided_slice %79 {offsets = [0, 0], sizes = [8, 32], strides = [1, 1]} : vector<8x128xf32> to vector<8x32xf32>
    %81 = vector.extract_strided_slice %79 {offsets = [0, 32], sizes = [8, 32], strides = [1, 1]} : vector<8x128xf32> to vector<8x32xf32>
    %82 = vector.extract_strided_slice %79 {offsets = [0, 64], sizes = [8, 32], strides = [1, 1]} : vector<8x128xf32> to vector<8x32xf32>
    %cst_35 = arith.constant 2.000000e+00 : f32
    %83 = vector.broadcast %cst_35 : f32 to vector<8x32xf32>
    %84 = arith.mulf %83, %82 : vector<8x32xf32>
    %cst_36 = arith.constant 1.000000e+00 : f32
    %85 = vector.broadcast %cst_36 : f32 to vector<8x32xf32>
    %86 = arith.subf %84, %85 : vector<8x32xf32>
    %87 = vector.extract_strided_slice %79 {offsets = [0, 96], sizes = [8, 32], strides = [1, 1]} : vector<8x128xf32> to vector<8x32xf32>
    %88 = arith.mulf %81, %68 : vector<8x32xf32>
    %89 = arith.mulf %80, %86 : vector<8x32xf32>
    %90 = arith.addf %88, %89 : vector<8x32xf32>
    %91 = math.tanh %90 : vector<8x32xf32>
    %92 = arith.mulf %87, %91 : vector<8x32xf32>
    %93 = vector.extract_strided_slice %44 {offsets = [2, 0, 0], sizes = [1, 8, 128], strides = [1, 1, 1]} : vector<16x8x128xf32> to vector<1x8x128xf32>
    %94 = vector.shape_cast %93 : vector<1x8x128xf32> to vector<8x128xf32>
    %cst_37 = arith.constant dense<0.000000e+00> : vector<8x128xf32>
    %95 = tpu.matmul %92, %28, %cst_37 {dimension_numbers = #tpu.dot_dimension_numbers<[1], [0], [0], [1], [0, 0, 1, 1], [], []>, precision = #tpu.contract_precision<fp32>} : vector<8x32xf32>, vector<32x128xf32>, vector<8x128xf32> -> vector<8x128xf32>
    %96 = arith.addf %94, %95 : vector<8x128xf32>
    %97 = arith.negf %96 : vector<8x128xf32>
    %98 = math.exp %97 : vector<8x128xf32>
    %cst_38 = arith.constant 1.000000e+00 : f32
    %99 = vector.broadcast %cst_38 : f32 to vector<8x128xf32>
    %100 = arith.addf %99, %98 : vector<8x128xf32>
    %101 = arith.divf %99, %100 : vector<8x128xf32>
    %102 = vector.extract_strided_slice %101 {offsets = [0, 0], sizes = [8, 32], strides = [1, 1]} : vector<8x128xf32> to vector<8x32xf32>
    %103 = vector.extract_strided_slice %101 {offsets = [0, 32], sizes = [8, 32], strides = [1, 1]} : vector<8x128xf32> to vector<8x32xf32>
    %104 = vector.extract_strided_slice %101 {offsets = [0, 64], sizes = [8, 32], strides = [1, 1]} : vector<8x128xf32> to vector<8x32xf32>
    %cst_39 = arith.constant 2.000000e+00 : f32
    %105 = vector.broadcast %cst_39 : f32 to vector<8x32xf32>
    %106 = arith.mulf %105, %104 : vector<8x32xf32>
    %cst_40 = arith.constant 1.000000e+00 : f32
    %107 = vector.broadcast %cst_40 : f32 to vector<8x32xf32>
    %108 = arith.subf %106, %107 : vector<8x32xf32>
    %109 = vector.extract_strided_slice %101 {offsets = [0, 96], sizes = [8, 32], strides = [1, 1]} : vector<8x128xf32> to vector<8x32xf32>
    %110 = arith.mulf %103, %90 : vector<8x32xf32>
    %111 = arith.mulf %102, %108 : vector<8x32xf32>
    %112 = arith.addf %110, %111 : vector<8x32xf32>
    %113 = math.tanh %112 : vector<8x32xf32>
    %114 = arith.mulf %109, %113 : vector<8x32xf32>
    %115 = vector.extract_strided_slice %44 {offsets = [3, 0, 0], sizes = [1, 8, 128], strides = [1, 1, 1]} : vector<16x8x128xf32> to vector<1x8x128xf32>
    %116 = vector.shape_cast %115 : vector<1x8x128xf32> to vector<8x128xf32>
    %cst_41 = arith.constant dense<0.000000e+00> : vector<8x128xf32>
    %117 = tpu.matmul %114, %28, %cst_41 {dimension_numbers = #tpu.dot_dimension_numbers<[1], [0], [0], [1], [0, 0, 1, 1], [], []>, precision = #tpu.contract_precision<fp32>} : vector<8x32xf32>, vector<32x128xf32>, vector<8x128xf32> -> vector<8x128xf32>
    %118 = arith.addf %116, %117 : vector<8x128xf32>
    %119 = arith.negf %118 : vector<8x128xf32>
    %120 = math.exp %119 : vector<8x128xf32>
    %cst_42 = arith.constant 1.000000e+00 : f32
    %121 = vector.broadcast %cst_42 : f32 to vector<8x128xf32>
    %122 = arith.addf %121, %120 : vector<8x128xf32>
    %123 = arith.divf %121, %122 : vector<8x128xf32>
    %124 = vector.extract_strided_slice %123 {offsets = [0, 0], sizes = [8, 32], strides = [1, 1]} : vector<8x128xf32> to vector<8x32xf32>
    %125 = vector.extract_strided_slice %123 {offsets = [0, 32], sizes = [8, 32], strides = [1, 1]} : vector<8x128xf32> to vector<8x32xf32>
    %126 = vector.extract_strided_slice %123 {offsets = [0, 64], sizes = [8, 32], strides = [1, 1]} : vector<8x128xf32> to vector<8x32xf32>
    %cst_43 = arith.constant 2.000000e+00 : f32
    %127 = vector.broadcast %cst_43 : f32 to vector<8x32xf32>
    %128 = arith.mulf %127, %126 : vector<8x32xf32>
    %cst_44 = arith.constant 1.000000e+00 : f32
    %129 = vector.broadcast %cst_44 : f32 to vector<8x32xf32>
    %130 = arith.subf %128, %129 : vector<8x32xf32>
    %131 = vector.extract_strided_slice %123 {offsets = [0, 96], sizes = [8, 32], strides = [1, 1]} : vector<8x128xf32> to vector<8x32xf32>
    %132 = arith.mulf %125, %112 : vector<8x32xf32>
    %133 = arith.mulf %124, %130 : vector<8x32xf32>
    %134 = arith.addf %132, %133 : vector<8x32xf32>
    %135 = math.tanh %134 : vector<8x32xf32>
    %136 = arith.mulf %131, %135 : vector<8x32xf32>
    %137 = vector.extract_strided_slice %44 {offsets = [4, 0, 0], sizes = [1, 8, 128], strides = [1, 1, 1]} : vector<16x8x128xf32> to vector<1x8x128xf32>
    %138 = vector.shape_cast %137 : vector<1x8x128xf32> to vector<8x128xf32>
    %cst_45 = arith.constant dense<0.000000e+00> : vector<8x128xf32>
    %139 = tpu.matmul %136, %28, %cst_45 {dimension_numbers = #tpu.dot_dimension_numbers<[1], [0], [0], [1], [0, 0, 1, 1], [], []>, precision = #tpu.contract_precision<fp32>} : vector<8x32xf32>, vector<32x128xf32>, vector<8x128xf32> -> vector<8x128xf32>
    %140 = arith.addf %138, %139 : vector<8x128xf32>
    %141 = arith.negf %140 : vector<8x128xf32>
    %142 = math.exp %141 : vector<8x128xf32>
    %cst_46 = arith.constant 1.000000e+00 : f32
    %143 = vector.broadcast %cst_46 : f32 to vector<8x128xf32>
    %144 = arith.addf %143, %142 : vector<8x128xf32>
    %145 = arith.divf %143, %144 : vector<8x128xf32>
    %146 = vector.extract_strided_slice %145 {offsets = [0, 0], sizes = [8, 32], strides = [1, 1]} : vector<8x128xf32> to vector<8x32xf32>
    %147 = vector.extract_strided_slice %145 {offsets = [0, 32], sizes = [8, 32], strides = [1, 1]} : vector<8x128xf32> to vector<8x32xf32>
    %148 = vector.extract_strided_slice %145 {offsets = [0, 64], sizes = [8, 32], strides = [1, 1]} : vector<8x128xf32> to vector<8x32xf32>
    %cst_47 = arith.constant 2.000000e+00 : f32
    %149 = vector.broadcast %cst_47 : f32 to vector<8x32xf32>
    %150 = arith.mulf %149, %148 : vector<8x32xf32>
    %cst_48 = arith.constant 1.000000e+00 : f32
    %151 = vector.broadcast %cst_48 : f32 to vector<8x32xf32>
    %152 = arith.subf %150, %151 : vector<8x32xf32>
    %153 = vector.extract_strided_slice %145 {offsets = [0, 96], sizes = [8, 32], strides = [1, 1]} : vector<8x128xf32> to vector<8x32xf32>
    %154 = arith.mulf %147, %134 : vector<8x32xf32>
    %155 = arith.mulf %146, %152 : vector<8x32xf32>
    %156 = arith.addf %154, %155 : vector<8x32xf32>
    %157 = math.tanh %156 : vector<8x32xf32>
    %158 = arith.mulf %153, %157 : vector<8x32xf32>
    %159 = vector.extract_strided_slice %44 {offsets = [5, 0, 0], sizes = [1, 8, 128], strides = [1, 1, 1]} : vector<16x8x128xf32> to vector<1x8x128xf32>
    %160 = vector.shape_cast %159 : vector<1x8x128xf32> to vector<8x128xf32>
    %cst_49 = arith.constant dense<0.000000e+00> : vector<8x128xf32>
    %161 = tpu.matmul %158, %28, %cst_49 {dimension_numbers = #tpu.dot_dimension_numbers<[1], [0], [0], [1], [0, 0, 1, 1], [], []>, precision = #tpu.contract_precision<fp32>} : vector<8x32xf32>, vector<32x128xf32>, vector<8x128xf32> -> vector<8x128xf32>
    %162 = arith.addf %160, %161 : vector<8x128xf32>
    %163 = arith.negf %162 : vector<8x128xf32>
    %164 = math.exp %163 : vector<8x128xf32>
    %cst_50 = arith.constant 1.000000e+00 : f32
    %165 = vector.broadcast %cst_50 : f32 to vector<8x128xf32>
    %166 = arith.addf %165, %164 : vector<8x128xf32>
    %167 = arith.divf %165, %166 : vector<8x128xf32>
    %168 = vector.extract_strided_slice %167 {offsets = [0, 0], sizes = [8, 32], strides = [1, 1]} : vector<8x128xf32> to vector<8x32xf32>
    %169 = vector.extract_strided_slice %167 {offsets = [0, 32], sizes = [8, 32], strides = [1, 1]} : vector<8x128xf32> to vector<8x32xf32>
    %170 = vector.extract_strided_slice %167 {offsets = [0, 64], sizes = [8, 32], strides = [1, 1]} : vector<8x128xf32> to vector<8x32xf32>
    %cst_51 = arith.constant 2.000000e+00 : f32
    %171 = vector.broadcast %cst_51 : f32 to vector<8x32xf32>
    %172 = arith.mulf %171, %170 : vector<8x32xf32>
    %cst_52 = arith.constant 1.000000e+00 : f32
    %173 = vector.broadcast %cst_52 : f32 to vector<8x32xf32>
    %174 = arith.subf %172, %173 : vector<8x32xf32>
    %175 = vector.extract_strided_slice %167 {offsets = [0, 96], sizes = [8, 32], strides = [1, 1]} : vector<8x128xf32> to vector<8x32xf32>
    %176 = arith.mulf %169, %156 : vector<8x32xf32>
    %177 = arith.mulf %168, %174 : vector<8x32xf32>
    %178 = arith.addf %176, %177 : vector<8x32xf32>
    %179 = math.tanh %178 : vector<8x32xf32>
    %180 = arith.mulf %175, %179 : vector<8x32xf32>
    %181 = vector.extract_strided_slice %44 {offsets = [6, 0, 0], sizes = [1, 8, 128], strides = [1, 1, 1]} : vector<16x8x128xf32> to vector<1x8x128xf32>
    %182 = vector.shape_cast %181 : vector<1x8x128xf32> to vector<8x128xf32>
    %cst_53 = arith.constant dense<0.000000e+00> : vector<8x128xf32>
    %183 = tpu.matmul %180, %28, %cst_53 {dimension_numbers = #tpu.dot_dimension_numbers<[1], [0], [0], [1], [0, 0, 1, 1], [], []>, precision = #tpu.contract_precision<fp32>} : vector<8x32xf32>, vector<32x128xf32>, vector<8x128xf32> -> vector<8x128xf32>
    %184 = arith.addf %182, %183 : vector<8x128xf32>
    %185 = arith.negf %184 : vector<8x128xf32>
    %186 = math.exp %185 : vector<8x128xf32>
    %cst_54 = arith.constant 1.000000e+00 : f32
    %187 = vector.broadcast %cst_54 : f32 to vector<8x128xf32>
    %188 = arith.addf %187, %186 : vector<8x128xf32>
    %189 = arith.divf %187, %188 : vector<8x128xf32>
    %190 = vector.extract_strided_slice %189 {offsets = [0, 0], sizes = [8, 32], strides = [1, 1]} : vector<8x128xf32> to vector<8x32xf32>
    %191 = vector.extract_strided_slice %189 {offsets = [0, 32], sizes = [8, 32], strides = [1, 1]} : vector<8x128xf32> to vector<8x32xf32>
    %192 = vector.extract_strided_slice %189 {offsets = [0, 64], sizes = [8, 32], strides = [1, 1]} : vector<8x128xf32> to vector<8x32xf32>
    %cst_55 = arith.constant 2.000000e+00 : f32
    %193 = vector.broadcast %cst_55 : f32 to vector<8x32xf32>
    %194 = arith.mulf %193, %192 : vector<8x32xf32>
    %cst_56 = arith.constant 1.000000e+00 : f32
    %195 = vector.broadcast %cst_56 : f32 to vector<8x32xf32>
    %196 = arith.subf %194, %195 : vector<8x32xf32>
    %197 = vector.extract_strided_slice %189 {offsets = [0, 96], sizes = [8, 32], strides = [1, 1]} : vector<8x128xf32> to vector<8x32xf32>
    %198 = arith.mulf %191, %178 : vector<8x32xf32>
    %199 = arith.mulf %190, %196 : vector<8x32xf32>
    %200 = arith.addf %198, %199 : vector<8x32xf32>
    %201 = math.tanh %200 : vector<8x32xf32>
    %202 = arith.mulf %197, %201 : vector<8x32xf32>
    %203 = vector.extract_strided_slice %44 {offsets = [7, 0, 0], sizes = [1, 8, 128], strides = [1, 1, 1]} : vector<16x8x128xf32> to vector<1x8x128xf32>
    %204 = vector.shape_cast %203 : vector<1x8x128xf32> to vector<8x128xf32>
    %cst_57 = arith.constant dense<0.000000e+00> : vector<8x128xf32>
    %205 = tpu.matmul %202, %28, %cst_57 {dimension_numbers = #tpu.dot_dimension_numbers<[1], [0], [0], [1], [0, 0, 1, 1], [], []>, precision = #tpu.contract_precision<fp32>} : vector<8x32xf32>, vector<32x128xf32>, vector<8x128xf32> -> vector<8x128xf32>
    %206 = arith.addf %204, %205 : vector<8x128xf32>
    %207 = arith.negf %206 : vector<8x128xf32>
    %208 = math.exp %207 : vector<8x128xf32>
    %cst_58 = arith.constant 1.000000e+00 : f32
    %209 = vector.broadcast %cst_58 : f32 to vector<8x128xf32>
    %210 = arith.addf %209, %208 : vector<8x128xf32>
    %211 = arith.divf %209, %210 : vector<8x128xf32>
    %212 = vector.extract_strided_slice %211 {offsets = [0, 0], sizes = [8, 32], strides = [1, 1]} : vector<8x128xf32> to vector<8x32xf32>
    %213 = vector.extract_strided_slice %211 {offsets = [0, 32], sizes = [8, 32], strides = [1, 1]} : vector<8x128xf32> to vector<8x32xf32>
    %214 = vector.extract_strided_slice %211 {offsets = [0, 64], sizes = [8, 32], strides = [1, 1]} : vector<8x128xf32> to vector<8x32xf32>
    %cst_59 = arith.constant 2.000000e+00 : f32
    %215 = vector.broadcast %cst_59 : f32 to vector<8x32xf32>
    %216 = arith.mulf %215, %214 : vector<8x32xf32>
    %cst_60 = arith.constant 1.000000e+00 : f32
    %217 = vector.broadcast %cst_60 : f32 to vector<8x32xf32>
    %218 = arith.subf %216, %217 : vector<8x32xf32>
    %219 = vector.extract_strided_slice %211 {offsets = [0, 96], sizes = [8, 32], strides = [1, 1]} : vector<8x128xf32> to vector<8x32xf32>
    %220 = arith.mulf %213, %200 : vector<8x32xf32>
    %221 = arith.mulf %212, %218 : vector<8x32xf32>
    %222 = arith.addf %220, %221 : vector<8x32xf32>
    %223 = math.tanh %222 : vector<8x32xf32>
    %224 = arith.mulf %219, %223 : vector<8x32xf32>
    %225 = vector.extract_strided_slice %44 {offsets = [8, 0, 0], sizes = [1, 8, 128], strides = [1, 1, 1]} : vector<16x8x128xf32> to vector<1x8x128xf32>
    %226 = vector.shape_cast %225 : vector<1x8x128xf32> to vector<8x128xf32>
    %cst_61 = arith.constant dense<0.000000e+00> : vector<8x128xf32>
    %227 = tpu.matmul %224, %28, %cst_61 {dimension_numbers = #tpu.dot_dimension_numbers<[1], [0], [0], [1], [0, 0, 1, 1], [], []>, precision = #tpu.contract_precision<fp32>} : vector<8x32xf32>, vector<32x128xf32>, vector<8x128xf32> -> vector<8x128xf32>
    %228 = arith.addf %226, %227 : vector<8x128xf32>
    %229 = arith.negf %228 : vector<8x128xf32>
    %230 = math.exp %229 : vector<8x128xf32>
    %cst_62 = arith.constant 1.000000e+00 : f32
    %231 = vector.broadcast %cst_62 : f32 to vector<8x128xf32>
    %232 = arith.addf %231, %230 : vector<8x128xf32>
    %233 = arith.divf %231, %232 : vector<8x128xf32>
    %234 = vector.extract_strided_slice %233 {offsets = [0, 0], sizes = [8, 32], strides = [1, 1]} : vector<8x128xf32> to vector<8x32xf32>
    %235 = vector.extract_strided_slice %233 {offsets = [0, 32], sizes = [8, 32], strides = [1, 1]} : vector<8x128xf32> to vector<8x32xf32>
    %236 = vector.extract_strided_slice %233 {offsets = [0, 64], sizes = [8, 32], strides = [1, 1]} : vector<8x128xf32> to vector<8x32xf32>
    %cst_63 = arith.constant 2.000000e+00 : f32
    %237 = vector.broadcast %cst_63 : f32 to vector<8x32xf32>
    %238 = arith.mulf %237, %236 : vector<8x32xf32>
    %cst_64 = arith.constant 1.000000e+00 : f32
    %239 = vector.broadcast %cst_64 : f32 to vector<8x32xf32>
    %240 = arith.subf %238, %239 : vector<8x32xf32>
    %241 = vector.extract_strided_slice %233 {offsets = [0, 96], sizes = [8, 32], strides = [1, 1]} : vector<8x128xf32> to vector<8x32xf32>
    %242 = arith.mulf %235, %222 : vector<8x32xf32>
    %243 = arith.mulf %234, %240 : vector<8x32xf32>
    %244 = arith.addf %242, %243 : vector<8x32xf32>
    %245 = math.tanh %244 : vector<8x32xf32>
    %246 = arith.mulf %241, %245 : vector<8x32xf32>
    %247 = vector.extract_strided_slice %44 {offsets = [9, 0, 0], sizes = [1, 8, 128], strides = [1, 1, 1]} : vector<16x8x128xf32> to vector<1x8x128xf32>
    %248 = vector.shape_cast %247 : vector<1x8x128xf32> to vector<8x128xf32>
    %cst_65 = arith.constant dense<0.000000e+00> : vector<8x128xf32>
    %249 = tpu.matmul %246, %28, %cst_65 {dimension_numbers = #tpu.dot_dimension_numbers<[1], [0], [0], [1], [0, 0, 1, 1], [], []>, precision = #tpu.contract_precision<fp32>} : vector<8x32xf32>, vector<32x128xf32>, vector<8x128xf32> -> vector<8x128xf32>
    %250 = arith.addf %248, %249 : vector<8x128xf32>
    %251 = arith.negf %250 : vector<8x128xf32>
    %252 = math.exp %251 : vector<8x128xf32>
    %cst_66 = arith.constant 1.000000e+00 : f32
    %253 = vector.broadcast %cst_66 : f32 to vector<8x128xf32>
    %254 = arith.addf %253, %252 : vector<8x128xf32>
    %255 = arith.divf %253, %254 : vector<8x128xf32>
    %256 = vector.extract_strided_slice %255 {offsets = [0, 0], sizes = [8, 32], strides = [1, 1]} : vector<8x128xf32> to vector<8x32xf32>
    %257 = vector.extract_strided_slice %255 {offsets = [0, 32], sizes = [8, 32], strides = [1, 1]} : vector<8x128xf32> to vector<8x32xf32>
    %258 = vector.extract_strided_slice %255 {offsets = [0, 64], sizes = [8, 32], strides = [1, 1]} : vector<8x128xf32> to vector<8x32xf32>
    %cst_67 = arith.constant 2.000000e+00 : f32
    %259 = vector.broadcast %cst_67 : f32 to vector<8x32xf32>
    %260 = arith.mulf %259, %258 : vector<8x32xf32>
    %cst_68 = arith.constant 1.000000e+00 : f32
    %261 = vector.broadcast %cst_68 : f32 to vector<8x32xf32>
    %262 = arith.subf %260, %261 : vector<8x32xf32>
    %263 = vector.extract_strided_slice %255 {offsets = [0, 96], sizes = [8, 32], strides = [1, 1]} : vector<8x128xf32> to vector<8x32xf32>
    %264 = arith.mulf %257, %244 : vector<8x32xf32>
    %265 = arith.mulf %256, %262 : vector<8x32xf32>
    %266 = arith.addf %264, %265 : vector<8x32xf32>
    %267 = math.tanh %266 : vector<8x32xf32>
    %268 = arith.mulf %263, %267 : vector<8x32xf32>
    %269 = vector.extract_strided_slice %44 {offsets = [10, 0, 0], sizes = [1, 8, 128], strides = [1, 1, 1]} : vector<16x8x128xf32> to vector<1x8x128xf32>
    %270 = vector.shape_cast %269 : vector<1x8x128xf32> to vector<8x128xf32>
    %cst_69 = arith.constant dense<0.000000e+00> : vector<8x128xf32>
    %271 = tpu.matmul %268, %28, %cst_69 {dimension_numbers = #tpu.dot_dimension_numbers<[1], [0], [0], [1], [0, 0, 1, 1], [], []>, precision = #tpu.contract_precision<fp32>} : vector<8x32xf32>, vector<32x128xf32>, vector<8x128xf32> -> vector<8x128xf32>
    %272 = arith.addf %270, %271 : vector<8x128xf32>
    %273 = arith.negf %272 : vector<8x128xf32>
    %274 = math.exp %273 : vector<8x128xf32>
    %cst_70 = arith.constant 1.000000e+00 : f32
    %275 = vector.broadcast %cst_70 : f32 to vector<8x128xf32>
    %276 = arith.addf %275, %274 : vector<8x128xf32>
    %277 = arith.divf %275, %276 : vector<8x128xf32>
    %278 = vector.extract_strided_slice %277 {offsets = [0, 0], sizes = [8, 32], strides = [1, 1]} : vector<8x128xf32> to vector<8x32xf32>
    %279 = vector.extract_strided_slice %277 {offsets = [0, 32], sizes = [8, 32], strides = [1, 1]} : vector<8x128xf32> to vector<8x32xf32>
    %280 = vector.extract_strided_slice %277 {offsets = [0, 64], sizes = [8, 32], strides = [1, 1]} : vector<8x128xf32> to vector<8x32xf32>
    %cst_71 = arith.constant 2.000000e+00 : f32
    %281 = vector.broadcast %cst_71 : f32 to vector<8x32xf32>
    %282 = arith.mulf %281, %280 : vector<8x32xf32>
    %cst_72 = arith.constant 1.000000e+00 : f32
    %283 = vector.broadcast %cst_72 : f32 to vector<8x32xf32>
    %284 = arith.subf %282, %283 : vector<8x32xf32>
    %285 = vector.extract_strided_slice %277 {offsets = [0, 96], sizes = [8, 32], strides = [1, 1]} : vector<8x128xf32> to vector<8x32xf32>
    %286 = arith.mulf %279, %266 : vector<8x32xf32>
    %287 = arith.mulf %278, %284 : vector<8x32xf32>
    %288 = arith.addf %286, %287 : vector<8x32xf32>
    %289 = math.tanh %288 : vector<8x32xf32>
    %290 = arith.mulf %285, %289 : vector<8x32xf32>
    %291 = vector.extract_strided_slice %44 {offsets = [11, 0, 0], sizes = [1, 8, 128], strides = [1, 1, 1]} : vector<16x8x128xf32> to vector<1x8x128xf32>
    %292 = vector.shape_cast %291 : vector<1x8x128xf32> to vector<8x128xf32>
    %cst_73 = arith.constant dense<0.000000e+00> : vector<8x128xf32>
    %293 = tpu.matmul %290, %28, %cst_73 {dimension_numbers = #tpu.dot_dimension_numbers<[1], [0], [0], [1], [0, 0, 1, 1], [], []>, precision = #tpu.contract_precision<fp32>} : vector<8x32xf32>, vector<32x128xf32>, vector<8x128xf32> -> vector<8x128xf32>
    %294 = arith.addf %292, %293 : vector<8x128xf32>
    %295 = arith.negf %294 : vector<8x128xf32>
    %296 = math.exp %295 : vector<8x128xf32>
    %cst_74 = arith.constant 1.000000e+00 : f32
    %297 = vector.broadcast %cst_74 : f32 to vector<8x128xf32>
    %298 = arith.addf %297, %296 : vector<8x128xf32>
    %299 = arith.divf %297, %298 : vector<8x128xf32>
    %300 = vector.extract_strided_slice %299 {offsets = [0, 0], sizes = [8, 32], strides = [1, 1]} : vector<8x128xf32> to vector<8x32xf32>
    %301 = vector.extract_strided_slice %299 {offsets = [0, 32], sizes = [8, 32], strides = [1, 1]} : vector<8x128xf32> to vector<8x32xf32>
    %302 = vector.extract_strided_slice %299 {offsets = [0, 64], sizes = [8, 32], strides = [1, 1]} : vector<8x128xf32> to vector<8x32xf32>
    %cst_75 = arith.constant 2.000000e+00 : f32
    %303 = vector.broadcast %cst_75 : f32 to vector<8x32xf32>
    %304 = arith.mulf %303, %302 : vector<8x32xf32>
    %cst_76 = arith.constant 1.000000e+00 : f32
    %305 = vector.broadcast %cst_76 : f32 to vector<8x32xf32>
    %306 = arith.subf %304, %305 : vector<8x32xf32>
    %307 = vector.extract_strided_slice %299 {offsets = [0, 96], sizes = [8, 32], strides = [1, 1]} : vector<8x128xf32> to vector<8x32xf32>
    %308 = arith.mulf %301, %288 : vector<8x32xf32>
    %309 = arith.mulf %300, %306 : vector<8x32xf32>
    %310 = arith.addf %308, %309 : vector<8x32xf32>
    %311 = math.tanh %310 : vector<8x32xf32>
    %312 = arith.mulf %307, %311 : vector<8x32xf32>
    %313 = vector.extract_strided_slice %44 {offsets = [12, 0, 0], sizes = [1, 8, 128], strides = [1, 1, 1]} : vector<16x8x128xf32> to vector<1x8x128xf32>
    %314 = vector.shape_cast %313 : vector<1x8x128xf32> to vector<8x128xf32>
    %cst_77 = arith.constant dense<0.000000e+00> : vector<8x128xf32>
    %315 = tpu.matmul %312, %28, %cst_77 {dimension_numbers = #tpu.dot_dimension_numbers<[1], [0], [0], [1], [0, 0, 1, 1], [], []>, precision = #tpu.contract_precision<fp32>} : vector<8x32xf32>, vector<32x128xf32>, vector<8x128xf32> -> vector<8x128xf32>
    %316 = arith.addf %314, %315 : vector<8x128xf32>
    %317 = arith.negf %316 : vector<8x128xf32>
    %318 = math.exp %317 : vector<8x128xf32>
    %cst_78 = arith.constant 1.000000e+00 : f32
    %319 = vector.broadcast %cst_78 : f32 to vector<8x128xf32>
    %320 = arith.addf %319, %318 : vector<8x128xf32>
    %321 = arith.divf %319, %320 : vector<8x128xf32>
    %322 = vector.extract_strided_slice %321 {offsets = [0, 0], sizes = [8, 32], strides = [1, 1]} : vector<8x128xf32> to vector<8x32xf32>
    %323 = vector.extract_strided_slice %321 {offsets = [0, 32], sizes = [8, 32], strides = [1, 1]} : vector<8x128xf32> to vector<8x32xf32>
    %324 = vector.extract_strided_slice %321 {offsets = [0, 64], sizes = [8, 32], strides = [1, 1]} : vector<8x128xf32> to vector<8x32xf32>
    %cst_79 = arith.constant 2.000000e+00 : f32
    %325 = vector.broadcast %cst_79 : f32 to vector<8x32xf32>
    %326 = arith.mulf %325, %324 : vector<8x32xf32>
    %cst_80 = arith.constant 1.000000e+00 : f32
    %327 = vector.broadcast %cst_80 : f32 to vector<8x32xf32>
    %328 = arith.subf %326, %327 : vector<8x32xf32>
    %329 = vector.extract_strided_slice %321 {offsets = [0, 96], sizes = [8, 32], strides = [1, 1]} : vector<8x128xf32> to vector<8x32xf32>
    %330 = arith.mulf %323, %310 : vector<8x32xf32>
    %331 = arith.mulf %322, %328 : vector<8x32xf32>
    %332 = arith.addf %330, %331 : vector<8x32xf32>
    %333 = math.tanh %332 : vector<8x32xf32>
    %334 = arith.mulf %329, %333 : vector<8x32xf32>
    %335 = vector.extract_strided_slice %44 {offsets = [13, 0, 0], sizes = [1, 8, 128], strides = [1, 1, 1]} : vector<16x8x128xf32> to vector<1x8x128xf32>
    %336 = vector.shape_cast %335 : vector<1x8x128xf32> to vector<8x128xf32>
    %cst_81 = arith.constant dense<0.000000e+00> : vector<8x128xf32>
    %337 = tpu.matmul %334, %28, %cst_81 {dimension_numbers = #tpu.dot_dimension_numbers<[1], [0], [0], [1], [0, 0, 1, 1], [], []>, precision = #tpu.contract_precision<fp32>} : vector<8x32xf32>, vector<32x128xf32>, vector<8x128xf32> -> vector<8x128xf32>
    %338 = arith.addf %336, %337 : vector<8x128xf32>
    %339 = arith.negf %338 : vector<8x128xf32>
    %340 = math.exp %339 : vector<8x128xf32>
    %cst_82 = arith.constant 1.000000e+00 : f32
    %341 = vector.broadcast %cst_82 : f32 to vector<8x128xf32>
    %342 = arith.addf %341, %340 : vector<8x128xf32>
    %343 = arith.divf %341, %342 : vector<8x128xf32>
    %344 = vector.extract_strided_slice %343 {offsets = [0, 0], sizes = [8, 32], strides = [1, 1]} : vector<8x128xf32> to vector<8x32xf32>
    %345 = vector.extract_strided_slice %343 {offsets = [0, 32], sizes = [8, 32], strides = [1, 1]} : vector<8x128xf32> to vector<8x32xf32>
    %346 = vector.extract_strided_slice %343 {offsets = [0, 64], sizes = [8, 32], strides = [1, 1]} : vector<8x128xf32> to vector<8x32xf32>
    %cst_83 = arith.constant 2.000000e+00 : f32
    %347 = vector.broadcast %cst_83 : f32 to vector<8x32xf32>
    %348 = arith.mulf %347, %346 : vector<8x32xf32>
    %cst_84 = arith.constant 1.000000e+00 : f32
    %349 = vector.broadcast %cst_84 : f32 to vector<8x32xf32>
    %350 = arith.subf %348, %349 : vector<8x32xf32>
    %351 = vector.extract_strided_slice %343 {offsets = [0, 96], sizes = [8, 32], strides = [1, 1]} : vector<8x128xf32> to vector<8x32xf32>
    %352 = arith.mulf %345, %332 : vector<8x32xf32>
    %353 = arith.mulf %344, %350 : vector<8x32xf32>
    %354 = arith.addf %352, %353 : vector<8x32xf32>
    %355 = math.tanh %354 : vector<8x32xf32>
    %356 = arith.mulf %351, %355 : vector<8x32xf32>
    %357 = vector.extract_strided_slice %44 {offsets = [14, 0, 0], sizes = [1, 8, 128], strides = [1, 1, 1]} : vector<16x8x128xf32> to vector<1x8x128xf32>
    %358 = vector.shape_cast %357 : vector<1x8x128xf32> to vector<8x128xf32>
    %cst_85 = arith.constant dense<0.000000e+00> : vector<8x128xf32>
    %359 = tpu.matmul %356, %28, %cst_85 {dimension_numbers = #tpu.dot_dimension_numbers<[1], [0], [0], [1], [0, 0, 1, 1], [], []>, precision = #tpu.contract_precision<fp32>} : vector<8x32xf32>, vector<32x128xf32>, vector<8x128xf32> -> vector<8x128xf32>
    %360 = arith.addf %358, %359 : vector<8x128xf32>
    %361 = arith.negf %360 : vector<8x128xf32>
    %362 = math.exp %361 : vector<8x128xf32>
    %cst_86 = arith.constant 1.000000e+00 : f32
    %363 = vector.broadcast %cst_86 : f32 to vector<8x128xf32>
    %364 = arith.addf %363, %362 : vector<8x128xf32>
    %365 = arith.divf %363, %364 : vector<8x128xf32>
    %366 = vector.extract_strided_slice %365 {offsets = [0, 0], sizes = [8, 32], strides = [1, 1]} : vector<8x128xf32> to vector<8x32xf32>
    %367 = vector.extract_strided_slice %365 {offsets = [0, 32], sizes = [8, 32], strides = [1, 1]} : vector<8x128xf32> to vector<8x32xf32>
    %368 = vector.extract_strided_slice %365 {offsets = [0, 64], sizes = [8, 32], strides = [1, 1]} : vector<8x128xf32> to vector<8x32xf32>
    %cst_87 = arith.constant 2.000000e+00 : f32
    %369 = vector.broadcast %cst_87 : f32 to vector<8x32xf32>
    %370 = arith.mulf %369, %368 : vector<8x32xf32>
    %cst_88 = arith.constant 1.000000e+00 : f32
    %371 = vector.broadcast %cst_88 : f32 to vector<8x32xf32>
    %372 = arith.subf %370, %371 : vector<8x32xf32>
    %373 = vector.extract_strided_slice %365 {offsets = [0, 96], sizes = [8, 32], strides = [1, 1]} : vector<8x128xf32> to vector<8x32xf32>
    %374 = arith.mulf %367, %354 : vector<8x32xf32>
    %375 = arith.mulf %366, %372 : vector<8x32xf32>
    %376 = arith.addf %374, %375 : vector<8x32xf32>
    %377 = math.tanh %376 : vector<8x32xf32>
    %378 = arith.mulf %373, %377 : vector<8x32xf32>
    %379 = vector.extract_strided_slice %44 {offsets = [15, 0, 0], sizes = [1, 8, 128], strides = [1, 1, 1]} : vector<16x8x128xf32> to vector<1x8x128xf32>
    %380 = vector.shape_cast %379 : vector<1x8x128xf32> to vector<8x128xf32>
    %cst_89 = arith.constant dense<0.000000e+00> : vector<8x128xf32>
    %381 = tpu.matmul %378, %28, %cst_89 {dimension_numbers = #tpu.dot_dimension_numbers<[1], [0], [0], [1], [0, 0, 1, 1], [], []>, precision = #tpu.contract_precision<fp32>} : vector<8x32xf32>, vector<32x128xf32>, vector<8x128xf32> -> vector<8x128xf32>
    %382 = arith.addf %380, %381 : vector<8x128xf32>
    %383 = arith.negf %382 : vector<8x128xf32>
    %384 = math.exp %383 : vector<8x128xf32>
    %cst_90 = arith.constant 1.000000e+00 : f32
    %385 = vector.broadcast %cst_90 : f32 to vector<8x128xf32>
    %386 = arith.addf %385, %384 : vector<8x128xf32>
    %387 = arith.divf %385, %386 : vector<8x128xf32>
    %388 = vector.extract_strided_slice %387 {offsets = [0, 0], sizes = [8, 32], strides = [1, 1]} : vector<8x128xf32> to vector<8x32xf32>
    %389 = vector.extract_strided_slice %387 {offsets = [0, 32], sizes = [8, 32], strides = [1, 1]} : vector<8x128xf32> to vector<8x32xf32>
    %390 = vector.extract_strided_slice %387 {offsets = [0, 64], sizes = [8, 32], strides = [1, 1]} : vector<8x128xf32> to vector<8x32xf32>
    %cst_91 = arith.constant 2.000000e+00 : f32
    %391 = vector.broadcast %cst_91 : f32 to vector<8x32xf32>
    %392 = arith.mulf %391, %390 : vector<8x32xf32>
    %cst_92 = arith.constant 1.000000e+00 : f32
    %393 = vector.broadcast %cst_92 : f32 to vector<8x32xf32>
    %394 = arith.subf %392, %393 : vector<8x32xf32>
    %395 = vector.extract_strided_slice %387 {offsets = [0, 96], sizes = [8, 32], strides = [1, 1]} : vector<8x128xf32> to vector<8x32xf32>
    %396 = arith.mulf %389, %376 : vector<8x32xf32>
    %397 = arith.mulf %388, %394 : vector<8x32xf32>
    %398 = arith.addf %396, %397 : vector<8x32xf32>
    %399 = math.tanh %398 : vector<8x32xf32>
    %400 = arith.mulf %395, %399 : vector<8x32xf32>
    %c192_93 = arith.constant 192 : index
    %c0_94 = arith.constant 0 : index
    %401 = vector.load %arg3[%c192_93, %c0_94] : memref<424x128xf32, #tpu.memory_space<vmem>>, vector<32x32xf32>
    %c224 = arith.constant 224 : index
    %c0_95 = arith.constant 0 : index
    %402 = vector.load %arg3[%c224, %c0_95] : memref<424x128xf32, #tpu.memory_space<vmem>>, vector<1x32xf32>
    %cst_96 = arith.constant dense<0.000000e+00> : vector<8x32xf32>
    %403 = tpu.matmul %400, %401, %cst_96 {dimension_numbers = #tpu.dot_dimension_numbers<[1], [0], [0], [1], [0, 0, 1, 1], [], []>, precision = #tpu.contract_precision<fp32>} : vector<8x32xf32>, vector<32x32xf32>, vector<8x32xf32> -> vector<8x32xf32>
    %404 = vector.broadcast %402 : vector<1x32xf32> to vector<8x32xf32>
    %405 = arith.addf %403, %404 : vector<8x32xf32>
    %406 = math.tanh %405 : vector<8x32xf32>
    %c232 = arith.constant 232 : index
    %c0_97 = arith.constant 0 : index
    %407 = vector.load %arg3[%c232, %c0_97] : memref<424x128xf32, #tpu.memory_space<vmem>>, vector<32x32xf32>
    %c264 = arith.constant 264 : index
    %c0_98 = arith.constant 0 : index
    %408 = vector.load %arg3[%c264, %c0_98] : memref<424x128xf32, #tpu.memory_space<vmem>>, vector<1x32xf32>
    %cst_99 = arith.constant dense<0.000000e+00> : vector<8x32xf32>
    %409 = tpu.matmul %398, %407, %cst_99 {dimension_numbers = #tpu.dot_dimension_numbers<[1], [0], [0], [1], [0, 0, 1, 1], [], []>, precision = #tpu.contract_precision<fp32>} : vector<8x32xf32>, vector<32x32xf32>, vector<8x32xf32> -> vector<8x32xf32>
    %410 = vector.broadcast %408 : vector<1x32xf32> to vector<8x32xf32>
    %411 = arith.addf %409, %410 : vector<8x32xf32>
    %412 = vector.extract_strided_slice %49 {offsets = [0, 0, 0], sizes = [1, 8, 128], strides = [1, 1, 1]} : vector<8x8x128xf32> to vector<1x8x128xf32>
    %413 = vector.shape_cast %412 : vector<1x8x128xf32> to vector<8x128xf32>
    %cst_100 = arith.constant dense<0.000000e+00> : vector<8x128xf32>
    %414 = tpu.matmul %406, %32, %cst_100 {dimension_numbers = #tpu.dot_dimension_numbers<[1], [0], [0], [1], [0, 0, 1, 1], [], []>, precision = #tpu.contract_precision<fp32>} : vector<8x32xf32>, vector<32x128xf32>, vector<8x128xf32> -> vector<8x128xf32>
    %415 = arith.addf %413, %414 : vector<8x128xf32>
    %416 = arith.negf %415 : vector<8x128xf32>
    %417 = math.exp %416 : vector<8x128xf32>
    %cst_101 = arith.constant 1.000000e+00 : f32
    %418 = vector.broadcast %cst_101 : f32 to vector<8x128xf32>
    %419 = arith.addf %418, %417 : vector<8x128xf32>
    %420 = arith.divf %418, %419 : vector<8x128xf32>
    %421 = vector.extract_strided_slice %420 {offsets = [0, 0], sizes = [8, 32], strides = [1, 1]} : vector<8x128xf32> to vector<8x32xf32>
    %422 = vector.extract_strided_slice %420 {offsets = [0, 32], sizes = [8, 32], strides = [1, 1]} : vector<8x128xf32> to vector<8x32xf32>
    %423 = vector.extract_strided_slice %420 {offsets = [0, 64], sizes = [8, 32], strides = [1, 1]} : vector<8x128xf32> to vector<8x32xf32>
    %cst_102 = arith.constant 2.000000e+00 : f32
    %424 = vector.broadcast %cst_102 : f32 to vector<8x32xf32>
    %425 = arith.mulf %424, %423 : vector<8x32xf32>
    %cst_103 = arith.constant 1.000000e+00 : f32
    %426 = vector.broadcast %cst_103 : f32 to vector<8x32xf32>
    %427 = arith.subf %425, %426 : vector<8x32xf32>
    %428 = vector.extract_strided_slice %420 {offsets = [0, 96], sizes = [8, 32], strides = [1, 1]} : vector<8x128xf32> to vector<8x32xf32>
    %429 = arith.mulf %422, %411 : vector<8x32xf32>
    %430 = arith.mulf %421, %427 : vector<8x32xf32>
    %431 = arith.addf %429, %430 : vector<8x32xf32>
    %432 = math.tanh %431 : vector<8x32xf32>
    %433 = arith.mulf %428, %432 : vector<8x32xf32>
    %434 = vector.extract_strided_slice %49 {offsets = [1, 0, 0], sizes = [1, 8, 128], strides = [1, 1, 1]} : vector<8x8x128xf32> to vector<1x8x128xf32>
    %435 = vector.shape_cast %434 : vector<1x8x128xf32> to vector<8x128xf32>
    %cst_104 = arith.constant dense<0.000000e+00> : vector<8x128xf32>
    %436 = tpu.matmul %433, %32, %cst_104 {dimension_numbers = #tpu.dot_dimension_numbers<[1], [0], [0], [1], [0, 0, 1, 1], [], []>, precision = #tpu.contract_precision<fp32>} : vector<8x32xf32>, vector<32x128xf32>, vector<8x128xf32> -> vector<8x128xf32>
    %437 = arith.addf %435, %436 : vector<8x128xf32>
    %438 = arith.negf %437 : vector<8x128xf32>
    %439 = math.exp %438 : vector<8x128xf32>
    %cst_105 = arith.constant 1.000000e+00 : f32
    %440 = vector.broadcast %cst_105 : f32 to vector<8x128xf32>
    %441 = arith.addf %440, %439 : vector<8x128xf32>
    %442 = arith.divf %440, %441 : vector<8x128xf32>
    %443 = vector.extract_strided_slice %442 {offsets = [0, 0], sizes = [8, 32], strides = [1, 1]} : vector<8x128xf32> to vector<8x32xf32>
    %444 = vector.extract_strided_slice %442 {offsets = [0, 32], sizes = [8, 32], strides = [1, 1]} : vector<8x128xf32> to vector<8x32xf32>
    %445 = vector.extract_strided_slice %442 {offsets = [0, 64], sizes = [8, 32], strides = [1, 1]} : vector<8x128xf32> to vector<8x32xf32>
    %cst_106 = arith.constant 2.000000e+00 : f32
    %446 = vector.broadcast %cst_106 : f32 to vector<8x32xf32>
    %447 = arith.mulf %446, %445 : vector<8x32xf32>
    %cst_107 = arith.constant 1.000000e+00 : f32
    %448 = vector.broadcast %cst_107 : f32 to vector<8x32xf32>
    %449 = arith.subf %447, %448 : vector<8x32xf32>
    %450 = vector.extract_strided_slice %442 {offsets = [0, 96], sizes = [8, 32], strides = [1, 1]} : vector<8x128xf32> to vector<8x32xf32>
    %451 = arith.mulf %444, %431 : vector<8x32xf32>
    %452 = arith.mulf %443, %449 : vector<8x32xf32>
    %453 = arith.addf %451, %452 : vector<8x32xf32>
    %454 = math.tanh %453 : vector<8x32xf32>
    %455 = arith.mulf %450, %454 : vector<8x32xf32>
    %456 = vector.extract_strided_slice %49 {offsets = [2, 0, 0], sizes = [1, 8, 128], strides = [1, 1, 1]} : vector<8x8x128xf32> to vector<1x8x128xf32>
    %457 = vector.shape_cast %456 : vector<1x8x128xf32> to vector<8x128xf32>
    %cst_108 = arith.constant dense<0.000000e+00> : vector<8x128xf32>
    %458 = tpu.matmul %455, %32, %cst_108 {dimension_numbers = #tpu.dot_dimension_numbers<[1], [0], [0], [1], [0, 0, 1, 1], [], []>, precision = #tpu.contract_precision<fp32>} : vector<8x32xf32>, vector<32x128xf32>, vector<8x128xf32> -> vector<8x128xf32>
    %459 = arith.addf %457, %458 : vector<8x128xf32>
    %460 = arith.negf %459 : vector<8x128xf32>
    %461 = math.exp %460 : vector<8x128xf32>
    %cst_109 = arith.constant 1.000000e+00 : f32
    %462 = vector.broadcast %cst_109 : f32 to vector<8x128xf32>
    %463 = arith.addf %462, %461 : vector<8x128xf32>
    %464 = arith.divf %462, %463 : vector<8x128xf32>
    %465 = vector.extract_strided_slice %464 {offsets = [0, 0], sizes = [8, 32], strides = [1, 1]} : vector<8x128xf32> to vector<8x32xf32>
    %466 = vector.extract_strided_slice %464 {offsets = [0, 32], sizes = [8, 32], strides = [1, 1]} : vector<8x128xf32> to vector<8x32xf32>
    %467 = vector.extract_strided_slice %464 {offsets = [0, 64], sizes = [8, 32], strides = [1, 1]} : vector<8x128xf32> to vector<8x32xf32>
    %cst_110 = arith.constant 2.000000e+00 : f32
    %468 = vector.broadcast %cst_110 : f32 to vector<8x32xf32>
    %469 = arith.mulf %468, %467 : vector<8x32xf32>
    %cst_111 = arith.constant 1.000000e+00 : f32
    %470 = vector.broadcast %cst_111 : f32 to vector<8x32xf32>
    %471 = arith.subf %469, %470 : vector<8x32xf32>
    %472 = vector.extract_strided_slice %464 {offsets = [0, 96], sizes = [8, 32], strides = [1, 1]} : vector<8x128xf32> to vector<8x32xf32>
    %473 = arith.mulf %466, %453 : vector<8x32xf32>
    %474 = arith.mulf %465, %471 : vector<8x32xf32>
    %475 = arith.addf %473, %474 : vector<8x32xf32>
    %476 = math.tanh %475 : vector<8x32xf32>
    %477 = arith.mulf %472, %476 : vector<8x32xf32>
    %478 = vector.extract_strided_slice %49 {offsets = [3, 0, 0], sizes = [1, 8, 128], strides = [1, 1, 1]} : vector<8x8x128xf32> to vector<1x8x128xf32>
    %479 = vector.shape_cast %478 : vector<1x8x128xf32> to vector<8x128xf32>
    %cst_112 = arith.constant dense<0.000000e+00> : vector<8x128xf32>
    %480 = tpu.matmul %477, %32, %cst_112 {dimension_numbers = #tpu.dot_dimension_numbers<[1], [0], [0], [1], [0, 0, 1, 1], [], []>, precision = #tpu.contract_precision<fp32>} : vector<8x32xf32>, vector<32x128xf32>, vector<8x128xf32> -> vector<8x128xf32>
    %481 = arith.addf %479, %480 : vector<8x128xf32>
    %482 = arith.negf %481 : vector<8x128xf32>
    %483 = math.exp %482 : vector<8x128xf32>
    %cst_113 = arith.constant 1.000000e+00 : f32
    %484 = vector.broadcast %cst_113 : f32 to vector<8x128xf32>
    %485 = arith.addf %484, %483 : vector<8x128xf32>
    %486 = arith.divf %484, %485 : vector<8x128xf32>
    %487 = vector.extract_strided_slice %486 {offsets = [0, 0], sizes = [8, 32], strides = [1, 1]} : vector<8x128xf32> to vector<8x32xf32>
    %488 = vector.extract_strided_slice %486 {offsets = [0, 32], sizes = [8, 32], strides = [1, 1]} : vector<8x128xf32> to vector<8x32xf32>
    %489 = vector.extract_strided_slice %486 {offsets = [0, 64], sizes = [8, 32], strides = [1, 1]} : vector<8x128xf32> to vector<8x32xf32>
    %cst_114 = arith.constant 2.000000e+00 : f32
    %490 = vector.broadcast %cst_114 : f32 to vector<8x32xf32>
    %491 = arith.mulf %490, %489 : vector<8x32xf32>
    %cst_115 = arith.constant 1.000000e+00 : f32
    %492 = vector.broadcast %cst_115 : f32 to vector<8x32xf32>
    %493 = arith.subf %491, %492 : vector<8x32xf32>
    %494 = vector.extract_strided_slice %486 {offsets = [0, 96], sizes = [8, 32], strides = [1, 1]} : vector<8x128xf32> to vector<8x32xf32>
    %495 = arith.mulf %488, %475 : vector<8x32xf32>
    %496 = arith.mulf %487, %493 : vector<8x32xf32>
    %497 = arith.addf %495, %496 : vector<8x32xf32>
    %498 = math.tanh %497 : vector<8x32xf32>
    %499 = arith.mulf %494, %498 : vector<8x32xf32>
    %500 = vector.extract_strided_slice %49 {offsets = [4, 0, 0], sizes = [1, 8, 128], strides = [1, 1, 1]} : vector<8x8x128xf32> to vector<1x8x128xf32>
    %501 = vector.shape_cast %500 : vector<1x8x128xf32> to vector<8x128xf32>
    %cst_116 = arith.constant dense<0.000000e+00> : vector<8x128xf32>
    %502 = tpu.matmul %499, %32, %cst_116 {dimension_numbers = #tpu.dot_dimension_numbers<[1], [0], [0], [1], [0, 0, 1, 1], [], []>, precision = #tpu.contract_precision<fp32>} : vector<8x32xf32>, vector<32x128xf32>, vector<8x128xf32> -> vector<8x128xf32>
    %503 = arith.addf %501, %502 : vector<8x128xf32>
    %504 = arith.negf %503 : vector<8x128xf32>
    %505 = math.exp %504 : vector<8x128xf32>
    %cst_117 = arith.constant 1.000000e+00 : f32
    %506 = vector.broadcast %cst_117 : f32 to vector<8x128xf32>
    %507 = arith.addf %506, %505 : vector<8x128xf32>
    %508 = arith.divf %506, %507 : vector<8x128xf32>
    %509 = vector.extract_strided_slice %508 {offsets = [0, 0], sizes = [8, 32], strides = [1, 1]} : vector<8x128xf32> to vector<8x32xf32>
    %510 = vector.extract_strided_slice %508 {offsets = [0, 32], sizes = [8, 32], strides = [1, 1]} : vector<8x128xf32> to vector<8x32xf32>
    %511 = vector.extract_strided_slice %508 {offsets = [0, 64], sizes = [8, 32], strides = [1, 1]} : vector<8x128xf32> to vector<8x32xf32>
    %cst_118 = arith.constant 2.000000e+00 : f32
    %512 = vector.broadcast %cst_118 : f32 to vector<8x32xf32>
    %513 = arith.mulf %512, %511 : vector<8x32xf32>
    %cst_119 = arith.constant 1.000000e+00 : f32
    %514 = vector.broadcast %cst_119 : f32 to vector<8x32xf32>
    %515 = arith.subf %513, %514 : vector<8x32xf32>
    %516 = vector.extract_strided_slice %508 {offsets = [0, 96], sizes = [8, 32], strides = [1, 1]} : vector<8x128xf32> to vector<8x32xf32>
    %517 = arith.mulf %510, %497 : vector<8x32xf32>
    %518 = arith.mulf %509, %515 : vector<8x32xf32>
    %519 = arith.addf %517, %518 : vector<8x32xf32>
    %520 = math.tanh %519 : vector<8x32xf32>
    %521 = arith.mulf %516, %520 : vector<8x32xf32>
    %522 = vector.extract_strided_slice %49 {offsets = [5, 0, 0], sizes = [1, 8, 128], strides = [1, 1, 1]} : vector<8x8x128xf32> to vector<1x8x128xf32>
    %523 = vector.shape_cast %522 : vector<1x8x128xf32> to vector<8x128xf32>
    %cst_120 = arith.constant dense<0.000000e+00> : vector<8x128xf32>
    %524 = tpu.matmul %521, %32, %cst_120 {dimension_numbers = #tpu.dot_dimension_numbers<[1], [0], [0], [1], [0, 0, 1, 1], [], []>, precision = #tpu.contract_precision<fp32>} : vector<8x32xf32>, vector<32x128xf32>, vector<8x128xf32> -> vector<8x128xf32>
    %525 = arith.addf %523, %524 : vector<8x128xf32>
    %526 = arith.negf %525 : vector<8x128xf32>
    %527 = math.exp %526 : vector<8x128xf32>
    %cst_121 = arith.constant 1.000000e+00 : f32
    %528 = vector.broadcast %cst_121 : f32 to vector<8x128xf32>
    %529 = arith.addf %528, %527 : vector<8x128xf32>
    %530 = arith.divf %528, %529 : vector<8x128xf32>
    %531 = vector.extract_strided_slice %530 {offsets = [0, 0], sizes = [8, 32], strides = [1, 1]} : vector<8x128xf32> to vector<8x32xf32>
    %532 = vector.extract_strided_slice %530 {offsets = [0, 32], sizes = [8, 32], strides = [1, 1]} : vector<8x128xf32> to vector<8x32xf32>
    %533 = vector.extract_strided_slice %530 {offsets = [0, 64], sizes = [8, 32], strides = [1, 1]} : vector<8x128xf32> to vector<8x32xf32>
    %cst_122 = arith.constant 2.000000e+00 : f32
    %534 = vector.broadcast %cst_122 : f32 to vector<8x32xf32>
    %535 = arith.mulf %534, %533 : vector<8x32xf32>
    %cst_123 = arith.constant 1.000000e+00 : f32
    %536 = vector.broadcast %cst_123 : f32 to vector<8x32xf32>
    %537 = arith.subf %535, %536 : vector<8x32xf32>
    %538 = vector.extract_strided_slice %530 {offsets = [0, 96], sizes = [8, 32], strides = [1, 1]} : vector<8x128xf32> to vector<8x32xf32>
    %539 = arith.mulf %532, %519 : vector<8x32xf32>
    %540 = arith.mulf %531, %537 : vector<8x32xf32>
    %541 = arith.addf %539, %540 : vector<8x32xf32>
    %542 = math.tanh %541 : vector<8x32xf32>
    %543 = arith.mulf %538, %542 : vector<8x32xf32>
    %544 = vector.extract_strided_slice %49 {offsets = [6, 0, 0], sizes = [1, 8, 128], strides = [1, 1, 1]} : vector<8x8x128xf32> to vector<1x8x128xf32>
    %545 = vector.shape_cast %544 : vector<1x8x128xf32> to vector<8x128xf32>
    %cst_124 = arith.constant dense<0.000000e+00> : vector<8x128xf32>
    %546 = tpu.matmul %543, %32, %cst_124 {dimension_numbers = #tpu.dot_dimension_numbers<[1], [0], [0], [1], [0, 0, 1, 1], [], []>, precision = #tpu.contract_precision<fp32>} : vector<8x32xf32>, vector<32x128xf32>, vector<8x128xf32> -> vector<8x128xf32>
    %547 = arith.addf %545, %546 : vector<8x128xf32>
    %548 = arith.negf %547 : vector<8x128xf32>
    %549 = math.exp %548 : vector<8x128xf32>
    %cst_125 = arith.constant 1.000000e+00 : f32
    %550 = vector.broadcast %cst_125 : f32 to vector<8x128xf32>
    %551 = arith.addf %550, %549 : vector<8x128xf32>
    %552 = arith.divf %550, %551 : vector<8x128xf32>
    %553 = vector.extract_strided_slice %552 {offsets = [0, 0], sizes = [8, 32], strides = [1, 1]} : vector<8x128xf32> to vector<8x32xf32>
    %554 = vector.extract_strided_slice %552 {offsets = [0, 32], sizes = [8, 32], strides = [1, 1]} : vector<8x128xf32> to vector<8x32xf32>
    %555 = vector.extract_strided_slice %552 {offsets = [0, 64], sizes = [8, 32], strides = [1, 1]} : vector<8x128xf32> to vector<8x32xf32>
    %cst_126 = arith.constant 2.000000e+00 : f32
    %556 = vector.broadcast %cst_126 : f32 to vector<8x32xf32>
    %557 = arith.mulf %556, %555 : vector<8x32xf32>
    %cst_127 = arith.constant 1.000000e+00 : f32
    %558 = vector.broadcast %cst_127 : f32 to vector<8x32xf32>
    %559 = arith.subf %557, %558 : vector<8x32xf32>
    %560 = vector.extract_strided_slice %552 {offsets = [0, 96], sizes = [8, 32], strides = [1, 1]} : vector<8x128xf32> to vector<8x32xf32>
    %561 = arith.mulf %554, %541 : vector<8x32xf32>
    %562 = arith.mulf %553, %559 : vector<8x32xf32>
    %563 = arith.addf %561, %562 : vector<8x32xf32>
    %564 = math.tanh %563 : vector<8x32xf32>
    %565 = arith.mulf %560, %564 : vector<8x32xf32>
    %566 = vector.extract_strided_slice %49 {offsets = [7, 0, 0], sizes = [1, 8, 128], strides = [1, 1, 1]} : vector<8x8x128xf32> to vector<1x8x128xf32>
    %567 = vector.shape_cast %566 : vector<1x8x128xf32> to vector<8x128xf32>
    %cst_128 = arith.constant dense<0.000000e+00> : vector<8x128xf32>
    %568 = tpu.matmul %565, %32, %cst_128 {dimension_numbers = #tpu.dot_dimension_numbers<[1], [0], [0], [1], [0, 0, 1, 1], [], []>, precision = #tpu.contract_precision<fp32>} : vector<8x32xf32>, vector<32x128xf32>, vector<8x128xf32> -> vector<8x128xf32>
    %569 = arith.addf %567, %568 : vector<8x128xf32>
    %570 = arith.negf %569 : vector<8x128xf32>
    %571 = math.exp %570 : vector<8x128xf32>
    %cst_129 = arith.constant 1.000000e+00 : f32
    %572 = vector.broadcast %cst_129 : f32 to vector<8x128xf32>
    %573 = arith.addf %572, %571 : vector<8x128xf32>
    %574 = arith.divf %572, %573 : vector<8x128xf32>
    %575 = vector.extract_strided_slice %574 {offsets = [0, 0], sizes = [8, 32], strides = [1, 1]} : vector<8x128xf32> to vector<8x32xf32>
    %576 = vector.extract_strided_slice %574 {offsets = [0, 32], sizes = [8, 32], strides = [1, 1]} : vector<8x128xf32> to vector<8x32xf32>
    %577 = vector.extract_strided_slice %574 {offsets = [0, 64], sizes = [8, 32], strides = [1, 1]} : vector<8x128xf32> to vector<8x32xf32>
    %cst_130 = arith.constant 2.000000e+00 : f32
    %578 = vector.broadcast %cst_130 : f32 to vector<8x32xf32>
    %579 = arith.mulf %578, %577 : vector<8x32xf32>
    %cst_131 = arith.constant 1.000000e+00 : f32
    %580 = vector.broadcast %cst_131 : f32 to vector<8x32xf32>
    %581 = arith.subf %579, %580 : vector<8x32xf32>
    %582 = vector.extract_strided_slice %574 {offsets = [0, 96], sizes = [8, 32], strides = [1, 1]} : vector<8x128xf32> to vector<8x32xf32>
    %583 = arith.mulf %576, %563 : vector<8x32xf32>
    %584 = arith.mulf %575, %581 : vector<8x32xf32>
    %585 = arith.addf %583, %584 : vector<8x32xf32>
    %586 = math.tanh %585 : vector<8x32xf32>
    %587 = arith.mulf %582, %586 : vector<8x32xf32>
    %588 = tpu.concatenate %433, %455, %477, %499, %521, %543, %565, %587 in 0 : vector<8x32xf32>, vector<8x32xf32>, vector<8x32xf32>, vector<8x32xf32>, vector<8x32xf32>, vector<8x32xf32>, vector<8x32xf32>, vector<8x32xf32> -> vector<64x32xf32>
    %c272 = arith.constant 272 : index
    %c0_132 = arith.constant 0 : index
    %589 = vector.load %arg3[%c272, %c0_132] : memref<424x128xf32, #tpu.memory_space<vmem>>, vector<32x104xf32>
    %c304 = arith.constant 304 : index
    %c0_133 = arith.constant 0 : index
    %590 = vector.load %arg3[%c304, %c0_133] : memref<424x128xf32, #tpu.memory_space<vmem>>, vector<1x104xf32>
    %cst_134 = arith.constant dense<0.000000e+00> : vector<64x104xf32>
    %591 = tpu.matmul %588, %589, %cst_134 {dimension_numbers = #tpu.dot_dimension_numbers<[1], [0], [0], [1], [0, 0, 1, 1], [], []>, precision = #tpu.contract_precision<fp32>} : vector<64x32xf32>, vector<32x104xf32>, vector<64x104xf32> -> vector<64x104xf32>
    %592 = vector.broadcast %590 : vector<1x104xf32> to vector<64x104xf32>
    %593 = arith.addf %591, %592 : vector<64x104xf32>
    %cst_135 = arith.constant 0.000000e+00 : f32
    %594 = vector.broadcast %cst_135 : f32 to vector<64x104xf32>
    %595 = arith.maximumf %593, %594 : vector<64x104xf32>
    %c312 = arith.constant 312 : index
    %c0_136 = arith.constant 0 : index
    %596 = vector.load %arg3[%c312, %c0_136] : memref<424x128xf32, #tpu.memory_space<vmem>>, vector<104x16xf32>
    %c416 = arith.constant 416 : index
    %c0_137 = arith.constant 0 : index
    %597 = vector.load %arg3[%c416, %c0_137] : memref<424x128xf32, #tpu.memory_space<vmem>>, vector<1x16xf32>
    %cst_138 = arith.constant dense<0.000000e+00> : vector<64x16xf32>
    %598 = tpu.matmul %595, %596, %cst_138 {dimension_numbers = #tpu.dot_dimension_numbers<[1], [0], [0], [1], [0, 0, 1, 1], [], []>, precision = #tpu.contract_precision<fp32>} : vector<64x104xf32>, vector<104x16xf32>, vector<64x16xf32> -> vector<64x16xf32>
    %599 = vector.broadcast %597 : vector<1x16xf32> to vector<64x16xf32>
    %600 = arith.addf %598, %599 : vector<64x16xf32>
    %601 = vector.extract_strided_slice %600 {offsets = [0, 0], sizes = [64, 3], strides = [1, 1]} : vector<64x16xf32> to vector<64x3xf32>
    %602 = vector.extract_strided_slice %600 {offsets = [0, 3], sizes = [64, 3], strides = [1, 1]} : vector<64x16xf32> to vector<64x3xf32>
    %603 = vector.extract_strided_slice %600 {offsets = [0, 6], sizes = [64, 3], strides = [1, 1]} : vector<64x16xf32> to vector<64x3xf32>
    %604 = vector.extract_strided_slice %600 {offsets = [0, 9], sizes = [64, 3], strides = [1, 1]} : vector<64x16xf32> to vector<64x3xf32>
    %cst_139 = arith.constant 2.000000e+00 : f32
    %605 = vector.broadcast %cst_139 : f32 to vector<64x3xf32>
    %606 = arith.mulf %605, %602 : vector<64x3xf32>
    %cst_140 = arith.constant 2.000000e+01 : f32
    %607 = vector.broadcast %cst_140 : f32 to vector<64x3xf32>
    %608 = arith.cmpf ogt, %606, %607 : vector<64x3xf32>
    %cst_141 = arith.constant 2.000000e+00 : f32
    %609 = vector.broadcast %cst_141 : f32 to vector<64x3xf32>
    %610 = arith.mulf %609, %602 : vector<64x3xf32>
    %cst_142 = arith.constant 0.000000e+00 : f32
    %611 = vector.broadcast %cst_142 : f32 to vector<64x3xf32>
    %612 = arith.maximumf %610, %611 : vector<64x3xf32>
    %613 = vector.broadcast %cst_142 : f32 to vector<64x3xf32>
    %614 = arith.subf %610, %613 : vector<64x3xf32>
    %615 = arith.cmpf one, %614, %614 : vector<64x3xf32>
    %616 = vector.broadcast %cst_142 : f32 to vector<64x3xf32>
    %617 = arith.addf %610, %616 : vector<64x3xf32>
    %618 = math.absf %614 : vector<64x3xf32>
    %cst_143 = arith.constant 0.000000e+00 : f32
    %619 = vector.broadcast %cst_143 : f32 to vector<64x3xf32>
    %620 = arith.subf %619, %618 : vector<64x3xf32>
    %621 = math.exp %620 : vector<64x3xf32>
    %622 = math.log1p %621 : vector<64x3xf32>
    %623 = arith.addf %612, %622 : vector<64x3xf32>
    %624 = arith.select %615, %617, %623 : vector<64x3xi1>, vector<64x3xf32>
    %cst_144 = arith.constant 5.000000e-01 : f32
    %625 = vector.broadcast %cst_144 : f32 to vector<64x3xf32>
    %626 = arith.mulf %624, %625 : vector<64x3xf32>
    %627 = arith.select %608, %602, %626 : vector<64x3xi1>, vector<64x3xf32>
    %cst_145 = arith.constant dense<0xFF800000> : vector<64xf32>
    %628 = vector.multi_reduction <maximumf>, %604, %cst_145 [1] : vector<64x3xf32> to vector<64xf32>
    %629 = vector.shape_cast %628 : vector<64xf32> to vector<64x1xf32>
    %630 = vector.broadcast %629 : vector<64x1xf32> to vector<64x3xf32>
    %631 = arith.subf %604, %630 : vector<64x3xf32>
    %632 = math.exp %631 : vector<64x3xf32>
    %cst_146 = arith.constant dense<0.000000e+00> : vector<64xf32>
    %633 = vector.multi_reduction <add>, %632, %cst_146 [1] : vector<64x3xf32> to vector<64xf32>
    %634 = vector.shape_cast %633 : vector<64xf32> to vector<64x1xf32>
    %635 = vector.broadcast %634 : vector<64x1xf32> to vector<64x3xf32>
    %636 = arith.divf %632, %635 : vector<64x3xf32>
    %cst_147 = arith.constant 9.99999974E-6 : f32
    %637 = vector.broadcast %cst_147 : f32 to vector<64x3xf32>
    %638 = arith.addf %627, %637 : vector<64x3xf32>
    %639 = arith.negf %603 : vector<64x3xf32>
    %640 = math.exp %639 : vector<64x3xf32>
    %cst_148 = arith.constant 1.000000e+00 : f32
    %641 = vector.broadcast %cst_148 : f32 to vector<64x3xf32>
    %642 = arith.addf %641, %640 : vector<64x3xf32>
    %643 = arith.divf %641, %642 : vector<64x3xf32>
    %cst_149 = arith.constant 0.999989986 : f32
    %644 = vector.broadcast %cst_149 : f32 to vector<64x3xf32>
    %645 = arith.mulf %644, %643 : vector<64x3xf32>
    %cst_150 = arith.constant 9.99999974E-6 : f32
    %646 = vector.broadcast %cst_150 : f32 to vector<64x3xf32>
    %647 = arith.addf %645, %646 : vector<64x3xf32>
    %cst_151 = arith.constant 0.999989986 : f32
    %648 = vector.broadcast %cst_151 : f32 to vector<64x3xf32>
    %649 = arith.mulf %648, %636 : vector<64x3xf32>
    %cst_152 = arith.constant 9.99999974E-6 : f32
    %650 = vector.broadcast %cst_152 : f32 to vector<64x3xf32>
    %651 = arith.addf %649, %650 : vector<64x3xf32>
    %652 = tpu.concatenate %601, %638, %647, %651 in 1 : vector<64x3xf32>, vector<64x3xf32>, vector<64x3xf32>, vector<64x3xf32> -> vector<64x12xf32>
    %c0_153 = arith.constant 0 : index
    %c0_154 = arith.constant 0 : index
    %653 = vector.load %arg4[%c0_153, %c0_154] : memref<64x12xf32, #tpu.memory_space<vmem>>, vector<64x12xf32>
    tpu.vector_store %arg4[%c0_153, %c0_154], %652 {strides = array<i32>} : memref<64x12xf32, #tpu.memory_space<vmem>>, vector<64x12xf32>,
    return
  }
}

</mosaic_0001>

<bundles_post_ra>
// kernel: forward.1
= control target key start
LH: loop header
LB: loop body
LE: loop exit
PB: predicated region body
PF: predicated region fallthrough
CT: control target
= control target key end

     0   :  { %vm24_vm0 = vcmask 64512   ;;  %v34340_v0 = vmov 0.0   ;;  %vm29704_vm1 = vmmov 0   ;;  %vm490_vm2 = vcmask 654336   ;;  %s29706_s11 = smov 64   ;;  %s29707_s12 = smov 32   ;;  %s34335_s3 = inlined_call_operand.vmem [shape: f32[424,128], index: 3, kind: input, shape index: {}]   ;;  %s34336_s0 = inlined_call_operand.vmem [shape: f32[8,8], index: 0, kind: input, shape index: {}]   ;;  %s34337_s1 = inlined_call_operand.vmem [shape: f32[192,8], index: 1, kind: input, shape index: {}]   ;;  %s34338_s2 = inlined_call_operand.vmem [shape: f32[208,128], index: 2, kind: input, shape index: {}]   ;;  %s34339_s4 = inlined_call_operand.vmem [shape: f32[64,12], index: 4, kind: output, shape index: {}]  }
   0x1   :  { %24009 = vmatprep.subr.mxu0 %v34340_v0  ;;  %v18_v1 = vld [vmem:[%s34335_s3] sm:$0xff]  ;;  %24011 = vmatprep.mubr.msk.f32.mxu0 %vm29704_vm1, %v34340_v0  ;;  %v1081_v14 = vld [vmem:[%s34335_s3 + $0x68] sm:$0xff]  ;;  %v1059_v23 = vld [vmem:[%s34337_s1 + $0x10] sm:$0xff]  ;;  %vm4260_vm3 = vcmask 261120   ;;  %vm2631_vm4 = vcmask 523264   ;;  %s29708_s27 = smov 96  }
   0x2   :  { %v17_v2 = vld [vmem:[%s34336_s0] sm:$0xff]  ;;  %v29_v3 = vand.u32 4294901760, %v18_v1  ;;  %24059 = vmatprep.mubr.msk.f32.mxu1 %vm29704_vm1, %v34340_v0  ;;  %v29757_v15 = vand.u32 4294901760, %v1081_v14  ;;  %v1058_v22 = vld [vmem:[%s34337_s1 + $0x8] sm:$0xff]  ;;  %v29790_v26 = vsel %vm24_vm0, %v1059_v23, 0  ;;  %v1060_v27 = vld [vmem:[%s34337_s1 + $0x18] sm:$0xff] }
   0x3   :  { %v26_v4 = vsel %vm24_vm0, %v17_v2, 0  ;;  %v1057_v20 = vld [vmem:[%s34337_s1] sm:$0xff]  ;;  %v29787_v25 = vsel %vm24_vm0, %v1058_v22, 0  ;;  %v29803_v30 = vand.u32 4294901760, %v29790_v26  ;;  %v29806_v31 = vsel %vm24_vm0, %v1060_v27, 0  ;;  %v1062_v33 = vld [vmem:[%s34337_s1 + $0x28] sm:$0xff] }
   0x4   :  { %v94_v5 = vand.u32 4294901760, %v26_v4  ;;  %24010 = vmatpush3.msra.mxu0 %v29_v3  ;;  %v106_v6 = vsub.f32 %v18_v1, %v29_v3  ;;  %v1467_v16 = vsub.f32 %v1081_v14, %v29757_v15  ;;  %v29775_v21 = vsel %vm24_vm0, %v1057_v20, 0  ;;  %v1061_v28 = vld [vmem:[%s34337_s1 + $0x20] sm:$0xff]  ;;  %v1063_v34 = vld [vmem:[%s34337_s1 + $0x30] sm:$0xff]  ;;  %v1064_v39 = vld [vmem:[%s34337_s1 + $0x38] sm:$0xff] }
   0x5   :  { %24014 = vmatprep.subr.mxu0 %v34340_v0  ;;  %v29784_v24 = vand.u32 4294901760, %v29775_v21  ;;  %v29799_v29 = vand.u32 4294901760, %v29787_v25  ;;  %v29809_v32 = vsel %vm24_vm0, %v1061_v28, 0  ;;  %v29819_v35 = vand.u32 4294901760, %v29806_v31  ;;  %v1065_v40 = vld [vmem:[%s34337_s1 + $0x40] sm:$0xff]  ;;  %v1066_v45 = vld [vmem:[%s34337_s1 + $0x48] sm:$0xff] }
   0x6   :  { %v95_v7 = vsub.f32 %v26_v4, %v94_v5  ;;  %v107_v8 = vand.u32 4294901760, %v106_v6  ;;  %v29763_v17 = vand.u32 4294901760, %v1467_v16  ;;  %v29823_v36 = vand.u32 4294901760, %v29809_v32  ;;  %v1067_v46 = vld [vmem:[%s34337_s1 + $0x50] sm:$0xff]  ;;  %v1068_v51 = vld [vmem:[%s34337_s1 + $0x58] sm:$0xff]  ;;  %v1069_v52 = vld [vmem:[%s34337_s1 + $0x60] sm:$0xff] }
   0x7   :  { %v29826_v37 = vsel %vm24_vm0, %v1062_v33, 0  ;;  %v29829_v38 = vsel %vm24_vm0, %v1063_v34, 0  ;;  %v29847_v43 = vsel %vm24_vm0, %v1064_v39, 0  ;;  %v29850_v44 = vsel %vm24_vm0, %v1065_v40, 0  ;;  %v1070_v57 = vld [vmem:[%s34337_s1 + $0x68] sm:$0xff]  ;;  %v1071_v58 = vld [vmem:[%s34337_s1 + $0x70] sm:$0xff] }
   0x8   :  { %v96_v9 = vand.u32 4294901760, %v95_v7  ;;  %v108_v10 = vsub.f32 %v106_v6, %v107_v8  ;;  %v1469_v18 = vsub.f32 %v1467_v16, %v29763_v17  ;;  %v29840_v41 = vand.u32 4294901760, %v29826_v37  ;;  %v1072_v63 = vld [vmem:[%s34337_s1 + $0x78] sm:$0xff]  ;;  %v1073_v1 = vld [vmem:[%s34337_s1 + $0x80] sm:$0xff]  ;;  %v1078_v20 = vld [vmem:[%s34337_s1 + $0xa8] sm:$0xff] }
   0x9   :  { %v29844_v42 = vand.u32 4294901760, %v29829_v38  ;;  %v29860_v47 = vand.u32 4294901760, %v29847_v43  ;;  %v29864_v48 = vand.u32 4294901760, %v29850_v44  ;;  %v29867_v49 = vsel %vm24_vm0, %v1066_v45, 0  ;;  %v1079_v22 = vld [vmem:[%s34337_s1 + $0xb0] sm:$0xff]  ;;  %v1080_v34 = vld [vmem:[%s34337_s1 + $0xb8] sm:$0xff] }
   0xa   :  { %v97_v11 = vsub.f32 %v95_v7, %v96_v9  ;;  %v109_v12 = vand.u32 4294901760, %v108_v10  ;;  %v1470_v19 = vand.u32 4294901760, %v1469_v18  ;;  %v29870_v50 = vsel %vm24_vm0, %v1067_v46, 0 }
   0xb   :  { %v29880_v53 = vand.u32 4294901760, %v29867_v49  ;;  %v29884_v54 = vand.u32 4294901760, %v29870_v50  ;;  %v29887_v55 = vsel %vm24_vm0, %v1068_v51, 0  ;;  %v29890_v56 = vsel %vm24_vm0, %v1069_v52, 0 }
   0xc   :  { %v98_v13 = vand.u32 4294901760, %v97_v11  ;;  %v29900_v59 = vand.u32 4294901760, %v29887_v55  ;;  %v29904_v60 = vand.u32 4294901760, %v29890_v56  ;;  %v29907_v61 = vsel %vm24_vm0, %v1070_v57, 0 }
   0xd   :  { %v29910_v62 = vsel %vm24_vm0, %v1071_v58, 0  ;;  %v29920_v2 = vand.u32 4294901760, %v29907_v61  ;;  %v29927_v4 = vsel %vm24_vm0, %v1072_v63, 0  ;;  %v29984_v28 = vsel %vm24_vm0, %v1078_v20, 0  ;;  %v475_v63 = vld [vmem:[%s34335_s3 + $0x10] sm:$0xff]  ;;  %v478_v20 = vld [vmem:[%s34335_s3 + $0x28] sm:$0xff] }
   0xe   :  { %24012 = vmatmul.mubr.f32.vlgmr.msra.gmra.mrb[0].mxu0 %v98_v13  ;;  %v1077_v13 = vld [vmem:[%s34337_s1 + $0xa0] sm:$0xff]  ;;  %v29987_v33 = vsel %vm24_vm0, %v1079_v22, 0  ;;  %v29994_v39 = vand.u32 4294901760, %v29984_v28  ;;  %v30001_v45 = vsel %vm24_vm0, %v1080_v34, 0  ;;  %v30010_v51 = vsub.f32 %v29775_v21, %v29784_v24 }
   0xf   :  { %24015 = vmatpush3.msra.mxu0 %v109_v12  ;;  %24016 = vmatprep.mubr.msk.f32.mxu0 %vm29704_vm1, %v34340_v0  ;;  %v1076_v12 = vld [vmem:[%s34337_s1 + $0x98] sm:$0xff]  ;;  %v29998_v40 = vand.u32 4294901760, %v29987_v33  ;;  %v30005_v46 = vand.u32 4294901760, %v30001_v45  ;;  %v30014_v52 = vsub.f32 %v29787_v25, %v29799_v29  ;;  %v30020_v57 = vsub.f32 %v29790_v26, %v29803_v30 }
  0x10   :  { %24019 = vmatprep.subr.mxu0 %v34340_v0  ;;  %v1145_v18 = vsel %vm24_vm0, %v1076_v12, 0  ;;  %34550 = vst [vmem:[#allocation4_spill] sm:$0xff] %v29994_v39  ;;  %34553 = vst [vmem:[#allocation7_spill] sm:$0xff] %v30010_v51  ;;  %v30025_v58 = vsub.f32 %v29806_v31, %v29819_v35  ;;  %v30030_v21 = vsub.f32 %v29809_v32, %v29823_v36  ;;  %v504_v34 = vand.u32 4294901760, %v478_v20 }
  0x11   :  { %v29977_v23 = vand.u32 4294901760, %v1145_v18  ;;  %34551 = vst [vmem:[#allocation5_spill] sm:$0xff] %v29998_v40  ;;  %34552 = vst [vmem:[#allocation6_spill] sm:$0xff] %v30005_v46  ;;  %v30037_v25 = vsub.f32 %v29826_v37, %v29840_v41  ;;  %v30042_v26 = vsub.f32 %v29829_v38, %v29844_v42  ;;  %v30047_v31 = vsub.f32 %v29847_v43, %v29860_v47 }
  0x12   :  { %34554 = vst [vmem:[#allocation8_spill] sm:$0xff] %v30014_v52  ;;  %34555 = vst [vmem:[#allocation9_spill] sm:$0xff] %v30020_v57  ;;  %v30052_v32 = vsub.f32 %v29850_v44, %v29864_v48  ;;  %v30057_v37 = vsub.f32 %v29867_v49, %v29880_v53  ;;  %v30062_v38 = vsub.f32 %v29870_v50, %v29884_v54  ;;  %vm20970_vm5 = vcmask 850944  }
  0x13   :  { %34548 = vst [vmem:[#allocation2_spill] sm:$0xff] %v29977_v23  ;;  %34556 = vst [vmem:[#allocation10_spill] sm:$0xff] %v30025_v58  ;;  %v30067_v43 = vsub.f32 %v29887_v55, %v29900_v59  ;;  %v30072_v44 = vsub.f32 %v29890_v56, %v29904_v60  ;;  %v30077_v49 = vsub.f32 %v29907_v61, %v29920_v2  ;;  %vm22074_vm6 = vcmask 97352  }
  0x14   :  { %34557 = vst [vmem:[#allocation11_spill] sm:$0xff] %v30030_v21  ;;  %34558 = vst [vmem:[#allocation12_spill] sm:$0xff] %v30042_v26  ;;  %vm22155_vm7 = vcmask 23552  }
  0x15   :  { %34559 = vst [vmem:[#allocation13_spill] sm:$0xff] %v30052_v32  ;;  %34560 = vst [vmem:[#allocation14_spill] sm:$0xff] %v30057_v37 }
  0x16   :  { %24017 = vmatmul.mubr.f32.vlgmr.msra.gmra.mrb[0].mxu0 %v94_v5  ;;  %34561 = vst [vmem:[#allocation15_spill] sm:$0xff] %v30062_v38 }
  0x17   :  { %24020 = vmatpush3.msra.mxu0 %v106_v6  ;;  %24021 = vmatprep.mubr.msk.f32.mxu0 %vm29704_vm1, %v34340_v0  ;;  %v1074_v6 = vld [vmem:[%s34337_s1 + $0x88] sm:$0xff] }
  0x18   :  { %24024 = vmatprep.subr.mxu0 %v34340_v0  ;;  %v29947_v10 = vsel %vm24_vm0, %v1074_v6, 0 }
  0x19   :  { %v29960_v14 = vand.u32 4294901760, %v29947_v10 }
  0x1b   :  { %v30097_v61 = vsub.f32 %v29947_v10, %v29960_v14 }
  0x1e   :  { %24022 = vmatmul.mubr.f32.vlgmr.msra.gmra.mrb[0].mxu0 %v95_v7  ;;  %v1075_v7 = vld [vmem:[%s34337_s1 + $0x90] sm:$0xff] }
  0x1f   :  { %24025 = vmatpush3.msra.mxu0 %v29_v3  ;;  %24026 = vmatprep.mubr.msk.f32.mxu0 %vm29704_vm1, %v34340_v0  ;;  %v29950_v11 = vsel %vm24_vm0, %v1075_v7, 0 }
  0x20   :  { %24029 = vmatprep.subr.mxu0 %v34340_v0 }
  0x26   :  { %24027 = vmatmul.mubr.f32.vlgmr.msra.gmra.mrb[0].mxu0 %v96_v9 }
  0x27   :  { %24030 = vmatpush3.msra.mxu0 %v107_v8  ;;  %24031 = vmatprep.mubr.msk.f32.mxu0 %vm29704_vm1, %v34340_v0  ;;  %v29940_v8 = vand.u32 4294901760, %v29927_v4 }
  0x28   :  { %24034 = vmatprep.subr.mxu0 %v34340_v0 }
  0x29   :  { %v30087_v55 = vsub.f32 %v29927_v4, %v29940_v8  ;;  %v30112_v4 = vsub.f32 %v1145_v18, %v29977_v23  ;;  %v477_v18 = vld [vmem:[%s34335_s3 + $0x20] sm:$0xff] }
  0x2a   :  { %v501_v22 = vand.u32 4294901760, %v477_v18 }
  0x2e   :  { %24032 = vmatmul.mubr.f32.vlgmr.msra.gmra.mrb[0].mxu0 %v94_v5 }
  0x2f   :  { %24035 = vmatpush3.msra.mxu0 %v29_v3  ;;  %24036 = vmatprep.mubr.msk.f32.mxu0 %vm29704_vm1, %v34340_v0  ;;  %v29924_v3 = vand.u32 4294901760, %v29910_v62  ;;  %v480_v0 = vld [vmem:[%s34335_s3 + $0x38] sm:$0xff] }
  0x30   :  { %24215 = vmatprep.subr.mxu0 %v1470_v19 }
  0x31   :  { %v30082_v50 = vsub.f32 %v29910_v62, %v29924_v3 }
  0x36   :  { %24037 = vmatmul.mubr.f32.vlgmr.msra.gmra.mrb[0].mxu0 %v94_v5  ;;  %v29930_v5 = vsel %vm24_vm0, %v1073_v1, 0  ;;  %v476_v1 = vld [vmem:[%s34335_s3 + $0x18] sm:$0xff] }
  0x37   :  { %24216 = vmatpush3.msra.mxu0 %v1470_v19  ;;  %24217 = vmatprep.mubr.f32.mxu0 %v29784_v24  ;;  %v29944_v9 = vand.u32 4294901760, %v29930_v5  ;;  %v29968_v19 = vsel %vm24_vm0, %v1077_v13, 0  ;;  %v498_v6 = vand.u32 4294901760, %v476_v1  ;;  %v34348_v13 = vmov 0.0|0.0  }
  0x38   :  { %24253 = vmatprep.subr.mxu0 %v1467_v16  ;;  %v29981_v27 = vand.u32 4294901760, %v29968_v19  ;;  %27159 = vmatprep.subr.bf16.mxu1 %v34348_v13  ;;  %vm22292_vm0 = vcmask 48128  }
  0x39   :  { %v30092_v56 = vsub.f32 %v29930_v5, %v29944_v9  ;;  %v495_v5 = vand.u32 4294901760, %v475_v63  ;;  %v30123_v12 = vsub.f32 %v476_v1, %v498_v6  ;;  %v30144_v1 = vpack.c.bf16 %v504_v34, %v501_v22 }
  0x3a   :  { %24218 = vmatmul.mubr.f32.vlgmr.msra.gmra.mrb[2].mxu0 %v29799_v29  ;;  %34549 = vst [vmem:[#allocation3_spill] sm:$0xff] %v29981_v27  ;;  %v30117_v7 = vsub.f32 %v29968_v19, %v29981_v27  ;;  %v30135_v19 = vsub.f32 %v29984_v28, %v29994_v39  ;;  %v479_v28 = vld [vmem:[%s34335_s3 + $0x30] sm:$0xff] }
  0x3b   :  { %24220 = vmatprep.mubr.f32.mxu0 %v29803_v30  ;;  %24254 = vmatpush3.msra.mxu0 %v1467_v16  ;;  %v29964_v16 = vand.u32 4294901760, %v29950_v11  ;;  %v30119_v10 = vpack.c.bf16 %v498_v6, %v495_v5  ;;  %34564 = vst [vmem:[#allocation18_spill] sm:$0xff] %v30144_v1  ;;  %v30148_v6 = vsub.f32 %v478_v20, %v504_v34  ;;  %v483_v20 = vld [vmem:[%s34335_s3 + $0x50] sm:$0xff] }
  0x3c   :  { %24291 = vmatprep.subr.mxu0 %v29757_v15 }
  0x3d   :  { %v30102_v62 = vsub.f32 %v29950_v11, %v29964_v16  ;;  %34562 = vst [vmem:[#allocation16_spill] sm:$0xff] %v30119_v10  ;;  %v30121_v11 = vsub.f32 %v475_v63, %v495_v5  ;;  %27161 = vmatpush3.bf16.msra.mxu1 %v30119_v10  ;;  %v30141_v63 = vsub.f32 %v29987_v33, %v29998_v40 }
  0x3e   :  { %24221 = vmatmul.mubr.f32.gmra.mrb[4].mxu0 %v29819_v35  ;;  %27162 = vmatprep.subr.bf16.mxu1 %v34348_v13  ;;  %v30146_v5 = vsub.f32 %v477_v18, %v501_v22  ;;  %v30159_v33 = vsub.f32 %v30001_v45, %v30005_v46  ;;  %v507_v18 = vand.u32 4294901760, %v479_v28  ;;  %v510_v22 = vand.u32 4294901760, %v480_v0  ;;  %v481_v45 = vld [vmem:[%s34335_s3 + $0x40] sm:$0xff] }
  0x3f   :  { %24223 = vmatprep.mubr.f32.mxu0 %v29823_v36  ;;  %34563 = vst [vmem:[#allocation17_spill] sm:$0xff] %v30141_v63 }
  0x40   :  { %34565 = vst [vmem:[#allocation19_spill] sm:$0xff] %v30159_v33  ;;  %v30165_v34 = vpack.c.bf16 %v510_v22, %v507_v18  ;;  %v30167_v10 = vsub.f32 %v479_v28, %v507_v18  ;;  %v34567_v28 = vand.u32 4294901760, %v30010_v51  ;;  %v34568_v18 = vmov 0.0|0.0  }
  0x41   :  { %27164 = vmatpush3.bf16.msra.mxu1 %v30144_v1  ;;  %v482_v1 = vld [vmem:[%s34335_s3 + $0x48] sm:$0xff] }
  0x42   :  { %24224 = vmatmul.mubr.f32.gmra.mrb[6].mxu0 %v29840_v41  ;;  %27165 = vmatprep.subr.bf16.mxu1 %v34348_v13  ;;  %34566 = vst [vmem:[#allocation20_spill] sm:$0xff] %v30165_v34  ;;  %v513_v13 = vand.u32 4294901760, %v481_v45 }
  0x43   :  { %24226 = vmatprep.mubr.f32.mxu0 %v29844_v42 }
  0x45   :  { %27167 = vmatpush3.bf16.msra.mxu1 %v30165_v34 }
  0x46   :  { %24227 = vmatmul.mubr.f32.gmra.mrb[8].mxu0 %v29860_v47  ;;  %27168 = vmatprep.subr.bf16.mxu1 %v34568_v18 }
  0x47   :  { %24229 = vmatprep.mubr.f32.mxu0 %v29864_v48 }
  0x4a   :  { %24230 = vmatmul.mubr.f32.gmra.mrb[10].mxu0 %v29880_v53 }
  0x4b   :  { %24232 = vmatprep.mubr.f32.mxu0 %v29884_v54 }
  0x4e   :  { %24233 = vmatmul.mubr.f32.gmra.mrb[12].mxu0 %v29900_v59 }
  0x4f   :  { %24235 = vmatprep.mubr.f32.mxu0 %v29904_v60 }
  0x52   :  { %24236 = vmatmul.mubr.f32.gmra.mrb[14].mxu0 %v29920_v2 }
  0x53   :  { %24238 = vmatprep.mubr.f32.mxu0 %v29924_v3 }
  0x56   :  { %24239 = vmatmul.mubr.f32.gmra.mrb[16].mxu0 %v29940_v8 }
  0x57   :  { %24241 = vmatprep.mubr.f32.mxu0 %v29944_v9 }
  0x5a   :  { %24242 = vmatmul.mubr.f32.gmra.mrb[18].mxu0 %v29960_v14 }
  0x5b   :  { %24244 = vmatprep.mubr.f32.mxu0 %v29964_v16 }
  0x5e   :  { %24245 = vmatmul.mubr.f32.gmra.mrb[20].mxu0 %v29977_v23 }
  0x5f   :  { %24247 = vmatprep.mubr.f32.mxu0 %v29981_v27 }
  0x62   :  { %24248 = vmatmul.mubr.f32.gmra.mrb[22].mxu0 %v29994_v39  ;;  %v30186_v39 = vsub.f32 %v481_v45, %v513_v13  ;;  %v34571_v45 = vand.u32 4294901760, %v30020_v57 }
  0x63   :  { %24250 = vmatprep.mubr.f32.mxu0 %v29998_v40  ;;  %v30169_v40 = vsub.f32 %v480_v0, %v510_v22  ;;  %v34570_v0 = vand.u32 4294901760, %v30014_v52 }
  0x66   :  { %24251 = vmatmul.mubr.f32.gmra.mrb[24].mxu0 %v30005_v46  ;;  %v516_v46 = vand.u32 4294901760, %v482_v1 }
  0x67   :  { %24255 = vmatprep.mubr.f32.mxu0 %v30010_v51  ;;  %v519_v51 = vand.u32 4294901760, %v483_v20 }
  0x68   :  { %v30184_v22 = vpack.c.bf16 %v516_v46, %v513_v13  ;;  %v30188_v27 = vsub.f32 %v482_v1, %v516_v46  ;;  %v34368_v46 = vand.u32 4294901760, %v30121_v11 }
  0x6a   :  { %24256 = vmatmul.mubr.f32.vlgmr.msra.gmra.mrb[2].mxu0 %v30014_v52  ;;  %34569 = vst [vmem:[#allocation21_spill] sm:$0xff] %v30184_v22  ;;  %27170 = vmatpush3.bf16.msra.mxu1 %v30184_v22  ;;  %v30210_v52 = vsub.f32 %v483_v20, %v519_v51  ;;  %v583_v1 = vsub.f32 %v30121_v11, %v34368_v46 }
  0x6b   :  { %24258 = vmatprep.mubr.f32.mxu0 %v30020_v57  ;;  %24292 = vmatpush3.msra.mxu0 %v29757_v15  ;;  %v34375_v57 = vand.u32 4294901760, %v30037_v25 }
  0x6c   :  { %24329 = vmatprep.subr.mxu0 %v29763_v17  ;;  %27171 = vmatprep.subr.bf16.mxu1 %v34568_v18  ;;  %v584_v20 = vand.u32 4294901760, %v583_v1  ;;  %v34380_v1 = vand.u32 4294901760, %v30047_v31 }
  0x6e   :  { %24259 = vmatmul.mubr.f32.gmra.mrb[4].mxu0 %v30025_v58 }
  0x6f   :  { %24261 = vmatprep.mubr.f32.mxu0 %v30030_v21 }
  0x72   :  { %24262 = vmatmul.mubr.f32.gmra.mrb[6].mxu0 %v30037_v25 }
  0x73   :  { %24264 = vmatprep.mubr.f32.mxu0 %v30042_v26 }
  0x76   :  { %24265 = vmatmul.mubr.f32.gmra.mrb[8].mxu0 %v30047_v31 }
  0x77   :  { %24267 = vmatprep.mubr.f32.mxu0 %v30052_v32 }
  0x7a   :  { %24268 = vmatmul.mubr.f32.gmra.mrb[10].mxu0 %v30057_v37 }
  0x7b   :  { %24270 = vmatprep.mubr.f32.mxu0 %v30062_v38 }
  0x7e   :  { %24271 = vmatmul.mubr.f32.gmra.mrb[12].mxu0 %v30067_v43 }
  0x7f   :  { %24273 = vmatprep.mubr.f32.mxu0 %v30072_v44 }
  0x82   :  { %24274 = vmatmul.mubr.f32.gmra.mrb[14].mxu0 %v30077_v49 }
  0x83   :  { %24276 = vmatprep.mubr.f32.mxu0 %v30082_v50 }
  0x86   :  { %24277 = vmatmul.mubr.f32.gmra.mrb[16].mxu0 %v30087_v55 }
  0x87   :  { %24279 = vmatprep.mubr.f32.mxu0 %v30092_v56 }
  0x8a   :  { %24280 = vmatmul.mubr.f32.gmra.mrb[18].mxu0 %v30097_v61 }
  0x8b   :  { %24282 = vmatprep.mubr.f32.mxu0 %v30102_v62 }
  0x8e   :  { %24283 = vmatmul.mubr.f32.gmra.mrb[20].mxu0 %v30112_v4 }
  0x8f   :  { %24285 = vmatprep.mubr.f32.mxu0 %v30117_v7 }
  0x92   :  { %24286 = vmatmul.mubr.f32.gmra.mrb[22].mxu0 %v30135_v19 }
  0x93   :  { %24288 = vmatprep.mubr.f32.mxu0 %v30141_v63 }
  0x96   :  { %24289 = vmatmul.mubr.f32.gmra.mrb[24].mxu0 %v30159_v33 }
  0x97   :  { %24293 = vmatprep.mubr.f32.mxu0 %v34567_v28  ;;  %v484_v28 = vld [vmem:[%s34335_s3 + $0x58] sm:$0xff] }
  0x98   :  { %v522_v13 = vand.u32 4294901760, %v484_v28 }
  0x9a   :  { %24294 = vmatmul.mubr.f32.vlgmr.msra.gmra.mrb[2].mxu0 %v34570_v0  ;;  %v30208_v0 = vpack.c.bf16 %v522_v13, %v519_v51  ;;  %v30212_v22 = vsub.f32 %v484_v28, %v522_v13  ;;  %v34574_v51 = vand.u32 4294901760, %v30030_v21  ;;  %v34371_v13 = vand.u32 4294901760, %v30146_v5 }
  0x9b   :  { %24296 = vmatprep.mubr.f32.mxu0 %v34571_v45  ;;  %24330 = vmatpush3.msra.mxu0 %v29763_v17  ;;  %v34572_v45 = vand.u32 4294901760, %v30123_v12  ;;  %v34573_v17 = vand.u32 4294901760, %v30025_v58  ;;  %v34376_v21 = vand.u32 4294901760, %v30167_v10 }
  0x9c   :  { %24367 = vmatprep.subr.mxu0 %v29757_v15  ;;  %27173 = vmatpush3.bf16.msra.mxu1 %v30208_v0 }
  0x9d   :  { %v590_v23 = vsub.f32 %v30123_v12, %v34572_v45  ;;  %27174 = vmatprep.subr.bf16.mxu1 %v34568_v18  ;;  %v34374_v45 = vand.u32 4294901760, %v30148_v6 }
  0x9e   :  { %24297 = vmatmul.mubr.f32.gmra.mrb[4].mxu0 %v34573_v17  ;;  %v597_v17 = vsub.f32 %v30146_v5, %v34371_v13  ;;  %v34379_v13 = vand.u32 4294901760, %v30169_v40 }
  0x9f   :  { %24299 = vmatprep.mubr.f32.mxu0 %v34574_v51  ;;  %v591_v28 = vand.u32 4294901760, %v590_v23  ;;  %v604_v34 = vsub.f32 %v30148_v6, %v34374_v45  ;;  %v34381_v23 = vand.u32 4294901760, %v30052_v32  ;;  %v34575_v51 = vand.u32 4294901760, %v30042_v26 }
  0xa0   :  { %v611_v45 = vsub.f32 %v30167_v10, %v34376_v21  ;;  %v34385_v21 = vand.u32 4294901760, %v30188_v27 }
  0xa1   :  { %v30230_v46 = vpack.c.bf16 %v591_v28, %v584_v20  ;;  %v598_v20 = vand.u32 4294901760, %v597_v17  ;;  %v605_v28 = vand.u32 4294901760, %v604_v34  ;;  %v34388_v17 = vand.u32 4294901760, %v30057_v37 }
  0xa2   :  { %24300 = vmatmul.mubr.f32.gmra.mrb[6].mxu0 %v34375_v57  ;;  %v618_v57 = vsub.f32 %v30169_v40, %v34379_v13  ;;  %v34389_v34 = vand.u32 4294901760, %v30062_v38 }
  0xa3   :  { %24302 = vmatprep.mubr.f32.mxu0 %v34575_v51  ;;  %v30246_v58 = vpack.c.bf16 %v605_v28, %v598_v20  ;;  %v612_v51 = vand.u32 4294901760, %v611_v45  ;;  %v34382_v28 = vand.u32 4294901760, %v30186_v39  ;;  %v34392_v45 = vand.u32 4294901760, %v30067_v43 }
  0xa4   :  { %v619_v20 = vand.u32 4294901760, %v618_v57  ;;  %v34404_v57 = vand.u32 4294901760, %v30072_v44 }
  0xa5   :  { %v625_v13 = vsub.f32 %v30186_v39, %v34382_v28  ;;  %v645_v28 = vand.u32 4294901760, %v30212_v22 }
  0xa6   :  { %24303 = vmatmul.mubr.f32.gmra.mrb[8].mxu0 %v34380_v1  ;;  %v30262_v26 = vpack.c.bf16 %v619_v20, %v612_v51  ;;  %v632_v1 = vsub.f32 %v30188_v27, %v34385_v21 }
  0xa7   :  { %24305 = vmatprep.mubr.f32.mxu0 %v34381_v23  ;;  %v626_v51 = vand.u32 4294901760, %v625_v13  ;;  %v638_v23 = vand.u32 4294901760, %v30210_v52  ;;  %v646_v37 = vsub.f32 %v30212_v22, %v645_v28  ;;  %v34394_v13 = vand.u32 4294901760, %v30082_v50 }
  0xa8   :  { %v633_v20 = vand.u32 4294901760, %v632_v1 }
  0xa9   :  { %v639_v21 = vsub.f32 %v30210_v52, %v638_v23 }
  0xaa   :  { %24306 = vmatmul.mubr.f32.gmra.mrb[10].mxu0 %v34388_v17  ;;  %v30278_v32 = vpack.c.bf16 %v633_v20, %v626_v51  ;;  %v34397_v17 = vand.u32 4294901760, %v30077_v49  ;;  %v34393_v51 = vand.u32 4294901760, %v30087_v55  ;;  %v34395_v20 = vand.u32 4294901760, %v30092_v56 }
  0xab   :  { %24308 = vmatprep.mubr.f32.mxu0 %v34389_v34  ;;  %v640_v1 = vand.u32 4294901760, %v639_v21  ;;  %v647_v34 = vand.u32 4294901760, %v646_v37  ;;  %v34396_v21 = vand.u32 4294901760, %v30097_v61  ;;  %v34398_v37 = vand.u32 4294901760, %v30102_v62 }
  0xad   :  { %v30288_v38 = vpack.c.bf16 %v647_v34, %v640_v1  ;;  %v34399_v1 = vand.u32 4294901760, %v30112_v4  ;;  %v34583_v34 = vand.u32 4294901760, %v30188_v27 }
  0xae   :  { %24309 = vmatmul.mubr.f32.gmra.mrb[12].mxu0 %v34392_v45  ;;  %v34584_v45 = vld [vmem:[#allocation2_spill] sm:$0xff] }
  0xaf   :  { %24311 = vmatprep.mubr.f32.mxu0 %v34404_v57  ;;  %v34579_v57 = vand.u32 4294901760, %v30148_v6 }
  0xb2   :  { %24312 = vmatmul.mubr.f32.gmra.mrb[14].mxu0 %v34397_v17  ;;  %v34580_v17 = vand.u32 4294901760, %v30167_v10 }
  0xb3   :  { %24314 = vmatprep.mubr.f32.mxu0 %v34394_v13  ;;  %v34581_v13 = vand.u32 4294901760, %v30169_v40 }
  0xb6   :  { %24315 = vmatmul.mubr.f32.gmra.mrb[16].mxu0 %v34393_v51  ;;  %v34403_v51 = vand.u32 4294901760, %v30117_v7 }
  0xb7   :  { %24317 = vmatprep.mubr.f32.mxu0 %v34395_v20  ;;  %v34402_v20 = vand.u32 4294901760, %v30135_v19 }
  0xba   :  { %24318 = vmatmul.mubr.f32.gmra.mrb[18].mxu0 %v34396_v21  ;;  %v34401_v21 = vand.u32 4294901760, %v30141_v63  ;;  %v34588_v63 = vld [vmem:[#allocation6_spill] sm:$0xff] }
  0xbb   :  { %24320 = vmatprep.mubr.f32.mxu0 %v34398_v37  ;;  %v34400_v37 = vand.u32 4294901760, %v30159_v33  ;;  %v34587_v33 = vld [vmem:[#allocation5_spill] sm:$0xff] }
  0xbe   :  { %24321 = vmatmul.mubr.f32.gmra.mrb[20].mxu0 %v34399_v1 }
  0xbf   :  { %24323 = vmatprep.mubr.f32.mxu0 %v34403_v51  ;;  %v34578_v51 = vand.u32 4294901760, %v30146_v5 }
  0xc1   :  { %v30356_v1 = vpack.c.bf16 %v34579_v57, %v34578_v51  ;;  %v30376_v51 = vpack.c.bf16 %v645_v28, %v638_v23  ;;  %v22323_v23 = vld [vmem:[%s34335_s3 + $0x8] ss:$0 sm:$0xff] }
  0xc2   :  { %24324 = vmatmul.mubr.f32.gmra.mrb[22].mxu0 %v34402_v20 }
  0xc3   :  { %24326 = vmatprep.mubr.f32.mxu0 %v34401_v21  ;;  %v34577_v21 = vand.u32 4294901760, %v30123_v12 }
  0xc6   :  { %24327 = vmatmul.mubr.f32.gmra.mrb[24].mxu0 %v34400_v37  ;;  %v34576_v37 = vand.u32 4294901760, %v30121_v11 }
  0xc7   :  { %24331 = vmatprep.mubr.f32.mxu0 %v29784_v24 }
  0xc8   :  { %v30348_v20 = vpack.c.bf16 %v34577_v21, %v34576_v37  ;;  %v30364_v21 = vpack.c.bf16 %v34581_v13, %v34580_v17  ;;  %v34582_v37 = vand.u32 4294901760, %v30186_v39  ;;  %v34585_v17 = vld [vmem:[#allocation3_spill] sm:$0xff]  ;;  %v34586_v13 = vld [vmem:[#allocation4_spill] sm:$0xff] }
  0xca   :  { %24332 = vmatmul.mubr.f32.vlgmr.msra.gmra.mrb[2].mxu0 %v29799_v29  ;;  %v30372_v57 = vpack.c.bf16 %v34583_v34, %v34582_v37 }
  0xcb   :  { %24334 = vmatprep.mubr.f32.mxu0 %v29803_v30  ;;  %24368 = vmatpush3.msra.mxu0 %v29757_v15 }
  0xcc   :  { %27351 = vmatprep.subr.bf16.mxu0 %v34568_v18 }
  0xce   :  { %24335 = vmatmul.mubr.f32.gmra.mrb[4].mxu0 %v29819_v35 }
  0xcf   :  { %24337 = vmatprep.mubr.f32.mxu0 %v29823_v36 }
  0xd2   :  { %24338 = vmatmul.mubr.f32.gmra.mrb[6].mxu0 %v29840_v41 }
  0xd3   :  { %24340 = vmatprep.mubr.f32.mxu0 %v29844_v42 }
  0xd6   :  { %24341 = vmatmul.mubr.f32.gmra.mrb[8].mxu0 %v29860_v47 }
  0xd7   :  { %24343 = vmatprep.mubr.f32.mxu0 %v29864_v48 }
  0xda   :  { %24344 = vmatmul.mubr.f32.gmra.mrb[10].mxu0 %v29880_v53 }
  0xdb   :  { %24346 = vmatprep.mubr.f32.mxu0 %v29884_v54 }
  0xde   :  { %24347 = vmatmul.mubr.f32.gmra.mrb[12].mxu0 %v29900_v59 }
  0xdf   :  { %24349 = vmatprep.mubr.f32.mxu0 %v29904_v60 }
  0xe2   :  { %24350 = vmatmul.mubr.f32.gmra.mrb[14].mxu0 %v29920_v2 }
  0xe3   :  { %24352 = vmatprep.mubr.f32.mxu0 %v29924_v3 }
  0xe6   :  { %24353 = vmatmul.mubr.f32.gmra.mrb[16].mxu0 %v29940_v8 }
  0xe7   :  { %24355 = vmatprep.mubr.f32.mxu0 %v29944_v9 }
  0xea   :  { %24356 = vmatmul.mubr.f32.gmra.mrb[18].mxu0 %v29960_v14 }
  0xeb   :  { %24358 = vmatprep.mubr.f32.mxu0 %v29964_v16 }
  0xee   :  { %24359 = vmatmul.mubr.f32.gmra.mrb[20].mxu0 %v34584_v45 }
  0xef   :  { %24361 = vmatprep.mubr.f32.mxu0 %v34585_v17 }
  0xf2   :  { %24362 = vmatmul.mubr.f32.gmra.mrb[22].mxu0 %v34586_v13 }
  0xf3   :  { %24364 = vmatprep.mubr.f32.mxu0 %v34587_v33 }
  0xf6   :  { %24365 = vmatmul.mubr.f32.gmra.mrb[24].mxu0 %v34588_v63 }
  0xf7   :  { %24369 = vmatprep.mubr.f32.mxu0 %v29784_v24 }
  0xfa   :  { %24370 = vmatmul.mubr.f32.vlgmr.msra.gmra.mrb[2].mxu0 %v29799_v29 }
  0xfb   :  { %24372 = vmatprep.mubr.f32.mxu0 %v29803_v30 }
  0xfe   :  { %24373 = vmatmul.mubr.f32.gmra.mrb[4].mxu0 %v29819_v35 }
  0xff   :  { %24375 = vmatprep.mubr.f32.mxu0 %v29823_v36 }
 0x102   :  { %24376 = vmatmul.mubr.f32.gmra.mrb[6].mxu0 %v29840_v41 }
 0x103   :  { %24378 = vmatprep.mubr.f32.mxu0 %v29844_v42 }
 0x106   :  { %24379 = vmatmul.mubr.f32.gmra.mrb[8].mxu0 %v29860_v47 }
 0x107   :  { %24381 = vmatprep.mubr.f32.mxu0 %v29864_v48 }
 0x109   :  { %v470_v24 = vpop.f32.mrb[0].mxu0 }
 0x10a   :  { %v28605_v29 = vadd.f32 %v22323_v23, %v470_v24  ;;  %v24038_v28 = vpop.f32.mrb[1].mxu0  ;;  %24382 = vmatmul.mubr.f32.gmra.mrb[10].mxu0 %v29880_v53  ;;  %v34589_v53 = vmov 0.0  }
 0x10b   :  { %24384 = vmatprep.mubr.f32.mxu0 %v29884_v54  ;;  %v34590_v54 = vpack.c.bf16 %v30123_v12, %v30121_v11 }
 0x10c   :  { %29411 = vtanh.f32 %v28605_v29 }
 0x10e   :  { %24385 = vmatmul.mubr.f32.gmra.mrb[12].mxu0 %v29900_v59  ;;  %v34591_v59 = vpack.c.bf16 %v30148_v6, %v30146_v5  ;;  %v30525_v6 = vld [vmem:[%s34335_s3 + $0x88] sm:$0xff] }
 0x10f   :  { %24387 = vmatprep.mubr.f32.mxu0 %v29904_v60  ;;  %v34592_v60 = vpack.c.bf16 %v30169_v40, %v30167_v10  ;;  %v34599_v10 = vld [vmem:[#allocation7_spill] sm:$0xff] }
 0x110   :  { %v34600_v11 = vand.u32 4294901760, %v34599_v10 }
 0x112   :  { %24388 = vmatmul.mubr.f32.gmra.mrb[14].mxu0 %v29920_v2  ;;  %v34593_v2 = vpack.c.bf16 %v30188_v27, %v30186_v39  ;;  %v30485_v27 = vld [vmem:[%s34338_s2] sm:$0xff]  ;;  %v30490_v39 = vld [vmem:[%s34338_s2 + $0x8] sm:$0xff]  ;;  %v1228_v12 = vsub.f32 %v34599_v10, %v34600_v11  ;;  %v34614_v10 = vand.u32 4294901760, %v30047_v31 }
 0x113   :  { %24390 = vmatprep.mubr.f32.mxu0 %v29924_v3  ;;  %v34594_v3 = vpack.c.bf16 %v30212_v22, %v30210_v52  ;;  %v34412_v40 = vand.u32 4294901760, %v30485_v27  ;;  %v34411_v52 = vand.u32 4294901760, %v30490_v39 }
 0x114   :  { %v1229_v37 = vand.u32 4294901760, %v1228_v12  ;;  %v1298_v11 = vsub.f32 %v30047_v31, %v34614_v10 }
 0x116   :  { %v29412_v30 = vpop.eup %29411  ;;  %24391 = vmatmul.mubr.f32.gmra.mrb[16].mxu0 %v29940_v8  ;;  %v34595_v8 = vld [vmem:[#allocation16_spill] sm:$0xff] }
 0x117   :  { %24393 = vmatprep.mubr.f32.mxu0 %v29944_v9  ;;  %v492_v35 = vsel %vm490_vm2, %v29412_v30, 0  ;;  %v34596_v9 = vld [vmem:[#allocation18_spill] sm:$0xff]  ;;  %vm22301_vm2 = vcmask 72704  }
 0x118   :  { %v30403_v36 = vand.u32 4294901760, %v492_v35  ;;  %v34606_v30 = vld [vmem:[#allocation10_spill] sm:$0xff] }
 0x11a   :  { %24394 = vmatmul.mubr.f32.gmra.mrb[18].mxu0 %v29960_v14  ;;  %v570_v41 = vsub.f32 %v492_v35, %v30403_v36  ;;  %v34597_v14 = vld [vmem:[#allocation20_spill] sm:$0xff]  ;;  %v34607_v35 = vand.u32 4294901760, %v34606_v30 }
 0x11b   :  { %24396 = vmatprep.mubr.f32.mxu0 %v29964_v16  ;;  %v34598_v16 = vld [vmem:[#allocation21_spill] sm:$0xff] }
 0x11c   :  { %v571_v42 = vand.u32 4294901760, %v570_v41 }
 0x11e   :  { %24397 = vmatmul.mubr.f32.gmra.mrb[20].mxu0 %v34584_v45  ;;  %v572_v47 = vsub.f32 %v570_v41, %v571_v42  ;;  %v34601_v45 = vld [vmem:[#allocation8_spill] sm:$0xff] }
 0x11f   :  { %24399 = vmatprep.mubr.f32.mxu0 %v34585_v17 }
 0x120   :  { %v573_v48 = vand.u32 4294901760, %v572_v47 }
 0x122   :  { %24060 = vmatmul.mubr.f32.vlgmr.msra.gmra.mrb[0].mxu1 %v573_v48  ;;  %24400 = vmatmul.mubr.f32.gmra.mrb[22].mxu0 %v34586_v13  ;;  %v34420_v13 = vand.u32 4294901760, %v30525_v6  ;;  %v34608_v48 = vld [vmem:[#allocation11_spill] sm:$0xff] }
 0x123   :  { %27176 = vmatpush3.bf16.msra.mxu1 %v30230_v46  ;;  %24402 = vmatprep.mubr.f32.mxu0 %v34587_v33  ;;  %v30532_v46 = vld [vmem:[%s34335_s3 + $0x90] sm:$0xff] }
 0x124   :  { %27177 = vmatprep.subr.bf16.mxu1 %v34568_v18  ;;  %24082 = vmatprep.mubr.msk.f32.mxu1 %vm29704_vm1, %v34589_v53  ;;  %v34419_v24 = vand.u32 4294901760, %v30532_v46 }
 0x126   :  { %24403 = vmatmul.mubr.f32.gmra.mrb[24].mxu0 %v34588_v63 }
 0x127   :  { %27179 = vmatpush3.bf16.msra.mxu1 %v30246_v58  ;;  %24736 = vmatprep.mubr.msk.f32.mxu0 %vm29704_vm1, %v34589_v53  ;;  %v30498_v58 = vld [vmem:[%s34335_s3 + $0x78] sm:$0xff] }
 0x128   :  { %27180 = vmatprep.subr.bf16.mxu1 %v34568_v18  ;;  %v2705_v63 = vand.u32 4294901760, %v30498_v58 }
 0x12b   :  { %27182 = vmatpush3.bf16.msra.mxu1 %v30262_v26  ;;  %v30503_v26 = vld [vmem:[%s34335_s3 + $0x80] sm:$0xff] }
 0x12c   :  { %27183 = vmatprep.subr.bf16.mxu1 %v34568_v18  ;;  %v2708_v5 = vand.u32 4294901760, %v30503_v26 }
 0x12e   :  { %v30553_v23 = vpack.c.bf16 %v2708_v5, %v2705_v63 }
 0x12f   :  { %27185 = vmatpush3.bf16.msra.mxu1 %v30278_v32  ;;  %v30508_v32 = vsub.f32 %v30485_v27, %v34412_v40 }
 0x130   :  { %27186 = vmatprep.subr.bf16.mxu1 %v34568_v18  ;;  %34605 = vst [vmem:[#allocation2_spill] sm:$0xff] %v30553_v23 }
 0x131   :  { %v34410_v33 = vand.u32 4294901760, %v30508_v32 }
 0x133   :  { %27188 = vmatpush3.bf16.msra.mxu1 %v30288_v38  ;;  %v30513_v38 = vsub.f32 %v30490_v39, %v34411_v52 }
 0x134   :  { %27189 = vmatprep.subr.bf16.mxu1 %v34568_v18 }
 0x135   :  { %v34409_v22 = vand.u32 4294901760, %v30513_v38 }
 0x136   :  { %24083 = vmatmul.mubr.f32.vlgmr.msra.gmra.mrb[0].mxu1 %v30403_v36 }
 0x137   :  { %27191 = vmatpush3.bf16.msra.mxu1 %v34590_v54  ;;  %24105 = vmatprep.mubr.msk.f32.mxu1 %vm29704_vm1, %v34589_v53  ;;  %v34609_v54 = vand.u32 4294901760, %v34608_v48 }
 0x138   :  { %27192 = vmatprep.subr.bf16.mxu1 %v34568_v18 }
 0x13b   :  { %27194 = vmatpush3.bf16.msra.mxu1 %v34591_v59  ;;  %v1268_v59 = vsub.f32 %v34608_v48, %v34609_v54 }
 0x13c   :  { %27195 = vmatprep.subr.bf16.mxu1 %v34568_v18 }
 0x13f   :  { %27197 = vmatpush3.bf16.msra.mxu1 %v34592_v60 }
 0x140   :  { %27198 = vmatprep.subr.bf16.mxu1 %v34568_v18 }
 0x143   :  { %27200 = vmatpush3.bf16.msra.mxu1 %v34593_v2 }
 0x144   :  { %27201 = vmatprep.subr.bf16.mxu1 %v34568_v18 }
 0x147   :  { %27203 = vmatpush3.bf16.msra.mxu1 %v34594_v3  ;;  %v1269_v3 = vand.u32 4294901760, %v1268_v59  ;;  %v34624_v59 = vand.u32 4294901760, %v30082_v50 }
 0x148   :  { %27204 = vmatprep.subr.bf16.mxu1 %v34568_v18 }
 0x14a   :  { %24106 = vmatmul.mubr.f32.vlgmr.msra.gmra.mrb[0].mxu1 %v570_v41  ;;  %v1258_v41 = vsub.f32 %v34606_v30, %v34607_v35  ;;  %v34622_v35 = vand.u32 4294901760, %v30072_v44 }
 0x14b   :  { %27206 = vmatpush3.bf16.msra.mxu1 %v34595_v8  ;;  %24128 = vmatprep.mubr.msk.f32.mxu1 %vm29704_vm1, %v34589_v53 }
 0x14c   :  { %27207 = vmatprep.subr.bf16.mxu1 %v34568_v18  ;;  %v1259_v60 = vand.u32 4294901760, %v1258_v41  ;;  %v1348_v41 = vsub.f32 %v30072_v44, %v34622_v35 }
 0x14e   :  { %v1349_v54 = vand.u32 4294901760, %v1348_v41 }
 0x14f   :  { %27209 = vmatpush3.bf16.msra.mxu1 %v34596_v9 }
 0x150   :  { %27210 = vmatprep.subr.bf16.mxu1 %v34568_v18 }
 0x153   :  { %27212 = vmatpush3.bf16.msra.mxu1 %v34597_v14 }
 0x154   :  { %27213 = vmatprep.subr.bf16.mxu1 %v34568_v18 }
 0x157   :  { %27215 = vmatpush3.bf16.msra.mxu1 %v34598_v16 }
 0x158   :  { %27216 = vmatprep.subr.bf16.mxu1 %v34568_v18 }
 0x15b   :  { %27218 = vmatpush3.bf16.msra.mxu1 %v30208_v0 }
 0x15c   :  { %27219 = vmatprep.subr.bf16.mxu1 %v34568_v18 }
 0x15e   :  { %24129 = vmatmul.mubr.f32.vlgmr.msra.gmra.mrb[0].mxu1 %v571_v42 }
 0x15f   :  { %27221 = vmatpush3.bf16.msra.mxu1 %v30348_v20  ;;  %24151 = vmatprep.mubr.msk.f32.mxu1 %vm29704_vm1, %v34589_v53  ;;  %v34602_v20 = vand.u32 4294901760, %v34601_v45 }
 0x160   :  { %27222 = vmatprep.subr.bf16.mxu1 %v34568_v18 }
 0x161   :  { %v1238_v34 = vsub.f32 %v34601_v45, %v34602_v20  ;;  %v34615_v45 = vld [vmem:[#allocation13_spill] sm:$0xff] }
 0x163   :  { %27224 = vmatpush3.bf16.msra.mxu1 %v30356_v1  ;;  %v4347_v1 = vsub.f32 %v30508_v32, %v34410_v33 }
 0x164   :  { %27225 = vmatprep.subr.bf16.mxu1 %v34568_v18 }
 0x165   :  { %v4348_v29 = vand.u32 4294901760, %v4347_v1  ;;  %v34617_v1 = vld [vmem:[#allocation14_spill] sm:$0xff] }
 0x167   :  { %27227 = vmatpush3.bf16.msra.mxu1 %v30364_v21  ;;  %v4354_v21 = vsub.f32 %v30513_v38, %v34409_v22 }
 0x168   :  { %27228 = vmatprep.subr.bf16.mxu1 %v34568_v18 }
 0x169   :  { %v4355_v28 = vand.u32 4294901760, %v4354_v21  ;;  %v34618_v21 = vand.u32 4294901760, %v34617_v1 }
 0x16b   :  { %27230 = vmatpush3.bf16.msra.mxu1 %v30372_v57  ;;  %v34603_v57 = vld [vmem:[#allocation9_spill] sm:$0xff]  ;;  %v27352_v42 = vpack.c.bf16 %v4355_v28, %v4348_v29  ;;  %v34621_v28 = vand.u32 4294901760, %v30067_v43 }
 0x16c   :  { %27231 = vmatprep.subr.bf16.mxu1 %v34568_v18 }
 0x16d   :  { %27353 = vmatpush3.bf16.msra.mxu0 %v27352_v42 }
 0x16e   :  { %27354 = vmatprep.subr.bf16.mxu0 %v34568_v18 }
 0x16f   :  { %27233 = vmatpush3.bf16.msra.mxu1 %v30376_v51  ;;  %v34604_v51 = vand.u32 4294901760, %v34603_v57 }
 0x170   :  { %27234 = vmatprep.subr.bf16.mxu1 %v34568_v18 }
 0x171   :  { %v1248_v17 = vsub.f32 %v34603_v57, %v34604_v51  ;;  %v34619_v51 = vld [vmem:[#allocation15_spill] sm:$0xff] }
 0x172   :  { %24152 = vmatmul.mubr.f32.vlgmr.msra.gmra.mrb[0].mxu1 %v30403_v36 }
 0x173   :  { %27236 = vmatpush3.bf16.msra.mxu1 %v34595_v8  ;;  %24174 = vmatprep.mubr.msk.f32.mxu1 %vm29704_vm1, %v34589_v53  ;;  %v1249_v47 = vand.u32 4294901760, %v1248_v17  ;;  %v34612_v8 = vld [vmem:[#allocation12_spill] sm:$0xff]  ;;  %v34620_v17 = vand.u32 4294901760, %v34619_v51 }
 0x174   :  { %27237 = vmatprep.subr.bf16.mxu1 %v34568_v18 }
 0x175   :  { %v1328_v31 = vsub.f32 %v34619_v51, %v34620_v17 }
 0x177   :  { %27239 = vmatpush3.bf16.msra.mxu1 %v34596_v9  ;;  %v34613_v9 = vand.u32 4294901760, %v34612_v8  ;;  %v1329_v30 = vand.u32 4294901760, %v1328_v31 }
 0x178   :  { %27240 = vmatprep.subr.bf16.mxu1 %v34568_v18 }
 0x17b   :  { %27242 = vmatpush3.bf16.msra.mxu1 %v34597_v14  ;;  %v1288_v14 = vsub.f32 %v34612_v8, %v34613_v9  ;;  %v34627_v9 = vand.u32 4294901760, %v30097_v61 }
 0x17c   :  { %27243 = vmatprep.subr.bf16.mxu1 %v34568_v18 }
 0x17d   :  { %v1289_v12 = vand.u32 4294901760, %v1288_v14  ;;  %v1398_v14 = vsub.f32 %v30097_v61, %v34627_v9 }
 0x17f   :  { %27245 = vmatpush3.bf16.msra.mxu1 %v34598_v16 }
 0x180   :  { %27246 = vmatprep.subr.bf16.mxu1 %v34568_v18 }
 0x183   :  { %27248 = vmatpush3.bf16.msra.mxu1 %v30208_v0  ;;  %v1239_v0 = vand.u32 4294901760, %v1238_v34  ;;  %v1299_v34 = vand.u32 4294901760, %v1298_v11  ;;  %v34629_v11 = vand.u32 4294901760, %v30112_v4 }
 0x184   :  { %24177 = vmatprep.subr.mxu1 %v29757_v15 }
 0x186   :  { %24175 = vmatmul.mubr.f32.vlgmr.msra.gmra.mrb[0].mxu1 %v30403_v36  ;;  %v30569_v36 = vpack.c.bf16 %v34419_v24, %v34420_v13 }
 0x187   :  { %24178 = vmatpush3.msra.mxu1 %v29757_v15  ;;  %24179 = vmatprep.mubr.f32.mxu1 %v1229_v37  ;;  %v34611_v15 = vand.u32 4294901760, %v30037_v25  ;;  %v1318_v37 = vsub.f32 %v34617_v1, %v34618_v21  ;;  %v34632_v1 = vld [vmem:[#allocation17_spill] sm:$0xff] }
 0x188   :  { %27250 = vmatprep.subr.bf16.mxu1 %v30553_v23  ;;  %34610 = vst [vmem:[#allocation3_spill] sm:$0xff] %v30569_v36  ;;  %v34633_v21 = vand.u32 4294901760, %v34632_v1 }
 0x189   :  { %v1278_v2 = vsub.f32 %v30037_v25, %v34611_v15  ;;  %v34616_v25 = vand.u32 4294901760, %v34615_v45  ;;  %v1319_v29 = vand.u32 4294901760, %v1318_v37  ;;  %v34625_v15 = vand.u32 4294901760, %v30087_v55 }
 0x18a   :  { %24180 = vmatmul.mubr.f32.vlgmr.msra.gmra.mrb[2].mxu1 %v1239_v0  ;;  %v1338_v0 = vsub.f32 %v30067_v43, %v34621_v28  ;;  %v1448_v37 = vsub.f32 %v34632_v1, %v34633_v21  ;;  %v4232_v28 = vld [vmem:[%s34338_s2 + $0x10] sm:$0xff] }
 0x18b   :  { %24182 = vmatprep.mubr.f32.mxu1 %v1249_v47  ;;  %27252 = vmatpush3.bf16.msra.mxu1 %v30553_v23  ;;  %v1279_v16 = vand.u32 4294901760, %v1278_v2  ;;  %v1308_v20 = vsub.f32 %v34615_v45, %v34616_v25  ;;  %v34623_v47 = vand.u32 4294901760, %v30077_v49  ;;  %v1378_v2 = vsub.f32 %v30087_v55, %v34625_v15 }
 0x18c   :  { %27254 = vmatprep.subr.bf16.mxu1 %v30569_v36  ;;  %v1339_v42 = vand.u32 4294901760, %v1338_v0  ;;  %v1399_v55 = vand.u32 4294901760, %v1398_v14  ;;  %v34630_v45 = vand.u32 4294901760, %v30117_v7  ;;  %v4233_v0 = vld [vmem:[%s34338_s2 + $0x18] sm:$0xff] }
 0x18d   :  { %v1309_v57 = vand.u32 4294901760, %v1308_v20  ;;  %v1358_v48 = vsub.f32 %v30077_v49, %v34623_v47  ;;  %v1379_v49 = vand.u32 4294901760, %v1378_v2  ;;  %v34631_v20 = vand.u32 4294901760, %v30135_v19 }
 0x18e   :  { %24183 = vmatmul.mubr.f32.gmra.mrb[4].mxu1 %v1259_v60  ;;  %v1368_v60 = vsub.f32 %v30082_v50, %v34624_v59  ;;  %v1428_v25 = vsub.f32 %v30117_v7, %v34630_v45  ;;  %v1449_v7 = vand.u32 4294901760, %v1448_v37  ;;  %v4274_v35 = vand.u32 4294901760, %v4233_v0 }
 0x18f   :  { %24185 = vmatprep.mubr.f32.mxu1 %v1269_v3  ;;  %27256 = vmatpush3.bf16.msra.mxu1 %v30569_v36  ;;  %v1359_v43 = vand.u32 4294901760, %v1358_v48  ;;  %v34626_v3 = vand.u32 4294901760, %v30092_v56 }
 0x190   :  { %v1369_v44 = vand.u32 4294901760, %v1368_v60  ;;  %v30646_v47 = vsub.f32 %v4233_v0, %v4274_v35 }
 0x191   :  { %v1388_v8 = vsub.f32 %v30092_v56, %v34626_v3 }
 0x192   :  { %24186 = vmatmul.mubr.f32.gmra.mrb[6].mxu1 %v1279_v16  ;;  %v34628_v16 = vand.u32 4294901760, %v30102_v62  ;;  %v4367_v59 = vand.u32 4294901760, %v30646_v47 }
 0x193   :  { %24188 = vmatprep.mubr.f32.mxu1 %v1289_v12  ;;  %v1389_v50 = vand.u32 4294901760, %v1388_v8  ;;  %v1418_v12 = vsub.f32 %v30112_v4, %v34629_v11 }
 0x194   :  { %v1408_v10 = vsub.f32 %v30102_v62, %v34628_v16  ;;  %v1429_v62 = vand.u32 4294901760, %v1428_v25  ;;  %v4368_v15 = vsub.f32 %v30646_v47, %v4367_v59 }
 0x195   :  { %v1419_v61 = vand.u32 4294901760, %v1418_v12 }
 0x196   :  { %24189 = vmatmul.mubr.f32.gmra.mrb[8].mxu1 %v1299_v34  ;;  %v1409_v56 = vand.u32 4294901760, %v1408_v10  ;;  %v1438_v34 = vsub.f32 %v30135_v19, %v34631_v20  ;;  %v4369_v3 = vand.u32 4294901760, %v4368_v15  ;;  %v30729_v15 = vsub.f32 %v30503_v26, %v2708_v5 }
 0x197   :  { %24191 = vmatprep.mubr.f32.mxu1 %v1309_v57  ;;  %v34634_v57 = vld [vmem:[#allocation19_spill] sm:$0xff] }
 0x198   :  { %v1439_v4 = vand.u32 4294901760, %v1438_v34  ;;  %v34635_v51 = vand.u32 4294901760, %v34634_v57  ;;  %v2622_v34 = vld [vmem:[%s34335_s3 + $0x98] sm:$0xff]  ;;  %34640 = vst [vmem:[#allocation18_spill] sm:$0xff] %v30729_v15 }
 0x199   :  { %v2717_v1 = vand.u32 4294901760, %v2622_v34 }
 0x19a   :  { %24192 = vmatmul.mubr.f32.gmra.mrb[10].mxu1 %v1319_v29  ;;  %v1458_v17 = vsub.f32 %v34634_v57, %v34635_v51  ;;  %v2624_v51 = vld [vmem:[%s34335_s3 + $0xa8] sm:$0xff] }
 0x19b   :  { %24194 = vmatprep.mubr.f32.mxu1 %v1329_v30  ;;  %v4271_v30 = vand.u32 4294901760, %v4232_v28  ;;  %v30742_v26 = vsub.f32 %v2622_v34, %v2717_v1 }
 0x19c   :  { %v1459_v31 = vand.u32 4294901760, %v1458_v17  ;;  %v2625_v17 = vld [vmem:[%s34335_s3 + $0xb0] sm:$0xff] }
 0x19d   :  { %v30681_v25 = vpack.c.bf16 %v4274_v35, %v4271_v30  ;;  %34641 = vst [vmem:[#allocation20_spill] sm:$0xff] %v30742_v26  ;;  %v34414_v52 = vand.u32 4294901760, %v30742_v26 }
 0x19e   :  { %24195 = vmatmul.mubr.f32.gmra.mrb[12].mxu1 %v1339_v42  ;;  %v30644_v42 = vsub.f32 %v4232_v28, %v4271_v30  ;;  %v2726_v28 = vand.u32 4294901760, %v2625_v17 }
 0x19f   :  { %24197 = vmatprep.mubr.f32.mxu1 %v1349_v54  ;;  %34636 = vst [vmem:[#allocation4_spill] sm:$0xff] %v30681_v25 }
 0x1a0   :  { %v4360_v54 = vand.u32 4294901760, %v30644_v42 }
 0x1a2   :  { %24198 = vmatmul.mubr.f32.gmra.mrb[14].mxu1 %v1359_v43  ;;  %v4361_v43 = vsub.f32 %v30644_v42, %v4360_v54 }
 0x1a3   :  { %24200 = vmatprep.mubr.f32.mxu1 %v1369_v44 }
 0x1a4   :  { %v4362_v44 = vand.u32 4294901760, %v4361_v43 }
 0x1a6   :  { %24201 = vmatmul.mubr.f32.gmra.mrb[16].mxu1 %v1379_v49  ;;  %v27355_v49 = vpack.c.bf16 %v4369_v3, %v4362_v44  ;;  %v34418_v3 = vand.u32 4294901760, %v30729_v15 }
 0x1a7   :  { %24203 = vmatprep.mubr.f32.mxu1 %v1389_v50 }
 0x1a8   :  { %27356 = vmatpush3.bf16.msra.mxu0 %v27355_v49  ;;  %v3028_v22 = vsub.f32 %v30729_v15, %v34418_v3 }
 0x1a9   :  { %27357 = vmatprep.subr.bf16.mxu0 %v34568_v18 }
 0x1aa   :  { %24204 = vmatmul.mubr.f32.gmra.mrb[18].mxu1 %v1399_v55 }
 0x1ab   :  { %24206 = vmatprep.mubr.f32.mxu1 %v1409_v56 }
 0x1ae   :  { %24207 = vmatmul.mubr.f32.gmra.mrb[20].mxu1 %v1419_v61 }
 0x1af   :  { %24209 = vmatprep.mubr.f32.mxu1 %v1429_v62  ;;  %v2623_v62 = vld [vmem:[%s34335_s3 + $0xa0] sm:$0xff] }
 0x1b0   :  { %v2720_v21 = vand.u32 4294901760, %v2623_v62 }
 0x1b2   :  { %24210 = vmatmul.mubr.f32.gmra.mrb[22].mxu1 %v1439_v4  ;;  %v30695_v4 = vpack.c.bf16 %v2720_v21, %v2717_v1  ;;  %v30744_v5 = vsub.f32 %v2623_v62, %v2720_v21  ;;  %v30758_v62 = vsub.f32 %v2625_v17, %v2726_v28 }
 0x1b3   :  { %24212 = vmatprep.mubr.f32.mxu1 %v1449_v7  ;;  %v30705_v7 = vpack.c.bf16 %v4367_v59, %v4360_v54  ;;  %v30724_v59 = vsub.f32 %v30498_v58, %v2705_v63  ;;  %v3029_v58 = vand.u32 4294901760, %v3028_v22 }
 0x1b4   :  { %34637 = vst [vmem:[#allocation5_spill] sm:$0xff] %v30695_v4  ;;  %27258 = vmatprep.subr.bf16.mxu1 %v30695_v4  ;;  %34642 = vst [vmem:[#allocation21_spill] sm:$0xff] %v30744_v5  ;;  %v34415_v40 = vand.u32 4294901760, %v30744_v5  ;;  %v34416_v21 = vand.u32 4294901760, %v30758_v62  ;;  %v30776_v17 = vpack.c.bf16 %v30744_v5, %v30742_v26 }
 0x1b5   :  { %27260 = vmatpush3.bf16.msra.mxu1 %v30695_v4  ;;  %34639 = vst [vmem:[#allocation16_spill] sm:$0xff] %v30724_v59  ;;  %v34413_v44 = vand.u32 4294901760, %v30724_v59  ;;  %34644 = vst [vmem:[#allocation8_spill] sm:$0xff] %v30758_v62 }
 0x1b6   :  { %24213 = vmatmul.mubr.f32.gmra.mrb[24].mxu1 %v1459_v31  ;;  %v2723_v31 = vand.u32 4294901760, %v2624_v51  ;;  %v3056_v22 = vsub.f32 %v30744_v5, %v34415_v40  ;;  %v3070_v40 = vsub.f32 %v30758_v62, %v34416_v21  ;;  %34645 = vst [vmem:[#allocation9_spill] sm:$0xff] %v30776_v17 }
 0x1b7   :  { %v3021_v49 = vsub.f32 %v30724_v59, %v34413_v44  ;;  %v3049_v44 = vsub.f32 %v30742_v26, %v34414_v52 }
 0x1b8   :  { %v30711_v30 = vpack.c.bf16 %v2726_v28, %v2723_v31  ;;  %v30756_v34 = vsub.f32 %v2624_v51, %v2723_v31  ;;  %v30772_v51 = vpack.c.bf16 %v30729_v15, %v30724_v59  ;;  %v30785_v28 = vld [vmem:[%s34338_s2 + $0x60] sm:$0xff] }
 0x1b9   :  { %v3022_v33 = vand.u32 4294901760, %v3021_v49  ;;  %v3057_v49 = vand.u32 4294901760, %v3056_v22  ;;  %v3071_v22 = vand.u32 4294901760, %v3070_v40  ;;  %v30790_v40 = vld [vmem:[%s34338_s2 + $0x68] sm:$0xff]  ;;  %v34647_v21 = vand.u32 4294901760, %v30785_v28 }
 0x1ba   :  { %34638 = vst [vmem:[#allocation6_spill] sm:$0xff] %v30711_v30  ;;  %27262 = vmatprep.subr.bf16.mxu1 %v30711_v30  ;;  %34643 = vst [vmem:[#allocation7_spill] sm:$0xff] %v30756_v34  ;;  %v34417_v1 = vand.u32 4294901760, %v30756_v34  ;;  %v30780_v31 = vpack.c.bf16 %v30758_v62, %v30756_v34  ;;  %v30812_v62 = vld [vmem:[%s34335_s3 + $0x70] ss:$0 sm:$0xff]  ;;  %v34648_v3 = vand.u32 4294901760, %v30790_v40 }
 0x1bb   :  { %27264 = vmatpush3.bf16.msra.mxu1 %v30711_v30  ;;  %v30739_v63 = vpack.c.bf16 %v3029_v58, %v3022_v33  ;;  %v3050_v33 = vand.u32 4294901760, %v3049_v44  ;;  %v30820_v5 = vsub.f32 %v30785_v28, %v34647_v21 }
 0x1bc   :  { %v3063_v52 = vsub.f32 %v30756_v34, %v34417_v1  ;;  %34646 = vst [vmem:[#allocation10_spill] sm:$0xff] %v30780_v31 }
 0x1bd   :  { %27266 = vmatprep.subr.bf16.mxu1 %v30739_v63  ;;  %v30754_v58 = vpack.c.bf16 %v3057_v49, %v3050_v33  ;;  %v30800_v49 = vld [vmem:[%s34338_s2 + $0x78] sm:$0xff] }
 0x1be   :  { %v3064_v44 = vand.u32 4294901760, %v3063_v52  ;;  %v30795_v52 = vld [vmem:[%s34338_s2 + $0x70] sm:$0xff]  ;;  %v34650_v26 = vand.u32 4294901760, %v30800_v49 }
 0x1bf   :  { %v34649_v55 = vand.u32 4294901760, %v30795_v52 }
 0x1c0   :  { %v30768_v33 = vpack.c.bf16 %v3071_v22, %v3064_v44  ;;  %v22324_v44 = vld [vmem:[%s34335_s3 + $0x60] ss:$0 sm:$0xff]  ;;  %v27358_v22 = vpack.c.bf16 %v30513_v38, %v30508_v32  ;;  %v30837_v15 = vsub.f32 %v30800_v49, %v34650_v26 }
 0x1cd   :  { %v30632_v29 = vpop.f32.mrb[2].mxu0 }
 0x1ce   :  { %v30634_v19 = vpop.f32.mrb[3].mxu0 }
 0x1d1   :  { %v30642_v41 = vpop.f32.mrb[4].mxu0 }
 0x1d2   :  { %v30648_v48 = vpop.f32.mrb[5].mxu0 }
 0x1d5   :  { %v30652_v60 = vpop.f32.mrb[6].mxu0 }
 0x1d6   :  { %v30656_v2 = vpop.f32.mrb[7].mxu0 }
 0x1d9   :  { %v30658_v8 = vpop.f32.mrb[8].mxu0 }
 0x1da   :  { %v30660_v9 = vpop.f32.mrb[9].mxu0 }
 0x1dd   :  { %v30663_v14 = vpop.f32.mrb[10].mxu0 }
 0x1de   :  { %v30665_v50 = vpop.f32.mrb[11].mxu0 }
 0x1e1   :  { %v30667_v16 = vpop.f32.mrb[12].mxu0 }
 0x1e2   :  { %v30669_v10 = vpop.f32.mrb[13].mxu0 }
 0x1e5   :  { %v30673_v11 = vpop.f32.mrb[14].mxu0 }
 0x1e6   :  { %v30675_v12 = vpop.f32.mrb[15].mxu0 }
 0x1e9   :  { %v30677_v56 = vpop.f32.mrb[16].mxu0 }
 0x1ea   :  { %v30679_v45 = vpop.f32.mrb[17].mxu0 }
 0x1ed   :  { %v30683_v61 = vpop.f32.mrb[18].mxu0 }
 0x1ee   :  { %v30685_v20 = vpop.f32.mrb[19].mxu0 }
 0x1f1   :  { %v30693_v37 = vpop.f32.mrb[20].mxu0 }
 0x1f2   :  { %v30697_v57 = vpop.f32.mrb[21].mxu0 }
 0x1f5   :  { %v30709_v0 = vpop.f32.mrb[22].mxu0 }
 0x1f6   :  { %v30713_v35 = vpop.f32.mrb[23].mxu0 }
 0x1f9   :  { %v30717_v43 = vpop.f32.mrb[24].mxu0 }
 0x1fa   :  { %v30719_v54 = vpop.f32.mrb[25].mxu0 }
 0x259   :  { %v1053_v1 = vpop.f32.mrb[0].mxu1 }
 0x25a   :  { %v28606_v24 = vadd.f32 %v22324_v44, %v1053_v1  ;;  %v24176_v13 = vpop.f32.mrb[1].mxu1  ;;  %v30825_v1 = vsub.f32 %v30790_v40, %v34648_v3  ;;  %v34651_v3 = vand.u32 4294901760, %v30525_v6 }
 0x25c   :  { %v4262_v34 = vsel %vm4260_vm3, %v28606_v24, 0  ;;  %v30832_v24 = vsub.f32 %v30795_v52, %v34649_v55  ;;  %v30845_v4 = vsub.f32 %v30525_v6, %v34651_v3  ;;  %v34652_v55 = vand.u32 4294901760, %v30532_v46 }
 0x25d   :  { %v30827_v13 = vand.u32 4294901760, %v4262_v34  ;;  %v24181_v44 = vpop.f32.mrb[2].mxu1  ;;  %v34654_v6 = vand.u32 4294901760, %v30485_v27 }
 0x25e   :  { %v1242_v21 = vadd.f32 %v24181_v44, %v30812_v62  ;;  %v1231_v59 = vpop.f32.mrb[3].mxu1  ;;  %v30850_v36 = vsub.f32 %v30532_v46, %v34652_v55  ;;  %v34438_v44 = vand.u32 4294901760, %v30825_v1  ;;  %v34436_v3 = vand.u32 4294901760, %v30845_v4 }
 0x25f   :  { %v1232_v30 = vadd.f32 %v30812_v62, %v1231_v59  ;;  %24737 = vmatmul.mubr.f32.vlgmr.msra.gmra.mrb[26].mxu0 %v30827_v13  ;;  %v34439_v59 = vand.u32 4294901760, %v30820_v5  ;;  %v34657_v27 = vand.u32 4294901760, %v30832_v24 }
 0x260   :  { %v28608_v26 = vadd.f32 %v30632_v29, %v1242_v21  ;;  %27359 = vmatpush3.bf16.msra.mxu0 %v27358_v22  ;;  %24747 = vmatprep.mubr.msk.f32.mxu0 %vm29704_vm1, %v34589_v53  ;;  %v34437_v55 = vand.u32 4294901760, %v30850_v36 }
 0x261   :  { %v28610_v23 = vadd.f32 %v30634_v19, %v1232_v30  ;;  %v24184_v31 = vpop.f32.mrb[4].mxu1  ;;  %27360 = vmatprep.subr.bf16.mxu0 %v34568_v18  ;;  %v34653_v30 = vpack.c.bf16 %v30646_v47, %v30644_v42 }
 0x262   :  { %29413 = vtanh.f32 %v28608_v26  ;;  %v1262_v29 = vadd.f32 %v24184_v31, %v30812_v62  ;;  %v1251_v22 = vpop.f32.mrb[5].mxu1  ;;  %v34655_v26 = vand.u32 4294901760, %v30490_v39  ;;  %v4843_v31 = vsub.f32 %v30825_v1, %v34438_v44 }
 0x263   :  { %29415 = vtanh.f32 %v28610_v23  ;;  %v1252_v21 = vadd.f32 %v30812_v62, %v1251_v22  ;;  %v4836_v23 = vsub.f32 %v30820_v5, %v34439_v59  ;;  %v4850_v39 = vsub.f32 %v30832_v24, %v34657_v27 }
 0x264   :  { %v28612_v19 = vadd.f32 %v30642_v41, %v1262_v29  ;;  %27362 = vmatpush3.bf16.msra.mxu0 %v34653_v30  ;;  %v30873_v46 = vpack.c.bf16 %v34655_v26, %v34654_v6  ;;  %v30882_v41 = vsub.f32 %v4262_v34, %v30827_v13  ;;  %v34658_v6 = vand.u32 4294901760, %v30837_v15 }
 0x265   :  { %v28614_v42 = vadd.f32 %v30648_v48, %v1252_v21  ;;  %v24187_v47 = vpop.f32.mrb[6].mxu1  ;;  %27363 = vmatprep.subr.bf16.mxu0 %v34568_v18  ;;  %v3035_v48 = vsub.f32 %v30845_v4, %v34436_v3  ;;  %v3042_v21 = vsub.f32 %v30850_v36, %v34437_v55  ;;  %v34659_v55 = vand.u32 4294901760, %v30508_v32 }
 0x266   :  { %34656 = vst [vmem:[#allocation11_spill] sm:$0xff] %v30873_v46  ;;  %v4857_v29 = vsub.f32 %v30837_v15, %v34658_v6  ;;  %29417 = vtanh.f32 %v28612_v19  ;;  %v1282_v22 = vadd.f32 %v24187_v47, %v30812_v62  ;;  %v1271_v30 = vpop.f32.mrb[7].mxu1  ;;  %v4837_v19 = vand.u32 4294901760, %v4836_v23 }
 0x267   :  { %29419 = vtanh.f32 %v28614_v42  ;;  %v1272_v34 = vadd.f32 %v30812_v62, %v1271_v30  ;;  %24748 = vmatmul.mubr.f32.vlgmr.msra.gmra.mrb[26].mxu0 %v30882_v41  ;;  %v4844_v42 = vand.u32 4294901760, %v4843_v31  ;;  %v30908_v6 = vand.u32 4294901760, %v30882_v41 }
 0x268   :  { %v28616_v26 = vadd.f32 %v30652_v60, %v1282_v22  ;;  %27365 = vmatpush3.bf16.msra.mxu0 %v30873_v46  ;;  %24758 = vmatprep.mubr.msk.f32.mxu0 %vm29704_vm1, %v34589_v53  ;;  %v4851_v30 = vand.u32 4294901760, %v4850_v39  ;;  %v4858_v3 = vand.u32 4294901760, %v4857_v29  ;;  %v34660_v23 = vand.u32 4294901760, %v30513_v38 }
 0x269   :  { %v28618_v47 = vadd.f32 %v30656_v2, %v1272_v34  ;;  %v24190_v27 = vpop.f32.mrb[8].mxu1  ;;  %27366 = vmatprep.subr.bf16.mxu0 %v34568_v18  ;;  %v3036_v34 = vand.u32 4294901760, %v3035_v48  ;;  %v3043_v44 = vand.u32 4294901760, %v3042_v21  ;;  %v34661_v39 = vand.u32 4294901760, %v30785_v28 }
 0x26a   :  { %29421 = vtanh.f32 %v28616_v26  ;;  %v1302_v60 = vadd.f32 %v24190_v27, %v30812_v62  ;;  %v1291_v22 = vpop.f32.mrb[9].mxu1  ;;  %v27370_v31 = vpack.c.bf16 %v34660_v23, %v34659_v55  ;;  %v34662_v29 = vand.u32 4294901760, %v30790_v40 }
 0x26b   :  { %29423 = vtanh.f32 %v28618_v47  ;;  %v1292_v2 = vadd.f32 %v30812_v62, %v1291_v22  ;;  %v34663_v32 = vand.u32 4294901760, %v30795_v52  ;;  %v34664_v38 = vand.u32 4294901760, %v30800_v49 }
 0x26c   :  { %v29414_v59 = vpop.eup %29413  ;;  %v28620_v17 = vadd.f32 %v30658_v8, %v1302_v60  ;;  %27368 = vmatpush3.bf16.msra.mxu0 %v30681_v25  ;;  %v30922_v26 = vpack.c.bf16 %v34662_v29, %v34661_v39  ;;  %v30930_v47 = vpack.c.bf16 %v4844_v42, %v4837_v19  ;;  %v4336_v28 = vsub.f32 %v30882_v41, %v30908_v6 }
 0x26d   :  { %v30928_v55 = vpack.c.bf16 %v34664_v38, %v34663_v32  ;;  %v29416_v48 = vpop.eup %29415  ;;  %v2636_v21 = vsel %vm2631_vm4, %v29414_v59, 0  ;;  %v28622_v8 = vadd.f32 %v30660_v9, %v1292_v2  ;;  %v24193_v27 = vpop.f32.mrb[10].mxu1  ;;  %27369 = vmatprep.subr.bf16.mxu0 %v34568_v18  ;;  %v30937_v40 = vpack.c.bf16 %v4858_v3, %v4851_v30 }
 0x26e   :  { %v30939_v52 = vand.u32 4294901760, %v2636_v21  ;;  %29425 = vtanh.f32 %v28620_v17  ;;  %v1322_v49 = vadd.f32 %v24193_v27, %v30812_v62  ;;  %v1311_v19 = vpop.f32.mrb[11].mxu1  ;;  %v2633_v42 = vsel %vm2631_vm4, %v29416_v48, 0 }
 0x26f   :  { %29427 = vtanh.f32 %v28622_v8  ;;  %v1312_v59 = vadd.f32 %v30812_v62, %v1311_v19  ;;  %24759 = vmatmul.mubr.f32.vlgmr.msra.gmra.mrb[26].mxu0 %v30908_v6  ;;  %v30945_v9 = vand.u32 4294901760, %v2633_v42  ;;  %v30947_v60 = vpack.c.bf16 %v3043_v44, %v3036_v34 }
 0x270   :  { %v29418_v22 = vpop.eup %29417  ;;  %v30950_v3 = vsub.f32 %v2636_v21, %v30939_v52  ;;  %v28624_v17 = vadd.f32 %v30663_v14, %v1322_v49  ;;  %27371 = vmatpush3.bf16.msra.mxu0 %v27370_v31  ;;  %24769 = vmatprep.mubr.msk.f32.mxu0 %vm29704_vm1, %v34589_v53  ;;  %v30968_v48 = vand.u32 4294901760, %v4336_v28 }
 0x271   :  { %v29420_v23 = vpop.eup %29419  ;;  %v28626_v2 = vadd.f32 %v30665_v50, %v1312_v59  ;;  %v24196_v39 = vpop.f32.mrb[12].mxu1  ;;  %27372 = vmatprep.subr.bf16.mxu0 %v34568_v18  ;;  %v30960_v44 = vsub.f32 %v2633_v42, %v30945_v9  ;;  %v2642_v34 = vsel %vm2631_vm4, %v29418_v22, 0 }
 0x272   :  { %v1342_v31 = vadd.f32 %v24196_v39, %v30812_v62  ;;  %v1331_v29 = vpop.f32.mrb[13].mxu1  ;;  %v34441_v32 = vand.u32 4294901760, %v30950_v3  ;;  %v2639_v38 = vsel %vm2631_vm4, %v29420_v23, 0  ;;  %34665 = vst [vmem:[#allocation12_spill] sm:$0xff] %v30968_v48  ;;  %v30979_v42 = vand.u32 4294901760, %v2642_v34 }
 0x273   :  { %29429 = vtanh.f32 %v28626_v2  ;;  %v1332_v50 = vadd.f32 %v30812_v62, %v1331_v29  ;;  %v34446_v21 = vand.u32 4294901760, %v30960_v44  ;;  %v30972_v8 = vand.u32 4294901760, %v2639_v38 }
 0x274   :  { %v29422_v27 = vpop.eup %29421  ;;  %29431 = vtanh.f32 %v28624_v17  ;;  %v28628_v49 = vadd.f32 %v30667_v16, %v1342_v31  ;;  %27374 = vmatpush3.bf16.msra.mxu0 %v30705_v7  ;;  %v2790_v19 = vsub.f32 %v30950_v3, %v34441_v32  ;;  %v30992_v31 = vsub.f32 %v2642_v34, %v30979_v42 }
 0x275   :  { %v29424_v28 = vpop.eup %29423  ;;  %v28630_v59 = vadd.f32 %v30669_v10, %v1332_v50  ;;  %v24199_v22 = vpop.f32.mrb[14].mxu1  ;;  %27375 = vmatprep.subr.bf16.mxu0 %v34568_v18  ;;  %v2780_v17 = vsub.f32 %v30960_v44, %v34446_v21  ;;  %v30987_v16 = vsub.f32 %v2639_v38, %v30972_v8  ;;  %v2648_v7 = vsel %vm2631_vm4, %v29422_v27, 0 }
 0x276   :  { %29433 = vtanh.f32 %v28628_v49  ;;  %v1362_v23 = vadd.f32 %v24199_v22, %v30812_v62  ;;  %v1351_v2 = vpop.f32.mrb[15].mxu1  ;;  %v2791_v39 = vand.u32 4294901760, %v2790_v19  ;;  %v34443_v27 = vand.u32 4294901760, %v30992_v31 }
 0x277   :  { %29435 = vtanh.f32 %v28630_v59  ;;  %v1352_v10 = vadd.f32 %v30812_v62, %v1351_v2  ;;  %24770 = vmatmul.mubr.f32.vlgmr.msra.gmra.mrb[26].mxu0 %v30827_v13  ;;  %v2781_v29 = vand.u32 4294901760, %v2780_v17  ;;  %v34442_v50 = vand.u32 4294901760, %v30987_v16 }
 0x278   :  { %v29426_v38 = vpop.eup %29425  ;;  %v28632_v32 = vadd.f32 %v30673_v11, %v1362_v23  ;;  %27377 = vmatpush3.bf16.msra.mxu0 %v30873_v46  ;;  %24780 = vmatprep.mubr.msk.f32.mxu0 %vm29704_vm1, %v34589_v53  ;;  %v2645_v34 = vsel %vm2631_vm4, %v29424_v28, 0  ;;  %v31003_v49 = vand.u32 4294901760, %v2648_v7 }
 0x279   :  { %v29428_v19 = vpop.eup %29427  ;;  %v28634_v59 = vadd.f32 %v30675_v12, %v1352_v10  ;;  %v24202_v22 = vpop.f32.mrb[16].mxu1  ;;  %24421 = vmatprep.mubr.f32.mxu1 %v2781_v29  ;;  %27378 = vmatprep.subr.bf16.mxu0 %v34568_v18  ;;  %v2800_v11 = vsub.f32 %v30987_v16, %v34442_v50  ;;  %v31010_v17 = vand.u32 4294901760, %v2645_v34  ;;  %v2654_v23 = vsel %vm2631_vm4, %v29426_v38, 0 }
 0x27a   :  { %29437 = vtanh.f32 %v28632_v32  ;;  %v1382_v28 = vadd.f32 %v24202_v22, %v30812_v62  ;;  %v1371_v2 = vpop.f32.mrb[17].mxu1  ;;  %24422 = vmatmul.mubr.f32.vlgmr.msra.gmra.mrb[26].mxu1 %v2791_v39  ;;  %v2810_v12 = vsub.f32 %v30992_v31, %v34443_v27  ;;  %v31018_v10 = vsub.f32 %v2648_v7, %v31003_v49 }
 0x27b   :  { %29439 = vtanh.f32 %v28634_v59  ;;  %v1372_v29 = vadd.f32 %v30812_v62, %v1371_v2  ;;  %27268 = vmatpush3.bf16.msra.mxu1 %v30739_v63  ;;  %v2801_v50 = vand.u32 4294901760, %v2800_v11  ;;  %v31023_v38 = vsub.f32 %v2645_v34, %v31010_v17 }
 0x27c   :  { %v28636_v32 = vadd.f32 %v30677_v56, %v1382_v28  ;;  %27380 = vmatpush3.bf16.msra.mxu0 %v30681_v25  ;;  %v2811_v39 = vand.u32 4294901760, %v2810_v12  ;;  %v34444_v22 = vand.u32 4294901760, %v31018_v10  ;;  %v2651_v27 = vsel %vm2631_vm4, %v29428_v19, 0  ;;  %27270 = vmatprep.subr.bf16.mxu1 %v30947_v60 }
 0x27d   :  { %v29430_v7 = vpop.eup %29429  ;;  %v28638_v59 = vadd.f32 %v30679_v45, %v1372_v29  ;;  %v24205_v2 = vpop.f32.mrb[18].mxu1  ;;  %24424 = vmatprep.mubr.f32.mxu1 %v2801_v50  ;;  %27381 = vmatprep.subr.bf16.mxu0 %v34568_v18  ;;  %v34445_v63 = vand.u32 4294901760, %v31023_v38  ;;  %v31033_v34 = vand.u32 4294901760, %v2651_v27  ;;  %v31035_v56 = vand.u32 4294901760, %v2654_v23 }
 0x27e   :  { %v29432_v11 = vpop.eup %29431  ;;  %29441 = vtanh.f32 %v28636_v32  ;;  %v1402_v28 = vadd.f32 %v24205_v2, %v30812_v62  ;;  %v1391_v19 = vpop.f32.mrb[19].mxu1  ;;  %24425 = vmatmul.mubr.f32.gmra.mrb[28].mxu1 %v2811_v39  ;;  %v2830_v45 = vsub.f32 %v31018_v10, %v34444_v22  ;;  %v2657_v50 = vsel %vm2631_vm4, %v29430_v7, 0 }
 0x27f   :  { %29443 = vtanh.f32 %v28638_v59  ;;  %v1392_v12 = vadd.f32 %v30812_v62, %v1391_v19  ;;  %24781 = vmatmul.mubr.f32.vlgmr.msra.gmra.mrb[26].mxu0 %v30827_v13  ;;  %v2820_v29 = vsub.f32 %v31023_v38, %v34445_v63  ;;  %v31048_v32 = vsub.f32 %v2651_v27, %v31033_v34  ;;  %27272 = vmatpush3.bf16.msra.mxu1 %v30947_v60 }
 0x280   :  { %v29434_v39 = vpop.eup %29433  ;;  %v28640_v2 = vadd.f32 %v30683_v61, %v1402_v28  ;;  %27383 = vmatpush3.bf16.msra.mxu0 %v30922_v26  ;;  %v2831_v7 = vand.u32 4294901760, %v2830_v45  ;;  %24791 = vmatprep.mubr.msk.f32.mxu0 %vm29704_vm1, %v34589_v53  ;;  %v31056_v59 = vsub.f32 %v2654_v23, %v31035_v56  ;;  %v31058_v19 = vand.u32 4294901760, %v2657_v50 }
 0x281   :  { %v29436_v22 = vpop.eup %29435  ;;  %v28642_v27 = vadd.f32 %v30685_v20, %v1392_v12  ;;  %v24208_v63 = vpop.f32.mrb[20].mxu1  ;;  %v2821_v21 = vand.u32 4294901760, %v2820_v29  ;;  %27384 = vmatprep.subr.bf16.mxu0 %v34568_v18  ;;  %v34447_v61 = vand.u32 4294901760, %v31048_v32  ;;  %v2660_v60 = vsel %vm2631_vm4, %v29432_v11, 0  ;;  %27274 = vmatprep.subr.bf16.mxu1 %v30754_v58 }
 0x282   :  { %29445 = vtanh.f32 %v28640_v2  ;;  %v1422_v28 = vadd.f32 %v24208_v63, %v30812_v62  ;;  %v1411_v23 = vpop.f32.mrb[21].mxu1  ;;  %v34448_v45 = vand.u32 4294901760, %v31056_v59  ;;  %v31068_v14 = vsub.f32 %v2657_v50, %v31058_v19 }
 0x283   :  { %29447 = vtanh.f32 %v28642_v27  ;;  %24427 = vmatprep.mubr.f32.mxu1 %v2821_v21  ;;  %v1412_v20 = vadd.f32 %v30812_v62, %v1411_v23  ;;  %v2840_v12 = vsub.f32 %v31048_v32, %v34447_v61  ;;  %v31074_v11 = vand.u32 4294901760, %v2660_v60  ;;  %27276 = vmatpush3.bf16.msra.mxu1 %v30754_v58 }
 0x284   :  { %v29438_v29 = vpop.eup %29437  ;;  %v28644_v63 = vadd.f32 %v30693_v37, %v1422_v28  ;;  %24428 = vmatmul.mubr.f32.gmra.mrb[30].mxu1 %v2831_v7  ;;  %27386 = vmatpush3.bf16.msra.mxu0 %v30928_v55  ;;  %v2850_v21 = vsub.f32 %v31056_v59, %v34448_v45  ;;  %v34449_v50 = vand.u32 4294901760, %v31068_v14  ;;  %v2663_v2 = vsel %vm2631_vm4, %v29436_v22, 0 }
 0x285   :  { %v29440_v27 = vpop.eup %29439  ;;  %v28646_v23 = vadd.f32 %v30697_v57, %v1412_v20  ;;  %v24211_v61 = vpop.f32.mrb[22].mxu1  ;;  %v2841_v30 = vand.u32 4294901760, %v2840_v12  ;;  %27387 = vmatprep.subr.bf16.mxu0 %v34568_v18  ;;  %v31087_v37 = vsub.f32 %v2660_v60, %v31074_v11  ;;  %v31089_v58 = vand.u32 4294901760, %v2663_v2  ;;  %27278 = vmatprep.subr.bf16.mxu1 %v30768_v33 }
 0x286   :  { %29449 = vtanh.f32 %v28644_v63  ;;  %v1442_v7 = vadd.f32 %v24211_v61, %v30812_v62  ;;  %v1431_v28 = vpop.f32.mrb[23].mxu1  ;;  %v2851_v45 = vand.u32 4294901760, %v2850_v21  ;;  %v2860_v57 = vsub.f32 %v31068_v14, %v34449_v50 }
 0x287   :  { %34666 = vst [vmem:[#allocation13_spill] sm:$0xff] %v31087_v37  ;;  %29451 = vtanh.f32 %v28646_v23  ;;  %24430 = vmatprep.mubr.f32.mxu1 %v2841_v30  ;;  %v1432_v22 = vadd.f32 %v30812_v62, %v1431_v28  ;;  %24792 = vmatmul.mubr.f32.vlgmr.msra.gmra.mrb[28].mxu0 %v30968_v48  ;;  %v34453_v60 = vand.u32 4294901760, %v31087_v37  ;;  %v31100_v20 = vsub.f32 %v2663_v2, %v31089_v58 }
 0x288   :  { %v29442_v12 = vpop.eup %29441  ;;  %v28648_v61 = vadd.f32 %v30709_v0, %v1442_v7  ;;  %24431 = vmatmul.mubr.f32.gmra.mrb[32].mxu1 %v2851_v45  ;;  %27389 = vmatpush3.bf16.msra.mxu0 %v30930_v47  ;;  %v2861_v63 = vand.u32 4294901760, %v2860_v57  ;;  %v2666_v21 = vsel %vm2631_vm4, %v29434_v39, 0  ;;  %v2669_v30 = vsel %vm2631_vm4, %v29440_v27, 0 }
 0x289   :  { %34667 = vst [vmem:[#allocation14_spill] sm:$0xff] %v31100_v20  ;;  %v29444_v23 = vpop.eup %29443  ;;  %v28650_v28 = vadd.f32 %v30713_v35, %v1432_v22  ;;  %v24214_v50 = vpop.f32.mrb[24].mxu1  ;;  %v2870_v2 = vsub.f32 %v31087_v37, %v34453_v60  ;;  %27390 = vmatprep.subr.bf16.mxu0 %v34568_v18  ;;  %v34452_v0 = vand.u32 4294901760, %v31100_v20  ;;  %24802 = vmatprep.mubr.msk.f32.mxu0 %vm29704_vm1, %v34589_v53  ;;  %v31114_v47 = vand.u32 4294901760, %v2666_v21 }
 0x28a   :  { %29453 = vtanh.f32 %v28648_v61  ;;  %v1462_v39 = vadd.f32 %v24214_v50, %v30812_v62  ;;  %24433 = vmatprep.mubr.f32.mxu1 %v2861_v63  ;;  %v1451_v45 = vpop.f32.mrb[25].mxu1  ;;  %v31117_v35 = vand.u32 4294901760, %v2669_v30  ;;  %v2672_v27 = vsel %vm2631_vm4, %v29438_v29, 0  ;;  %27280 = vmatpush3.bf16.msra.mxu1 %v30768_v33 }
 0x28b   :  { %29455 = vtanh.f32 %v28650_v28  ;;  %v1452_v7 = vadd.f32 %v30812_v62, %v1451_v45  ;;  %v2871_v57 = vand.u32 4294901760, %v2870_v2  ;;  %v2880_v22 = vsub.f32 %v31100_v20, %v34452_v0  ;;  %27282 = vmatprep.subr.bf16.mxu1 %v30772_v51 }
 0x28c   :  { %v29446_v61 = vpop.eup %29445  ;;  %v28652_v50 = vadd.f32 %v30717_v43, %v1462_v39  ;;  %27392 = vmatpush3.bf16.msra.mxu0 %v30937_v40  ;;  %v31129_v63 = vsub.f32 %v2666_v21, %v31114_v47  ;;  %v31132_v33 = vsub.f32 %v2669_v30, %v31117_v35  ;;  %v31134_v29 = vand.u32 4294901760, %v2672_v27 }
 0x28d   :  { %v29448_v62 = vpop.eup %29447  ;;  %v28654_v28 = vadd.f32 %v30719_v54, %v1452_v7  ;;  %24434 = vmatmul.mubr.f32.gmra.mrb[34].mxu1 %v2871_v57  ;;  %v2881_v2 = vand.u32 4294901760, %v2880_v22  ;;  %27393 = vmatprep.subr.bf16.mxu0 %v34568_v18  ;;  %v2675_v45 = vsel %vm2631_vm4, %v29444_v23, 0  ;;  %v2678_v43 = vsel %vm2631_vm4, %v29442_v12, 0 }
 0x28e   :  { %34668 = vst [vmem:[#allocation15_spill] sm:$0xff] %v31129_v63  ;;  %34669 = vst [vmem:[#allocation17_spill] sm:$0xff] %v31132_v33  ;;  %29457 = vtanh.f32 %v28652_v50  ;;  %v34451_v40 = vand.u32 4294901760, %v31129_v63  ;;  %v34450_v21 = vand.u32 4294901760, %v31132_v33  ;;  %v31143_v30 = vsub.f32 %v2672_v27, %v31134_v29 }
 0x28f   :  { %29459 = vtanh.f32 %v28654_v28  ;;  %24436 = vmatprep.mubr.f32.mxu1 %v2881_v2  ;;  %24803 = vmatmul.mubr.f32.vlgmr.msra.gmra.mrb[28].mxu0 %v30827_v13  ;;  %v31146_v54 = vand.u32 4294901760, %v2675_v45  ;;  %v31148_v39 = vand.u32 4294901760, %v2678_v43  ;;  %v2681_v23 = vsel %vm2631_vm4, %v29448_v62, 0 }
 0x290   :  { %34670 = vst [vmem:[#allocation19_spill] sm:$0xff] %v31143_v30  ;;  %v29450_v7 = vpop.eup %29449  ;;  %v2890_v12 = vsub.f32 %v31129_v63, %v34451_v40  ;;  %v34671_v57 = vpack.c.bf16 %v30825_v1, %v30820_v5  ;;  %v2900_v27 = vsub.f32 %v31132_v33, %v34450_v21  ;;  %v34457_v22 = vand.u32 4294901760, %v31143_v30  ;;  %24813 = vmatprep.mubr.msk.f32.mxu0 %vm29704_vm1, %v34589_v53 }
 0x291   :  { %v31163_v50 = vand.u32 4294901760, %v2681_v23  ;;  %v29452_v62 = vpop.eup %29451  ;;  %v31167_v28 = vsub.f32 %v2675_v45, %v31146_v54  ;;  %v31170_v2 = vsub.f32 %v2678_v43, %v31148_v39  ;;  %v2690_v21 = vsel %vm2631_vm4, %v29450_v7, 0 }
 0x292   :  { %27395 = vmatpush3.bf16.msra.mxu0 %v34671_v57  ;;  %v2684_v57 = vsel %vm2631_vm4, %v29446_v61, 0  ;;  %v2891_v40 = vand.u32 4294901760, %v2890_v12  ;;  %v2901_v0 = vand.u32 4294901760, %v2900_v27  ;;  %v2910_v60 = vsub.f32 %v31143_v30, %v34457_v22 }
 0x293   :  { %27396 = vmatprep.subr.bf16.mxu0 %v34568_v18  ;;  %34672 = vst [vmem:[#allocation22_spill] sm:$0xff] %v31167_v28  ;;  %34673 = vst [vmem:[#allocation23_spill] sm:$0xff] %v31170_v2  ;;  %v31178_v48 = vsub.f32 %v2681_v23, %v31163_v50  ;;  %v31182_v46 = vand.u32 4294901760, %v2684_v57  ;;  %v2687_v43 = vsel %vm2631_vm4, %v29452_v62, 0  ;;  %v34675_v12 = vpack.c.bf16 %v30837_v15, %v30832_v24 }
 0x294   :  { %v29454_v61 = vpop.eup %29453  ;;  %24437 = vmatmul.mubr.f32.gmra.mrb[36].mxu1 %v2891_v40  ;;  %v2911_v7 = vand.u32 4294901760, %v2910_v60  ;;  %v31189_v22 = vand.u32 4294901760, %v2687_v43  ;;  %v31191_v23 = vand.u32 4294901760, %v2690_v21  ;;  %v34676_v45 = vand.u32 4294901760, %v31167_v28 }
 0x295   :  { %34674 = vst [vmem:[#allocation24_spill] sm:$0xff] %v31178_v48  ;;  %v34468_v27 = vand.u32 4294901760, %v31178_v48  ;;  %v29456_v25 = vpop.eup %29455  ;;  %24439 = vmatprep.mubr.f32.mxu1 %v2901_v0  ;;  %v34677_v62 = vand.u32 4294901760, %v31170_v2  ;;  %v31201_v40 = vsub.f32 %v2684_v57, %v31182_v46 }
 0x296   :  { %27398 = vmatpush3.bf16.msra.mxu0 %v34675_v12  ;;  %v2920_v30 = vsub.f32 %v31167_v28, %v34676_v45  ;;  %v2696_v12 = vsel %vm2631_vm4, %v29454_v61, 0  ;;  %v31208_v0 = vsub.f32 %v2687_v43, %v31189_v22  ;;  %v31211_v45 = vsub.f32 %v2690_v21, %v31191_v23 }
 0x297   :  { %v2930_v60 = vsub.f32 %v31170_v2, %v34677_v62  ;;  %27399 = vmatprep.subr.bf16.mxu0 %v34568_v18  ;;  %34678 = vst [vmem:[#allocation25_spill] sm:$0xff] %v31201_v40  ;;  %v2940_v33 = vsub.f32 %v31178_v48, %v34468_v27  ;;  %v2693_v28 = vsel %vm2631_vm4, %v29456_v25, 0  ;;  %v34471_v57 = vand.u32 4294901760, %v31201_v40 }
 0x298   :  { %34679 = vst [vmem:[#allocation26_spill] sm:$0xff] %v31208_v0  ;;  %v2921_v62 = vand.u32 4294901760, %v2920_v30  ;;  %v31216_v2 = vand.u32 4294901760, %v2693_v28  ;;  %v29458_v61 = vpop.eup %29457  ;;  %24440 = vmatmul.mubr.f32.gmra.mrb[38].mxu1 %v2911_v7  ;;  %v34472_v43 = vand.u32 4294901760, %v31208_v0  ;;  %v31220_v27 = vand.u32 4294901760, %v2696_v12 }
 0x299   :  { %24814 = vmatmul.mubr.f32.vlgmr.msra.gmra.mrb[28].mxu0 %v30882_v41  ;;  %v2931_v63 = vand.u32 4294901760, %v2930_v60  ;;  %v29460_v21 = vpop.eup %29459  ;;  %v2941_v48 = vand.u32 4294901760, %v2940_v33  ;;  %v2702_v30 = vsel %vm2631_vm4, %v29458_v61, 0  ;;  %v2950_v7 = vsub.f32 %v31201_v40, %v34471_v57 }
 0x29a   :  { %27401 = vmatpush3.bf16.msra.mxu0 %v30922_v26  ;;  %34680 = vst [vmem:[#allocation27_spill] sm:$0xff] %v31220_v27  ;;  %24442 = vmatprep.mubr.f32.mxu1 %v2921_v62  ;;  %v31225_v41 = vsub.f32 %v2693_v28, %v31216_v2  ;;  %v2960_v60 = vsub.f32 %v31208_v0, %v34472_v43  ;;  %v2699_v62 = vsel %vm2631_vm4, %v29460_v21, 0  ;;  %v31243_v61 = vand.u32 4294901760, %v2702_v30 }
 0x29b   :  { %27402 = vmatprep.subr.bf16.mxu0 %v34568_v18  ;;  %24824 = vmatprep.mubr.msk.f32.mxu0 %vm29704_vm1, %v34589_v53  ;;  %v31237_v33 = vsub.f32 %v2696_v12, %v31220_v27  ;;  %v31241_v25 = vand.u32 4294901760, %v2699_v62  ;;  %v34683_v57 = vand.u32 4294901760, %v30820_v5  ;;  %v34684_v43 = vand.u32 4294901760, %v30825_v1 }
 0x29c   :  { %v34484_v28 = vand.u32 4294901760, %v31225_v41  ;;  %34682 = vst [vmem:[#allocation29_spill] sm:$0xff] %v31243_v61  ;;  %24443 = vmatmul.mubr.f32.gmra.mrb[40].mxu1 %v2931_v63  ;;  %v2961_v40 = vand.u32 4294901760, %v2960_v60  ;;  %v2951_v20 = vand.u32 4294901760, %v2950_v7  ;;  %v34685_v63 = vand.u32 4294901760, %v31211_v45 }
 0x29d   :  { %34681 = vst [vmem:[#allocation28_spill] sm:$0xff] %v31241_v25  ;;  %v27406_v0 = vpack.c.bf16 %v34684_v43, %v34683_v57  ;;  %24445 = vmatprep.mubr.f32.mxu1 %v2941_v48  ;;  %v31255_v21 = vsub.f32 %v2699_v62, %v31241_v25  ;;  %v34483_v5 = vand.u32 4294901760, %v31237_v33  ;;  %v31262_v1 = vsub.f32 %v2702_v30, %v31243_v61 }
 0x29e   :  { %27404 = vmatpush3.bf16.msra.mxu0 %v30928_v55  ;;  %v2980_v12 = vsub.f32 %v31225_v41, %v34484_v28  ;;  %v2970_v37 = vsub.f32 %v31211_v45, %v34685_v63  ;;  %v34686_v57 = vand.u32 4294901760, %v30832_v24  ;;  %v34687_v43 = vand.u32 4294901760, %v30837_v15  ;;  %v34693_v63 = vld [vmem:[#allocation6_spill] sm:$0xff]  ;;  %v34713_v28 = vld [vmem:[#allocation20_spill] sm:$0xff] }
 0x29f   :  { %27405 = vmatprep.subr.bf16.mxu0 %v34568_v18  ;;  %v34482_v48 = vand.u32 4294901760, %v31255_v21  ;;  %v34481_v24 = vand.u32 4294901760, %v31262_v1 }
 0x2a0   :  { %24446 = vmatmul.mubr.f32.gmra.mrb[42].mxu1 %v2951_v20  ;;  %v27409_v7 = vpack.c.bf16 %v34687_v43, %v34686_v57  ;;  %v2981_v60 = vand.u32 4294901760, %v2980_v12  ;;  %v2971_v62 = vand.u32 4294901760, %v2970_v37  ;;  %v34692_v12 = vld [vmem:[#allocation5_spill] sm:$0xff]  ;;  %v34694_v57 = vld [vmem:[#allocation16_spill] sm:$0xff] }
 0x2a1   :  { %24825 = vmatmul.mubr.f32.vlgmr.msra.gmra.mrb[28].mxu0 %v30908_v6  ;;  %24448 = vmatprep.mubr.f32.mxu1 %v2961_v40  ;;  %v3000_v30 = vsub.f32 %v31255_v21, %v34482_v48  ;;  %v2990_v6 = vsub.f32 %v31237_v33, %v34483_v5  ;;  %v3010_v37 = vsub.f32 %v31262_v1, %v34481_v24  ;;  %v34695_v43 = vand.u32 4294901760, %v34694_v57  ;;  %v34707_v57 = vld [vmem:[#allocation26_spill] sm:$0xff] }
 0x2a2   :  { %27407 = vmatpush3.bf16.msra.mxu0 %v27406_v0  ;;  %24835 = vmatprep.mubr.msk.f32.mxu0 %vm29704_vm1, %v34589_v53  ;;  %v27285_v0 = vpack.c.bf16 %v30850_v36, %v30845_v4  ;;  %v34711_v48 = vand.u32 4294901760, %v30950_v3  ;;  %v34712_v5 = vand.u32 4294901760, %v30987_v16 }
 0x2a3   :  { %27408 = vmatprep.subr.bf16.mxu0 %v34568_v18  ;;  %v3001_v15 = vand.u32 4294901760, %v3000_v30  ;;  %v2991_v20 = vand.u32 4294901760, %v2990_v6  ;;  %v3011_v40 = vand.u32 4294901760, %v3010_v37  ;;  %v34699_v6 = vld [vmem:[#allocation14_spill] sm:$0xff]  ;;  %v34702_v37 = vld [vmem:[#allocation19_spill] sm:$0xff] }
 0x2a4   :  { %24449 = vmatmul.mubr.f32.gmra.mrb[44].mxu1 %v2971_v62  ;;  %v34698_v62 = vld [vmem:[#allocation13_spill] sm:$0xff] }
 0x2a5   :  { %24451 = vmatprep.mubr.f32.mxu1 %v2981_v60 }
 0x2a6   :  { %27410 = vmatpush3.bf16.msra.mxu0 %v27409_v7  ;;  %v34696_v7 = vld [vmem:[#allocation18_spill] sm:$0xff] }
 0x2a7   :  { %27411 = vmatprep.subr.bf16.mxu0 %v34568_v18  ;;  %v34697_v60 = vand.u32 4294901760, %v34696_v7  ;;  %v34709_v7 = vand.u32 4294901760, %v30845_v4  ;;  %v34718_v4 = vand.u32 4294901760, %v31023_v38 }
 0x2a8   :  { %24452 = vmatmul.mubr.f32.gmra.mrb[46].mxu1 %v2991_v20  ;;  %v34701_v20 = vld [vmem:[#allocation17_spill] sm:$0xff] }
 0x2a9   :  { %24836 = vmatmul.mubr.f32.vlgmr.msra.gmra.mrb[28].mxu0 %v30827_v13  ;;  %24454 = vmatprep.mubr.f32.mxu1 %v3001_v15  ;;  %v27313_v30 = vpack.c.bf16 %v34697_v60, %v34695_v43  ;;  %v34700_v15 = vld [vmem:[#allocation15_spill] sm:$0xff]  ;;  %v34708_v43 = vand.u32 4294901760, %v30960_v44  ;;  %v34710_v60 = vand.u32 4294901760, %v30850_v36 }
 0x2aa   :  { %27413 = vmatpush3.bf16.msra.mxu0 %v30922_v26  ;;  %24846 = vmatprep.mubr.msk.f32.mxu0 %vm29704_vm1, %v34589_v53  ;;  %v34688_v26 = vld [vmem:[#allocation9_spill] sm:$0xff]  ;;  %v34714_v53 = vand.u32 4294901760, %v34713_v28  ;;  %v34719_v36 = vld [vmem:[#allocation7_spill] sm:$0xff]  ;;  %v34724_v28 = vand.u32 4294901760, %v31048_v32 }
 0x2ab   :  { %27414 = vmatprep.subr.bf16.mxu0 %v34568_v18  ;;  %v27317_v24 = vpack.c.bf16 %v34710_v60, %v34709_v7 }
 0x2ac   :  { %24455 = vmatmul.mubr.f32.gmra.mrb[48].mxu1 %v3011_v40  ;;  %v34703_v40 = vld [vmem:[#allocation22_spill] sm:$0xff] }
 0x2ad   :  { %24473 = vmatprep.mubr.f32.mxu1 %v30945_v9 }
 0x2ae   :  { %27416 = vmatpush3.bf16.msra.mxu0 %v30928_v55  ;;  %v34691_v55 = vld [vmem:[#allocation3_spill] sm:$0xff] }
 0x2b0   :  { %24474 = vmatmul.mubr.f32.vlgmr.msra.gmra.mrb[26].mxu1 %v30939_v52 }
 0x2b1   :  { %24847 = vmatmul.mubr.f32.vlgmr.msra.gmra.mrb[28].mxu0 %v30827_v13  ;;  %24476 = vmatprep.mubr.f32.mxu1 %v30972_v8  ;;  %v34689_v13 = vld [vmem:[#allocation10_spill] sm:$0xff] }
 0x2b2   :  { %27284 = vmatpush3.bf16.msra.mxu1 %v30772_v51  ;;  %v34690_v51 = vld [vmem:[#allocation2_spill] sm:$0xff] }
 0x2b3   :  { %27286 = vmatprep.subr.bf16.mxu1 %v27285_v0 }
 0x2b4   :  { %24477 = vmatmul.mubr.f32.gmra.mrb[28].mxu1 %v30979_v42 }
 0x2b5   :  { %24479 = vmatprep.mubr.f32.mxu1 %v31010_v17 }
 0x2b6   :  { %27288 = vmatpush3.bf16.msra.mxu1 %v27285_v0  ;;  %v34704_v0 = vld [vmem:[#allocation23_spill] sm:$0xff] }
 0x2b7   :  { %27290 = vmatprep.subr.bf16.mxu1 %v34688_v26 }
 0x2b8   :  { %24480 = vmatmul.mubr.f32.gmra.mrb[30].mxu1 %v31003_v49 }
 0x2b9   :  { %24482 = vmatprep.mubr.f32.mxu1 %v31033_v34 }
 0x2ba   :  { %27292 = vmatpush3.bf16.msra.mxu1 %v34688_v26  ;;  %v34705_v26 = vld [vmem:[#allocation24_spill] sm:$0xff] }
 0x2bb   :  { %27294 = vmatprep.subr.bf16.mxu1 %v34689_v13 }
 0x2bc   :  { %24483 = vmatmul.mubr.f32.gmra.mrb[32].mxu1 %v31035_v56 }
 0x2bd   :  { %24485 = vmatprep.mubr.f32.mxu1 %v31058_v19 }
 0x2be   :  { %27296 = vmatpush3.bf16.msra.mxu1 %v34689_v13  ;;  %v34706_v13 = vld [vmem:[#allocation25_spill] sm:$0xff] }
 0x2bf   :  { %27298 = vmatprep.subr.bf16.mxu1 %v34690_v51 }
 0x2c0   :  { %24486 = vmatmul.mubr.f32.gmra.mrb[34].mxu1 %v31074_v11 }
 0x2c1   :  { %24488 = vmatprep.mubr.f32.mxu1 %v31089_v58 }
 0x2c4   :  { %24489 = vmatmul.mubr.f32.gmra.mrb[36].mxu1 %v31114_v47 }
 0x2c5   :  { %24491 = vmatprep.mubr.f32.mxu1 %v31117_v35 }
 0x2c8   :  { %24492 = vmatmul.mubr.f32.gmra.mrb[38].mxu1 %v31134_v29 }
 0x2c9   :  { %24494 = vmatprep.mubr.f32.mxu1 %v31146_v54 }
 0x2cc   :  { %24495 = vmatmul.mubr.f32.gmra.mrb[40].mxu1 %v31148_v39 }
 0x2cd   :  { %24497 = vmatprep.mubr.f32.mxu1 %v31163_v50 }
 0x2d0   :  { %24498 = vmatmul.mubr.f32.gmra.mrb[42].mxu1 %v31182_v46 }
 0x2d1   :  { %24500 = vmatprep.mubr.f32.mxu1 %v31189_v22 }
 0x2d4   :  { %24501 = vmatmul.mubr.f32.gmra.mrb[44].mxu1 %v31191_v23 }
 0x2d5   :  { %24503 = vmatprep.mubr.f32.mxu1 %v31216_v2 }
 0x2d8   :  { %24504 = vmatmul.mubr.f32.gmra.mrb[46].mxu1 %v31220_v27 }
 0x2d9   :  { %24506 = vmatprep.mubr.f32.mxu1 %v31241_v25 }
 0x2dc   :  { %24507 = vmatmul.mubr.f32.gmra.mrb[48].mxu1 %v31243_v61  ;;  %v34715_v61 = vld [vmem:[#allocation21_spill] sm:$0xff] }
 0x2dd   :  { %24525 = vmatprep.mubr.f32.mxu1 %v30960_v44  ;;  %v34716_v25 = vand.u32 4294901760, %v34715_v61  ;;  %v34717_v44 = vand.u32 4294901760, %v30992_v31  ;;  %v34734_v61 = vand.u32 4294901760, %v34705_v26 }
 0x2df   :  { %v27321_v27 = vpack.c.bf16 %v34716_v25, %v34714_v53  ;;  %v34725_v53 = vand.u32 4294901760, %v31056_v59  ;;  %v34733_v25 = vand.u32 4294901760, %v34704_v0 }
 0x2e0   :  { %24526 = vmatmul.mubr.f32.vlgmr.msra.gmra.mrb[26].mxu1 %v30950_v3  ;;  %v34720_v3 = vand.u32 4294901760, %v34719_v36 }
 0x2e1   :  { %24528 = vmatprep.mubr.f32.mxu1 %v30987_v16  ;;  %27300 = vmatpush3.bf16.msra.mxu1 %v34690_v51 }
 0x2e2   :  { %27302 = vmatprep.subr.bf16.mxu1 %v34691_v55 }
 0x2e4   :  { %24529 = vmatmul.mubr.f32.gmra.mrb[28].mxu1 %v30992_v31  ;;  %v34726_v31 = vand.u32 4294901760, %v31068_v14 }
 0x2e5   :  { %24531 = vmatprep.mubr.f32.mxu1 %v31023_v38  ;;  %27304 = vmatpush3.bf16.msra.mxu1 %v34691_v55  ;;  %v34727_v38 = vand.u32 4294901760, %v34698_v62 }
 0x2e6   :  { %27306 = vmatprep.subr.bf16.mxu1 %v34692_v12 }
 0x2e8   :  { %24532 = vmatmul.mubr.f32.gmra.mrb[30].mxu1 %v31018_v10 }
 0x2e9   :  { %24534 = vmatprep.mubr.f32.mxu1 %v31048_v32  ;;  %27308 = vmatpush3.bf16.msra.mxu1 %v34692_v12  ;;  %v34729_v32 = vand.u32 4294901760, %v34700_v15 }
 0x2ea   :  { %27310 = vmatprep.subr.bf16.mxu1 %v34693_v63 }
 0x2ec   :  { %24535 = vmatmul.mubr.f32.gmra.mrb[32].mxu1 %v31056_v59  ;;  %v34731_v59 = vand.u32 4294901760, %v34702_v37 }
 0x2ed   :  { %24537 = vmatprep.mubr.f32.mxu1 %v31068_v14  ;;  %27312 = vmatpush3.bf16.msra.mxu1 %v34693_v63  ;;  %v34732_v14 = vand.u32 4294901760, %v34703_v40 }
 0x2ee   :  { %27314 = vmatprep.subr.bf16.mxu1 %v27313_v30 }
 0x2f0   :  { %24538 = vmatmul.mubr.f32.gmra.mrb[34].mxu1 %v34698_v62  ;;  %v34736_v62 = vand.u32 4294901760, %v34707_v57 }
 0x2f1   :  { %24540 = vmatprep.mubr.f32.mxu1 %v34699_v6 }
 0x2f4   :  { %24541 = vmatmul.mubr.f32.gmra.mrb[36].mxu1 %v34700_v15  ;;  %v34738_v15 = vand.u32 4294901760, %v31225_v41 }
 0x2f5   :  { %24543 = vmatprep.mubr.f32.mxu1 %v34701_v20 }
 0x2f8   :  { %24544 = vmatmul.mubr.f32.gmra.mrb[38].mxu1 %v34702_v37  ;;  %v34740_v37 = vand.u32 4294901760, %v31255_v21 }
 0x2f9   :  { %24546 = vmatprep.mubr.f32.mxu1 %v34703_v40  ;;  %v34741_v40 = vand.u32 4294901760, %v31262_v1 }
 0x2fc   :  { %24547 = vmatmul.mubr.f32.gmra.mrb[40].mxu1 %v34704_v0 }
 0x2fd   :  { %24549 = vmatprep.mubr.f32.mxu1 %v34705_v26 }
 0x300   :  { %24550 = vmatmul.mubr.f32.gmra.mrb[42].mxu1 %v34706_v13 }
 0x301   :  { %24552 = vmatprep.mubr.f32.mxu1 %v34707_v57  ;;  %v4248_v57 = vld [vmem:[%s34338_s2 + $0x88] sm:$0xff] }
 0x304   :  { %24553 = vmatmul.mubr.f32.gmra.mrb[44].mxu1 %v31211_v45 }
 0x305   :  { %24555 = vmatprep.mubr.f32.mxu1 %v31225_v41 }
 0x308   :  { %24556 = vmatmul.mubr.f32.gmra.mrb[46].mxu1 %v31237_v33 }
 0x309   :  { %24558 = vmatprep.mubr.f32.mxu1 %v31255_v21  ;;  %v34743_v21 = vld [vmem:[#allocation28_spill] sm:$0xff] }
 0x30c   :  { %24559 = vmatmul.mubr.f32.gmra.mrb[48].mxu1 %v31262_v1  ;;  %v34744_v1 = vld [vmem:[#allocation29_spill] sm:$0xff] }
 0x30d   :  { %24577 = vmatprep.mubr.f32.mxu1 %v34708_v43 }
 0x310   :  { %24578 = vmatmul.mubr.f32.vlgmr.msra.gmra.mrb[26].mxu1 %v34711_v48  ;;  %v34721_v48 = vld [vmem:[#allocation8_spill] sm:$0xff] }
 0x311   :  { %24580 = vmatprep.mubr.f32.mxu1 %v34712_v5  ;;  %27316 = vmatpush3.bf16.msra.mxu1 %v27313_v30  ;;  %v34722_v16 = vand.u32 4294901760, %v34721_v48  ;;  %v34723_v30 = vand.u32 4294901760, %v31018_v10  ;;  %v34728_v10 = vand.u32 4294901760, %v34699_v6  ;;  %v34737_v6 = vand.u32 4294901760, %v31211_v45  ;;  %v4249_v48 = vld [vmem:[%s34338_s2 + $0x90] sm:$0xff] }
 0x312   :  { %27318 = vmatprep.subr.bf16.mxu1 %v27317_v24 }
 0x313   :  { %v27325_v5 = vpack.c.bf16 %v34722_v16, %v34720_v3  ;;  %v4250_v16 = vld [vmem:[%s34338_s2 + $0x98] sm:$0xff] }
 0x314   :  { %24581 = vmatmul.mubr.f32.gmra.mrb[28].mxu1 %v34717_v44  ;;  %v6460_v44 = vand.u32 4294901760, %v4248_v57 }
 0x315   :  { %24583 = vmatprep.mubr.f32.mxu1 %v34718_v4  ;;  %27320 = vmatpush3.bf16.msra.mxu1 %v27317_v24  ;;  %v34735_v24 = vand.u32 4294901760, %v34706_v13  ;;  %v4247_v13 = vld [vmem:[%s34338_s2 + $0x80] sm:$0xff] }
 0x316   :  { %27322 = vmatprep.subr.bf16.mxu1 %v27321_v27  ;;  %v6457_v60 = vand.u32 4294901760, %v4247_v13 }
 0x318   :  { %24584 = vmatmul.mubr.f32.gmra.mrb[30].mxu1 %v34723_v30  ;;  %v31538_v3 = vpack.c.bf16 %v6460_v44, %v6457_v60 }
 0x319   :  { %24586 = vmatprep.mubr.f32.mxu1 %v34724_v28  ;;  %27324 = vmatpush3.bf16.msra.mxu1 %v27321_v27  ;;  %v34730_v27 = vand.u32 4294901760, %v34701_v20  ;;  %v34739_v20 = vand.u32 4294901760, %v31237_v33  ;;  %v34742_v33 = vld [vmem:[#allocation27_spill] sm:$0xff]  ;;  %v6463_v28 = vand.u32 4294901760, %v4249_v48 }
 0x31a   :  { %27326 = vmatprep.subr.bf16.mxu1 %v27325_v5 }
 0x31c   :  { %24587 = vmatmul.mubr.f32.gmra.mrb[32].mxu1 %v34725_v53  ;;  %v6466_v53 = vand.u32 4294901760, %v4250_v16 }
 0x31d   :  { %24589 = vmatprep.mubr.f32.mxu1 %v34726_v31  ;;  %27328 = vmatpush3.bf16.msra.mxu1 %v27325_v5 }
 0x31e   :  { %27330 = vmatprep.subr.bf16.mxu1 %v34690_v51 }
 0x320   :  { %24590 = vmatmul.mubr.f32.gmra.mrb[34].mxu1 %v34727_v38  ;;  %v31550_v38 = vpack.c.bf16 %v6466_v53, %v6463_v28 }
 0x321   :  { %24592 = vmatprep.mubr.f32.mxu1 %v34728_v10  ;;  %v6607_v10 = vsub.f32 %v4247_v13, %v6457_v60 }
 0x324   :  { %24593 = vmatmul.mubr.f32.gmra.mrb[36].mxu1 %v34729_v32  ;;  %v6614_v32 = vsub.f32 %v4248_v57, %v6460_v44 }
 0x325   :  { %24595 = vmatprep.mubr.f32.mxu1 %v34730_v27  ;;  %v6608_v27 = vand.u32 4294901760, %v6607_v10 }
 0x328   :  { %24596 = vmatmul.mubr.f32.gmra.mrb[38].mxu1 %v34731_v59  ;;  %v6615_v59 = vand.u32 4294901760, %v6614_v32 }
 0x329   :  { %24598 = vmatprep.mubr.f32.mxu1 %v34732_v14 }
 0x32c   :  { %24599 = vmatmul.mubr.f32.gmra.mrb[40].mxu1 %v34733_v25  ;;  %v6609_v25 = vsub.f32 %v6607_v10, %v6608_v27 }
 0x32d   :  { %24601 = vmatprep.mubr.f32.mxu1 %v34734_v61  ;;  %v6616_v61 = vsub.f32 %v6614_v32, %v6615_v59 }
 0x330   :  { %24602 = vmatmul.mubr.f32.gmra.mrb[42].mxu1 %v34735_v24  ;;  %v6621_v24 = vsub.f32 %v4249_v48, %v6463_v28 }
 0x331   :  { %24604 = vmatprep.mubr.f32.mxu1 %v34736_v62  ;;  %v6628_v62 = vsub.f32 %v4250_v16, %v6466_v53 }
 0x334   :  { %24605 = vmatmul.mubr.f32.gmra.mrb[44].mxu1 %v34737_v6  ;;  %v6610_v6 = vand.u32 4294901760, %v6609_v25 }
 0x335   :  { %24607 = vmatprep.mubr.f32.mxu1 %v34738_v15  ;;  %v6617_v15 = vand.u32 4294901760, %v6616_v61 }
 0x338   :  { %24608 = vmatmul.mubr.f32.gmra.mrb[46].mxu1 %v34739_v20  ;;  %v6622_v20 = vand.u32 4294901760, %v6621_v24 }
 0x339   :  { %24610 = vmatprep.mubr.f32.mxu1 %v34740_v37  ;;  %v6629_v37 = vand.u32 4294901760, %v6628_v62 }
 0x33c   :  { %24611 = vmatmul.mubr.f32.gmra.mrb[48].mxu1 %v34741_v40  ;;  %v31558_v40 = vpack.c.bf16 %v6617_v15, %v6610_v6 }
 0x33d   :  { %24629 = vmatprep.mubr.f32.mxu1 %v30945_v9 }
 0x340   :  { %24630 = vmatmul.mubr.f32.vlgmr.msra.gmra.mrb[26].mxu1 %v30939_v52 }
 0x341   :  { %24632 = vmatprep.mubr.f32.mxu1 %v30972_v8  ;;  %27332 = vmatpush3.bf16.msra.mxu1 %v34690_v51  ;;  %v34745_v51 = vld [vmem:[#allocation11_spill] sm:$0xff] }
 0x342   :  { %27334 = vmatprep.subr.bf16.mxu1 %v34691_v55 }
 0x344   :  { %24633 = vmatmul.mubr.f32.gmra.mrb[28].mxu1 %v30979_v42 }
 0x345   :  { %24635 = vmatprep.mubr.f32.mxu1 %v31010_v17  ;;  %27336 = vmatpush3.bf16.msra.mxu1 %v34691_v55  ;;  %v34746_v55 = vld [vmem:[#allocation4_spill] sm:$0xff] }
 0x346   :  { %27338 = vmatprep.subr.bf16.mxu1 %v34692_v12 }
 0x348   :  { %24636 = vmatmul.mubr.f32.gmra.mrb[30].mxu1 %v31003_v49 }
 0x349   :  { %24638 = vmatprep.mubr.f32.mxu1 %v31033_v34  ;;  %27340 = vmatpush3.bf16.msra.mxu1 %v34692_v12 }
 0x34a   :  { %27342 = vmatprep.subr.bf16.mxu1 %v34693_v63 }
 0x34c   :  { %24639 = vmatmul.mubr.f32.gmra.mrb[32].mxu1 %v31035_v56 }
 0x34d   :  { %24641 = vmatprep.mubr.f32.mxu1 %v31058_v19  ;;  %27344 = vmatpush3.bf16.msra.mxu1 %v34693_v63 }
 0x34e   :  { %27345 = vmatprep.subr.bf16.mxu1 %v34568_v18 }
 0x350   :  { %24642 = vmatmul.mubr.f32.gmra.mrb[34].mxu1 %v31074_v11 }
 0x351   :  { %24644 = vmatprep.mubr.f32.mxu1 %v31089_v58 }
 0x352   :  { %v31438_v45 = vpop.f32.mrb[26].mxu0 }
 0x353   :  { %v24782_v41 = vpop.f32.mrb[27].mxu0 }
 0x354   :  { %24645 = vmatmul.mubr.f32.gmra.mrb[36].mxu1 %v31114_v47  ;;  %v6623_v41 = vsub.f32 %v6621_v24, %v6622_v20 }
 0x355   :  { %24647 = vmatprep.mubr.f32.mxu1 %v31117_v35 }
 0x358   :  { %24648 = vmatmul.mubr.f32.gmra.mrb[38].mxu1 %v31134_v29 }
 0x359   :  { %24650 = vmatprep.mubr.f32.mxu1 %v31146_v54 }
 0x35c   :  { %24651 = vmatmul.mubr.f32.gmra.mrb[40].mxu1 %v31148_v39 }
 0x35d   :  { %24653 = vmatprep.mubr.f32.mxu1 %v31163_v50 }
 0x360   :  { %24654 = vmatmul.mubr.f32.gmra.mrb[42].mxu1 %v31182_v46 }
 0x361   :  { %24656 = vmatprep.mubr.f32.mxu1 %v31189_v22 }
 0x364   :  { %24657 = vmatmul.mubr.f32.gmra.mrb[44].mxu1 %v31191_v23 }
 0x365   :  { %24659 = vmatprep.mubr.f32.mxu1 %v31216_v2 }
 0x368   :  { %24660 = vmatmul.mubr.f32.gmra.mrb[46].mxu1 %v34742_v33 }
 0x369   :  { %24662 = vmatprep.mubr.f32.mxu1 %v34743_v21 }
 0x36c   :  { %24663 = vmatmul.mubr.f32.gmra.mrb[48].mxu1 %v34744_v1 }
 0x36d   :  { %24681 = vmatprep.mubr.f32.mxu1 %v30945_v9 }
 0x370   :  { %24682 = vmatmul.mubr.f32.vlgmr.msra.gmra.mrb[26].mxu1 %v30939_v52 }
 0x371   :  { %24684 = vmatprep.mubr.f32.mxu1 %v30972_v8  ;;  %27347 = vmatpush3.bf16.msra.mxu1 %v34745_v51  ;;  %v34748_v8 = vmov 0.0  }
 0x372   :  { %27348 = vmatprep.subr.bf16.mxu1 %v34568_v18 }
 0x374   :  { %24685 = vmatmul.mubr.f32.gmra.mrb[28].mxu1 %v30979_v42  ;;  %v34749_v42 = vld [vmem:[#allocation12_spill] sm:$0xff] }
 0x375   :  { %24687 = vmatprep.mubr.f32.mxu1 %v31010_v17  ;;  %27350 = vmatpush3.bf16.msra.mxu1 %v34746_v55 }
 0x376   :  { %27466 = vmatprep.subr.bf16.mxu1 %v31538_v3 }
 0x378   :  { %24688 = vmatmul.mubr.f32.gmra.mrb[30].mxu1 %v31003_v49  ;;  %v4235_v49 = vld [vmem:[%s34338_s2 + $0x28] sm:$0xff] }
 0x379   :  { %24690 = vmatprep.mubr.f32.mxu1 %v31033_v34  ;;  %v5290_v34 = vand.u32 4294901760, %v4235_v49 }
 0x37c   :  { %24691 = vmatmul.mubr.f32.gmra.mrb[32].mxu1 %v31035_v56 }
 0x37d   :  { %24693 = vmatprep.mubr.f32.mxu1 %v31058_v19  ;;  %v4236_v19 = vld [vmem:[%s34338_s2 + $0x30] sm:$0xff] }
 0x380   :  { %24694 = vmatmul.mubr.f32.gmra.mrb[34].mxu1 %v31074_v11  ;;  %v4237_v11 = vld [vmem:[%s34338_s2 + $0x38] sm:$0xff] }
 0x381   :  { %24696 = vmatprep.mubr.f32.mxu1 %v31089_v58  ;;  %v5293_v58 = vand.u32 4294901760, %v4236_v19 }
 0x383   :  { %v31520_v0 = vsub.f32 %v4236_v19, %v5293_v58 }
 0x384   :  { %v31467_v52 = vpop.f32.mrb[28].mxu0  ;;  %24697 = vmatmul.mubr.f32.gmra.mrb[36].mxu1 %v31114_v47  ;;  %v5296_v47 = vand.u32 4294901760, %v4237_v11 }
 0x385   :  { %34747 = vst [vmem:[#allocation9_spill] sm:$0xff] %v31467_v52  ;;  %v24848_v9 = vpop.f32.mrb[29].mxu0  ;;  %24699 = vmatprep.mubr.f32.mxu1 %v31117_v35  ;;  %34750 = vst [vmem:[#allocation10_spill] sm:$0xff] %v31520_v0  ;;  %v34501_v43 = vand.u32 4294901760, %v31520_v0 }
 0x386   :  { %v31501_v35 = vpack.c.bf16 %v5296_v47, %v5293_v58  ;;  %v31522_v26 = vsub.f32 %v4237_v11, %v5296_v47  ;;  %v31567_v9 = vpack.c.bf16 %v6614_v32, %v6607_v10 }
 0x387   :  { %v5533_v4 = vsub.f32 %v31520_v0, %v34501_v43 }
 0x388   :  { %24700 = vmatmul.mubr.f32.gmra.mrb[38].mxu1 %v31134_v29  ;;  %34751 = vst [vmem:[#allocation2_spill] sm:$0xff] %v31522_v26  ;;  %v34499_v7 = vand.u32 4294901760, %v31522_v26  ;;  %v31565_v55 = vpack.c.bf16 %v31522_v26, %v31520_v0 }
 0x389   :  { %24702 = vmatprep.mubr.f32.mxu1 %v31146_v54  ;;  %v31507_v54 = vsub.f32 %v4235_v49, %v5290_v34  ;;  %v5534_v5 = vand.u32 4294901760, %v5533_v4  ;;  %v31573_v49 = vpack.c.bf16 %v6629_v37, %v6622_v20 }
 0x38a   :  { %v5540_v36 = vsub.f32 %v31522_v26, %v34499_v7 }
 0x38b   :  { %34752 = vst [vmem:[#allocation3_spill] sm:$0xff] %v31573_v49 }
 0x38c   :  { %24703 = vmatmul.mubr.f32.gmra.mrb[40].mxu1 %v31148_v39  ;;  %v5541_v30 = vand.u32 4294901760, %v5540_v36 }
 0x38d   :  { %24705 = vmatprep.mubr.f32.mxu1 %v31163_v50 }
 0x38e   :  { %v31548_v31 = vpack.c.bf16 %v5541_v30, %v5534_v5 }
 0x390   :  { %24706 = vmatmul.mubr.f32.gmra.mrb[42].mxu1 %v31182_v46  ;;  %v4234_v46 = vld [vmem:[%s34338_s2 + $0x20] sm:$0xff] }
 0x391   :  { %24708 = vmatprep.mubr.f32.mxu1 %v31189_v22  ;;  %v5287_v17 = vand.u32 4294901760, %v4234_v46  ;;  %v34504_v22 = vand.u32 4294901760, %v31507_v54 }
 0x393   :  { %v31491_v56 = vpack.c.bf16 %v5290_v34, %v5287_v17  ;;  %v31505_v29 = vsub.f32 %v4234_v46, %v5287_v17  ;;  %v31571_v46 = vpack.c.bf16 %v6615_v59, %v6608_v27  ;;  %v31578_v17 = vld [vmem:[%s34335_s3 + $0xb8] ss:$0 sm:$0xff] }
 0x394   :  { %24709 = vmatmul.mubr.f32.gmra.mrb[44].mxu1 %v31191_v23 }
 0x395   :  { %24711 = vmatprep.mubr.f32.mxu1 %v31216_v2  ;;  %27418 = vmatprep.subr.bf16.mxu0 %v31491_v56  ;;  %v34505_v39 = vand.u32 4294901760, %v31505_v29  ;;  %v5526_v2 = vsub.f32 %v31507_v54, %v34504_v22  ;;  %v31556_v14 = vpack.c.bf16 %v31507_v54, %v31505_v29 }
 0x396   :  { %27420 = vmatpush3.bf16.msra.mxu0 %v31491_v56 }
 0x397   :  { %27422 = vmatprep.subr.bf16.mxu0 %v31501_v35  ;;  %v5519_v50 = vsub.f32 %v31505_v29, %v34505_v39  ;;  %v5527_v12 = vand.u32 4294901760, %v5526_v2 }
 0x398   :  { %24712 = vmatmul.mubr.f32.gmra.mrb[46].mxu1 %v34742_v33  ;;  %v6630_v33 = vsub.f32 %v6628_v62, %v6629_v37 }
 0x399   :  { %24714 = vmatprep.mubr.f32.mxu1 %v34743_v21  ;;  %v5520_v23 = vand.u32 4294901760, %v5519_v50  ;;  %v6624_v21 = vand.u32 4294901760, %v6623_v41 }
 0x39a   :  { %27424 = vmatpush3.bf16.msra.mxu0 %v31501_v35 }
 0x39b   :  { %v31517_v63 = vpack.c.bf16 %v5527_v12, %v5520_v23 }
 0x39c   :  { %24715 = vmatmul.mubr.f32.gmra.mrb[48].mxu1 %v34744_v1  ;;  %v6631_v1 = vand.u32 4294901760, %v6630_v33 }
 0x39d   :  { %24725 = vmatprep.mubr.msk.f32.mxu1 %vm29704_vm1, %v34748_v8  ;;  %27426 = vmatprep.subr.bf16.mxu0 %v31517_v63 }
 0x39e   :  { %v31561_v51 = vpack.c.bf16 %v6631_v1, %v6624_v21 }
 0x3a0   :  { %24726 = vmatmul.mubr.f32.vlgmr.msra.gmra.mrb[50].mxu1 %v34749_v42  ;;  %v31569_v42 = vpack.c.bf16 %v6628_v62, %v6621_v24 }
 0x3a1   :  { %27468 = vmatpush3.bf16.msra.mxu1 %v31538_v3 }
 0x3a2   :  { %27470 = vmatprep.subr.bf16.mxu1 %v31550_v38 }
 0x3a5   :  { %27472 = vmatpush3.bf16.msra.mxu1 %v31550_v38 }
 0x3a6   :  { %27474 = vmatprep.subr.bf16.mxu1 %v31558_v40 }
 0x443   :  { %v24683_v34 = vpop.f32.mrb[26].mxu1 }
 0x444   :  { %v28655_v19 = vadd.f32 %v24683_v34, %v31578_v17  ;;  %v4088_v11 = vpop.f32.mrb[27].mxu1 }
 0x445   :  { %v28656_v58 = vadd.f32 %v31578_v17, %v4088_v11 }
 0x446   :  { %v5242_v47 = vsel %vm4260_vm3, %v28655_v19, 0 }
 0x447   :  { %v31583_v50 = vand.u32 4294901760, %v5242_v47  ;;  %v5239_v2 = vsel %vm4260_vm3, %v28656_v58, 0  ;;  %v24686_v23 = vpop.f32.mrb[28].mxu1 }
 0x448   :  { %v31586_v12 = vand.u32 4294901760, %v5239_v2  ;;  %v28657_v13 = vadd.f32 %v24686_v23, %v31578_v17  ;;  %v4100_v57 = vpop.f32.mrb[29].mxu1 }
 0x449   :  { %v31590_v60 = vsub.f32 %v5242_v47, %v31583_v50  ;;  %v28658_v44 = vadd.f32 %v31578_v17, %v4100_v57 }
 0x44a   :  { %34753 = vst [vmem:[#allocation5_spill] sm:$0xff] %v31586_v12  ;;  %v31594_v4 = vsub.f32 %v5239_v2, %v31586_v12  ;;  %v5248_v36 = vsel %vm4260_vm3, %v28657_v13, 0 }
 0x44b   :  { %v34498_v48 = vand.u32 4294901760, %v31590_v60  ;;  %v31598_v16 = vand.u32 4294901760, %v5248_v36  ;;  %v5245_v5 = vsel %vm4260_vm3, %v28658_v44, 0  ;;  %v24689_v30 = vpop.f32.mrb[30].mxu1 }
 0x44c   :  { %v31601_v28 = vand.u32 4294901760, %v5245_v5  ;;  %v28659_v53 = vadd.f32 %v24689_v30, %v31578_v17  ;;  %v4112_v10 = vpop.f32.mrb[31].mxu1  ;;  %v34503_v32 = vand.u32 4294901760, %v31594_v4 }
 0x44d   :  { %v31606_v27 = vsub.f32 %v5248_v36, %v31598_v16  ;;  %v28660_v59 = vadd.f32 %v31578_v17, %v4112_v10  ;;  %v5368_v25 = vsub.f32 %v31590_v60, %v34498_v48 }
 0x44e   :  { %v31613_v61 = vsub.f32 %v5245_v5, %v31601_v28  ;;  %v5254_v24 = vsel %vm4260_vm3, %v28659_v53, 0  ;;  %v5358_v62 = vsub.f32 %v31594_v4, %v34503_v32 }
 0x44f   :  { %v31619_v6 = vand.u32 4294901760, %v5254_v24  ;;  %v5251_v15 = vsel %vm4260_vm3, %v28660_v59, 0  ;;  %v24692_v20 = vpop.f32.mrb[32].mxu1  ;;  %v34495_v37 = vand.u32 4294901760, %v31606_v27  ;;  %v5369_v58 = vand.u32 4294901760, %v5368_v25 }
 0x450   :  { %v31623_v41 = vand.u32 4294901760, %v5251_v15  ;;  %v28661_v33 = vadd.f32 %v24692_v20, %v31578_v17  ;;  %v4124_v21 = vpop.f32.mrb[33].mxu1  ;;  %v5359_v1 = vand.u32 4294901760, %v5358_v62  ;;  %v34497_v34 = vand.u32 4294901760, %v31613_v61 }
 0x451   :  { %v31628_v19 = vsub.f32 %v5254_v24, %v31619_v6  ;;  %v28662_v11 = vadd.f32 %v31578_v17, %v4124_v21  ;;  %v5388_v47 = vsub.f32 %v31606_v27, %v34495_v37 }
 0x452   :  { %v31635_v2 = vsub.f32 %v5251_v15, %v31623_v41  ;;  %v5260_v23 = vsel %vm4260_vm3, %v28661_v33, 0  ;;  %24857 = vmatprep.mubr.f32.mxu0 %v5359_v1  ;;  %v5378_v13 = vsub.f32 %v31613_v61, %v34497_v34 }
 0x453   :  { %v31641_v57 = vand.u32 4294901760, %v5260_v23  ;;  %v5257_v44 = vsel %vm4260_vm3, %v28662_v11, 0  ;;  %v24695_v36 = vpop.f32.mrb[34].mxu1  ;;  %24858 = vmatmul.mubr.f32.vlgmr.msra.gmra.mrb[30].mxu0 %v5369_v58  ;;  %v34493_v5 = vand.u32 4294901760, %v31628_v19  ;;  %v5389_v15 = vand.u32 4294901760, %v5388_v47 }
 0x454   :  { %v31645_v30 = vand.u32 4294901760, %v5257_v44  ;;  %v28663_v53 = vadd.f32 %v24695_v36, %v31578_v17  ;;  %v4136_v10 = vpop.f32.mrb[35].mxu1  ;;  %27428 = vmatpush3.bf16.msra.mxu0 %v31517_v63  ;;  %v5379_v59 = vand.u32 4294901760, %v5378_v13  ;;  %v34494_v25 = vand.u32 4294901760, %v31635_v2 }
 0x455   :  { %v31651_v24 = vsub.f32 %v5260_v23, %v31641_v57  ;;  %v28664_v62 = vadd.f32 %v31578_v17, %v4136_v10  ;;  %v5408_v20 = vsub.f32 %v31628_v19, %v34493_v5  ;;  %27430 = vmatprep.subr.bf16.mxu0 %v31548_v31 }
 0x456   :  { %v31659_v33 = vsub.f32 %v5257_v44, %v31645_v30  ;;  %v5266_v63 = vsel %vm4260_vm3, %v28663_v53, 0  ;;  %24860 = vmatprep.mubr.f32.mxu0 %v5379_v59  ;;  %v5398_v21 = vsub.f32 %v31635_v2, %v34494_v25 }
 0x457   :  { %34754 = vst [vmem:[#allocation6_spill] sm:$0xff] %v31651_v24  ;;  %v31665_v1 = vand.u32 4294901760, %v5266_v63  ;;  %v5263_v11 = vsel %vm4260_vm3, %v28664_v62, 0  ;;  %v24698_v58 = vpop.f32.mrb[36].mxu1  ;;  %24861 = vmatmul.mubr.f32.gmra.mrb[32].mxu0 %v5389_v15  ;;  %v34492_v47 = vand.u32 4294901760, %v31651_v24  ;;  %v5409_v62 = vand.u32 4294901760, %v5408_v20 }
 0x458   :  { %v31669_v23 = vand.u32 4294901760, %v5263_v11  ;;  %v28665_v13 = vadd.f32 %v24698_v58, %v31578_v17  ;;  %v4148_v44 = vpop.f32.mrb[37].mxu1  ;;  %v5399_v36 = vand.u32 4294901760, %v5398_v21  ;;  %v34496_v53 = vand.u32 4294901760, %v31659_v33  ;;  %27432 = vmatpush3.bf16.msra.mxu0 %v31548_v31 }
 0x459   :  { %v31675_v10 = vsub.f32 %v5266_v63, %v31665_v1  ;;  %v28666_v59 = vadd.f32 %v31578_v17, %v4148_v44  ;;  %v5428_v15 = vsub.f32 %v31651_v24, %v34492_v47  ;;  %27434 = vmatprep.subr.bf16.mxu0 %v31556_v14 }
 0x45a   :  { %v31683_v58 = vsub.f32 %v5263_v11, %v31669_v23  ;;  %v5272_v21 = vsel %vm4260_vm3, %v28665_v13, 0  ;;  %24863 = vmatprep.mubr.f32.mxu0 %v5399_v36  ;;  %v5418_v31 = vsub.f32 %v31659_v33, %v34496_v53 }
 0x45b   :  { %34755 = vst [vmem:[#allocation16_spill] sm:$0xff] %v31675_v10  ;;  %v31689_v63 = vand.u32 4294901760, %v5272_v21  ;;  %v5269_v20 = vsel %vm4260_vm3, %v28666_v59, 0  ;;  %v24701_v44 = vpop.f32.mrb[38].mxu1  ;;  %24864 = vmatmul.mubr.f32.gmra.mrb[34].mxu0 %v5409_v62  ;;  %v34500_v47 = vand.u32 4294901760, %v31675_v10  ;;  %v5429_v34 = vand.u32 4294901760, %v5428_v15 }
 0x45c   :  { %34756 = vst [vmem:[#allocation18_spill] sm:$0xff] %v31683_v58  ;;  %v31693_v5 = vand.u32 4294901760, %v5269_v20  ;;  %v28667_v11 = vadd.f32 %v24701_v44, %v31578_v17  ;;  %v4160_v25 = vpop.f32.mrb[39].mxu1  ;;  %v5419_v37 = vand.u32 4294901760, %v5418_v31  ;;  %v34502_v13 = vand.u32 4294901760, %v31683_v58 }
 0x45d   :  { %v31698_v36 = vsub.f32 %v5272_v21, %v31689_v63  ;;  %v28668_v53 = vadd.f32 %v31578_v17, %v4160_v25  ;;  %v5448_v59 = vsub.f32 %v31675_v10, %v34500_v47 }
 0x45e   :  { %v31705_v62 = vsub.f32 %v5269_v20, %v31693_v5  ;;  %v5278_v48 = vsel %vm4260_vm3, %v28667_v11, 0  ;;  %24866 = vmatprep.mubr.f32.mxu0 %v5419_v37  ;;  %v5438_v31 = vsub.f32 %v31683_v58, %v34502_v13 }
 0x45f   :  { %34757 = vst [vmem:[#allocation13_spill] sm:$0xff] %v31698_v36  ;;  %v31711_v44 = vand.u32 4294901760, %v5278_v48  ;;  %v5275_v21 = vsel %vm4260_vm3, %v28668_v53, 0  ;;  %v24704_v25 = vpop.f32.mrb[40].mxu1  ;;  %24867 = vmatmul.mubr.f32.gmra.mrb[36].mxu0 %v5429_v34  ;;  %v34506_v15 = vand.u32 4294901760, %v31698_v36  ;;  %v5449_v32 = vand.u32 4294901760, %v5448_v59 }
 0x460   :  { %34758 = vst [vmem:[#allocation14_spill] sm:$0xff] %v31705_v62  ;;  %v31715_v7 = vand.u32 4294901760, %v5275_v21  ;;  %v28669_v20 = vadd.f32 %v24704_v25, %v31578_v17  ;;  %v4172_v47 = vpop.f32.mrb[41].mxu1  ;;  %v5439_v43 = vand.u32 4294901760, %v5438_v31  ;;  %v34507_v37 = vand.u32 4294901760, %v31705_v62 }
 0x461   :  { %v31720_v11 = vsub.f32 %v5278_v48, %v31711_v44  ;;  %v28670_v13 = vadd.f32 %v31578_v17, %v4172_v47  ;;  %v5468_v34 = vsub.f32 %v31698_v36, %v34506_v15 }
 0x462   :  { %v31727_v53 = vsub.f32 %v5275_v21, %v31715_v7  ;;  %v5284_v22 = vsel %vm4260_vm3, %v28669_v20, 0  ;;  %24869 = vmatprep.mubr.f32.mxu0 %v5439_v43  ;;  %v5458_v31 = vsub.f32 %v31705_v62, %v34507_v37 }
 0x463   :  { %34759 = vst [vmem:[#allocation15_spill] sm:$0xff] %v31720_v11  ;;  %v31733_v25 = vand.u32 4294901760, %v5284_v22  ;;  %v5281_v48 = vsel %vm4260_vm3, %v28670_v13, 0  ;;  %v24707_v47 = vpop.f32.mrb[42].mxu1  ;;  %24870 = vmatmul.mubr.f32.gmra.mrb[38].mxu0 %v5449_v32  ;;  %v34510_v59 = vand.u32 4294901760, %v31720_v11  ;;  %v5469_v8 = vand.u32 4294901760, %v5468_v34 }
 0x464   :  { %34760 = vst [vmem:[#allocation17_spill] sm:$0xff] %v31727_v53  ;;  %v31737_v39 = vand.u32 4294901760, %v5281_v48  ;;  %v28671_v21 = vadd.f32 %v24707_v47, %v31578_v17  ;;  %v4184_v15 = vpop.f32.mrb[43].mxu1  ;;  %v5459_v52 = vand.u32 4294901760, %v5458_v31  ;;  %v34512_v43 = vand.u32 4294901760, %v31727_v53 }
 0x465   :  { %v31742_v20 = vsub.f32 %v5284_v22, %v31733_v25  ;;  %v28672_v37 = vadd.f32 %v31578_v17, %v4184_v15  ;;  %v5488_v32 = vsub.f32 %v31720_v11, %v34510_v59 }
 0x466   :  { %v31749_v13 = vsub.f32 %v5281_v48, %v31737_v39  ;;  %v6436_v18 = vsel %vm4260_vm3, %v28671_v21, 0  ;;  %24872 = vmatprep.mubr.f32.mxu0 %v5459_v52  ;;  %v5478_v31 = vsub.f32 %v31727_v53, %v34512_v43 }
 0x467   :  { %34761 = vst [vmem:[#allocation19_spill] sm:$0xff] %v31742_v20  ;;  %v31755_v47 = vand.u32 4294901760, %v6436_v18  ;;  %v6433_v22 = vsel %vm4260_vm3, %v28672_v37, 0  ;;  %v24710_v15 = vpop.f32.mrb[44].mxu1  ;;  %24873 = vmatmul.mubr.f32.gmra.mrb[40].mxu0 %v5469_v8  ;;  %v34519_v34 = vand.u32 4294901760, %v31742_v20  ;;  %v5489_v11 = vand.u32 4294901760, %v5488_v32 }
 0x468   :  { %34762 = vst [vmem:[#allocation22_spill] sm:$0xff] %v31749_v13  ;;  %v31759_v26 = vand.u32 4294901760, %v6433_v22  ;;  %v28673_v48 = vadd.f32 %v24710_v15, %v31578_v17  ;;  %v4196_v59 = vpop.f32.mrb[45].mxu1  ;;  %v5479_v0 = vand.u32 4294901760, %v5478_v31  ;;  %v34522_v52 = vand.u32 4294901760, %v31749_v13 }
 0x469   :  { %v31764_v21 = vsub.f32 %v6436_v18, %v31755_v47  ;;  %v28674_v43 = vadd.f32 %v31578_v17, %v4196_v59  ;;  %v5508_v8 = vsub.f32 %v31742_v20, %v34519_v34 }
 0x46a   :  { %v31771_v37 = vsub.f32 %v6433_v22, %v31759_v26  ;;  %v6442_v53 = vsel %vm4260_vm3, %v28673_v48, 0  ;;  %24875 = vmatprep.mubr.f32.mxu0 %v5479_v0  ;;  %v5498_v31 = vsub.f32 %v31749_v13, %v34522_v52 }
 0x46b   :  { %v31778_v15 = vand.u32 4294901760, %v6442_v53  ;;  %v6439_v59 = vsel %vm4260_vm3, %v28674_v43, 0  ;;  %v24713_v32 = vpop.f32.mrb[46].mxu1  ;;  %24876 = vmatmul.mubr.f32.gmra.mrb[42].mxu0 %v5489_v11  ;;  %v5509_v18 = vand.u32 4294901760, %v5508_v8  ;;  %v34763_v13 = vand.u32 4294901760, %v31764_v21 }
 0x46c   :  { %v31781_v36 = vand.u32 4294901760, %v6439_v59  ;;  %v28675_v22 = vadd.f32 %v24713_v32, %v31578_v17  ;;  %v4208_v34 = vpop.f32.mrb[47].mxu1  ;;  %v5499_v20 = vand.u32 4294901760, %v5498_v31  ;;  %v34528_v0 = vand.u32 4294901760, %v31771_v37 }
 0x46d   :  { %v31786_v48 = vsub.f32 %v6442_v53, %v31778_v15  ;;  %v28676_v52 = vadd.f32 %v31578_v17, %v4208_v34  ;;  %v6538_v43 = vsub.f32 %v31764_v21, %v34763_v13 }
 0x46e   :  { %v31793_v11 = vsub.f32 %v6439_v59, %v31781_v36  ;;  %v6448_v49 = vsel %vm4260_vm3, %v28675_v22, 0  ;;  %24878 = vmatprep.mubr.f32.mxu0 %v5499_v20  ;;  %v6528_v31 = vsub.f32 %v31771_v37, %v34528_v0 }
 0x46f   :  { %v31799_v32 = vand.u32 4294901760, %v6448_v49  ;;  %v6445_v53 = vsel %vm4260_vm3, %v28676_v52, 0  ;;  %v24716_v34 = vpop.f32.mrb[48].mxu1  ;;  %24879 = vmatmul.mubr.f32.gmra.mrb[44].mxu0 %v5509_v18  ;;  %v34535_v8 = vand.u32 4294901760, %v31786_v48  ;;  %v22327_v52 = vld [vmem:[%s34338_s2 + $0xc0] ss:$0 sm:$0xff] }
 0x470   :  { %v31803_v62 = vand.u32 4294901760, %v6445_v53  ;;  %v28677_v13 = vadd.f32 %v24716_v34, %v31578_v17  ;;  %v4220_v59 = vpop.f32.mrb[49].mxu1  ;;  %24889 = vmatprep.mubr.f32.mxu0 %v31586_v12  ;;  %v6529_v20 = vand.u32 4294901760, %v6528_v31  ;;  %v34538_v22 = vand.u32 4294901760, %v31793_v11 }
 0x471   :  { %v31809_v0 = vsub.f32 %v6448_v49, %v31799_v32  ;;  %v28678_v10 = vadd.f32 %v31578_v17, %v4220_v59  ;;  %v6539_v18 = vand.u32 4294901760, %v6538_v43  ;;  %v6558_v34 = vsub.f32 %v31786_v48, %v34535_v8 }
 0x472   :  { %v31819_v58 = vsub.f32 %v6445_v53, %v31803_v62  ;;  %v6454_v31 = vsel %vm4260_vm3, %v28677_v13, 0  ;;  %25049 = vmatprep.mubr.f32.mxu1 %v6529_v20  ;;  %v6548_v49 = vsub.f32 %v31793_v11, %v34538_v22 }
 0x473   :  { %v31825_v17 = vand.u32 4294901760, %v6454_v31  ;;  %v6451_v59 = vsel %vm4260_vm3, %v28678_v10, 0  ;;  %v4339_v12 = vpop.f32.mrb[50].mxu1  ;;  %24890 = vmatmul.mubr.f32.vlgmr.msra.gmra.mrb[30].mxu0 %v31583_v50  ;;  %25050 = vmatmul.mubr.f32.vlgmr.msra.gmra.mrb[52].mxu1 %v6539_v18  ;;  %v6577_v43 = vand.u32 4294901760, %v31809_v0  ;;  %v6559_v10 = vand.u32 4294901760, %v6558_v34 }
 0x474   :  { %v31830_v8 = vand.u32 4294901760, %v6451_v59  ;;  %v4340_v53 = vadd.f32 %v22327_v52, %v4339_v12  ;;  %v24727_v24 = vpop.f32.mrb[51].mxu1  ;;  %24892 = vmatprep.mubr.f32.mxu0 %v31601_v28  ;;  %27436 = vmatpush3.bf16.msra.mxu0 %v31556_v14  ;;  %v6549_v13 = vand.u32 4294901760, %v6548_v49  ;;  %v6567_v20 = vand.u32 4294901760, %v31819_v58 }
 0x475   :  { %v31836_v22 = vsub.f32 %v6454_v31, %v31825_v17  ;;  %v6578_v18 = vsub.f32 %v31809_v0, %v6577_v43  ;;  %27476 = vmatpush3.bf16.msra.mxu1 %v31558_v40  ;;  %27438 = vmatprep.subr.bf16.mxu0 %v31565_v55 }
 0x476   :  { %v31844_v12 = vsub.f32 %v6451_v59, %v31830_v8  ;;  %v31847_v14 = vadd.f32 %v31438_v45, %v4340_v53  ;;  %25052 = vmatprep.mubr.f32.mxu1 %v6549_v13  ;;  %v6568_v24 = vsub.f32 %v31819_v58, %v6567_v20  ;;  %27478 = vmatprep.subr.bf16.mxu1 %v31561_v51  ;;  %v34768_v53 = vand.u32 4294901760, %v31771_v37  ;;  %v34769_v13 = vld [vmem:[#allocation16_spill] sm:$0xff] }
 0x477   :  { %24893 = vmatmul.mubr.f32.gmra.mrb[32].mxu0 %v31598_v16  ;;  %25053 = vmatmul.mubr.f32.gmra.mrb[54].mxu1 %v6559_v10  ;;  %v6597_v40 = vand.u32 4294901760, %v31836_v22  ;;  %v6579_v45 = vand.u32 4294901760, %v6578_v18  ;;  %v34770_v10 = vand.u32 4294901760, %v31764_v21  ;;  %v34771_v18 = vld [vmem:[#allocation14_spill] sm:$0xff] }
 0x478   :  { %24895 = vmatprep.mubr.f32.mxu0 %v31623_v41  ;;  %v6569_v52 = vand.u32 4294901760, %v6568_v24  ;;  %v6587_v34 = vand.u32 4294901760, %v31844_v12  ;;  %27440 = vmatpush3.bf16.msra.mxu0 %v31565_v55  ;;  %v34772_v24 = vand.u32 4294901760, %v31793_v11 }
 0x479   :  { %v6598_v31 = vsub.f32 %v31836_v22, %v6597_v40  ;;  %27480 = vmatpush3.bf16.msra.mxu1 %v31561_v51  ;;  %27442 = vmatprep.subr.bf16.mxu0 %v31491_v56  ;;  %v34764_v51 = vand.u32 4294901760, %v31505_v29  ;;  %v34766_v29 = vld [vmem:[#allocation6_spill] sm:$0xff] }
 0x47a   :  { %25055 = vmatprep.mubr.f32.mxu1 %v6569_v52  ;;  %v6588_v49 = vsub.f32 %v31844_v12, %v6587_v34  ;;  %27482 = vmatprep.subr.bf16.mxu1 %v31567_v9  ;;  %v34773_v52 = vld [vmem:[#allocation3_spill] sm:$0xff] }
 0x47b   :  { %24896 = vmatmul.mubr.f32.gmra.mrb[34].mxu0 %v31619_v6  ;;  %25056 = vmatmul.mubr.f32.gmra.mrb[56].mxu1 %v6579_v45  ;;  %v6599_v59 = vand.u32 4294901760, %v6598_v31  ;;  %v34774_v45 = vld [vmem:[#allocation13_spill] sm:$0xff]  ;;  %v34775_v31 = vand.u32 4294901760, %v31786_v48 }
 0x47c   :  { %24898 = vmatprep.mubr.f32.mxu0 %v31645_v30  ;;  %v6589_v55 = vand.u32 4294901760, %v6588_v49  ;;  %v34783_v49 = vld [vmem:[#allocation2_spill] sm:$0xff] }
 0x47e   :  { %25058 = vmatprep.mubr.f32.mxu1 %v6589_v55  ;;  %v34785_v55 = vand.u32 4294901760, %v31590_v60 }
 0x47f   :  { %24899 = vmatmul.mubr.f32.gmra.mrb[36].mxu0 %v31641_v57  ;;  %25059 = vmatmul.mubr.f32.gmra.mrb[58].mxu1 %v6599_v59 }
 0x480   :  { %24901 = vmatprep.mubr.f32.mxu0 %v31669_v23  ;;  %25069 = vmatprep.mubr.f32.mxu1 %v31759_v26 }
 0x483   :  { %24902 = vmatmul.mubr.f32.gmra.mrb[38].mxu0 %v31665_v1  ;;  %25070 = vmatmul.mubr.f32.vlgmr.msra.gmra.mrb[52].mxu1 %v31755_v47 }
 0x484   :  { %24904 = vmatprep.mubr.f32.mxu0 %v31693_v5  ;;  %25072 = vmatprep.mubr.f32.mxu1 %v31781_v36 }
 0x485   :  { %27484 = vmatpush3.bf16.msra.mxu1 %v31567_v9  ;;  %v34765_v9 = vand.u32 4294901760, %v31507_v54  ;;  %v34767_v54 = vld [vmem:[#allocation18_spill] sm:$0xff] }
 0x486   :  { %27486 = vmatprep.subr.bf16.mxu1 %v31569_v42 }
 0x487   :  { %24905 = vmatmul.mubr.f32.gmra.mrb[40].mxu0 %v31689_v63  ;;  %25073 = vmatmul.mubr.f32.gmra.mrb[54].mxu1 %v31778_v15 }
 0x488   :  { %24907 = vmatprep.mubr.f32.mxu0 %v31715_v7  ;;  %25075 = vmatprep.mubr.f32.mxu1 %v31803_v62 }
 0x489   :  { %27488 = vmatpush3.bf16.msra.mxu1 %v31569_v42  ;;  %v27449_v42 = vpack.c.bf16 %v34765_v9, %v34764_v51 }
 0x48a   :  { %27490 = vmatprep.subr.bf16.mxu1 %v31538_v3 }
 0x48b   :  { %24908 = vmatmul.mubr.f32.gmra.mrb[42].mxu0 %v31711_v44  ;;  %25076 = vmatmul.mubr.f32.gmra.mrb[56].mxu1 %v31799_v32 }
 0x48c   :  { %24910 = vmatprep.mubr.f32.mxu0 %v31737_v39  ;;  %25078 = vmatprep.mubr.f32.mxu1 %v31830_v8 }
 0x48f   :  { %24911 = vmatmul.mubr.f32.gmra.mrb[44].mxu0 %v31733_v25  ;;  %25079 = vmatmul.mubr.f32.gmra.mrb[58].mxu1 %v31825_v17 }
 0x490   :  { %24921 = vmatprep.mubr.f32.mxu0 %v31594_v4  ;;  %25089 = vmatprep.mubr.f32.mxu1 %v31771_v37  ;;  %v34776_v37 = vld [vmem:[#allocation17_spill] sm:$0xff] }
 0x493   :  { %24922 = vmatmul.mubr.f32.vlgmr.msra.gmra.mrb[30].mxu0 %v31590_v60  ;;  %25090 = vmatmul.mubr.f32.vlgmr.msra.gmra.mrb[52].mxu1 %v31764_v21  ;;  %v34777_v21 = vld [vmem:[#allocation15_spill] sm:$0xff]  ;;  %v34788_v60 = vand.u32 4294901760, %v31635_v2 }
 0x494   :  { %24924 = vmatprep.mubr.f32.mxu0 %v31613_v61  ;;  %27444 = vmatpush3.bf16.msra.mxu0 %v31491_v56 }
 0x495   :  { %25092 = vmatprep.mubr.f32.mxu1 %v31793_v11  ;;  %27492 = vmatpush3.bf16.msra.mxu1 %v31538_v3  ;;  %v34781_v11 = vld [vmem:[#allocation10_spill] sm:$0xff] }
 0x496   :  { %27494 = vmatprep.subr.bf16.mxu1 %v31550_v38  ;;  %27446 = vmatprep.subr.bf16.mxu0 %v31501_v35 }
 0x497   :  { %24925 = vmatmul.mubr.f32.gmra.mrb[32].mxu0 %v31606_v27  ;;  %25093 = vmatmul.mubr.f32.gmra.mrb[54].mxu1 %v31786_v48  ;;  %v34779_v48 = vld [vmem:[#allocation19_spill] sm:$0xff] }
 0x498   :  { %24927 = vmatprep.mubr.f32.mxu0 %v31635_v2  ;;  %25095 = vmatprep.mubr.f32.mxu1 %v31819_v58  ;;  %v34780_v58 = vand.u32 4294901760, %v31594_v4  ;;  %v34787_v4 = vand.u32 4294901760, %v31606_v27  ;;  %v34791_v27 = vand.u32 4294901760, %v31659_v33  ;;  %v34792_v2 = vand.u32 4294901760, %v34766_v29 }
 0x499   :  { %27496 = vmatpush3.bf16.msra.mxu1 %v31550_v38  ;;  %27448 = vmatpush3.bf16.msra.mxu0 %v31501_v35 }
 0x49a   :  { %27498 = vmatprep.subr.bf16.mxu1 %v31571_v46  ;;  %27450 = vmatprep.subr.bf16.mxu0 %v27449_v42 }
 0x49b   :  { %24928 = vmatmul.mubr.f32.gmra.mrb[34].mxu0 %v31628_v19  ;;  %25096 = vmatmul.mubr.f32.gmra.mrb[56].mxu1 %v31809_v0  ;;  %v34784_v0 = vand.u32 4294901760, %v34783_v49 }
 0x49c   :  { %24930 = vmatprep.mubr.f32.mxu0 %v31659_v33  ;;  %25098 = vmatprep.mubr.f32.mxu1 %v31844_v12  ;;  %v34786_v12 = vand.u32 4294901760, %v31613_v61  ;;  %v34789_v61 = vmov 0.0|0.0   ;;  %v34795_v33 = vand.u32 4294901760, %v34771_v18 }
 0x49f   :  { %24931 = vmatmul.mubr.f32.gmra.mrb[36].mxu0 %v34766_v29  ;;  %25099 = vmatmul.mubr.f32.gmra.mrb[58].mxu1 %v31836_v22  ;;  %v34796_v22 = vand.u32 4294901760, %v34774_v45 }
 0x4a0   :  { %24933 = vmatprep.mubr.f32.mxu0 %v34767_v54  ;;  %25109 = vmatprep.mubr.f32.mxu1 %v34768_v53 }
 0x4a3   :  { %24934 = vmatmul.mubr.f32.gmra.mrb[38].mxu0 %v34769_v13  ;;  %25110 = vmatmul.mubr.f32.vlgmr.msra.gmra.mrb[52].mxu1 %v34770_v10 }
 0x4a4   :  { %24936 = vmatprep.mubr.f32.mxu0 %v34771_v18  ;;  %25112 = vmatprep.mubr.f32.mxu1 %v34772_v24 }
 0x4a5   :  { %27500 = vmatpush3.bf16.msra.mxu1 %v31571_v46  ;;  %v34778_v46 = vld [vmem:[#allocation22_spill] sm:$0xff] }
 0x4a6   :  { %27502 = vmatprep.subr.bf16.mxu1 %v34773_v52 }
 0x4a7   :  { %24937 = vmatmul.mubr.f32.gmra.mrb[40].mxu0 %v34774_v45  ;;  %25113 = vmatmul.mubr.f32.gmra.mrb[54].mxu1 %v34775_v31 }
 0x4a8   :  { %24939 = vmatprep.mubr.f32.mxu0 %v34776_v37  ;;  %25115 = vmatprep.mubr.f32.mxu1 %v6567_v20  ;;  %v34782_v20 = vand.u32 4294901760, %v34781_v11 }
 0x4a9   :  { %27504 = vmatpush3.bf16.msra.mxu1 %v34773_v52 }
 0x4aa   :  { %27506 = vmatprep.subr.bf16.mxu1 %v31538_v3 }
 0x4ab   :  { %24940 = vmatmul.mubr.f32.gmra.mrb[42].mxu0 %v34777_v21  ;;  %25116 = vmatmul.mubr.f32.gmra.mrb[56].mxu1 %v6577_v43  ;;  %v27453_v43 = vpack.c.bf16 %v34784_v0, %v34782_v20 }
 0x4ac   :  { %24942 = vmatprep.mubr.f32.mxu0 %v34778_v46  ;;  %25118 = vmatprep.mubr.f32.mxu1 %v6587_v34  ;;  %v34802_v34 = vmov 0.0  }
 0x4af   :  { %24943 = vmatmul.mubr.f32.gmra.mrb[44].mxu0 %v34779_v48  ;;  %25119 = vmatmul.mubr.f32.gmra.mrb[58].mxu1 %v6597_v40  ;;  %v34797_v40 = vand.u32 4294901760, %v34776_v37 }
 0x4b0   :  { %24953 = vmatprep.mubr.f32.mxu0 %v34780_v58  ;;  %25129 = vmatprep.mubr.f32.mxu1 %v31759_v26 }
 0x4b3   :  { %24954 = vmatmul.mubr.f32.vlgmr.msra.gmra.mrb[30].mxu0 %v34785_v55  ;;  %25130 = vmatmul.mubr.f32.vlgmr.msra.gmra.mrb[52].mxu1 %v31755_v47 }
 0x4b4   :  { %24956 = vmatprep.mubr.f32.mxu0 %v34786_v12  ;;  %27452 = vmatpush3.bf16.msra.mxu0 %v27449_v42 }
 0x4b5   :  { %25132 = vmatprep.mubr.f32.mxu1 %v31781_v36  ;;  %27508 = vmatpush3.bf16.msra.mxu1 %v31538_v3  ;;  %v34790_v3 = vand.u32 4294901760, %v31628_v19  ;;  %v34794_v19 = vand.u32 4294901760, %v34769_v13 }
 0x4b6   :  { %27510 = vmatprep.subr.bf16.mxu1 %v31550_v38  ;;  %27454 = vmatprep.subr.bf16.mxu0 %v27453_v43 }
 0x4b7   :  { %24957 = vmatmul.mubr.f32.gmra.mrb[32].mxu0 %v34787_v4  ;;  %25133 = vmatmul.mubr.f32.gmra.mrb[54].mxu1 %v31778_v15 }
 0x4b8   :  { %24959 = vmatprep.mubr.f32.mxu0 %v34788_v60  ;;  %25135 = vmatprep.mubr.f32.mxu1 %v31803_v62 }
 0x4b9   :  { %27512 = vmatpush3.bf16.msra.mxu1 %v31550_v38  ;;  %27456 = vmatpush3.bf16.msra.mxu0 %v27453_v43  ;;  %v34793_v38 = vand.u32 4294901760, %v34767_v54 }
 0x4ba   :  { %27458 = vmatprep.subr.bf16.mxu0 %v31491_v56  ;;  %27513 = vmatprep.subr.bf16.mxu1 %v34789_v61 }
 0x4bb   :  { %24960 = vmatmul.mubr.f32.gmra.mrb[34].mxu0 %v34790_v3  ;;  %25136 = vmatmul.mubr.f32.gmra.mrb[56].mxu1 %v31799_v32 }
 0x4bc   :  { %24962 = vmatprep.mubr.f32.mxu0 %v34791_v27  ;;  %25138 = vmatprep.mubr.f32.mxu1 %v31830_v8 }
 0x4bf   :  { %24963 = vmatmul.mubr.f32.gmra.mrb[36].mxu0 %v34792_v2  ;;  %25139 = vmatmul.mubr.f32.gmra.mrb[58].mxu1 %v31825_v17 }
 0x4c0   :  { %24965 = vmatprep.mubr.f32.mxu0 %v34793_v38  ;;  %25149 = vmatprep.mubr.f32.mxu1 %v31759_v26  ;;  %v34798_v26 = vand.u32 4294901760, %v34777_v21 }
 0x4c3   :  { %24966 = vmatmul.mubr.f32.gmra.mrb[38].mxu0 %v34794_v19  ;;  %25150 = vmatmul.mubr.f32.vlgmr.msra.gmra.mrb[52].mxu1 %v31755_v47  ;;  %v34799_v47 = vand.u32 4294901760, %v34778_v46 }
 0x4c4   :  { %24968 = vmatprep.mubr.f32.mxu0 %v34795_v33  ;;  %25152 = vmatprep.mubr.f32.mxu1 %v31781_v36  ;;  %v34800_v36 = vand.u32 4294901760, %v34779_v48 }
 0x4c7   :  { %24969 = vmatmul.mubr.f32.gmra.mrb[40].mxu0 %v34796_v22  ;;  %25153 = vmatmul.mubr.f32.gmra.mrb[54].mxu1 %v31778_v15  ;;  %v34801_v15 = vld [vmem:[#allocation5_spill] sm:$0xff] }
 0x4c8   :  { %24971 = vmatprep.mubr.f32.mxu0 %v34797_v40  ;;  %25155 = vmatprep.mubr.f32.mxu1 %v31803_v62 }
 0x4cb   :  { %24972 = vmatmul.mubr.f32.gmra.mrb[42].mxu0 %v34798_v26  ;;  %25156 = vmatmul.mubr.f32.gmra.mrb[56].mxu1 %v31799_v32 }
 0x4cc   :  { %24974 = vmatprep.mubr.f32.mxu0 %v34799_v47  ;;  %25158 = vmatprep.mubr.f32.mxu1 %v31830_v8 }
 0x4cf   :  { %24975 = vmatmul.mubr.f32.gmra.mrb[44].mxu0 %v34800_v36  ;;  %25159 = vmatmul.mubr.f32.gmra.mrb[58].mxu1 %v31825_v17 }
 0x4d0   :  { %24985 = vmatprep.mubr.f32.mxu0 %v34801_v15  ;;  %25169 = vmatprep.mubr.msk.f32.mxu1 %vm29704_vm1, %v34802_v34 }
 0x4d3   :  { %24986 = vmatmul.mubr.f32.vlgmr.msra.gmra.mrb[30].mxu0 %v31583_v50 }
 0x4d4   :  { %24988 = vmatprep.mubr.f32.mxu0 %v31601_v28  ;;  %27460 = vmatpush3.bf16.msra.mxu0 %v31491_v56  ;;  %v22328_v56 = vld [vmem:[%s34338_s2 + $0xc8] ss:$0 sm:$0xff] }
 0x4d5   :  { %27462 = vmatprep.subr.bf16.mxu0 %v31501_v35 }
 0x4d7   :  { %24989 = vmatmul.mubr.f32.gmra.mrb[32].mxu0 %v31598_v16 }
 0x4d8   :  { %24991 = vmatprep.mubr.f32.mxu0 %v31623_v41  ;;  %27464 = vmatpush3.bf16.msra.mxu0 %v31501_v35  ;;  %v34803_v35 = vld [vmem:[#allocation9_spill] sm:$0xff] }
 0x4d9   :  { %27585 = vmatprep.subr.bf16.mxu0 %v34789_v61 }
 0x4db   :  { %24992 = vmatmul.mubr.f32.gmra.mrb[34].mxu0 %v31619_v6 }
 0x4dc   :  { %24994 = vmatprep.mubr.f32.mxu0 %v31645_v30 }
 0x4df   :  { %24995 = vmatmul.mubr.f32.gmra.mrb[36].mxu0 %v31641_v57 }
 0x4e0   :  { %24997 = vmatprep.mubr.f32.mxu0 %v31669_v23 }
 0x4e3   :  { %24998 = vmatmul.mubr.f32.gmra.mrb[38].mxu0 %v31665_v1 }
 0x4e4   :  { %25000 = vmatprep.mubr.f32.mxu0 %v31693_v5 }
 0x4e7   :  { %25001 = vmatmul.mubr.f32.gmra.mrb[40].mxu0 %v31689_v63 }
 0x4e8   :  { %25003 = vmatprep.mubr.f32.mxu0 %v31715_v7 }
 0x4eb   :  { %25004 = vmatmul.mubr.f32.gmra.mrb[42].mxu0 %v31711_v44 }
 0x4ec   :  { %25006 = vmatprep.mubr.f32.mxu0 %v31737_v39 }
 0x4ef   :  { %25007 = vmatmul.mubr.f32.gmra.mrb[44].mxu0 %v31733_v25 }
 0x4f0   :  { %25017 = vmatprep.mubr.f32.mxu0 %v34801_v15 }
 0x4f3   :  { %25018 = vmatmul.mubr.f32.vlgmr.msra.gmra.mrb[30].mxu0 %v31583_v50  ;;  %v28681_v50 = vadd.f32 %v22328_v56, %v34803_v35  ;;  %v4239_v35 = vld [vmem:[%s34338_s2 + $0x48] sm:$0xff] }
 0x4f4   :  { %25020 = vmatprep.mubr.f32.mxu0 %v31601_v28 }
 0x4f7   :  { %25021 = vmatmul.mubr.f32.gmra.mrb[32].mxu0 %v31598_v16 }
 0x4f8   :  { %25023 = vmatprep.mubr.f32.mxu0 %v31623_v41 }
 0x4fb   :  { %25024 = vmatmul.mubr.f32.gmra.mrb[34].mxu0 %v31619_v6 }
 0x4fc   :  { %25026 = vmatprep.mubr.f32.mxu0 %v31645_v30 }
 0x4ff   :  { %25027 = vmatmul.mubr.f32.gmra.mrb[36].mxu0 %v31641_v57 }
 0x500   :  { %25029 = vmatprep.mubr.f32.mxu0 %v31669_v23 }
 0x503   :  { %25030 = vmatmul.mubr.f32.gmra.mrb[38].mxu0 %v31665_v1 }
 0x504   :  { %25032 = vmatprep.mubr.f32.mxu0 %v31693_v5 }
 0x507   :  { %25033 = vmatmul.mubr.f32.gmra.mrb[40].mxu0 %v31689_v63 }
 0x508   :  { %25035 = vmatprep.mubr.f32.mxu0 %v31715_v7 }
 0x50b   :  { %25036 = vmatmul.mubr.f32.gmra.mrb[42].mxu0 %v31711_v44 }
 0x50c   :  { %25038 = vmatprep.mubr.f32.mxu0 %v31737_v39 }
 0x50f   :  { %25039 = vmatmul.mubr.f32.gmra.mrb[44].mxu0 %v31733_v25 }
 0x510   :  { %25301 = vmatprep.mubr.msk.f32.mxu0 %vm29704_vm1, %v34802_v34 }
 0x596   :  { %v25151_v16 = vpop.f32.mrb[52].mxu1 }
 0x597   :  { %v32046_v28 = vadd.f32 %v28681_v50, %v25151_v16  ;;  %v7196_v6 = vpop.f32.mrb[53].mxu1  ;;  %v7284_v16 = vand.u32 4294901760, %v4239_v35 }
 0x598   :  { %v32048_v7 = vadd.f32 %v28681_v50, %v7196_v6 }
 0x59a   :  { %v25154_v41 = vpop.f32.mrb[54].mxu1 }
 0x59b   :  { %v32050_v57 = vadd.f32 %v28681_v50, %v25154_v41  ;;  %v7208_v39 = vpop.f32.mrb[55].mxu1 }
 0x59c   :  { %v32052_v5 = vadd.f32 %v28681_v50, %v7208_v39  ;;  %v4240_v39 = vld [vmem:[%s34338_s2 + $0x50] sm:$0xff] }
 0x59e   :  { %v25157_v30 = vpop.f32.mrb[56].mxu1 }
 0x59f   :  { %v32054_v1 = vadd.f32 %v28681_v50, %v25157_v30  ;;  %v7220_v23 = vpop.f32.mrb[57].mxu1  ;;  %v4241_v30 = vld [vmem:[%s34338_s2 + $0x58] sm:$0xff] }
 0x5a0   :  { %v32056_v63 = vadd.f32 %v28681_v50, %v7220_v23  ;;  %v7287_v23 = vand.u32 4294901760, %v4240_v39 }
 0x5a2   :  { %v25160_v62 = vpop.f32.mrb[58].mxu1 }
 0x5a3   :  { %v32058_v44 = vadd.f32 %v28681_v50, %v25160_v62  ;;  %v7232_v25 = vpop.f32.mrb[59].mxu1  ;;  %v7290_v62 = vand.u32 4294901760, %v4241_v30 }
 0x5a4   :  { %v32060_v32 = vadd.f32 %v28681_v50, %v7232_v25 }
 0x5a5   :  { %v32132_v25 = vpack.c.bf16 %v7290_v62, %v7287_v23 }
 0x5c6   :  { %v25019_v8 = vpop.f32.mrb[30].mxu0 }
 0x5c7   :  { %v32063_v17 = vadd.f32 %v31847_v14, %v25019_v8  ;;  %v6322_v59 = vpop.f32.mrb[31].mxu0  ;;  %v7375_v8 = vsub.f32 %v4240_v39, %v7287_v23 }
 0x5c8   :  { %v6416_v51 = vadd.f32 %v31847_v14, %v6322_v59  ;;  %v7382_v59 = vsub.f32 %v4241_v30, %v7290_v62 }
 0x5ca   :  { %v22329_v9 = vmul.f32 -1.442695, %v6416_v51  ;;  %v25022_v42 = vpop.f32.mrb[32].mxu0 }
 0x5cb   :  { %v32067_v29 = vadd.f32 %v31847_v14, %v25022_v42  ;;  %v6334_v54 = vpop.f32.mrb[33].mxu0 }
 0x5cc   :  { %29461 = vpow2.f32 %v22329_v9  ;;  %v32070_v53 = vadd.f32 %v31847_v14, %v6334_v54  ;;  %v7376_v9 = vand.u32 4294901760, %v7375_v8  ;;  %v7383_v54 = vand.u32 4294901760, %v7382_v59 }
 0x5ce   :  { %v25025_v13 = vpop.f32.mrb[34].mxu0 }
 0x5cf   :  { %v32073_v10 = vadd.f32 %v31847_v14, %v25025_v13  ;;  %v6346_v18 = vpop.f32.mrb[35].mxu0  ;;  %v7377_v13 = vsub.f32 %v7375_v8, %v7376_v9 }
 0x5d0   :  { %v32076_v24 = vadd.f32 %v31847_v14, %v6346_v18  ;;  %v7384_v18 = vsub.f32 %v7382_v59, %v7383_v54 }
 0x5d2   :  { %v25028_v52 = vpop.f32.mrb[36].mxu0 }
 0x5d3   :  { %v32079_v45 = vadd.f32 %v31847_v14, %v25028_v52  ;;  %v6358_v31 = vpop.f32.mrb[37].mxu0  ;;  %v7378_v52 = vand.u32 4294901760, %v7377_v13 }
 0x5d4   :  { %v32082_v37 = vadd.f32 %v31847_v14, %v6358_v31  ;;  %v7385_v31 = vand.u32 4294901760, %v7384_v18 }
 0x5d6   :  { %v29462_v21 = vpop.eup %29461  ;;  %v25031_v46 = vpop.f32.mrb[38].mxu0 }
 0x5d7   :  { %v7253_v48 = vadd.f32 1.0, %v29462_v21  ;;  %v32085_v58 = vadd.f32 %v31847_v14, %v25031_v46  ;;  %v6370_v11 = vpop.f32.mrb[39].mxu0  ;;  %v32139_v21 = vpack.c.bf16 %v7385_v31, %v7378_v52  ;;  %v32141_v46 = vpack.c.bf16 %v7382_v59, %v7375_v8 }
 0x5d8   :  { %v32088_v20 = vadd.f32 %v31847_v14, %v6370_v11 }
 0x5d9   :  { %29463 = vrcp.f32 %v7253_v48  ;;  %v32143_v48 = vpack.c.bf16 %v7383_v54, %v7376_v9 }
 0x5da   :  { %v25034_v49 = vpop.f32.mrb[40].mxu0 }
 0x5db   :  { %v32091_v0 = vadd.f32 %v31847_v14, %v25034_v49  ;;  %v6382_v43 = vpop.f32.mrb[41].mxu0  ;;  %v7368_v49 = vsub.f32 %v4239_v35, %v7284_v16 }
 0x5dc   :  { %v32094_v55 = vadd.f32 %v31847_v14, %v6382_v43 }
 0x5de   :  { %v25037_v12 = vpop.f32.mrb[42].mxu0 }
 0x5df   :  { %v32097_v4 = vadd.f32 %v31847_v14, %v25037_v12  ;;  %v6394_v60 = vpop.f32.mrb[43].mxu0  ;;  %v7369_v12 = vand.u32 4294901760, %v7368_v49 }
 0x5e0   :  { %v32100_v3 = vadd.f32 %v31847_v14, %v6394_v60 }
 0x5e2   :  { %v25040_v27 = vpop.f32.mrb[44].mxu0 }
 0x5e3   :  { %v29464_v2 = vpop.eup %29463  ;;  %v32103_v38 = vadd.f32 %v31847_v14, %v25040_v27  ;;  %v6406_v19 = vpop.f32.mrb[45].mxu0 }
 0x5e4   :  { %v32106_v33 = vadd.f32 %v31847_v14, %v6406_v19  ;;  %v7256_v22 = vmul.f32 2.0, %v29464_v2  ;;  %v7258_v36 = vmul.f32 0.0, %v29464_v2  ;;  %v4238_v14 = vld [vmem:[%s34338_s2 + $0x40] sm:$0xff]  ;;  %v7370_v19 = vsub.f32 %v7368_v49, %v7369_v12 }
 0x5e5   :  { %v7281_v50 = vand.u32 4294901760, %v4238_v14 }
 0x5e6   :  { %v22330_v40 = vadd.f32 -1.0, %v7256_v22 }
 0x5e7   :  { %v32119_v6 = vpack.c.bf16 %v7284_v16, %v7281_v50  ;;  %v7361_v11 = vsub.f32 %v4238_v14, %v7281_v50 }
 0x5e8   :  { %7260 = vrot.lane.b32.xlu0 %v22330_v40, %s29706_s11 }
 0x5e9   :  { %27515 = vmatpush3.bf16.msra.mxu1 %v32119_v6  ;;  %27587 = vmatpush3.bf16.msra.mxu0 %v32119_v6  ;;  %v7362_v43 = vand.u32 4294901760, %v7361_v11  ;;  %v32153_v14 = vpack.c.bf16 %v7368_v49, %v7361_v11 }
 0x5ea   :  { %27516 = vmatprep.subr.bf16.mxu1 %v34789_v61  ;;  %27588 = vmatprep.subr.bf16.mxu0 %v34789_v61 }
 0x5eb   :  { %v32167_v35 = vpack.c.bf16 %v7369_v12, %v7362_v43 }
 0x5ed   :  { %27518 = vmatpush3.bf16.msra.mxu1 %v32132_v25  ;;  %27590 = vmatpush3.bf16.msra.mxu0 %v32132_v25 }
 0x5ee   :  { %27519 = vmatprep.subr.bf16.mxu1 %v34789_v61  ;;  %27591 = vmatprep.subr.bf16.mxu0 %v34789_v61 }
 0x65a   :  { %v7261_v26 = vpop.permute.xlu0 %7260 }
 0x65b   :  { %v7263_v47 = vmul.f32 %v29464_v2, %v7261_v26 }
 0x65d   :  { %7265 = vrot.lane.b32.xlu0 %v7263_v47, %s29707_s12  ;;  %v7371_v47 = vand.u32 4294901760, %v7370_v19 }
 0x6cf   :  { %v7266_v15 = vpop.permute.xlu0 %7265 }
 0x6d0   :  { %v32110_v56 = vadd.f32 %v7266_v15, %v7258_v36 }
 0x6d2   :  { %29465 = vtanh.f32 %v32110_v56 }
 0x6dc   :  { %v29466_v41 = vpop.eup %29465 }
 0x6dd   :  { %7271 = vrot.lane.b32.xlu1 %v29466_v41, %s29706_s11 }
 0x74f   :  { %v7272_v51 = vpop.permute.xlu1 %7271 }
 0x750   :  { %v7274_v42 = vmul.f32 %v29464_v2, %v7272_v51  ;;  %v7363_v2 = vsub.f32 %v7361_v11, %v7362_v43 }
 0x752   :  { %7276 = vrot.lane.b32.xlu1 %v7274_v42, %s29707_s12  ;;  %v7364_v26 = vand.u32 4294901760, %v7363_v2 }
 0x754   :  { %v32146_v41 = vpack.c.bf16 %v7371_v47, %v7364_v26 }
 0x7c4   :  { %v7277_v60 = vpop.permute.xlu1 %7276 }
 0x7c5   :  { %v7278_v27 = vsel %vm4260_vm3, %v7277_v60, 0 }
 0x7c6   :  { %v7349_v22 = vand.u32 4294901760, %v7278_v27 }
 0x7c8   :  { %v7350_v40 = vsub.f32 %v7278_v27, %v7349_v22 }
 0x7ca   :  { %v7351_v36 = vand.u32 4294901760, %v7350_v40 }
 0x7cc   :  { %v7352_v15 = vsub.f32 %v7350_v40, %v7351_v36 }
 0x7ce   :  { %v7353_v39 = vand.u32 4294901760, %v7352_v15 }
 0x7d0   :  { %25170 = vmatmul.mubr.f32.vlgmr.msra.gmra.mrb[60].mxu1 %v7353_v39 }
 0x7d1   :  { %27521 = vmatpush3.bf16.msra.mxu1 %v32146_v41  ;;  %25180 = vmatprep.mubr.msk.f32.mxu1 %vm29704_vm1, %v34802_v34 }
 0x7d2   :  { %27522 = vmatprep.subr.bf16.mxu1 %v34789_v61 }
 0x7d5   :  { %27524 = vmatpush3.bf16.msra.mxu1 %v32139_v21 }
 0x7d6   :  { %27525 = vmatprep.subr.bf16.mxu1 %v34789_v61 }
 0x7d8   :  { %25181 = vmatmul.mubr.f32.vlgmr.msra.gmra.mrb[60].mxu1 %v7349_v22 }
 0x7d9   :  { %27527 = vmatpush3.bf16.msra.mxu1 %v32153_v14  ;;  %25191 = vmatprep.mubr.msk.f32.mxu1 %vm29704_vm1, %v34802_v34 }
 0x7da   :  { %27528 = vmatprep.subr.bf16.mxu1 %v34789_v61 }
 0x7dd   :  { %27530 = vmatpush3.bf16.msra.mxu1 %v32141_v46 }
 0x7de   :  { %27531 = vmatprep.subr.bf16.mxu1 %v34789_v61 }
 0x7e0   :  { %25192 = vmatmul.mubr.f32.vlgmr.msra.gmra.mrb[60].mxu1 %v7350_v40 }
 0x7e1   :  { %27533 = vmatpush3.bf16.msra.mxu1 %v32119_v6  ;;  %25202 = vmatprep.mubr.msk.f32.mxu1 %vm29704_vm1, %v34802_v34 }
 0x7e2   :  { %27534 = vmatprep.subr.bf16.mxu1 %v34789_v61 }
 0x7e5   :  { %27536 = vmatpush3.bf16.msra.mxu1 %v32132_v25 }
 0x7e6   :  { %27537 = vmatprep.subr.bf16.mxu1 %v34789_v61 }
 0x7e8   :  { %25203 = vmatmul.mubr.f32.vlgmr.msra.gmra.mrb[60].mxu1 %v7351_v36 }
 0x7e9   :  { %27539 = vmatpush3.bf16.msra.mxu1 %v32167_v35  ;;  %25213 = vmatprep.mubr.msk.f32.mxu1 %vm29704_vm1, %v34802_v34 }
 0x7ea   :  { %27540 = vmatprep.subr.bf16.mxu1 %v34789_v61 }
 0x7ed   :  { %27542 = vmatpush3.bf16.msra.mxu1 %v32143_v48 }
 0x7ee   :  { %27543 = vmatprep.subr.bf16.mxu1 %v34789_v61 }
 0x7f0   :  { %25214 = vmatmul.mubr.f32.vlgmr.msra.gmra.mrb[60].mxu1 %v7349_v22 }
 0x7f1   :  { %27545 = vmatpush3.bf16.msra.mxu1 %v32119_v6  ;;  %25224 = vmatprep.mubr.msk.f32.mxu1 %vm29704_vm1, %v34802_v34 }
 0x7f2   :  { %27546 = vmatprep.subr.bf16.mxu1 %v34789_v61 }
 0x7f5   :  { %27548 = vmatpush3.bf16.msra.mxu1 %v32132_v25 }
 0x7f6   :  { %27549 = vmatprep.subr.bf16.mxu1 %v34789_v61 }
 0x7f8   :  { %25225 = vmatmul.mubr.f32.vlgmr.msra.gmra.mrb[60].mxu1 %v7349_v22 }
 0x7f9   :  { %27551 = vmatpush3.bf16.msra.mxu1 %v32119_v6  ;;  %25235 = vmatprep.mubr.msk.f32.mxu1 %vm29704_vm1, %v34802_v34 }
 0x7fa   :  { %27552 = vmatprep.subr.bf16.mxu1 %v34789_v61 }
 0x7fd   :  { %27554 = vmatpush3.bf16.msra.mxu1 %v32132_v25 }
 0x7fe   :  { %27555 = vmatprep.subr.bf16.mxu1 %v34789_v61 }
 0x8cb   :  { %v7761_v50 = vpop.f32.mrb[60].mxu1 }
 0x8cc   :  { %v7765_v16 = vadd.f32 %v7761_v50, %v32063_v17  ;;  %v25226_v30 = vpop.f32.mrb[61].mxu1 }
 0x8ce   :  { %v22331_v23 = vmul.f32 -1.442695, %v7765_v16 }
 0x8d0   :  { %29467 = vpow2.f32 %v22331_v23 }
 0x8da   :  { %v29468_v62 = vpop.eup %29467 }
 0x8db   :  { %v7769_v8 = vadd.f32 1.0, %v29468_v62 }
 0x8dd   :  { %29469 = vrcp.f32 %v7769_v8 }
 0x8e7   :  { %v29470_v59 = vpop.eup %29469 }
 0x8e8   :  { %v7772_v51 = vmul.f32 2.0, %v29470_v59  ;;  %v7774_v13 = vmul.f32 %v29470_v59, %v32110_v56 }
 0x8ea   :  { %v22332_v9 = vadd.f32 -1.0, %v7772_v51 }
 0x8ec   :  { %7776 = vrot.lane.b32.xlu0 %v22332_v9, %s29706_s11 }
 0x95e   :  { %v7777_v42 = vpop.permute.xlu0 %7776 }
 0x95f   :  { %v7779_v54 = vmul.f32 %v29470_v59, %v7777_v42 }
 0x961   :  { %7781 = vrot.lane.b32.xlu1 %v7779_v54, %s29707_s12 }
 0x9d3   :  { %v7782_v18 = vpop.permute.xlu1 %7781 }
 0x9d4   :  { %v32192_v52 = vadd.f32 %v7782_v18, %v7774_v13 }
 0x9d6   :  { %29471 = vtanh.f32 %v32192_v52 }
 0x9e0   :  { %v29472_v17 = vpop.eup %29471 }
 0x9e1   :  { %7787 = vrot.lane.b32.xlu0 %v29472_v17, %s29706_s11 }
 0xa53   :  { %v7788_v31 = vpop.permute.xlu0 %7787 }
 0xa54   :  { %v7790_v11 = vmul.f32 %v29470_v59, %v7788_v31 }
 0xa56   :  { %7792 = vrot.lane.b32.xlu1 %v7790_v11, %s29707_s12 }
 0xac8   :  { %v7793_v49 = vpop.permute.xlu1 %7792 }
 0xac9   :  { %v7794_v43 = vsel %vm4260_vm3, %v7793_v49, 0 }
 0xaca   :  { %v7865_v12 = vand.u32 4294901760, %v7794_v43 }
 0xacc   :  { %v7866_v60 = vsub.f32 %v7794_v43, %v7865_v12 }
 0xace   :  { %v7867_v27 = vand.u32 4294901760, %v7866_v60 }
 0xad0   :  { %v7868_v2 = vsub.f32 %v7866_v60, %v7867_v27 }
 0xad2   :  { %v7869_v56 = vand.u32 4294901760, %v7868_v2 }
 0xad4   :  { %25236 = vmatmul.mubr.f32.vlgmr.msra.gmra.mrb[62].mxu1 %v7869_v56 }
 0xad5   :  { %27557 = vmatpush3.bf16.msra.mxu1 %v32146_v41  ;;  %25246 = vmatprep.mubr.msk.f32.mxu1 %vm29704_vm1, %v34802_v34 }
 0xad6   :  { %27558 = vmatprep.subr.bf16.mxu1 %v34789_v61 }
 0xad9   :  { %27560 = vmatpush3.bf16.msra.mxu1 %v32139_v21 }
 0xada   :  { %27561 = vmatprep.subr.bf16.mxu1 %v34789_v61 }
 0xadc   :  { %25247 = vmatmul.mubr.f32.vlgmr.msra.gmra.mrb[62].mxu1 %v7865_v12 }
 0xadd   :  { %27563 = vmatpush3.bf16.msra.mxu1 %v32153_v14  ;;  %25257 = vmatprep.mubr.msk.f32.mxu1 %vm29704_vm1, %v34802_v34 }
 0xade   :  { %27564 = vmatprep.subr.bf16.mxu1 %v34789_v61 }
 0xae1   :  { %27566 = vmatpush3.bf16.msra.mxu1 %v32141_v46 }
 0xae2   :  { %27567 = vmatprep.subr.bf16.mxu1 %v34789_v61 }
 0xae4   :  { %25258 = vmatmul.mubr.f32.vlgmr.msra.gmra.mrb[62].mxu1 %v7866_v60 }
 0xae5   :  { %27569 = vmatpush3.bf16.msra.mxu1 %v32119_v6  ;;  %25268 = vmatprep.mubr.msk.f32.mxu1 %vm29704_vm1, %v34802_v34 }
 0xae6   :  { %27570 = vmatprep.subr.bf16.mxu1 %v34789_v61 }
 0xae9   :  { %27572 = vmatpush3.bf16.msra.mxu1 %v32132_v25 }
 0xaea   :  { %27573 = vmatprep.subr.bf16.mxu1 %v34789_v61 }
 0xaec   :  { %25269 = vmatmul.mubr.f32.vlgmr.msra.gmra.mrb[62].mxu1 %v7867_v27 }
 0xaed   :  { %27575 = vmatpush3.bf16.msra.mxu1 %v32167_v35  ;;  %25279 = vmatprep.mubr.msk.f32.mxu1 %vm29704_vm1, %v34802_v34 }
 0xaee   :  { %27576 = vmatprep.subr.bf16.mxu1 %v34789_v61 }
 0xaf1   :  { %27578 = vmatpush3.bf16.msra.mxu1 %v32143_v48 }
 0xaf2   :  { %27579 = vmatprep.subr.bf16.mxu1 %v34789_v61 }
 0xaf4   :  { %25280 = vmatmul.mubr.f32.vlgmr.msra.gmra.mrb[62].mxu1 %v7865_v12 }
 0xaf5   :  { %27581 = vmatpush3.bf16.msra.mxu1 %v32119_v6  ;;  %25290 = vmatprep.mubr.msk.f32.mxu1 %vm29704_vm1, %v34802_v34 }
 0xaf6   :  { %27582 = vmatprep.subr.bf16.mxu1 %v34789_v61 }
 0xaf9   :  { %27584 = vmatpush3.bf16.msra.mxu1 %v32132_v25 }
 0xafa   :  { %27621 = vmatprep.subr.bf16.mxu1 %v34789_v61 }
 0xafc   :  { %25291 = vmatmul.mubr.f32.vlgmr.msra.gmra.mrb[62].mxu1 %v7865_v12 }
 0xafd   :  { %27623 = vmatpush3.bf16.msra.mxu1 %v32119_v6  ;;  %25367 = vmatprep.mubr.msk.f32.mxu1 %vm29704_vm1, %v34802_v34 }
 0xafe   :  { %27624 = vmatprep.subr.bf16.mxu1 %v34789_v61 }
 0xb01   :  { %27626 = vmatpush3.bf16.msra.mxu1 %v32132_v25 }
 0xb02   :  { %27627 = vmatprep.subr.bf16.mxu1 %v34789_v61 }
 0xbcf   :  { %v8277_v19 = vpop.f32.mrb[62].mxu1 }
 0xbd0   :  { %v8281_v22 = vadd.f32 %v8277_v19, %v32070_v53  ;;  %v25292_v40 = vpop.f32.mrb[63].mxu1 }
 0xbd2   :  { %v22333_v26 = vmul.f32 -1.442695, %v8281_v22 }
 0xbd4   :  { %29473 = vpow2.f32 %v22333_v26 }
 0xbde   :  { %v29474_v47 = vpop.eup %29473 }
 0xbdf   :  { %v8285_v36 = vadd.f32 1.0, %v29474_v47 }
 0xbe1   :  { %29475 = vrcp.f32 %v8285_v36 }
 0xbeb   :  { %v29476_v15 = vpop.eup %29475 }
 0xbec   :  { %v8288_v39 = vmul.f32 2.0, %v29476_v15  ;;  %v8290_v23 = vmul.f32 %v29476_v15, %v32192_v52 }
 0xbee   :  { %v22334_v50 = vadd.f32 -1.0, %v8288_v39 }
 0xbf0   :  { %8292 = vrot.lane.b32.xlu0 %v22334_v50, %s29706_s11 }
 0xc62   :  { %v8293_v16 = vpop.permute.xlu0 %8292 }
 0xc63   :  { %v8295_v30 = vmul.f32 %v29476_v15, %v8293_v16 }
 0xc65   :  { %8297 = vrot.lane.b32.xlu1 %v8295_v30, %s29707_s12 }
 0xcd7   :  { %v8298_v62 = vpop.permute.xlu1 %8297 }
 0xcd8   :  { %v32238_v8 = vadd.f32 %v8298_v62, %v8290_v23 }
 0xcda   :  { %29477 = vtanh.f32 %v32238_v8 }
 0xce4   :  { %v29478_v53 = vpop.eup %29477 }
 0xce5   :  { %8303 = vrot.lane.b32.xlu0 %v29478_v53, %s29706_s11 }
 0xd57   :  { %v8304_v59 = vpop.permute.xlu0 %8303 }
 0xd58   :  { %v8306_v51 = vmul.f32 %v29476_v15, %v8304_v59 }
 0xd5a   :  { %8308 = vrot.lane.b32.xlu1 %v8306_v51, %s29707_s12 }
 0xdcc   :  { %v8309_v9 = vpop.permute.xlu1 %8308 }
 0xdcd   :  { %v8310_v42 = vsel %vm4260_vm3, %v8309_v9, 0 }
 0xdce   :  { %v8381_v54 = vand.u32 4294901760, %v8310_v42 }
 0xdd0   :  { %v8382_v13 = vsub.f32 %v8310_v42, %v8381_v54 }
 0xdd2   :  { %v8383_v18 = vand.u32 4294901760, %v8382_v13 }
 0xdd4   :  { %v8384_v17 = vsub.f32 %v8382_v13, %v8383_v18 }
 0xdd6   :  { %v8385_v52 = vand.u32 4294901760, %v8384_v17 }
 0xdd8   :  { %25302 = vmatmul.mubr.f32.vlgmr.msra.gmra.mrb[46].mxu0 %v8385_v52 }
 0xdd9   :  { %27593 = vmatpush3.bf16.msra.mxu0 %v32146_v41  ;;  %25312 = vmatprep.mubr.msk.f32.mxu0 %vm29704_vm1, %v34802_v34 }
 0xdda   :  { %27594 = vmatprep.subr.bf16.mxu0 %v34789_v61 }
 0xddd   :  { %27596 = vmatpush3.bf16.msra.mxu0 %v32139_v21 }
 0xdde   :  { %27597 = vmatprep.subr.bf16.mxu0 %v34789_v61 }
 0xde0   :  { %25313 = vmatmul.mubr.f32.vlgmr.msra.gmra.mrb[46].mxu0 %v8381_v54 }
 0xde1   :  { %27599 = vmatpush3.bf16.msra.mxu0 %v32153_v14  ;;  %25323 = vmatprep.mubr.msk.f32.mxu0 %vm29704_vm1, %v34802_v34 }
 0xde2   :  { %27600 = vmatprep.subr.bf16.mxu0 %v34789_v61 }
 0xde5   :  { %27602 = vmatpush3.bf16.msra.mxu0 %v32141_v46 }
 0xde6   :  { %27603 = vmatprep.subr.bf16.mxu0 %v34789_v61 }
 0xde8   :  { %25324 = vmatmul.mubr.f32.vlgmr.msra.gmra.mrb[46].mxu0 %v8382_v13 }
 0xde9   :  { %27605 = vmatpush3.bf16.msra.mxu0 %v32119_v6  ;;  %25334 = vmatprep.mubr.msk.f32.mxu0 %vm29704_vm1, %v34802_v34 }
 0xdea   :  { %27606 = vmatprep.subr.bf16.mxu0 %v34789_v61 }
 0xded   :  { %27608 = vmatpush3.bf16.msra.mxu0 %v32132_v25 }
 0xdee   :  { %27609 = vmatprep.subr.bf16.mxu0 %v34789_v61 }
 0xdf0   :  { %25335 = vmatmul.mubr.f32.vlgmr.msra.gmra.mrb[46].mxu0 %v8383_v18 }
 0xdf1   :  { %27611 = vmatpush3.bf16.msra.mxu0 %v32167_v35  ;;  %25345 = vmatprep.mubr.msk.f32.mxu0 %vm29704_vm1, %v34802_v34 }
 0xdf2   :  { %27612 = vmatprep.subr.bf16.mxu0 %v34789_v61 }
 0xdf5   :  { %27614 = vmatpush3.bf16.msra.mxu0 %v32143_v48 }
 0xdf6   :  { %27615 = vmatprep.subr.bf16.mxu0 %v34789_v61 }
 0xdf8   :  { %25346 = vmatmul.mubr.f32.vlgmr.msra.gmra.mrb[46].mxu0 %v8381_v54 }
 0xdf9   :  { %27617 = vmatpush3.bf16.msra.mxu0 %v32119_v6  ;;  %25356 = vmatprep.mubr.msk.f32.mxu0 %vm29704_vm1, %v34802_v34 }
 0xdfa   :  { %27618 = vmatprep.subr.bf16.mxu0 %v34789_v61 }
 0xdfd   :  { %27620 = vmatpush3.bf16.msra.mxu0 %v32132_v25 }
 0xdfe   :  { %27657 = vmatprep.subr.bf16.mxu0 %v34789_v61 }
 0xe00   :  { %25357 = vmatmul.mubr.f32.vlgmr.msra.gmra.mrb[46].mxu0 %v8381_v54 }
 0xe01   :  { %27659 = vmatpush3.bf16.msra.mxu0 %v32119_v6  ;;  %25433 = vmatprep.mubr.msk.f32.mxu0 %vm29704_vm1, %v34802_v34 }
 0xe02   :  { %27660 = vmatprep.subr.bf16.mxu0 %v34789_v61 }
 0xe05   :  { %27662 = vmatpush3.bf16.msra.mxu0 %v32132_v25 }
 0xe06   :  { %27663 = vmatprep.subr.bf16.mxu0 %v34789_v61 }
 0xed3   :  { %v8793_v31 = vpop.f32.mrb[46].mxu0 }
 0xed4   :  { %v8797_v11 = vadd.f32 %v8793_v31, %v32067_v29  ;;  %v25358_v49 = vpop.f32.mrb[47].mxu0 }
 0xed6   :  { %v22335_v43 = vmul.f32 -1.442695, %v8797_v11 }
 0xed8   :  { %29479 = vpow2.f32 %v22335_v43 }
 0xee2   :  { %v29480_v12 = vpop.eup %29479 }
 0xee3   :  { %v8801_v60 = vadd.f32 1.0, %v29480_v12 }
 0xee5   :  { %29481 = vrcp.f32 %v8801_v60 }
 0xeef   :  { %v29482_v27 = vpop.eup %29481 }
 0xef0   :  { %v8804_v2 = vmul.f32 2.0, %v29482_v27  ;;  %v8806_v40 = vmul.f32 %v29482_v27, %v32238_v8 }
 0xef2   :  { %v22336_v56 = vadd.f32 -1.0, %v8804_v2 }
 0xef4   :  { %8808 = vrot.lane.b32.xlu0 %v22336_v56, %s29706_s11 }
 0xf66   :  { %v8809_v19 = vpop.permute.xlu0 %8808 }
 0xf67   :  { %v8811_v22 = vmul.f32 %v29482_v27, %v8809_v19 }
 0xf69   :  { %8813 = vrot.lane.b32.xlu1 %v8811_v22, %s29707_s12 }
 0xfdb   :  { %v8814_v26 = vpop.permute.xlu1 %8813 }
 0xfdc   :  { %v32284_v47 = vadd.f32 %v8814_v26, %v8806_v40 }
 0xfde   :  { %29483 = vtanh.f32 %v32284_v47 }
 0xfe8   :  { %v29484_v29 = vpop.eup %29483 }
 0xfe9   :  { %8819 = vrot.lane.b32.xlu0 %v29484_v29, %s29706_s11 }
0x105b   :  { %v8820_v36 = vpop.permute.xlu0 %8819 }
0x105c   :  { %v8822_v15 = vmul.f32 %v29482_v27, %v8820_v36 }
0x105e   :  { %8824 = vrot.lane.b32.xlu1 %v8822_v15, %s29707_s12 }
0x10d0   :  { %v8825_v39 = vpop.permute.xlu1 %8824 }
0x10d1   :  { %v8826_v50 = vsel %vm4260_vm3, %v8825_v39, 0 }
0x10d2   :  { %v8897_v16 = vand.u32 4294901760, %v8826_v50 }
0x10d4   :  { %v8898_v30 = vsub.f32 %v8826_v50, %v8897_v16 }
0x10d6   :  { %v8899_v23 = vand.u32 4294901760, %v8898_v30 }
0x10d8   :  { %v8900_v62 = vsub.f32 %v8898_v30, %v8899_v23 }
0x10da   :  { %v8901_v8 = vand.u32 4294901760, %v8900_v62 }
0x10dc   :  { %25368 = vmatmul.mubr.f32.vlgmr.msra.gmra.mrb[64].mxu1 %v8901_v8 }
0x10dd   :  { %27629 = vmatpush3.bf16.msra.mxu1 %v32146_v41  ;;  %25378 = vmatprep.mubr.msk.f32.mxu1 %vm29704_vm1, %v34802_v34 }
0x10de   :  { %27630 = vmatprep.subr.bf16.mxu1 %v34789_v61 }
0x10e1   :  { %27632 = vmatpush3.bf16.msra.mxu1 %v32139_v21 }
0x10e2   :  { %27633 = vmatprep.subr.bf16.mxu1 %v34789_v61 }
0x10e4   :  { %25379 = vmatmul.mubr.f32.vlgmr.msra.gmra.mrb[64].mxu1 %v8897_v16 }
0x10e5   :  { %27635 = vmatpush3.bf16.msra.mxu1 %v32153_v14  ;;  %25389 = vmatprep.mubr.msk.f32.mxu1 %vm29704_vm1, %v34802_v34 }
0x10e6   :  { %27636 = vmatprep.subr.bf16.mxu1 %v34789_v61 }
0x10e9   :  { %27638 = vmatpush3.bf16.msra.mxu1 %v32141_v46 }
0x10ea   :  { %27639 = vmatprep.subr.bf16.mxu1 %v34789_v61 }
0x10ec   :  { %25390 = vmatmul.mubr.f32.vlgmr.msra.gmra.mrb[64].mxu1 %v8898_v30 }
0x10ed   :  { %27641 = vmatpush3.bf16.msra.mxu1 %v32119_v6  ;;  %25400 = vmatprep.mubr.msk.f32.mxu1 %vm29704_vm1, %v34802_v34 }
0x10ee   :  { %27642 = vmatprep.subr.bf16.mxu1 %v34789_v61 }
0x10f1   :  { %27644 = vmatpush3.bf16.msra.mxu1 %v32132_v25 }
0x10f2   :  { %27645 = vmatprep.subr.bf16.mxu1 %v34789_v61 }
0x10f4   :  { %25401 = vmatmul.mubr.f32.vlgmr.msra.gmra.mrb[64].mxu1 %v8899_v23 }
0x10f5   :  { %27647 = vmatpush3.bf16.msra.mxu1 %v32167_v35  ;;  %25411 = vmatprep.mubr.msk.f32.mxu1 %vm29704_vm1, %v34802_v34 }
0x10f6   :  { %27648 = vmatprep.subr.bf16.mxu1 %v34789_v61 }
0x10f9   :  { %27650 = vmatpush3.bf16.msra.mxu1 %v32143_v48 }
0x10fa   :  { %27651 = vmatprep.subr.bf16.mxu1 %v34789_v61 }
0x10fc   :  { %25412 = vmatmul.mubr.f32.vlgmr.msra.gmra.mrb[64].mxu1 %v8897_v16 }
0x10fd   :  { %27653 = vmatpush3.bf16.msra.mxu1 %v32119_v6  ;;  %25422 = vmatprep.mubr.msk.f32.mxu1 %vm29704_vm1, %v34802_v34 }
0x10fe   :  { %27654 = vmatprep.subr.bf16.mxu1 %v34789_v61 }
0x1101   :  { %27656 = vmatpush3.bf16.msra.mxu1 %v32132_v25 }
0x1102   :  { %27693 = vmatprep.subr.bf16.mxu1 %v34789_v61 }
0x1104   :  { %25423 = vmatmul.mubr.f32.vlgmr.msra.gmra.mrb[64].mxu1 %v8897_v16 }
0x1105   :  { %27695 = vmatpush3.bf16.msra.mxu1 %v32119_v6  ;;  %25499 = vmatprep.mubr.msk.f32.mxu1 %vm29704_vm1, %v34802_v34 }
0x1106   :  { %27696 = vmatprep.subr.bf16.mxu1 %v34789_v61 }
0x1109   :  { %27698 = vmatpush3.bf16.msra.mxu1 %v32132_v25 }
0x110a   :  { %27699 = vmatprep.subr.bf16.mxu1 %v34789_v61 }
0x11d7   :  { %v9309_v53 = vpop.f32.mrb[64].mxu1 }
0x11d8   :  { %v9313_v59 = vadd.f32 %v9309_v53, %v32076_v24  ;;  %v25424_v51 = vpop.f32.mrb[65].mxu1 }
0x11da   :  { %v22337_v9 = vmul.f32 -1.442695, %v9313_v59 }
0x11dc   :  { %29485 = vpow2.f32 %v22337_v9 }
0x11e6   :  { %v29486_v42 = vpop.eup %29485 }
0x11e7   :  { %v9317_v54 = vadd.f32 1.0, %v29486_v42 }
0x11e9   :  { %29487 = vrcp.f32 %v9317_v54 }
0x11f3   :  { %v29488_v13 = vpop.eup %29487 }
0x11f4   :  { %v9320_v18 = vmul.f32 2.0, %v29488_v13  ;;  %v9322_v11 = vmul.f32 %v29488_v13, %v32284_v47 }
0x11f6   :  { %v22338_v17 = vadd.f32 -1.0, %v9320_v18 }
0x11f8   :  { %9324 = vrot.lane.b32.xlu0 %v22338_v17, %s29706_s11 }
0x126a   :  { %v9325_v52 = vpop.permute.xlu0 %9324 }
0x126b   :  { %v9327_v31 = vmul.f32 %v29488_v13, %v9325_v52 }
0x126d   :  { %9329 = vrot.lane.b32.xlu1 %v9327_v31, %s29707_s12 }
0x12df   :  { %v9330_v49 = vpop.permute.xlu1 %9329 }
0x12e0   :  { %v32330_v43 = vadd.f32 %v9330_v49, %v9322_v11 }
0x12e2   :  { %29489 = vtanh.f32 %v32330_v43 }
0x12ec   :  { %v29490_v24 = vpop.eup %29489 }
0x12ed   :  { %9335 = vrot.lane.b32.xlu0 %v29490_v24, %s29706_s11 }
0x135f   :  { %v9336_v12 = vpop.permute.xlu0 %9335 }
0x1360   :  { %v9338_v60 = vmul.f32 %v29488_v13, %v9336_v12 }
0x1362   :  { %9340 = vrot.lane.b32.xlu1 %v9338_v60, %s29707_s12 }
0x13d4   :  { %v9341_v27 = vpop.permute.xlu1 %9340 }
0x13d5   :  { %v9342_v2 = vsel %vm4260_vm3, %v9341_v27, 0 }
0x13d6   :  { %v9413_v56 = vand.u32 4294901760, %v9342_v2 }
0x13d8   :  { %v9414_v19 = vsub.f32 %v9342_v2, %v9413_v56 }
0x13da   :  { %v9415_v22 = vand.u32 4294901760, %v9414_v19 }
0x13dc   :  { %v9416_v40 = vsub.f32 %v9414_v19, %v9415_v22 }
0x13de   :  { %v9417_v26 = vand.u32 4294901760, %v9416_v40 }
0x13e0   :  { %25434 = vmatmul.mubr.f32.vlgmr.msra.gmra.mrb[48].mxu0 %v9417_v26 }
0x13e1   :  { %27665 = vmatpush3.bf16.msra.mxu0 %v32146_v41  ;;  %25444 = vmatprep.mubr.msk.f32.mxu0 %vm29704_vm1, %v34802_v34 }
0x13e2   :  { %27666 = vmatprep.subr.bf16.mxu0 %v34789_v61 }
0x13e5   :  { %27668 = vmatpush3.bf16.msra.mxu0 %v32139_v21 }
0x13e6   :  { %27669 = vmatprep.subr.bf16.mxu0 %v34789_v61 }
0x13e8   :  { %25445 = vmatmul.mubr.f32.vlgmr.msra.gmra.mrb[48].mxu0 %v9413_v56 }
0x13e9   :  { %27671 = vmatpush3.bf16.msra.mxu0 %v32153_v14  ;;  %25455 = vmatprep.mubr.msk.f32.mxu0 %vm29704_vm1, %v34802_v34 }
0x13ea   :  { %27672 = vmatprep.subr.bf16.mxu0 %v34789_v61 }
0x13ed   :  { %27674 = vmatpush3.bf16.msra.mxu0 %v32141_v46 }
0x13ee   :  { %27675 = vmatprep.subr.bf16.mxu0 %v34789_v61 }
0x13f0   :  { %25456 = vmatmul.mubr.f32.vlgmr.msra.gmra.mrb[48].mxu0 %v9414_v19 }
0x13f1   :  { %27677 = vmatpush3.bf16.msra.mxu0 %v32119_v6  ;;  %25466 = vmatprep.mubr.msk.f32.mxu0 %vm29704_vm1, %v34802_v34 }
0x13f2   :  { %27678 = vmatprep.subr.bf16.mxu0 %v34789_v61 }
0x13f5   :  { %27680 = vmatpush3.bf16.msra.mxu0 %v32132_v25 }
0x13f6   :  { %27681 = vmatprep.subr.bf16.mxu0 %v34789_v61 }
0x13f8   :  { %25467 = vmatmul.mubr.f32.vlgmr.msra.gmra.mrb[48].mxu0 %v9415_v22 }
0x13f9   :  { %27683 = vmatpush3.bf16.msra.mxu0 %v32167_v35  ;;  %25477 = vmatprep.mubr.msk.f32.mxu0 %vm29704_vm1, %v34802_v34 }
0x13fa   :  { %27684 = vmatprep.subr.bf16.mxu0 %v34789_v61 }
0x13fd   :  { %27686 = vmatpush3.bf16.msra.mxu0 %v32143_v48 }
0x13fe   :  { %27687 = vmatprep.subr.bf16.mxu0 %v34789_v61 }
0x1400   :  { %25478 = vmatmul.mubr.f32.vlgmr.msra.gmra.mrb[48].mxu0 %v9413_v56 }
0x1401   :  { %27689 = vmatpush3.bf16.msra.mxu0 %v32119_v6  ;;  %25488 = vmatprep.mubr.msk.f32.mxu0 %vm29704_vm1, %v34802_v34 }
0x1402   :  { %27690 = vmatprep.subr.bf16.mxu0 %v34789_v61 }
0x1405   :  { %27692 = vmatpush3.bf16.msra.mxu0 %v32132_v25 }
0x1406   :  { %27729 = vmatprep.subr.bf16.mxu0 %v34789_v61 }
0x1408   :  { %25489 = vmatmul.mubr.f32.vlgmr.msra.gmra.mrb[48].mxu0 %v9413_v56 }
0x1409   :  { %27731 = vmatpush3.bf16.msra.mxu0 %v32119_v6  ;;  %25565 = vmatprep.mubr.msk.f32.mxu0 %vm29704_vm1, %v34802_v34 }
0x140a   :  { %27732 = vmatprep.subr.bf16.mxu0 %v34789_v61 }
0x140d   :  { %27734 = vmatpush3.bf16.msra.mxu0 %v32132_v25 }
0x140e   :  { %27735 = vmatprep.subr.bf16.mxu0 %v34789_v61 }
0x14db   :  { %v9825_v47 = vpop.f32.mrb[48].mxu0 }
0x14dc   :  { %v9829_v29 = vadd.f32 %v9825_v47, %v32073_v10  ;;  %v25490_v36 = vpop.f32.mrb[49].mxu0 }
0x14de   :  { %v22339_v15 = vmul.f32 -1.442695, %v9829_v29 }
0x14e0   :  { %29491 = vpow2.f32 %v22339_v15 }
0x14ea   :  { %v29492_v39 = vpop.eup %29491 }
0x14eb   :  { %v9833_v50 = vadd.f32 1.0, %v29492_v39 }
0x14ed   :  { %29493 = vrcp.f32 %v9833_v50 }
0x14f7   :  { %v29494_v16 = vpop.eup %29493 }
0x14f8   :  { %v9836_v30 = vmul.f32 2.0, %v29494_v16  ;;  %v9838_v53 = vmul.f32 %v29494_v16, %v32330_v43 }
0x14fa   :  { %v22340_v23 = vadd.f32 -1.0, %v9836_v30 }
0x14fc   :  { %9840 = vrot.lane.b32.xlu0 %v22340_v23, %s29706_s11 }
0x156e   :  { %v9841_v62 = vpop.permute.xlu0 %9840 }
0x156f   :  { %v9843_v8 = vmul.f32 %v29494_v16, %v9841_v62 }
0x1571   :  { %9845 = vrot.lane.b32.xlu1 %v9843_v8, %s29707_s12 }
0x15e3   :  { %v9846_v59 = vpop.permute.xlu1 %9845 }
0x15e4   :  { %v32376_v51 = vadd.f32 %v9846_v59, %v9838_v53 }
0x15e6   :  { %29495 = vtanh.f32 %v32376_v51 }
0x15f0   :  { %v29496_v10 = vpop.eup %29495 }
0x15f1   :  { %9851 = vrot.lane.b32.xlu0 %v29496_v10, %s29706_s11 }
0x1663   :  { %v9852_v9 = vpop.permute.xlu0 %9851 }
0x1664   :  { %v9854_v42 = vmul.f32 %v29494_v16, %v9852_v9 }
0x1666   :  { %9856 = vrot.lane.b32.xlu1 %v9854_v42, %s29707_s12 }
0x16d8   :  { %v9857_v54 = vpop.permute.xlu1 %9856 }
0x16d9   :  { %v9858_v13 = vsel %vm4260_vm3, %v9857_v54, 0 }
0x16da   :  { %v9929_v18 = vand.u32 4294901760, %v9858_v13 }
0x16dc   :  { %v9930_v17 = vsub.f32 %v9858_v13, %v9929_v18 }
0x16de   :  { %v9931_v52 = vand.u32 4294901760, %v9930_v17 }
0x16e0   :  { %v9932_v31 = vsub.f32 %v9930_v17, %v9931_v52 }
0x16e2   :  { %v9933_v11 = vand.u32 4294901760, %v9932_v31 }
0x16e4   :  { %25500 = vmatmul.mubr.f32.vlgmr.msra.gmra.mrb[66].mxu1 %v9933_v11 }
0x16e5   :  { %27701 = vmatpush3.bf16.msra.mxu1 %v32146_v41  ;;  %25510 = vmatprep.mubr.msk.f32.mxu1 %vm29704_vm1, %v34802_v34 }
0x16e6   :  { %27702 = vmatprep.subr.bf16.mxu1 %v34789_v61 }
0x16e9   :  { %27704 = vmatpush3.bf16.msra.mxu1 %v32139_v21 }
0x16ea   :  { %27705 = vmatprep.subr.bf16.mxu1 %v34789_v61 }
0x16ec   :  { %25511 = vmatmul.mubr.f32.vlgmr.msra.gmra.mrb[66].mxu1 %v9929_v18 }
0x16ed   :  { %27707 = vmatpush3.bf16.msra.mxu1 %v32153_v14  ;;  %25521 = vmatprep.mubr.msk.f32.mxu1 %vm29704_vm1, %v34802_v34 }
0x16ee   :  { %27708 = vmatprep.subr.bf16.mxu1 %v34789_v61 }
0x16f1   :  { %27710 = vmatpush3.bf16.msra.mxu1 %v32141_v46 }
0x16f2   :  { %27711 = vmatprep.subr.bf16.mxu1 %v34789_v61 }
0x16f4   :  { %25522 = vmatmul.mubr.f32.vlgmr.msra.gmra.mrb[66].mxu1 %v9930_v17 }
0x16f5   :  { %27713 = vmatpush3.bf16.msra.mxu1 %v32119_v6  ;;  %25532 = vmatprep.mubr.msk.f32.mxu1 %vm29704_vm1, %v34802_v34 }
0x16f6   :  { %27714 = vmatprep.subr.bf16.mxu1 %v34789_v61 }
0x16f9   :  { %27716 = vmatpush3.bf16.msra.mxu1 %v32132_v25 }
0x16fa   :  { %27717 = vmatprep.subr.bf16.mxu1 %v34789_v61 }
0x16fc   :  { %25533 = vmatmul.mubr.f32.vlgmr.msra.gmra.mrb[66].mxu1 %v9931_v52 }
0x16fd   :  { %27719 = vmatpush3.bf16.msra.mxu1 %v32167_v35  ;;  %25543 = vmatprep.mubr.msk.f32.mxu1 %vm29704_vm1, %v34802_v34 }
0x16fe   :  { %27720 = vmatprep.subr.bf16.mxu1 %v34789_v61 }
0x1701   :  { %27722 = vmatpush3.bf16.msra.mxu1 %v32143_v48 }
0x1702   :  { %27723 = vmatprep.subr.bf16.mxu1 %v34789_v61 }
0x1704   :  { %25544 = vmatmul.mubr.f32.vlgmr.msra.gmra.mrb[66].mxu1 %v9929_v18 }
0x1705   :  { %27725 = vmatpush3.bf16.msra.mxu1 %v32119_v6  ;;  %25554 = vmatprep.mubr.msk.f32.mxu1 %vm29704_vm1, %v34802_v34 }
0x1706   :  { %27726 = vmatprep.subr.bf16.mxu1 %v34789_v61 }
0x1709   :  { %27728 = vmatpush3.bf16.msra.mxu1 %v32132_v25 }
0x170a   :  { %27765 = vmatprep.subr.bf16.mxu1 %v34789_v61 }
0x170c   :  { %25555 = vmatmul.mubr.f32.vlgmr.msra.gmra.mrb[66].mxu1 %v9929_v18 }
0x170d   :  { %27767 = vmatpush3.bf16.msra.mxu1 %v32119_v6  ;;  %25631 = vmatprep.mubr.msk.f32.mxu1 %vm29704_vm1, %v34802_v34 }
0x170e   :  { %27768 = vmatprep.subr.bf16.mxu1 %v34789_v61 }
0x1711   :  { %27770 = vmatpush3.bf16.msra.mxu1 %v32132_v25 }
0x1712   :  { %27771 = vmatprep.subr.bf16.mxu1 %v34789_v61 }
0x17df   :  { %v10341_v49 = vpop.f32.mrb[66].mxu1 }
0x17e0   :  { %v10345_v43 = vadd.f32 %v10341_v49, %v32082_v37  ;;  %v25556_v24 = vpop.f32.mrb[67].mxu1 }
0x17e2   :  { %v22341_v12 = vmul.f32 -1.442695, %v10345_v43 }
0x17e4   :  { %29497 = vpow2.f32 %v22341_v12 }
0x17ee   :  { %v29498_v60 = vpop.eup %29497 }
0x17ef   :  { %v10349_v27 = vadd.f32 1.0, %v29498_v60 }
0x17f1   :  { %29499 = vrcp.f32 %v10349_v27 }
0x17fb   :  { %v29500_v2 = vpop.eup %29499 }
0x17fc   :  { %v10352_v56 = vmul.f32 2.0, %v29500_v2  ;;  %v10354_v26 = vmul.f32 %v29500_v2, %v32376_v51 }
0x17fe   :  { %v22342_v19 = vadd.f32 -1.0, %v10352_v56 }
0x1800   :  { %10356 = vrot.lane.b32.xlu0 %v22342_v19, %s29706_s11 }
0x1872   :  { %v10357_v22 = vpop.permute.xlu0 %10356 }
0x1873   :  { %v10359_v40 = vmul.f32 %v29500_v2, %v10357_v22 }
0x1875   :  { %10361 = vrot.lane.b32.xlu1 %v10359_v40, %s29707_s12 }
0x18e7   :  { %v10362_v47 = vpop.permute.xlu1 %10361 }
0x18e8   :  { %v32422_v29 = vadd.f32 %v10362_v47, %v10354_v26 }
0x18ea   :  { %29501 = vtanh.f32 %v32422_v29 }
0x18f4   :  { %v29502_v37 = vpop.eup %29501 }
0x18f5   :  { %10367 = vrot.lane.b32.xlu0 %v29502_v37, %s29706_s11 }
0x1967   :  { %v10368_v36 = vpop.permute.xlu0 %10367 }
0x1968   :  { %v10370_v15 = vmul.f32 %v29500_v2, %v10368_v36 }
0x196a   :  { %10372 = vrot.lane.b32.xlu1 %v10370_v15, %s29707_s12 }
0x19dc   :  { %v10373_v39 = vpop.permute.xlu1 %10372 }
0x19dd   :  { %v10374_v50 = vsel %vm4260_vm3, %v10373_v39, 0 }
0x19de   :  { %v10445_v16 = vand.u32 4294901760, %v10374_v50 }
0x19e0   :  { %v10446_v30 = vsub.f32 %v10374_v50, %v10445_v16 }
0x19e2   :  { %v10447_v23 = vand.u32 4294901760, %v10446_v30 }
0x19e4   :  { %v10448_v62 = vsub.f32 %v10446_v30, %v10447_v23 }
0x19e6   :  { %v10449_v8 = vand.u32 4294901760, %v10448_v62 }
0x19e8   :  { %25566 = vmatmul.mubr.f32.vlgmr.msra.gmra.mrb[50].mxu0 %v10449_v8 }
0x19e9   :  { %27737 = vmatpush3.bf16.msra.mxu0 %v32146_v41  ;;  %25576 = vmatprep.mubr.msk.f32.mxu0 %vm29704_vm1, %v34802_v34 }
0x19ea   :  { %27738 = vmatprep.subr.bf16.mxu0 %v34789_v61 }
0x19ed   :  { %27740 = vmatpush3.bf16.msra.mxu0 %v32139_v21 }
0x19ee   :  { %27741 = vmatprep.subr.bf16.mxu0 %v34789_v61 }
0x19f0   :  { %25577 = vmatmul.mubr.f32.vlgmr.msra.gmra.mrb[50].mxu0 %v10445_v16 }
0x19f1   :  { %27743 = vmatpush3.bf16.msra.mxu0 %v32153_v14  ;;  %25587 = vmatprep.mubr.msk.f32.mxu0 %vm29704_vm1, %v34802_v34 }
0x19f2   :  { %27744 = vmatprep.subr.bf16.mxu0 %v34789_v61 }
0x19f5   :  { %27746 = vmatpush3.bf16.msra.mxu0 %v32141_v46 }
0x19f6   :  { %27747 = vmatprep.subr.bf16.mxu0 %v34789_v61 }
0x19f8   :  { %25588 = vmatmul.mubr.f32.vlgmr.msra.gmra.mrb[50].mxu0 %v10446_v30 }
0x19f9   :  { %27749 = vmatpush3.bf16.msra.mxu0 %v32119_v6  ;;  %25598 = vmatprep.mubr.msk.f32.mxu0 %vm29704_vm1, %v34802_v34 }
0x19fa   :  { %27750 = vmatprep.subr.bf16.mxu0 %v34789_v61 }
0x19fd   :  { %27752 = vmatpush3.bf16.msra.mxu0 %v32132_v25 }
0x19fe   :  { %27753 = vmatprep.subr.bf16.mxu0 %v34789_v61 }
0x1a00   :  { %25599 = vmatmul.mubr.f32.vlgmr.msra.gmra.mrb[50].mxu0 %v10447_v23 }
0x1a01   :  { %27755 = vmatpush3.bf16.msra.mxu0 %v32167_v35  ;;  %25609 = vmatprep.mubr.msk.f32.mxu0 %vm29704_vm1, %v34802_v34 }
0x1a02   :  { %27756 = vmatprep.subr.bf16.mxu0 %v34789_v61 }
0x1a05   :  { %27758 = vmatpush3.bf16.msra.mxu0 %v32143_v48 }
0x1a06   :  { %27759 = vmatprep.subr.bf16.mxu0 %v34789_v61 }
0x1a08   :  { %25610 = vmatmul.mubr.f32.vlgmr.msra.gmra.mrb[50].mxu0 %v10445_v16 }
0x1a09   :  { %27761 = vmatpush3.bf16.msra.mxu0 %v32119_v6  ;;  %25620 = vmatprep.mubr.msk.f32.mxu0 %vm29704_vm1, %v34802_v34 }
0x1a0a   :  { %27762 = vmatprep.subr.bf16.mxu0 %v34789_v61 }
0x1a0d   :  { %27764 = vmatpush3.bf16.msra.mxu0 %v32132_v25 }
0x1a0e   :  { %27801 = vmatprep.subr.bf16.mxu0 %v34789_v61 }
0x1a10   :  { %25621 = vmatmul.mubr.f32.vlgmr.msra.gmra.mrb[50].mxu0 %v10445_v16 }
0x1a11   :  { %27803 = vmatpush3.bf16.msra.mxu0 %v32119_v6  ;;  %25697 = vmatprep.mubr.msk.f32.mxu0 %vm29704_vm1, %v34802_v34 }
0x1a12   :  { %27804 = vmatprep.subr.bf16.mxu0 %v34789_v61 }
0x1a15   :  { %27806 = vmatpush3.bf16.msra.mxu0 %v32132_v25 }
0x1a16   :  { %27807 = vmatprep.subr.bf16.mxu0 %v34789_v61 }
0x1ae3   :  { %v10857_v53 = vpop.f32.mrb[50].mxu0 }
0x1ae4   :  { %v10861_v59 = vadd.f32 %v10857_v53, %v32079_v45  ;;  %v25622_v51 = vpop.f32.mrb[51].mxu0 }
0x1ae6   :  { %v22343_v10 = vmul.f32 -1.442695, %v10861_v59 }
0x1ae8   :  { %29503 = vpow2.f32 %v22343_v10 }
0x1af2   :  { %v29504_v9 = vpop.eup %29503 }
0x1af3   :  { %v10865_v42 = vadd.f32 1.0, %v29504_v9 }
0x1af5   :  { %29505 = vrcp.f32 %v10865_v42 }
0x1aff   :  { %v29506_v54 = vpop.eup %29505 }
0x1b00   :  { %v10868_v13 = vmul.f32 2.0, %v29506_v54  ;;  %v10870_v31 = vmul.f32 %v29506_v54, %v32422_v29 }
0x1b02   :  { %v22344_v18 = vadd.f32 -1.0, %v10868_v13 }
0x1b04   :  { %10872 = vrot.lane.b32.xlu0 %v22344_v18, %s29706_s11 }
0x1b76   :  { %v10873_v17 = vpop.permute.xlu0 %10872 }
0x1b77   :  { %v10875_v52 = vmul.f32 %v29506_v54, %v10873_v17 }
0x1b79   :  { %10877 = vrot.lane.b32.xlu1 %v10875_v52, %s29707_s12 }
0x1beb   :  { %v10878_v11 = vpop.permute.xlu1 %10877 }
0x1bec   :  { %v32468_v49 = vadd.f32 %v10878_v11, %v10870_v31 }
0x1bee   :  { %29507 = vtanh.f32 %v32468_v49 }
0x1bf8   :  { %v29508_v45 = vpop.eup %29507 }
0x1bf9   :  { %10883 = vrot.lane.b32.xlu0 %v29508_v45, %s29706_s11 }
0x1c6b   :  { %v10884_v43 = vpop.permute.xlu0 %10883 }
0x1c6c   :  { %v10886_v24 = vmul.f32 %v29506_v54, %v10884_v43 }
0x1c6e   :  { %10888 = vrot.lane.b32.xlu1 %v10886_v24, %s29707_s12 }
0x1ce0   :  { %v10889_v12 = vpop.permute.xlu1 %10888 }
0x1ce1   :  { %v10890_v60 = vsel %vm4260_vm3, %v10889_v12, 0 }
0x1ce2   :  { %v10961_v27 = vand.u32 4294901760, %v10890_v60 }
0x1ce4   :  { %v10962_v2 = vsub.f32 %v10890_v60, %v10961_v27 }
0x1ce6   :  { %v10963_v56 = vand.u32 4294901760, %v10962_v2 }
0x1ce8   :  { %v10964_v19 = vsub.f32 %v10962_v2, %v10963_v56 }
0x1cea   :  { %v10965_v22 = vand.u32 4294901760, %v10964_v19 }
0x1cec   :  { %25632 = vmatmul.mubr.f32.vlgmr.msra.gmra.mrb[68].mxu1 %v10965_v22 }
0x1ced   :  { %27773 = vmatpush3.bf16.msra.mxu1 %v32146_v41  ;;  %25642 = vmatprep.mubr.msk.f32.mxu1 %vm29704_vm1, %v34802_v34 }
0x1cee   :  { %27774 = vmatprep.subr.bf16.mxu1 %v34789_v61 }
0x1cf1   :  { %27776 = vmatpush3.bf16.msra.mxu1 %v32139_v21 }
0x1cf2   :  { %27777 = vmatprep.subr.bf16.mxu1 %v34789_v61 }
0x1cf4   :  { %25643 = vmatmul.mubr.f32.vlgmr.msra.gmra.mrb[68].mxu1 %v10961_v27 }
0x1cf5   :  { %27779 = vmatpush3.bf16.msra.mxu1 %v32153_v14  ;;  %25653 = vmatprep.mubr.msk.f32.mxu1 %vm29704_vm1, %v34802_v34 }
0x1cf6   :  { %27780 = vmatprep.subr.bf16.mxu1 %v34789_v61 }
0x1cf9   :  { %27782 = vmatpush3.bf16.msra.mxu1 %v32141_v46 }
0x1cfa   :  { %27783 = vmatprep.subr.bf16.mxu1 %v34789_v61 }
0x1cfc   :  { %25654 = vmatmul.mubr.f32.vlgmr.msra.gmra.mrb[68].mxu1 %v10962_v2 }
0x1cfd   :  { %27785 = vmatpush3.bf16.msra.mxu1 %v32119_v6  ;;  %25664 = vmatprep.mubr.msk.f32.mxu1 %vm29704_vm1, %v34802_v34 }
0x1cfe   :  { %27786 = vmatprep.subr.bf16.mxu1 %v34789_v61 }
0x1d01   :  { %27788 = vmatpush3.bf16.msra.mxu1 %v32132_v25 }
0x1d02   :  { %27789 = vmatprep.subr.bf16.mxu1 %v34789_v61 }
0x1d04   :  { %25665 = vmatmul.mubr.f32.vlgmr.msra.gmra.mrb[68].mxu1 %v10963_v56 }
0x1d05   :  { %27791 = vmatpush3.bf16.msra.mxu1 %v32167_v35  ;;  %25675 = vmatprep.mubr.msk.f32.mxu1 %vm29704_vm1, %v34802_v34 }
0x1d06   :  { %27792 = vmatprep.subr.bf16.mxu1 %v34789_v61 }
0x1d09   :  { %27794 = vmatpush3.bf16.msra.mxu1 %v32143_v48 }
0x1d0a   :  { %27795 = vmatprep.subr.bf16.mxu1 %v34789_v61 }
0x1d0c   :  { %25676 = vmatmul.mubr.f32.vlgmr.msra.gmra.mrb[68].mxu1 %v10961_v27 }
0x1d0d   :  { %27797 = vmatpush3.bf16.msra.mxu1 %v32119_v6  ;;  %25686 = vmatprep.mubr.msk.f32.mxu1 %vm29704_vm1, %v34802_v34 }
0x1d0e   :  { %27798 = vmatprep.subr.bf16.mxu1 %v34789_v61 }
0x1d11   :  { %27800 = vmatpush3.bf16.msra.mxu1 %v32132_v25 }
0x1d12   :  { %27837 = vmatprep.subr.bf16.mxu1 %v34789_v61 }
0x1d14   :  { %25687 = vmatmul.mubr.f32.vlgmr.msra.gmra.mrb[68].mxu1 %v10961_v27 }
0x1d15   :  { %27839 = vmatpush3.bf16.msra.mxu1 %v32119_v6  ;;  %25763 = vmatprep.mubr.msk.f32.mxu1 %vm29704_vm1, %v34802_v34 }
0x1d16   :  { %27840 = vmatprep.subr.bf16.mxu1 %v34789_v61 }
0x1d19   :  { %27842 = vmatpush3.bf16.msra.mxu1 %v32132_v25 }
0x1d1a   :  { %27843 = vmatprep.subr.bf16.mxu1 %v34789_v61 }
0x1de7   :  { %v11373_v40 = vpop.f32.mrb[68].mxu1 }
0x1de8   :  { %v11377_v26 = vadd.f32 %v11373_v40, %v32088_v20  ;;  %v25688_v47 = vpop.f32.mrb[69].mxu1 }
0x1dea   :  { %v22345_v29 = vmul.f32 -1.442695, %v11377_v26 }
0x1dec   :  { %29509 = vpow2.f32 %v22345_v29 }
0x1df6   :  { %v29510_v37 = vpop.eup %29509 }
0x1df7   :  { %v11381_v36 = vadd.f32 1.0, %v29510_v37 }
0x1df9   :  { %29511 = vrcp.f32 %v11381_v36 }
0x1e03   :  { %v29512_v15 = vpop.eup %29511 }
0x1e04   :  { %v11384_v39 = vmul.f32 2.0, %v29512_v15  ;;  %v11386_v23 = vmul.f32 %v29512_v15, %v32468_v49 }
0x1e06   :  { %v22346_v50 = vadd.f32 -1.0, %v11384_v39 }
0x1e08   :  { %11388 = vrot.lane.b32.xlu0 %v22346_v50, %s29706_s11 }
0x1e7a   :  { %v11389_v16 = vpop.permute.xlu0 %11388 }
0x1e7b   :  { %v11391_v30 = vmul.f32 %v29512_v15, %v11389_v16 }
0x1e7d   :  { %11393 = vrot.lane.b32.xlu1 %v11391_v30, %s29707_s12 }
0x1eef   :  { %v11394_v62 = vpop.permute.xlu1 %11393 }
0x1ef0   :  { %v32514_v8 = vadd.f32 %v11394_v62, %v11386_v23 }
0x1ef2   :  { %29513 = vtanh.f32 %v32514_v8 }
0x1efc   :  { %v29514_v20 = vpop.eup %29513 }
0x1efd   :  { %11399 = vrot.lane.b32.xlu0 %v29514_v20, %s29706_s11 }
0x1f6f   :  { %v11400_v53 = vpop.permute.xlu0 %11399 }
0x1f70   :  { %v11402_v59 = vmul.f32 %v29512_v15, %v11400_v53 }
0x1f72   :  { %11404 = vrot.lane.b32.xlu1 %v11402_v59, %s29707_s12 }
0x1fe4   :  { %v11405_v51 = vpop.permute.xlu1 %11404 }
0x1fe5   :  { %v11406_v10 = vsel %vm4260_vm3, %v11405_v51, 0 }
0x1fe6   :  { %v11477_v9 = vand.u32 4294901760, %v11406_v10 }
0x1fe8   :  { %v11478_v42 = vsub.f32 %v11406_v10, %v11477_v9 }
0x1fea   :  { %v11479_v54 = vand.u32 4294901760, %v11478_v42 }
0x1fec   :  { %v11480_v13 = vsub.f32 %v11478_v42, %v11479_v54 }
0x1fee   :  { %v11481_v18 = vand.u32 4294901760, %v11480_v13 }
0x1ff0   :  { %25698 = vmatmul.mubr.f32.vlgmr.msra.gmra.mrb[52].mxu0 %v11481_v18 }
0x1ff1   :  { %27809 = vmatpush3.bf16.msra.mxu0 %v32146_v41  ;;  %25708 = vmatprep.mubr.msk.f32.mxu0 %vm29704_vm1, %v34802_v34 }
0x1ff2   :  { %27810 = vmatprep.subr.bf16.mxu0 %v34789_v61 }
0x1ff5   :  { %27812 = vmatpush3.bf16.msra.mxu0 %v32139_v21 }
0x1ff6   :  { %27813 = vmatprep.subr.bf16.mxu0 %v34789_v61 }
0x1ff8   :  { %25709 = vmatmul.mubr.f32.vlgmr.msra.gmra.mrb[52].mxu0 %v11477_v9 }
0x1ff9   :  { %27815 = vmatpush3.bf16.msra.mxu0 %v32153_v14  ;;  %25719 = vmatprep.mubr.msk.f32.mxu0 %vm29704_vm1, %v34802_v34 }
0x1ffa   :  { %27816 = vmatprep.subr.bf16.mxu0 %v34789_v61 }
0x1ffd   :  { %27818 = vmatpush3.bf16.msra.mxu0 %v32141_v46 }
0x1ffe   :  { %27819 = vmatprep.subr.bf16.mxu0 %v34789_v61 }
0x2000   :  { %25720 = vmatmul.mubr.f32.vlgmr.msra.gmra.mrb[52].mxu0 %v11478_v42 }
0x2001   :  { %27821 = vmatpush3.bf16.msra.mxu0 %v32119_v6  ;;  %25730 = vmatprep.mubr.msk.f32.mxu0 %vm29704_vm1, %v34802_v34 }
0x2002   :  { %27822 = vmatprep.subr.bf16.mxu0 %v34789_v61 }
0x2005   :  { %27824 = vmatpush3.bf16.msra.mxu0 %v32132_v25 }
0x2006   :  { %27825 = vmatprep.subr.bf16.mxu0 %v34789_v61 }
0x2008   :  { %25731 = vmatmul.mubr.f32.vlgmr.msra.gmra.mrb[52].mxu0 %v11479_v54 }
0x2009   :  { %27827 = vmatpush3.bf16.msra.mxu0 %v32167_v35  ;;  %25741 = vmatprep.mubr.msk.f32.mxu0 %vm29704_vm1, %v34802_v34 }
0x200a   :  { %27828 = vmatprep.subr.bf16.mxu0 %v34789_v61 }
0x200d   :  { %27830 = vmatpush3.bf16.msra.mxu0 %v32143_v48 }
0x200e   :  { %27831 = vmatprep.subr.bf16.mxu0 %v34789_v61 }
0x2010   :  { %25742 = vmatmul.mubr.f32.vlgmr.msra.gmra.mrb[52].mxu0 %v11477_v9 }
0x2011   :  { %27833 = vmatpush3.bf16.msra.mxu0 %v32119_v6  ;;  %25752 = vmatprep.mubr.msk.f32.mxu0 %vm29704_vm1, %v34802_v34 }
0x2012   :  { %27834 = vmatprep.subr.bf16.mxu0 %v34789_v61 }
0x2015   :  { %27836 = vmatpush3.bf16.msra.mxu0 %v32132_v25 }
0x2016   :  { %27873 = vmatprep.subr.bf16.mxu0 %v34789_v61 }
0x2018   :  { %25753 = vmatmul.mubr.f32.vlgmr.msra.gmra.mrb[52].mxu0 %v11477_v9 }
0x2019   :  { %27875 = vmatpush3.bf16.msra.mxu0 %v32119_v6  ;;  %25829 = vmatprep.mubr.msk.f32.mxu0 %vm29704_vm1, %v34802_v34 }
0x201a   :  { %27876 = vmatprep.subr.bf16.mxu0 %v34789_v61 }
0x201d   :  { %27878 = vmatpush3.bf16.msra.mxu0 %v32132_v25 }
0x201e   :  { %27879 = vmatprep.subr.bf16.mxu0 %v34789_v61 }
0x20eb   :  { %v11889_v17 = vpop.f32.mrb[52].mxu0 }
0x20ec   :  { %v11893_v52 = vadd.f32 %v11889_v17, %v32085_v58  ;;  %v25754_v31 = vpop.f32.mrb[53].mxu0 }
0x20ee   :  { %v22347_v11 = vmul.f32 -1.442695, %v11893_v52 }
0x20f0   :  { %29515 = vpow2.f32 %v22347_v11 }
0x20fa   :  { %v29516_v49 = vpop.eup %29515 }
0x20fb   :  { %v11897_v45 = vadd.f32 1.0, %v29516_v49 }
0x20fd   :  { %29517 = vrcp.f32 %v11897_v45 }
0x2107   :  { %v29518_v43 = vpop.eup %29517 }
0x2108   :  { %v11900_v24 = vmul.f32 2.0, %v29518_v43  ;;  %v11902_v2 = vmul.f32 %v29518_v43, %v32514_v8 }
0x210a   :  { %v22348_v12 = vadd.f32 -1.0, %v11900_v24 }
0x210c   :  { %11904 = vrot.lane.b32.xlu0 %v22348_v12, %s29706_s11 }
0x217e   :  { %v11905_v60 = vpop.permute.xlu0 %11904 }
0x217f   :  { %v11907_v27 = vmul.f32 %v29518_v43, %v11905_v60 }
0x2181   :  { %11909 = vrot.lane.b32.xlu1 %v11907_v27, %s29707_s12 }
0x21f3   :  { %v11910_v56 = vpop.permute.xlu1 %11909 }
0x21f4   :  { %v32560_v19 = vadd.f32 %v11910_v56, %v11902_v2 }
0x21f6   :  { %29519 = vtanh.f32 %v32560_v19 }
0x2200   :  { %v29520_v58 = vpop.eup %29519 }
0x2201   :  { %11915 = vrot.lane.b32.xlu0 %v29520_v58, %s29706_s11 }
0x2273   :  { %v11916_v22 = vpop.permute.xlu0 %11915 }
0x2274   :  { %v11918_v40 = vmul.f32 %v29518_v43, %v11916_v22 }
0x2276   :  { %11920 = vrot.lane.b32.xlu1 %v11918_v40, %s29707_s12 }
0x22e8   :  { %v11921_v26 = vpop.permute.xlu1 %11920 }
0x22e9   :  { %v11922_v47 = vsel %vm4260_vm3, %v11921_v26, 0 }
0x22ea   :  { %v11993_v29 = vand.u32 4294901760, %v11922_v47 }
0x22ec   :  { %v11994_v37 = vsub.f32 %v11922_v47, %v11993_v29 }
0x22ee   :  { %v11995_v36 = vand.u32 4294901760, %v11994_v37 }
0x22f0   :  { %v11996_v15 = vsub.f32 %v11994_v37, %v11995_v36 }
0x22f2   :  { %v11997_v39 = vand.u32 4294901760, %v11996_v15 }
0x22f4   :  { %25764 = vmatmul.mubr.f32.vlgmr.msra.gmra.mrb[70].mxu1 %v11997_v39 }
0x22f5   :  { %27845 = vmatpush3.bf16.msra.mxu1 %v32146_v41  ;;  %25774 = vmatprep.mubr.msk.f32.mxu1 %vm29704_vm1, %v34802_v34 }
0x22f6   :  { %27846 = vmatprep.subr.bf16.mxu1 %v34789_v61 }
0x22f9   :  { %27848 = vmatpush3.bf16.msra.mxu1 %v32139_v21 }
0x22fa   :  { %27849 = vmatprep.subr.bf16.mxu1 %v34789_v61 }
0x22fc   :  { %25775 = vmatmul.mubr.f32.vlgmr.msra.gmra.mrb[70].mxu1 %v11993_v29 }
0x22fd   :  { %27851 = vmatpush3.bf16.msra.mxu1 %v32153_v14  ;;  %25785 = vmatprep.mubr.msk.f32.mxu1 %vm29704_vm1, %v34802_v34 }
0x22fe   :  { %27852 = vmatprep.subr.bf16.mxu1 %v34789_v61 }
0x2301   :  { %27854 = vmatpush3.bf16.msra.mxu1 %v32141_v46 }
0x2302   :  { %27855 = vmatprep.subr.bf16.mxu1 %v34789_v61 }
0x2304   :  { %25786 = vmatmul.mubr.f32.vlgmr.msra.gmra.mrb[70].mxu1 %v11994_v37 }
0x2305   :  { %27857 = vmatpush3.bf16.msra.mxu1 %v32119_v6  ;;  %25796 = vmatprep.mubr.msk.f32.mxu1 %vm29704_vm1, %v34802_v34 }
0x2306   :  { %27858 = vmatprep.subr.bf16.mxu1 %v34789_v61 }
0x2309   :  { %27860 = vmatpush3.bf16.msra.mxu1 %v32132_v25 }
0x230a   :  { %27861 = vmatprep.subr.bf16.mxu1 %v34789_v61 }
0x230c   :  { %25797 = vmatmul.mubr.f32.vlgmr.msra.gmra.mrb[70].mxu1 %v11995_v36 }
0x230d   :  { %27863 = vmatpush3.bf16.msra.mxu1 %v32167_v35  ;;  %25807 = vmatprep.mubr.msk.f32.mxu1 %vm29704_vm1, %v34802_v34 }
0x230e   :  { %27864 = vmatprep.subr.bf16.mxu1 %v34789_v61 }
0x2311   :  { %27866 = vmatpush3.bf16.msra.mxu1 %v32143_v48 }
0x2312   :  { %27867 = vmatprep.subr.bf16.mxu1 %v34789_v61 }
0x2314   :  { %25808 = vmatmul.mubr.f32.vlgmr.msra.gmra.mrb[70].mxu1 %v11993_v29 }
0x2315   :  { %27869 = vmatpush3.bf16.msra.mxu1 %v32119_v6  ;;  %25818 = vmatprep.mubr.msk.f32.mxu1 %vm29704_vm1, %v34802_v34 }
0x2316   :  { %27870 = vmatprep.subr.bf16.mxu1 %v34789_v61 }
0x2319   :  { %27872 = vmatpush3.bf16.msra.mxu1 %v32132_v25 }
0x231a   :  { %27909 = vmatprep.subr.bf16.mxu1 %v34789_v61 }
0x231c   :  { %25819 = vmatmul.mubr.f32.vlgmr.msra.gmra.mrb[70].mxu1 %v11993_v29 }
0x231d   :  { %27911 = vmatpush3.bf16.msra.mxu1 %v32119_v6  ;;  %25895 = vmatprep.mubr.msk.f32.mxu1 %vm29704_vm1, %v34802_v34 }
0x231e   :  { %27912 = vmatprep.subr.bf16.mxu1 %v34789_v61 }
0x2321   :  { %27914 = vmatpush3.bf16.msra.mxu1 %v32132_v25 }
0x2322   :  { %27915 = vmatprep.subr.bf16.mxu1 %v34789_v61 }
0x23ef   :  { %v12405_v50 = vpop.f32.mrb[70].mxu1 }
0x23f0   :  { %v12409_v16 = vadd.f32 %v12405_v50, %v32094_v55  ;;  %v25820_v30 = vpop.f32.mrb[71].mxu1 }
0x23f2   :  { %v22349_v23 = vmul.f32 -1.442695, %v12409_v16 }
0x23f4   :  { %29521 = vpow2.f32 %v22349_v23 }
0x23fe   :  { %v29522_v62 = vpop.eup %29521 }
0x23ff   :  { %v12413_v8 = vadd.f32 1.0, %v29522_v62 }
0x2401   :  { %29523 = vrcp.f32 %v12413_v8 }
0x240b   :  { %v29524_v20 = vpop.eup %29523 }
0x240c   :  { %v12416_v53 = vmul.f32 2.0, %v29524_v20  ;;  %v12418_v9 = vmul.f32 %v29524_v20, %v32560_v19 }
0x240e   :  { %v22350_v59 = vadd.f32 -1.0, %v12416_v53 }
0x2410   :  { %12420 = vrot.lane.b32.xlu0 %v22350_v59, %s29706_s11 }
0x2482   :  { %v12421_v51 = vpop.permute.xlu0 %12420 }
0x2483   :  { %v12423_v10 = vmul.f32 %v29524_v20, %v12421_v51 }
0x2485   :  { %12425 = vrot.lane.b32.xlu1 %v12423_v10, %s29707_s12 }
0x24f7   :  { %v12426_v42 = vpop.permute.xlu1 %12425 }
0x24f8   :  { %v32606_v54 = vadd.f32 %v12426_v42, %v12418_v9 }
0x24fa   :  { %29525 = vtanh.f32 %v32606_v54 }
0x2504   :  { %v29526_v55 = vpop.eup %29525 }
0x2505   :  { %12431 = vrot.lane.b32.xlu0 %v29526_v55, %s29706_s11 }
0x2577   :  { %v12432_v13 = vpop.permute.xlu0 %12431 }
0x2578   :  { %v12434_v18 = vmul.f32 %v29524_v20, %v12432_v13 }
0x257a   :  { %12436 = vrot.lane.b32.xlu1 %v12434_v18, %s29707_s12 }
0x25ec   :  { %v12437_v17 = vpop.permute.xlu1 %12436 }
0x25ed   :  { %v12438_v52 = vsel %vm4260_vm3, %v12437_v17, 0 }
0x25ee   :  { %v12509_v31 = vand.u32 4294901760, %v12438_v52 }
0x25f0   :  { %v12510_v11 = vsub.f32 %v12438_v52, %v12509_v31 }
0x25f2   :  { %v12511_v49 = vand.u32 4294901760, %v12510_v11 }
0x25f4   :  { %v12512_v45 = vsub.f32 %v12510_v11, %v12511_v49 }
0x25f6   :  { %v12513_v43 = vand.u32 4294901760, %v12512_v45 }
0x25f8   :  { %25830 = vmatmul.mubr.f32.vlgmr.msra.gmra.mrb[54].mxu0 %v12513_v43 }
0x25f9   :  { %27881 = vmatpush3.bf16.msra.mxu0 %v32146_v41  ;;  %25840 = vmatprep.mubr.msk.f32.mxu0 %vm29704_vm1, %v34802_v34 }
0x25fa   :  { %27882 = vmatprep.subr.bf16.mxu0 %v34789_v61 }
0x25fd   :  { %27884 = vmatpush3.bf16.msra.mxu0 %v32139_v21 }
0x25fe   :  { %27885 = vmatprep.subr.bf16.mxu0 %v34789_v61 }
0x2600   :  { %25841 = vmatmul.mubr.f32.vlgmr.msra.gmra.mrb[54].mxu0 %v12509_v31 }
0x2601   :  { %27887 = vmatpush3.bf16.msra.mxu0 %v32153_v14  ;;  %25851 = vmatprep.mubr.msk.f32.mxu0 %vm29704_vm1, %v34802_v34 }
0x2602   :  { %27888 = vmatprep.subr.bf16.mxu0 %v34789_v61 }
0x2605   :  { %27890 = vmatpush3.bf16.msra.mxu0 %v32141_v46 }
0x2606   :  { %27891 = vmatprep.subr.bf16.mxu0 %v34789_v61 }
0x2608   :  { %25852 = vmatmul.mubr.f32.vlgmr.msra.gmra.mrb[54].mxu0 %v12510_v11 }
0x2609   :  { %27893 = vmatpush3.bf16.msra.mxu0 %v32119_v6  ;;  %25862 = vmatprep.mubr.msk.f32.mxu0 %vm29704_vm1, %v34802_v34 }
0x260a   :  { %27894 = vmatprep.subr.bf16.mxu0 %v34789_v61 }
0x260d   :  { %27896 = vmatpush3.bf16.msra.mxu0 %v32132_v25 }
0x260e   :  { %27897 = vmatprep.subr.bf16.mxu0 %v34789_v61 }
0x2610   :  { %25863 = vmatmul.mubr.f32.vlgmr.msra.gmra.mrb[54].mxu0 %v12511_v49 }
0x2611   :  { %27899 = vmatpush3.bf16.msra.mxu0 %v32167_v35  ;;  %25873 = vmatprep.mubr.msk.f32.mxu0 %vm29704_vm1, %v34802_v34 }
0x2612   :  { %27900 = vmatprep.subr.bf16.mxu0 %v34789_v61 }
0x2615   :  { %27902 = vmatpush3.bf16.msra.mxu0 %v32143_v48 }
0x2616   :  { %27903 = vmatprep.subr.bf16.mxu0 %v34789_v61 }
0x2618   :  { %25874 = vmatmul.mubr.f32.vlgmr.msra.gmra.mrb[54].mxu0 %v12509_v31 }
0x2619   :  { %27905 = vmatpush3.bf16.msra.mxu0 %v32119_v6  ;;  %25884 = vmatprep.mubr.msk.f32.mxu0 %vm29704_vm1, %v34802_v34 }
0x261a   :  { %27906 = vmatprep.subr.bf16.mxu0 %v34789_v61 }
0x261d   :  { %27908 = vmatpush3.bf16.msra.mxu0 %v32132_v25 }
0x261e   :  { %27945 = vmatprep.subr.bf16.mxu0 %v34789_v61 }
0x2620   :  { %25885 = vmatmul.mubr.f32.vlgmr.msra.gmra.mrb[54].mxu0 %v12509_v31 }
0x2621   :  { %27947 = vmatpush3.bf16.msra.mxu0 %v32119_v6  ;;  %25961 = vmatprep.mubr.msk.f32.mxu0 %vm29704_vm1, %v34802_v34 }
0x2622   :  { %27948 = vmatprep.subr.bf16.mxu0 %v34789_v61 }
0x2625   :  { %27950 = vmatpush3.bf16.msra.mxu0 %v32132_v25 }
0x2626   :  { %27951 = vmatprep.subr.bf16.mxu0 %v34789_v61 }
0x26f3   :  { %v12921_v24 = vpop.f32.mrb[54].mxu0 }
0x26f4   :  { %v12925_v12 = vadd.f32 %v12921_v24, %v32091_v0  ;;  %v25886_v60 = vpop.f32.mrb[55].mxu0 }
0x26f6   :  { %v22351_v27 = vmul.f32 -1.442695, %v12925_v12 }
0x26f8   :  { %29527 = vpow2.f32 %v22351_v27 }
0x2702   :  { %v29528_v2 = vpop.eup %29527 }
0x2703   :  { %v12929_v56 = vadd.f32 1.0, %v29528_v2 }
0x2705   :  { %29529 = vrcp.f32 %v12929_v56 }
0x270f   :  { %v29530_v19 = vpop.eup %29529 }
0x2710   :  { %v12932_v58 = vmul.f32 2.0, %v29530_v19  ;;  %v12934_v47 = vmul.f32 %v29530_v19, %v32606_v54 }
0x2712   :  { %v22352_v22 = vadd.f32 -1.0, %v12932_v58 }
0x2714   :  { %12936 = vrot.lane.b32.xlu0 %v22352_v22, %s29706_s11 }
0x2786   :  { %v12937_v40 = vpop.permute.xlu0 %12936 }
0x2787   :  { %v12939_v26 = vmul.f32 %v29530_v19, %v12937_v40 }
0x2789   :  { %12941 = vrot.lane.b32.xlu1 %v12939_v26, %s29707_s12 }
0x27fb   :  { %v12942_v29 = vpop.permute.xlu1 %12941 }
0x27fc   :  { %v32652_v37 = vadd.f32 %v12942_v29, %v12934_v47 }
0x27fe   :  { %29531 = vtanh.f32 %v32652_v37 }
0x2808   :  { %v29532_v0 = vpop.eup %29531 }
0x2809   :  { %12947 = vrot.lane.b32.xlu0 %v29532_v0, %s29706_s11 }
0x287b   :  { %v12948_v36 = vpop.permute.xlu0 %12947 }
0x287c   :  { %v12950_v15 = vmul.f32 %v29530_v19, %v12948_v36 }
0x287e   :  { %12952 = vrot.lane.b32.xlu1 %v12950_v15, %s29707_s12 }
0x28f0   :  { %v12953_v39 = vpop.permute.xlu1 %12952 }
0x28f1   :  { %v12954_v50 = vsel %vm4260_vm3, %v12953_v39, 0 }
0x28f2   :  { %v13025_v16 = vand.u32 4294901760, %v12954_v50 }
0x28f4   :  { %v13026_v30 = vsub.f32 %v12954_v50, %v13025_v16 }
0x28f6   :  { %v13027_v23 = vand.u32 4294901760, %v13026_v30 }
0x28f8   :  { %v13028_v62 = vsub.f32 %v13026_v30, %v13027_v23 }
0x28fa   :  { %v13029_v8 = vand.u32 4294901760, %v13028_v62 }
0x28fc   :  { %25896 = vmatmul.mubr.f32.vlgmr.msra.gmra.mrb[72].mxu1 %v13029_v8 }
0x28fd   :  { %27917 = vmatpush3.bf16.msra.mxu1 %v32146_v41  ;;  %25906 = vmatprep.mubr.msk.f32.mxu1 %vm29704_vm1, %v34802_v34 }
0x28fe   :  { %27918 = vmatprep.subr.bf16.mxu1 %v34789_v61 }
0x2901   :  { %27920 = vmatpush3.bf16.msra.mxu1 %v32139_v21 }
0x2902   :  { %27921 = vmatprep.subr.bf16.mxu1 %v34789_v61 }
0x2904   :  { %25907 = vmatmul.mubr.f32.vlgmr.msra.gmra.mrb[72].mxu1 %v13025_v16 }
0x2905   :  { %27923 = vmatpush3.bf16.msra.mxu1 %v32153_v14  ;;  %25917 = vmatprep.mubr.msk.f32.mxu1 %vm29704_vm1, %v34802_v34 }
0x2906   :  { %27924 = vmatprep.subr.bf16.mxu1 %v34789_v61 }
0x2909   :  { %27926 = vmatpush3.bf16.msra.mxu1 %v32141_v46 }
0x290a   :  { %27927 = vmatprep.subr.bf16.mxu1 %v34789_v61 }
0x290c   :  { %25918 = vmatmul.mubr.f32.vlgmr.msra.gmra.mrb[72].mxu1 %v13026_v30 }
0x290d   :  { %27929 = vmatpush3.bf16.msra.mxu1 %v32119_v6  ;;  %25928 = vmatprep.mubr.msk.f32.mxu1 %vm29704_vm1, %v34802_v34 }
0x290e   :  { %27930 = vmatprep.subr.bf16.mxu1 %v34789_v61 }
0x2911   :  { %27932 = vmatpush3.bf16.msra.mxu1 %v32132_v25 }
0x2912   :  { %27933 = vmatprep.subr.bf16.mxu1 %v34789_v61 }
0x2914   :  { %25929 = vmatmul.mubr.f32.vlgmr.msra.gmra.mrb[72].mxu1 %v13027_v23 }
0x2915   :  { %27935 = vmatpush3.bf16.msra.mxu1 %v32167_v35  ;;  %25939 = vmatprep.mubr.msk.f32.mxu1 %vm29704_vm1, %v34802_v34 }
0x2916   :  { %27936 = vmatprep.subr.bf16.mxu1 %v34789_v61 }
0x2919   :  { %27938 = vmatpush3.bf16.msra.mxu1 %v32143_v48 }
0x291a   :  { %27939 = vmatprep.subr.bf16.mxu1 %v34789_v61 }
0x291c   :  { %25940 = vmatmul.mubr.f32.vlgmr.msra.gmra.mrb[72].mxu1 %v13025_v16 }
0x291d   :  { %27941 = vmatpush3.bf16.msra.mxu1 %v32119_v6  ;;  %25950 = vmatprep.mubr.msk.f32.mxu1 %vm29704_vm1, %v34802_v34 }
0x291e   :  { %27942 = vmatprep.subr.bf16.mxu1 %v34789_v61 }
0x2921   :  { %27944 = vmatpush3.bf16.msra.mxu1 %v32132_v25 }
0x2922   :  { %27981 = vmatprep.subr.bf16.mxu1 %v34789_v61 }
0x2924   :  { %25951 = vmatmul.mubr.f32.vlgmr.msra.gmra.mrb[72].mxu1 %v13025_v16 }
0x2925   :  { %27983 = vmatpush3.bf16.msra.mxu1 %v32119_v6  ;;  %26027 = vmatprep.mubr.msk.f32.mxu1 %vm29704_vm1, %v34802_v34 }
0x2926   :  { %27984 = vmatprep.subr.bf16.mxu1 %v34789_v61 }
0x2929   :  { %27986 = vmatpush3.bf16.msra.mxu1 %v32132_v25 }
0x292a   :  { %27987 = vmatprep.subr.bf16.mxu1 %v34789_v61 }
0x29f7   :  { %v13437_v20 = vpop.f32.mrb[72].mxu1 }
0x29f8   :  { %v13441_v53 = vadd.f32 %v13437_v20, %v32100_v3  ;;  %v25952_v59 = vpop.f32.mrb[73].mxu1 }
0x29fa   :  { %v22353_v51 = vmul.f32 -1.442695, %v13441_v53 }
0x29fc   :  { %29533 = vpow2.f32 %v22353_v51 }
0x2a06   :  { %v29534_v10 = vpop.eup %29533 }
0x2a07   :  { %v13445_v9 = vadd.f32 1.0, %v29534_v10 }
0x2a09   :  { %29535 = vrcp.f32 %v13445_v9 }
0x2a13   :  { %v29536_v42 = vpop.eup %29535 }
0x2a14   :  { %v13448_v54 = vmul.f32 2.0, %v29536_v42  ;;  %v13450_v17 = vmul.f32 %v29536_v42, %v32652_v37 }
0x2a16   :  { %v22354_v55 = vadd.f32 -1.0, %v13448_v54 }
0x2a18   :  { %13452 = vrot.lane.b32.xlu0 %v22354_v55, %s29706_s11 }
0x2a8a   :  { %v13453_v13 = vpop.permute.xlu0 %13452 }
0x2a8b   :  { %v13455_v18 = vmul.f32 %v29536_v42, %v13453_v13 }
0x2a8d   :  { %13457 = vrot.lane.b32.xlu1 %v13455_v18, %s29707_s12 }
0x2aff   :  { %v13458_v52 = vpop.permute.xlu1 %13457 }
0x2b00   :  { %v32698_v31 = vadd.f32 %v13458_v52, %v13450_v17 }
0x2b02   :  { %29537 = vtanh.f32 %v32698_v31 }
0x2b0c   :  { %v29538_v3 = vpop.eup %29537 }
0x2b0d   :  { %13463 = vrot.lane.b32.xlu0 %v29538_v3, %s29706_s11 }
0x2b7f   :  { %v13464_v11 = vpop.permute.xlu0 %13463 }
0x2b80   :  { %v13466_v49 = vmul.f32 %v29536_v42, %v13464_v11 }
0x2b82   :  { %13468 = vrot.lane.b32.xlu1 %v13466_v49, %s29707_s12 }
0x2bf4   :  { %v13469_v45 = vpop.permute.xlu1 %13468 }
0x2bf5   :  { %v13470_v43 = vsel %vm4260_vm3, %v13469_v45, 0 }
0x2bf6   :  { %v13541_v24 = vand.u32 4294901760, %v13470_v43 }
0x2bf8   :  { %v13542_v12 = vsub.f32 %v13470_v43, %v13541_v24 }
0x2bfa   :  { %v13543_v60 = vand.u32 4294901760, %v13542_v12 }
0x2bfc   :  { %v13544_v27 = vsub.f32 %v13542_v12, %v13543_v60 }
0x2bfe   :  { %v13545_v2 = vand.u32 4294901760, %v13544_v27 }
0x2c00   :  { %25962 = vmatmul.mubr.f32.vlgmr.msra.gmra.mrb[56].mxu0 %v13545_v2 }
0x2c01   :  { %27953 = vmatpush3.bf16.msra.mxu0 %v32146_v41  ;;  %25972 = vmatprep.mubr.msk.f32.mxu0 %vm29704_vm1, %v34802_v34 }
0x2c02   :  { %27954 = vmatprep.subr.bf16.mxu0 %v34789_v61 }
0x2c05   :  { %27956 = vmatpush3.bf16.msra.mxu0 %v32139_v21 }
0x2c06   :  { %27957 = vmatprep.subr.bf16.mxu0 %v34789_v61 }
0x2c08   :  { %25973 = vmatmul.mubr.f32.vlgmr.msra.gmra.mrb[56].mxu0 %v13541_v24 }
0x2c09   :  { %27959 = vmatpush3.bf16.msra.mxu0 %v32153_v14  ;;  %25983 = vmatprep.mubr.msk.f32.mxu0 %vm29704_vm1, %v34802_v34 }
0x2c0a   :  { %27960 = vmatprep.subr.bf16.mxu0 %v34789_v61 }
0x2c0d   :  { %27962 = vmatpush3.bf16.msra.mxu0 %v32141_v46 }
0x2c0e   :  { %27963 = vmatprep.subr.bf16.mxu0 %v34789_v61 }
0x2c10   :  { %25984 = vmatmul.mubr.f32.vlgmr.msra.gmra.mrb[56].mxu0 %v13542_v12 }
0x2c11   :  { %27965 = vmatpush3.bf16.msra.mxu0 %v32119_v6  ;;  %25994 = vmatprep.mubr.msk.f32.mxu0 %vm29704_vm1, %v34802_v34 }
0x2c12   :  { %27966 = vmatprep.subr.bf16.mxu0 %v34789_v61 }
0x2c15   :  { %27968 = vmatpush3.bf16.msra.mxu0 %v32132_v25 }
0x2c16   :  { %27969 = vmatprep.subr.bf16.mxu0 %v34789_v61 }
0x2c18   :  { %25995 = vmatmul.mubr.f32.vlgmr.msra.gmra.mrb[56].mxu0 %v13543_v60 }
0x2c19   :  { %27971 = vmatpush3.bf16.msra.mxu0 %v32167_v35  ;;  %26005 = vmatprep.mubr.msk.f32.mxu0 %vm29704_vm1, %v34802_v34 }
0x2c1a   :  { %27972 = vmatprep.subr.bf16.mxu0 %v34789_v61 }
0x2c1d   :  { %27974 = vmatpush3.bf16.msra.mxu0 %v32143_v48 }
0x2c1e   :  { %27975 = vmatprep.subr.bf16.mxu0 %v34789_v61 }
0x2c20   :  { %26006 = vmatmul.mubr.f32.vlgmr.msra.gmra.mrb[56].mxu0 %v13541_v24 }
0x2c21   :  { %27977 = vmatpush3.bf16.msra.mxu0 %v32119_v6  ;;  %26016 = vmatprep.mubr.msk.f32.mxu0 %vm29704_vm1, %v34802_v34 }
0x2c22   :  { %27978 = vmatprep.subr.bf16.mxu0 %v34789_v61 }
0x2c25   :  { %27980 = vmatpush3.bf16.msra.mxu0 %v32132_v25 }
0x2c26   :  { %28017 = vmatprep.subr.bf16.mxu0 %v34789_v61 }
0x2c28   :  { %26017 = vmatmul.mubr.f32.vlgmr.msra.gmra.mrb[56].mxu0 %v13541_v24 }
0x2c29   :  { %28019 = vmatpush3.bf16.msra.mxu0 %v32119_v6  ;;  %26093 = vmatprep.mubr.msk.f32.mxu0 %vm29704_vm1, %v34802_v34 }
0x2c2a   :  { %28020 = vmatprep.subr.bf16.mxu0 %v34789_v61 }
0x2c2d   :  { %28022 = vmatpush3.bf16.msra.mxu0 %v32132_v25 }
0x2c2e   :  { %28023 = vmatprep.subr.bf16.mxu0 %v34789_v61 }
0x2cfb   :  { %v13953_v56 = vpop.f32.mrb[56].mxu0 }
0x2cfc   :  { %v13957_v19 = vadd.f32 %v13953_v56, %v32097_v4  ;;  %v26018_v58 = vpop.f32.mrb[57].mxu0 }
0x2cfe   :  { %v22355_v22 = vmul.f32 -1.442695, %v13957_v19 }
0x2d00   :  { %29539 = vpow2.f32 %v22355_v22 }
0x2d0a   :  { %v29540_v40 = vpop.eup %29539 }
0x2d0b   :  { %v13961_v26 = vadd.f32 1.0, %v29540_v40 }
0x2d0d   :  { %29541 = vrcp.f32 %v13961_v26 }
0x2d17   :  { %v29542_v47 = vpop.eup %29541 }
0x2d18   :  { %v13964_v29 = vmul.f32 2.0, %v29542_v47  ;;  %v13966_v15 = vmul.f32 %v29542_v47, %v32698_v31 }
0x2d1a   :  { %v22356_v37 = vadd.f32 -1.0, %v13964_v29 }
0x2d1c   :  { %13968 = vrot.lane.b32.xlu0 %v22356_v37, %s29706_s11  ;;  %v15515_v37 = vld [vmem:[%s34335_s3 + $0xe8] sm:$0xff] }
0x2d8e   :  { %v13969_v0 = vpop.permute.xlu0 %13968 }
0x2d8f   :  { %v13971_v36 = vmul.f32 %v29542_v47, %v13969_v0  ;;  %v15516_v0 = vld [vmem:[%s34335_s3 + $0xf0] sm:$0xff] }
0x2d91   :  { %13973 = vrot.lane.b32.xlu1 %v13971_v36, %s29707_s12  ;;  %v15530_v36 = vand.u32 4294901760, %v15515_v37 }
0x2e03   :  { %v13974_v39 = vpop.permute.xlu1 %13973 }
0x2e04   :  { %v13976_v50 = vadd.f32 %v13974_v39, %v13966_v15  ;;  %v15533_v15 = vand.u32 4294901760, %v15516_v0 }
0x2e06   :  { %29543 = vtanh.f32 %v13976_v50  ;;  %v32831_v39 = vpack.c.bf16 %v15533_v15, %v15530_v36 }
0x2e10   :  { %v29544_v4 = vpop.eup %29543 }
0x2e11   :  { %13979 = vrot.lane.b32.xlu0 %v29544_v4, %s29706_s11  ;;  %v32835_v4 = vsub.f32 %v15516_v0, %v15533_v15 }
0x2e83   :  { %v13980_v16 = vpop.permute.xlu0 %13979 }
0x2e84   :  { %v13982_v30 = vmul.f32 %v29542_v47, %v13980_v16  ;;  %v15517_v16 = vld [vmem:[%s34335_s3 + $0xf8] sm:$0xff] }
0x2e86   :  { %13984 = vrot.lane.b32.xlu1 %v13982_v30, %s29707_s12  ;;  %v15518_v30 = vld [vmem:[%s34335_s3 + $0x100] sm:$0xff] }
0x2ef8   :  { %v13985_v23 = vpop.permute.xlu1 %13984 }
0x2ef9   :  { %v13986_v62 = vsel %vm4260_vm3, %v13985_v23, 0  ;;  %v15536_v23 = vand.u32 4294901760, %v15517_v16 }
0x2efa   :  { %v14057_v8 = vand.u32 4294901760, %v13986_v62 }
0x2efc   :  { %v14058_v20 = vsub.f32 %v13986_v62, %v14057_v8  ;;  %v15539_v62 = vand.u32 4294901760, %v15518_v30 }
0x2efe   :  { %v14059_v53 = vand.u32 4294901760, %v14058_v20 }
0x2f00   :  { %v14060_v59 = vsub.f32 %v14058_v20, %v14059_v53 }
0x2f02   :  { %v14061_v51 = vand.u32 4294901760, %v14060_v59  ;;  %v32847_v59 = vpack.c.bf16 %v15539_v62, %v15536_v23 }
0x2f04   :  { %26028 = vmatmul.mubr.f32.vlgmr.msra.gmra.mrb[74].mxu1 %v14061_v51  ;;  %v32849_v51 = vsub.f32 %v15517_v16, %v15536_v23 }
0x2f05   :  { %27989 = vmatpush3.bf16.msra.mxu1 %v32146_v41  ;;  %26038 = vmatprep.mubr.msk.f32.mxu1 %vm29704_vm1, %v34802_v34 }
0x2f06   :  { %27990 = vmatprep.subr.bf16.mxu1 %v34789_v61 }
0x2f09   :  { %27992 = vmatpush3.bf16.msra.mxu1 %v32139_v21 }
0x2f0a   :  { %27993 = vmatprep.subr.bf16.mxu1 %v34789_v61 }
0x2f0c   :  { %26039 = vmatmul.mubr.f32.vlgmr.msra.gmra.mrb[74].mxu1 %v14057_v8 }
0x2f0d   :  { %27995 = vmatpush3.bf16.msra.mxu1 %v32153_v14  ;;  %26049 = vmatprep.mubr.msk.f32.mxu1 %vm29704_vm1, %v34802_v34 }
0x2f0e   :  { %27996 = vmatprep.subr.bf16.mxu1 %v34789_v61 }
0x2f11   :  { %27998 = vmatpush3.bf16.msra.mxu1 %v32141_v46 }
0x2f12   :  { %27999 = vmatprep.subr.bf16.mxu1 %v34789_v61 }
0x2f14   :  { %26050 = vmatmul.mubr.f32.vlgmr.msra.gmra.mrb[74].mxu1 %v14058_v20  ;;  %v15618_v20 = vand.u32 4294901760, %v32835_v4 }
0x2f15   :  { %28001 = vmatpush3.bf16.msra.mxu1 %v32119_v6  ;;  %26060 = vmatprep.mubr.msk.f32.mxu1 %vm29704_vm1, %v34802_v34 }
0x2f16   :  { %28002 = vmatprep.subr.bf16.mxu1 %v34789_v61 }
0x2f19   :  { %28004 = vmatpush3.bf16.msra.mxu1 %v32132_v25 }
0x2f1a   :  { %28005 = vmatprep.subr.bf16.mxu1 %v34789_v61 }
0x2f1c   :  { %26061 = vmatmul.mubr.f32.vlgmr.msra.gmra.mrb[74].mxu1 %v14059_v53 }
0x2f1d   :  { %28007 = vmatpush3.bf16.msra.mxu1 %v32167_v35  ;;  %26071 = vmatprep.mubr.msk.f32.mxu1 %vm29704_vm1, %v34802_v34 }
0x2f1e   :  { %28008 = vmatprep.subr.bf16.mxu1 %v34789_v61 }
0x2f21   :  { %28010 = vmatpush3.bf16.msra.mxu1 %v32143_v48 }
0x2f22   :  { %28011 = vmatprep.subr.bf16.mxu1 %v34789_v61 }
0x2f24   :  { %26072 = vmatmul.mubr.f32.vlgmr.msra.gmra.mrb[74].mxu1 %v14057_v8 }
0x2f25   :  { %28013 = vmatpush3.bf16.msra.mxu1 %v32119_v6  ;;  %26082 = vmatprep.mubr.msk.f32.mxu1 %vm29704_vm1, %v34802_v34 }
0x2f26   :  { %28014 = vmatprep.subr.bf16.mxu1 %v34789_v61 }
0x2f29   :  { %28016 = vmatpush3.bf16.msra.mxu1 %v32132_v25 }
0x2f2a   :  { %28053 = vmatprep.subr.bf16.mxu1 %v34789_v61 }
0x2f2c   :  { %26083 = vmatmul.mubr.f32.vlgmr.msra.gmra.mrb[74].mxu1 %v14057_v8 }
0x2f2d   :  { %26159 = vmatprep.mubr.msk.f32.mxu1 %vm29704_vm1, %v34802_v34 }
0x2fff   :  { %v14469_v10 = vpop.f32.mrb[74].mxu1 }
0x3000   :  { %v14473_v9 = vadd.f32 %v14469_v10, %v32106_v33  ;;  %v26084_v42 = vpop.f32.mrb[75].mxu1  ;;  %v32851_v10 = vsub.f32 %v15518_v30, %v15539_v62 }
0x3001   :  { %v15619_v42 = vsub.f32 %v32835_v4, %v15618_v20 }
0x3002   :  { %v22357_v54 = vmul.f32 -1.442695, %v14473_v9 }
0x3004   :  { %29545 = vpow2.f32 %v22357_v54 }
0x300e   :  { %v29546_v55 = vpop.eup %29545 }
0x300f   :  { %v14477_v13 = vadd.f32 1.0, %v29546_v55  ;;  %v15625_v55 = vand.u32 4294901760, %v32849_v51 }
0x3011   :  { %29547 = vrcp.f32 %v14477_v13  ;;  %v15632_v13 = vand.u32 4294901760, %v32851_v10 }
0x301b   :  { %v29548_v18 = vpop.eup %29547 }
0x301c   :  { %v14480_v17 = vmul.f32 2.0, %v29548_v18  ;;  %v14482_v11 = vmul.f32 %v29548_v18, %v13976_v50  ;;  %v32833_v50 = vsub.f32 %v15515_v37, %v15530_v36 }
0x301e   :  { %v22358_v52 = vadd.f32 -1.0, %v14480_v17  ;;  %v15611_v8 = vand.u32 4294901760, %v32833_v50  ;;  %v15626_v17 = vsub.f32 %v32849_v51, %v15625_v55 }
0x3020   :  { %14484 = vrot.lane.b32.xlu0 %v22358_v52, %s29706_s11  ;;  %v15612_v9 = vsub.f32 %v32833_v50, %v15611_v8  ;;  %v15633_v52 = vsub.f32 %v32851_v10, %v15632_v13 }
0x3022   :  { %v15613_v54 = vand.u32 4294901760, %v15612_v9 }
0x3092   :  { %v14485_v31 = vpop.permute.xlu0 %14484 }
0x3093   :  { %v14487_v3 = vmul.f32 %v29548_v18, %v14485_v31 }
0x3095   :  { %14489 = vrot.lane.b32.xlu1 %v14487_v3, %s29707_s12  ;;  %v15627_v3 = vand.u32 4294901760, %v15626_v17 }
0x3107   :  { %v14490_v49 = vpop.permute.xlu1 %14489 }
0x3108   :  { %v14492_v45 = vadd.f32 %v14490_v49, %v14482_v11  ;;  %v15634_v11 = vand.u32 4294901760, %v15633_v52 }
0x310a   :  { %29549 = vtanh.f32 %v14492_v45  ;;  %v28099_v49 = vpack.c.bf16 %v15634_v11, %v15627_v3 }
0x3114   :  { %v29550_v33 = vpop.eup %29549 }
0x3115   :  { %14495 = vrot.lane.b32.xlu0 %v29550_v33, %s29706_s11  ;;  %v28105_v33 = vpack.c.bf16 %v32851_v10, %v32849_v51 }
0x3187   :  { %v14496_v43 = vpop.permute.xlu0 %14495 }
0x3188   :  { %v14498_v24 = vmul.f32 %v29548_v18, %v14496_v43  ;;  %v15620_v18 = vand.u32 4294901760, %v15619_v42  ;;  %v32866_v43 = vpack.c.bf16 %v15618_v20, %v15611_v8 }
0x318a   :  { %14500 = vrot.lane.b32.xlu1 %v14498_v24, %s29707_s12  ;;  %v28096_v31 = vpack.c.bf16 %v15620_v18, %v15613_v54  ;;  %v32868_v24 = vpack.c.bf16 %v15632_v13, %v15625_v55 }
0x31fc   :  { %v14501_v12 = vpop.permute.xlu1 %14500 }
0x31fd   :  { %v14502_v60 = vsel %vm4260_vm3, %v14501_v12, 0  ;;  %v15015_v12 = vld [vmem:[%s34335_s3 + $0xc0] sm:$0xff] }
0x31fe   :  { %v14573_v27 = vand.u32 4294901760, %v14502_v60 }
0x3200   :  { %v14574_v2 = vsub.f32 %v14502_v60, %v14573_v27  ;;  %v15016_v60 = vld [vmem:[%s34335_s3 + $0xc8] sm:$0xff] }
0x3202   :  { %v14575_v56 = vand.u32 4294901760, %v14574_v2 }
0x3204   :  { %v14576_v19 = vsub.f32 %v14574_v2, %v14575_v56 }
0x3206   :  { %v14577_v58 = vand.u32 4294901760, %v14576_v19 }
0x3208   :  { %26094 = vmatmul.mubr.f32.vlgmr.msra.gmra.mrb[58].mxu0 %v14577_v58 }
0x3209   :  { %28025 = vmatpush3.bf16.msra.mxu0 %v32146_v41  ;;  %26104 = vmatprep.mubr.msk.f32.mxu0 %vm29704_vm1, %v34802_v34 }
0x320a   :  { %28026 = vmatprep.subr.bf16.mxu0 %v34789_v61 }
0x320d   :  { %28028 = vmatpush3.bf16.msra.mxu0 %v32139_v21 }
0x320e   :  { %28029 = vmatprep.subr.bf16.mxu0 %v34789_v61 }
0x3210   :  { %26105 = vmatmul.mubr.f32.vlgmr.msra.gmra.mrb[58].mxu0 %v14573_v27 }
0x3211   :  { %28031 = vmatpush3.bf16.msra.mxu0 %v32153_v14  ;;  %26115 = vmatprep.mubr.msk.f32.mxu0 %vm29704_vm1, %v34802_v34 }
0x3212   :  { %28032 = vmatprep.subr.bf16.mxu0 %v34789_v61 }
0x3215   :  { %28034 = vmatpush3.bf16.msra.mxu0 %v32141_v46 }
0x3216   :  { %28035 = vmatprep.subr.bf16.mxu0 %v34789_v61 }
0x3218   :  { %26116 = vmatmul.mubr.f32.vlgmr.msra.gmra.mrb[58].mxu0 %v14574_v2  ;;  %v15033_v2 = vand.u32 4294901760, %v15016_v60 }
0x3219   :  { %28037 = vmatpush3.bf16.msra.mxu0 %v32119_v6  ;;  %26126 = vmatprep.mubr.msk.f32.mxu0 %vm29704_vm1, %v34802_v34 }
0x321a   :  { %28038 = vmatprep.subr.bf16.mxu0 %v34789_v61  ;;  %v32880_v58 = vsub.f32 %v15016_v60, %v15033_v2 }
0x321d   :  { %28040 = vmatpush3.bf16.msra.mxu0 %v32132_v25 }
0x321e   :  { %28041 = vmatprep.subr.bf16.mxu0 %v34789_v61 }
0x3220   :  { %26127 = vmatmul.mubr.f32.vlgmr.msra.gmra.mrb[58].mxu0 %v14575_v56 }
0x3221   :  { %28043 = vmatpush3.bf16.msra.mxu0 %v32167_v35  ;;  %26137 = vmatprep.mubr.msk.f32.mxu0 %vm29704_vm1, %v34802_v34 }
0x3222   :  { %28044 = vmatprep.subr.bf16.mxu0 %v34789_v61 }
0x3225   :  { %28046 = vmatpush3.bf16.msra.mxu0 %v32143_v48 }
0x3226   :  { %28047 = vmatprep.subr.bf16.mxu0 %v34789_v61 }
0x3228   :  { %26138 = vmatmul.mubr.f32.vlgmr.msra.gmra.mrb[58].mxu0 %v14573_v27 }
0x3229   :  { %28049 = vmatpush3.bf16.msra.mxu0 %v32119_v6  ;;  %26148 = vmatprep.mubr.msk.f32.mxu0 %vm29704_vm1, %v34802_v34 }
0x322a   :  { %28050 = vmatprep.subr.bf16.mxu0 %v34789_v61 }
0x322d   :  { %28052 = vmatpush3.bf16.msra.mxu0 %v32132_v25 }
0x322e   :  { %28089 = vmatprep.subr.bf16.mxu0 %v34789_v61 }
0x3230   :  { %26149 = vmatmul.mubr.f32.vlgmr.msra.gmra.mrb[58].mxu0 %v14573_v27  ;;  %v15030_v27 = vand.u32 4294901760, %v15015_v12 }
0x3231   :  { %26225 = vmatprep.mubr.msk.f32.mxu0 %vm29704_vm1, %v34802_v34  ;;  %28091 = vmatpush3.bf16.msra.mxu0 %v32831_v39 }
0x3232   :  { %28092 = vmatprep.subr.bf16.mxu0 %v34789_v61  ;;  %v32876_v56 = vpack.c.bf16 %v15033_v2, %v15030_v27  ;;  %v32878_v19 = vsub.f32 %v15015_v12, %v15030_v27  ;;  %v4254_v2 = vld [vmem:[%s34338_s2 + $0xb8] sm:$0xff] }
0x3234   :  { %28055 = vmatpush3.bf16.msra.mxu1 %v32876_v56 }
0x3235   :  { %28094 = vmatpush3.bf16.msra.mxu0 %v32847_v59  ;;  %28056 = vmatprep.subr.bf16.mxu1 %v34789_v61 }
0x3236   :  { %28095 = vmatprep.subr.bf16.mxu0 %v34789_v61 }
0x3303   :  { %v14985_v21 = vpop.f32.mrb[58].mxu0 }
0x3304   :  { %v14989_v46 = vadd.f32 %v14985_v21, %v32103_v38  ;;  %v26150_v48 = vpop.f32.mrb[59].mxu0  ;;  %v15017_v21 = vld [vmem:[%s34335_s3 + $0xd0] sm:$0xff] }
0x3305   :  { %v15036_v48 = vand.u32 4294901760, %v15017_v21 }
0x3306   :  { %v22359_v41 = vmul.f32 -1.442695, %v14989_v46  ;;  %v15018_v46 = vld [vmem:[%s34335_s3 + $0xd8] sm:$0xff] }
0x3308   :  { %29551 = vpow2.f32 %v22359_v41  ;;  %v15039_v41 = vand.u32 4294901760, %v15018_v46 }
0x3312   :  { %v29552_v6 = vpop.eup %29551 }
0x3313   :  { %v14993_v14 = vadd.f32 1.0, %v29552_v6  ;;  %v15111_v6 = vand.u32 4294901760, %v32878_v19 }
0x3315   :  { %29553 = vrcp.f32 %v14993_v14  ;;  %v15118_v14 = vand.u32 4294901760, %v32880_v58 }
0x3317   :  { %v28078_v55 = vpack.c.bf16 %v15118_v14, %v15111_v6 }
0x331f   :  { %v32818_v35 = vpop.eup %29553 }
0x3320   :  { %v14996_v22 = vmul.f32 2.0, %v32818_v35  ;;  %v14998_v38 = vmul.f32 %v32818_v35, %v14492_v45  ;;  %v28102_v45 = vpack.c.bf16 %v32835_v4, %v32833_v50 }
0x3322   :  { %v22360_v25 = vadd.f32 -1.0, %v14996_v22  ;;  %v32892_v22 = vpack.c.bf16 %v15039_v41, %v15036_v48 }
0x3324   :  { %15000 = vrot.lane.b32.xlu0 %v22360_v25, %s29706_s11  ;;  %v32894_v25 = vsub.f32 %v15017_v21, %v15036_v48  ;;  %28058 = vmatpush3.bf16.msra.mxu1 %v32892_v22 }
0x3325   :  { %28059 = vmatprep.subr.bf16.mxu1 %v34789_v61 }
0x3326   :  { %v15125_v37 = vand.u32 4294901760, %v32894_v25 }
0x3328   :  { %v15126_v50 = vsub.f32 %v32894_v25, %v15125_v37 }
0x332a   :  { %v15127_v23 = vand.u32 4294901760, %v15126_v50 }
0x3396   :  { %v15001_v40 = vpop.permute.xlu0 %15000 }
0x3397   :  { %v15003_v26 = vmul.f32 %v32818_v35, %v15001_v40  ;;  %v32896_v40 = vsub.f32 %v15018_v46, %v15039_v41 }
0x3399   :  { %15005 = vrot.lane.b32.xlu1 %v15003_v26, %s29707_s12  ;;  %v15112_v26 = vsub.f32 %v32878_v19, %v15111_v6  ;;  %v15132_v0 = vand.u32 4294901760, %v32896_v40  ;;  %v28069_v9 = vpack.c.bf16 %v32896_v40, %v32894_v25 }
0x339b   :  { %v15133_v4 = vsub.f32 %v32896_v40, %v15132_v0  ;;  %v28081_v13 = vpack.c.bf16 %v15132_v0, %v15125_v37 }
0x339d   :  { %v15134_v62 = vand.u32 4294901760, %v15133_v4 }
0x340b   :  { %v15006_v47 = vpop.permute.xlu1 %15005 }
0x340c   :  { %v15008_v29 = vadd.f32 %v15006_v47, %v14998_v38  ;;  %v15119_v38 = vsub.f32 %v32880_v58, %v15118_v14 }
0x340e   :  { %29555 = vtanh.f32 %v15008_v29  ;;  %v15120_v15 = vand.u32 4294901760, %v15119_v38 }
0x3418   :  { %v29556_v53 = vpop.eup %29555 }
0x3419   :  { %15011 = vrot.lane.b32.xlu0 %v29556_v53, %s29706_s11  ;;  %v28063_v53 = vpack.c.bf16 %v15134_v62, %v15127_v23 }
0x341d   :  { %15525 = vrot.lane.b32.xlu0 %v15008_v29, %s29708_s27  ;;  %v15113_v29 = vand.u32 4294901760, %v15112_v26 }
0x341f   :  { %v28060_v16 = vpack.c.bf16 %v15120_v15, %v15113_v29 }
0x348b   :  { %v15012_v47 = vpop.permute.xlu0 %15011 }
0x348c   :  { %v15014_v36 = vmul.f32 %v32818_v35, %v15012_v47  ;;  %v28066_v35 = vpack.c.bf16 %v32880_v58, %v32878_v19  ;;  %v16027_v19 = vand.u32 4294901760, %v4254_v2 }
0x348e   :  { %15025 = vrot.lane.b32.xlu1 %v15014_v36, %s29707_s12  ;;  %v16119_v40 = vsub.f32 %v4254_v2, %v16027_v19 }
0x348f   :  { %v15526_v30 = vpop.permute.xlu0 %15525 }
0x3490   :  { %v15527_v8 = vsel %vm4260_vm3, %v15526_v30, 0  ;;  %v16120_v29 = vand.u32 4294901760, %v16119_v40 }
0x3491   :  { %v15598_v20 = vand.u32 4294901760, %v15527_v8 }
0x3492   :  { %v16121_v36 = vsub.f32 %v16119_v40, %v16120_v29 }
0x3493   :  { %v15599_v51 = vsub.f32 %v15527_v8, %v15598_v20  ;;  %v22361_v8 = vld [vmem:[%s34335_s3 + $0xe0] ss:$0 sm:$0xff] }
0x3494   :  { %v16122_v50 = vand.u32 4294901760, %v16121_v36 }
0x3495   :  { %v15600_v10 = vand.u32 4294901760, %v15599_v51 }
0x3497   :  { %v15601_v42 = vsub.f32 %v15599_v51, %v15600_v10 }
0x3499   :  { %v15602_v54 = vand.u32 4294901760, %v15601_v42 }
0x349b   :  { %26226 = vmatmul.mubr.f32.vlgmr.msra.gmra.mrb[60].mxu0 %v15602_v54 }
0x349c   :  { %28097 = vmatpush3.bf16.msra.mxu0 %v28096_v31  ;;  %26236 = vmatprep.mubr.msk.f32.mxu0 %vm29704_vm1, %v34802_v34 }
0x349d   :  { %28098 = vmatprep.subr.bf16.mxu0 %v34789_v61 }
0x34a0   :  { %28100 = vmatpush3.bf16.msra.mxu0 %v28099_v49 }
0x34a1   :  { %28101 = vmatprep.subr.bf16.mxu0 %v34789_v61 }
0x34a3   :  { %26237 = vmatmul.mubr.f32.vlgmr.msra.gmra.mrb[60].mxu0 %v15598_v20 }
0x34a4   :  { %28103 = vmatpush3.bf16.msra.mxu0 %v28102_v45  ;;  %26247 = vmatprep.mubr.msk.f32.mxu0 %vm29704_vm1, %v34802_v34  ;;  %v4251_v45 = vld [vmem:[%s34338_s2 + $0xa0] sm:$0xff] }
0x34a5   :  { %28104 = vmatprep.subr.bf16.mxu0 %v34789_v61  ;;  %v16018_v60 = vand.u32 4294901760, %v4251_v45 }
0x34a7   :  { %v16098_v21 = vsub.f32 %v4251_v45, %v16018_v60 }
0x34a8   :  { %28106 = vmatpush3.bf16.msra.mxu0 %v28105_v33  ;;  %v4252_v33 = vld [vmem:[%s34338_s2 + $0xa8] sm:$0xff] }
0x34a9   :  { %28107 = vmatprep.subr.bf16.mxu0 %v34789_v61  ;;  %v16021_v27 = vand.u32 4294901760, %v4252_v33  ;;  %v16099_v41 = vand.u32 4294901760, %v16098_v21 }
0x34ab   :  { %26248 = vmatmul.mubr.f32.vlgmr.msra.gmra.mrb[60].mxu0 %v15599_v51  ;;  %v32984_v58 = vpack.c.bf16 %v16021_v27, %v16018_v60  ;;  %v16105_v46 = vsub.f32 %v4252_v33, %v16021_v27  ;;  %v16100_v14 = vsub.f32 %v16098_v21, %v16099_v41 }
0x34ac   :  { %28109 = vmatpush3.bf16.msra.mxu0 %v32831_v39  ;;  %26258 = vmatprep.mubr.msk.f32.mxu0 %vm29704_vm1, %v34802_v34 }
0x34ad   :  { %28110 = vmatprep.subr.bf16.mxu0 %v34789_v61  ;;  %v16106_v6 = vand.u32 4294901760, %v16105_v46  ;;  %v16101_v26 = vand.u32 4294901760, %v16100_v14 }
0x34af   :  { %v33004_v23 = vpack.c.bf16 %v16106_v6, %v16099_v41 }
0x34b0   :  { %28112 = vmatpush3.bf16.msra.mxu0 %v32847_v59 }
0x34b1   :  { %28113 = vmatprep.subr.bf16.mxu0 %v34789_v61 }
0x34b3   :  { %26259 = vmatmul.mubr.f32.vlgmr.msra.gmra.mrb[60].mxu0 %v15600_v10 }
0x34b4   :  { %28115 = vmatpush3.bf16.msra.mxu0 %v32866_v43  ;;  %26269 = vmatprep.mubr.msk.f32.mxu0 %vm29704_vm1, %v34802_v34  ;;  %v4253_v43 = vld [vmem:[%s34338_s2 + $0xb0] sm:$0xff] }
0x34b5   :  { %28116 = vmatprep.subr.bf16.mxu0 %v34789_v61 }
0x34b8   :  { %28118 = vmatpush3.bf16.msra.mxu0 %v32868_v24 }
0x34b9   :  { %28119 = vmatprep.subr.bf16.mxu0 %v34789_v61 }
0x34bb   :  { %26270 = vmatmul.mubr.f32.vlgmr.msra.gmra.mrb[60].mxu0 %v15598_v20 }
0x34bc   :  { %28121 = vmatpush3.bf16.msra.mxu0 %v32831_v39  ;;  %26280 = vmatprep.mubr.msk.f32.mxu0 %vm29704_vm1, %v34802_v34 }
0x34bd   :  { %28122 = vmatprep.subr.bf16.mxu0 %v34789_v61 }
0x34c0   :  { %28124 = vmatpush3.bf16.msra.mxu0 %v32847_v59  ;;  %v22362_v59 = vld [vmem:[%s34335_s3 + $0x108] ss:$0 sm:$0xff] }
0x34c1   :  { %28161 = vmatprep.subr.bf16.mxu0 %v34789_v61 }
0x34c3   :  { %26281 = vmatmul.mubr.f32.vlgmr.msra.gmra.mrb[60].mxu0 %v15598_v20 }
0x34c4   :  { %26357 = vmatprep.mubr.msk.f32.mxu0 %vm29704_vm1, %v34802_v34  ;;  %28163 = vmatpush3.bf16.msra.mxu0 %v32984_v58 }
0x34c5   :  { %28164 = vmatprep.subr.bf16.mxu0 %v34789_v61 }
0x3500   :  { %v15026_v18 = vpop.permute.xlu1 %15025 }
0x3501   :  { %v15027_v17 = vsel %vm4260_vm3, %v15026_v18, 0 }
0x3502   :  { %v15098_v52 = vand.u32 4294901760, %v15027_v17 }
0x3504   :  { %v15099_v31 = vsub.f32 %v15027_v17, %v15098_v52 }
0x3506   :  { %v15100_v3 = vand.u32 4294901760, %v15099_v31 }
0x3508   :  { %v15101_v39 = vsub.f32 %v15099_v31, %v15100_v3 }
0x350a   :  { %v15102_v11 = vand.u32 4294901760, %v15101_v39 }
0x350c   :  { %26160 = vmatmul.mubr.f32.vlgmr.msra.gmra.mrb[76].mxu1 %v15102_v11 }
0x350d   :  { %28061 = vmatpush3.bf16.msra.mxu1 %v28060_v16  ;;  %26170 = vmatprep.mubr.msk.f32.mxu1 %vm29704_vm1, %v34802_v34  ;;  %v33000_v16 = vpack.c.bf16 %v16105_v46, %v16098_v21 }
0x350e   :  { %28062 = vmatprep.subr.bf16.mxu1 %v34789_v61 }
0x3511   :  { %28064 = vmatpush3.bf16.msra.mxu1 %v28063_v53 }
0x3512   :  { %28065 = vmatprep.subr.bf16.mxu1 %v34789_v61 }
0x3514   :  { %26171 = vmatmul.mubr.f32.vlgmr.msra.gmra.mrb[76].mxu1 %v15098_v52 }
0x3515   :  { %28067 = vmatpush3.bf16.msra.mxu1 %v28066_v35  ;;  %26181 = vmatprep.mubr.msk.f32.mxu1 %vm29704_vm1, %v34802_v34 }
0x3516   :  { %28068 = vmatprep.subr.bf16.mxu1 %v34789_v61 }
0x3519   :  { %28070 = vmatpush3.bf16.msra.mxu1 %v28069_v9 }
0x351a   :  { %28071 = vmatprep.subr.bf16.mxu1 %v34789_v61 }
0x351c   :  { %26182 = vmatmul.mubr.f32.vlgmr.msra.gmra.mrb[76].mxu1 %v15099_v31 }
0x351d   :  { %28073 = vmatpush3.bf16.msra.mxu1 %v32876_v56  ;;  %26192 = vmatprep.mubr.msk.f32.mxu1 %vm29704_vm1, %v34802_v34 }
0x351e   :  { %28074 = vmatprep.subr.bf16.mxu1 %v34789_v61 }
0x3521   :  { %28076 = vmatpush3.bf16.msra.mxu1 %v32892_v22 }
0x3522   :  { %28077 = vmatprep.subr.bf16.mxu1 %v34789_v61 }
0x3524   :  { %26193 = vmatmul.mubr.f32.vlgmr.msra.gmra.mrb[76].mxu1 %v15100_v3 }
0x3525   :  { %28079 = vmatpush3.bf16.msra.mxu1 %v28078_v55  ;;  %26203 = vmatprep.mubr.msk.f32.mxu1 %vm29704_vm1, %v34802_v34 }
0x3526   :  { %28080 = vmatprep.subr.bf16.mxu1 %v34789_v61 }
0x3529   :  { %28082 = vmatpush3.bf16.msra.mxu1 %v28081_v13 }
0x352a   :  { %28083 = vmatprep.subr.bf16.mxu1 %v34789_v61 }
0x352c   :  { %26204 = vmatmul.mubr.f32.vlgmr.msra.gmra.mrb[76].mxu1 %v15098_v52 }
0x352d   :  { %28085 = vmatpush3.bf16.msra.mxu1 %v32876_v56  ;;  %26214 = vmatprep.mubr.msk.f32.mxu1 %vm29704_vm1, %v34802_v34  ;;  %v16024_v56 = vand.u32 4294901760, %v4253_v43 }
0x352e   :  { %28086 = vmatprep.subr.bf16.mxu1 %v34789_v61 }
0x352f   :  { %v32987_v48 = vpack.c.bf16 %v16027_v19, %v16024_v56  ;;  %v16112_v25 = vsub.f32 %v4253_v43, %v16024_v56 }
0x3531   :  { %28088 = vmatpush3.bf16.msra.mxu1 %v32892_v22  ;;  %v16107_v22 = vsub.f32 %v16105_v46, %v16106_v6  ;;  %v16113_v47 = vand.u32 4294901760, %v16112_v25  ;;  %28166 = vmatpush3.bf16.msra.mxu0 %v32987_v48  ;;  %v33002_v30 = vpack.c.bf16 %v16119_v40, %v16112_v25 }
0x3532   :  { %28125 = vmatprep.subr.bf16.mxu1 %v34789_v61  ;;  %28167 = vmatprep.subr.bf16.mxu0 %v34789_v61 }
0x3533   :  { %v16108_v38 = vand.u32 4294901760, %v16107_v22  ;;  %v16114_v0 = vsub.f32 %v16112_v25, %v16113_v47  ;;  %v33006_v62 = vpack.c.bf16 %v16120_v29, %v16113_v47 }
0x3534   :  { %26215 = vmatmul.mubr.f32.vlgmr.msra.gmra.mrb[76].mxu1 %v15098_v52 }
0x3535   :  { %26291 = vmatprep.mubr.msk.f32.mxu1 %vm29704_vm1, %v34802_v34  ;;  %28127 = vmatpush3.bf16.msra.mxu1 %v32984_v58  ;;  %v32996_v37 = vpack.c.bf16 %v16108_v38, %v16101_v26  ;;  %v16115_v15 = vand.u32 4294901760, %v16114_v0 }
0x3536   :  { %28128 = vmatprep.subr.bf16.mxu1 %v34789_v61 }
0x3537   :  { %v32998_v4 = vpack.c.bf16 %v16122_v50, %v16115_v15 }
0x3539   :  { %28130 = vmatpush3.bf16.msra.mxu1 %v32987_v48 }
0x353a   :  { %28131 = vmatprep.subr.bf16.mxu1 %v34789_v61 }
0x3596   :  { %v16010_v49 = vpop.f32.mrb[60].mxu0 }
0x3597   :  { %v28683_v24 = vadd.f32 %v22362_v59, %v16010_v49  ;;  %v26282_v12 = vpop.f32.mrb[61].mxu0 }
0x3599   :  { %16512 = vrot.lane.b32.xlu0 %v28683_v24, %s29707_s12 }
0x3607   :  { %v15510_v20 = vpop.f32.mrb[76].mxu1 }
0x3608   :  { %v28682_v53 = vadd.f32 %v22361_v8, %v15510_v20  ;;  %v26216_v51 = vpop.f32.mrb[77].mxu1 }
0x360a   :  { %29557 = vtanh.f32 %v28682_v53 }
0x360b   :  { %v16513_v43 = vpop.permute.xlu0 %16512 }
0x3614   :  { %v29558_v35 = vpop.eup %29557 }
0x3615   :  { %v16015_v10 = vsel %vm4260_vm3, %v29558_v35, 0 }
0x3616   :  { %v16086_v9 = vand.u32 4294901760, %v16015_v10 }
0x3618   :  { %v16087_v42 = vsub.f32 %v16015_v10, %v16086_v9 }
0x361a   :  { %v16088_v54 = vand.u32 4294901760, %v16087_v42 }
0x361c   :  { %v16089_v55 = vsub.f32 %v16087_v42, %v16088_v54 }
0x361e   :  { %v16090_v13 = vand.u32 4294901760, %v16089_v55 }
0x3620   :  { %26292 = vmatmul.mubr.f32.vlgmr.msra.gmra.mrb[78].mxu1 %v16090_v13 }
0x3621   :  { %28133 = vmatpush3.bf16.msra.mxu1 %v32996_v37  ;;  %26302 = vmatprep.mubr.msk.f32.mxu1 %vm29704_vm1, %v34802_v34 }
0x3622   :  { %28134 = vmatprep.subr.bf16.mxu1 %v34789_v61 }
0x3625   :  { %28136 = vmatpush3.bf16.msra.mxu1 %v32998_v4 }
0x3626   :  { %28137 = vmatprep.subr.bf16.mxu1 %v34789_v61 }
0x3628   :  { %26303 = vmatmul.mubr.f32.vlgmr.msra.gmra.mrb[78].mxu1 %v16086_v9 }
0x3629   :  { %28139 = vmatpush3.bf16.msra.mxu1 %v33000_v16  ;;  %26313 = vmatprep.mubr.msk.f32.mxu1 %vm29704_vm1, %v34802_v34 }
0x362a   :  { %28140 = vmatprep.subr.bf16.mxu1 %v34789_v61 }
0x362d   :  { %28142 = vmatpush3.bf16.msra.mxu1 %v33002_v30 }
0x362e   :  { %28143 = vmatprep.subr.bf16.mxu1 %v34789_v61 }
0x3630   :  { %26314 = vmatmul.mubr.f32.vlgmr.msra.gmra.mrb[78].mxu1 %v16087_v42 }
0x3631   :  { %28145 = vmatpush3.bf16.msra.mxu1 %v32984_v58  ;;  %26324 = vmatprep.mubr.msk.f32.mxu1 %vm29704_vm1, %v34802_v34 }
0x3632   :  { %28146 = vmatprep.subr.bf16.mxu1 %v34789_v61 }
0x3635   :  { %28148 = vmatpush3.bf16.msra.mxu1 %v32987_v48 }
0x3636   :  { %28149 = vmatprep.subr.bf16.mxu1 %v34789_v61 }
0x3638   :  { %26325 = vmatmul.mubr.f32.vlgmr.msra.gmra.mrb[78].mxu1 %v16088_v54 }
0x3639   :  { %28151 = vmatpush3.bf16.msra.mxu1 %v33004_v23  ;;  %26335 = vmatprep.mubr.msk.f32.mxu1 %vm29704_vm1, %v34802_v34 }
0x363a   :  { %28152 = vmatprep.subr.bf16.mxu1 %v34789_v61 }
0x363d   :  { %28154 = vmatpush3.bf16.msra.mxu1 %v33006_v62 }
0x363e   :  { %28155 = vmatprep.subr.bf16.mxu1 %v34789_v61 }
0x3640   :  { %26336 = vmatmul.mubr.f32.vlgmr.msra.gmra.mrb[78].mxu1 %v16086_v9 }
0x3641   :  { %28157 = vmatpush3.bf16.msra.mxu1 %v32984_v58  ;;  %26346 = vmatprep.mubr.msk.f32.mxu1 %vm29704_vm1, %v34802_v34 }
0x3642   :  { %28158 = vmatprep.subr.bf16.mxu1 %v34789_v61 }
0x3645   :  { %28160 = vmatpush3.bf16.msra.mxu1 %v32987_v48 }
0x3646   :  { %28197 = vmatprep.subr.bf16.mxu1 %v34789_v61 }
0x3648   :  { %26347 = vmatmul.mubr.f32.vlgmr.msra.gmra.mrb[78].mxu1 %v16086_v9 }
0x3649   :  { %28199 = vmatpush3.bf16.msra.mxu1 %v32984_v58  ;;  %26423 = vmatprep.mubr.msk.f32.mxu1 %vm29704_vm1, %v34802_v34 }
0x364a   :  { %28200 = vmatprep.subr.bf16.mxu1 %v34789_v61 }
0x364d   :  { %28202 = vmatpush3.bf16.msra.mxu1 %v32987_v48 }
0x364e   :  { %28203 = vmatprep.subr.bf16.mxu1 %v34789_v61 }
0x371b   :  { %v16498_v18 = vpop.f32.mrb[78].mxu1 }
0x371c   :  { %v16502_v17 = vadd.f32 %v16498_v18, %v32048_v7  ;;  %v26348_v52 = vpop.f32.mrb[79].mxu1 }
0x371e   :  { %v22363_v31 = vmul.f32 -1.442695, %v16502_v17 }
0x3720   :  { %29559 = vpow2.f32 %v22363_v31 }
0x372a   :  { %v29560_v3 = vpop.eup %29559 }
0x372b   :  { %v16506_v39 = vadd.f32 1.0, %v29560_v3 }
0x372d   :  { %29561 = vrcp.f32 %v16506_v39 }
0x3737   :  { %v29562_v11 = vpop.eup %29561 }
0x3738   :  { %v16509_v59 = vmul.f32 2.0, %v29562_v11  ;;  %v16515_v24 = vmul.f32 %v29562_v11, %v16513_v43 }
0x373a   :  { %v22364_v49 = vadd.f32 -1.0, %v16509_v59 }
0x373c   :  { %16517 = vrot.lane.b32.xlu1 %v22364_v49, %s29706_s11 }
0x37ae   :  { %v16518_v45 = vpop.permute.xlu1 %16517 }
0x37af   :  { %v16520_v33 = vmul.f32 %v29562_v11, %v16518_v45 }
0x37b1   :  { %16522 = vrot.lane.b32.xlu1 %v16520_v33, %s29707_s12 }
0x3823   :  { %v16523_v12 = vpop.permute.xlu1 %16522 }
0x3824   :  { %v33051_v60 = vadd.f32 %v16523_v12, %v16515_v24 }
0x3826   :  { %29563 = vtanh.f32 %v33051_v60 }
0x3830   :  { %v29564_v7 = vpop.eup %29563 }
0x3831   :  { %16528 = vrot.lane.b32.xlu0 %v29564_v7, %s29706_s11 }
0x38a3   :  { %v16529_v27 = vpop.permute.xlu0 %16528 }
0x38a4   :  { %v16531_v2 = vmul.f32 %v29562_v11, %v16529_v27 }
0x38a6   :  { %16533 = vrot.lane.b32.xlu1 %v16531_v2, %s29707_s12 }
0x3918   :  { %v16534_v56 = vpop.permute.xlu1 %16533 }
0x3919   :  { %v16535_v19 = vsel %vm4260_vm3, %v16534_v56, 0 }
0x391a   :  { %v33057_v21 = vand.u32 4294901760, %v16535_v19 }
0x391c   :  { %v33060_v46 = vsub.f32 %v16535_v19, %v33057_v21 }
0x391e   :  { %v33063_v41 = vand.u32 4294901760, %v33060_v46 }
0x3920   :  { %v16609_v6 = vsub.f32 %v33060_v46, %v33063_v41 }
0x3922   :  { %v33067_v14 = vand.u32 4294901760, %v16609_v6 }
0x3924   :  { %26358 = vmatmul.mubr.f32.vlgmr.msra.gmra.mrb[62].mxu0 %v33067_v14 }
0x3925   :  { %28169 = vmatpush3.bf16.msra.mxu0 %v32996_v37  ;;  %26368 = vmatprep.mubr.msk.f32.mxu0 %vm29704_vm1, %v34802_v34 }
0x3926   :  { %28170 = vmatprep.subr.bf16.mxu0 %v34789_v61 }
0x3929   :  { %28172 = vmatpush3.bf16.msra.mxu0 %v32998_v4 }
0x392a   :  { %28173 = vmatprep.subr.bf16.mxu0 %v34789_v61 }
0x392c   :  { %26369 = vmatmul.mubr.f32.vlgmr.msra.gmra.mrb[62].mxu0 %v33057_v21 }
0x392d   :  { %28175 = vmatpush3.bf16.msra.mxu0 %v33000_v16  ;;  %26379 = vmatprep.mubr.msk.f32.mxu0 %vm29704_vm1, %v34802_v34 }
0x392e   :  { %28176 = vmatprep.subr.bf16.mxu0 %v34789_v61 }
0x3931   :  { %28178 = vmatpush3.bf16.msra.mxu0 %v33002_v30 }
0x3932   :  { %28179 = vmatprep.subr.bf16.mxu0 %v34789_v61 }
0x3934   :  { %26380 = vmatmul.mubr.f32.vlgmr.msra.gmra.mrb[62].mxu0 %v33060_v46 }
0x3935   :  { %28181 = vmatpush3.bf16.msra.mxu0 %v32984_v58  ;;  %26390 = vmatprep.mubr.msk.f32.mxu0 %vm29704_vm1, %v34802_v34 }
0x3936   :  { %28182 = vmatprep.subr.bf16.mxu0 %v34789_v61 }
0x3939   :  { %28184 = vmatpush3.bf16.msra.mxu0 %v32987_v48 }
0x393a   :  { %28185 = vmatprep.subr.bf16.mxu0 %v34789_v61 }
0x393c   :  { %26391 = vmatmul.mubr.f32.vlgmr.msra.gmra.mrb[62].mxu0 %v33063_v41 }
0x393d   :  { %28187 = vmatpush3.bf16.msra.mxu0 %v33004_v23  ;;  %26401 = vmatprep.mubr.msk.f32.mxu0 %vm29704_vm1, %v34802_v34 }
0x393e   :  { %28188 = vmatprep.subr.bf16.mxu0 %v34789_v61 }
0x3941   :  { %28190 = vmatpush3.bf16.msra.mxu0 %v33006_v62 }
0x3942   :  { %28191 = vmatprep.subr.bf16.mxu0 %v34789_v61 }
0x3944   :  { %26402 = vmatmul.mubr.f32.vlgmr.msra.gmra.mrb[62].mxu0 %v33057_v21 }
0x3945   :  { %28193 = vmatpush3.bf16.msra.mxu0 %v32984_v58  ;;  %26412 = vmatprep.mubr.msk.f32.mxu0 %vm29704_vm1, %v34802_v34 }
0x3946   :  { %28194 = vmatprep.subr.bf16.mxu0 %v34789_v61 }
0x3949   :  { %28196 = vmatpush3.bf16.msra.mxu0 %v32987_v48 }
0x394a   :  { %28233 = vmatprep.subr.bf16.mxu0 %v34789_v61 }
0x394c   :  { %26413 = vmatmul.mubr.f32.vlgmr.msra.gmra.mrb[62].mxu0 %v33057_v21 }
0x394d   :  { %28235 = vmatpush3.bf16.msra.mxu0 %v32984_v58  ;;  %26489 = vmatprep.mubr.msk.f32.mxu0 %vm29704_vm1, %v34802_v34 }
0x394e   :  { %28236 = vmatprep.subr.bf16.mxu0 %v34789_v61 }
0x3951   :  { %28238 = vmatpush3.bf16.msra.mxu0 %v32987_v48 }
0x3952   :  { %28239 = vmatprep.subr.bf16.mxu0 %v34789_v61 }
0x3a1f   :  { %v17018_v22 = vpop.f32.mrb[62].mxu0 }
0x3a20   :  { %v17022_v25 = vadd.f32 %v17018_v22, %v32046_v28  ;;  %v26414_v40 = vpop.f32.mrb[63].mxu0 }
0x3a22   :  { %v22365_v26 = vmul.f32 -1.442695, %v17022_v25 }
0x3a24   :  { %29565 = vpow2.f32 %v22365_v26 }
0x3a2e   :  { %v29566_v38 = vpop.eup %29565 }
0x3a2f   :  { %v17026_v47 = vadd.f32 1.0, %v29566_v38 }
0x3a31   :  { %29567 = vrcp.f32 %v17026_v47 }
0x3a3b   :  { %v29568_v29 = vpop.eup %29567 }
0x3a3c   :  { %v17029_v0 = vmul.f32 2.0, %v29568_v29  ;;  %v17031_v8 = vmul.f32 %v29568_v29, %v33051_v60 }
0x3a3e   :  { %v22366_v36 = vadd.f32 -1.0, %v17029_v0 }
0x3a40   :  { %17033 = vrot.lane.b32.xlu0 %v22366_v36, %s29706_s11 }
0x3ab2   :  { %v17034_v15 = vpop.permute.xlu0 %17033 }
0x3ab3   :  { %v17036_v50 = vmul.f32 %v29568_v29, %v17034_v15 }
0x3ab5   :  { %17038 = vrot.lane.b32.xlu1 %v17036_v50, %s29707_s12 }
0x3b27   :  { %v17039_v20 = vpop.permute.xlu1 %17038 }
0x3b28   :  { %v33115_v53 = vadd.f32 %v17039_v20, %v17031_v8 }
0x3b2a   :  { %29569 = vtanh.f32 %v33115_v53 }
0x3b34   :  { %v29570_v28 = vpop.eup %29569 }
0x3b35   :  { %17044 = vrot.lane.b32.xlu0 %v29570_v28, %s29706_s11 }
0x3ba7   :  { %v17045_v51 = vpop.permute.xlu0 %17044 }
0x3ba8   :  { %v17047_v35 = vmul.f32 %v29568_v29, %v17045_v51 }
0x3baa   :  { %17049 = vrot.lane.b32.xlu1 %v17047_v35, %s29707_s12 }
0x3c1c   :  { %v17050_v10 = vpop.permute.xlu1 %17049 }
0x3c1d   :  { %v17051_v9 = vsel %vm4260_vm3, %v17050_v10, 0 }
0x3c1e   :  { %v33121_v42 = vand.u32 4294901760, %v17051_v9 }
0x3c20   :  { %v33124_v54 = vsub.f32 %v17051_v9, %v33121_v42 }
0x3c22   :  { %v33127_v55 = vand.u32 4294901760, %v33124_v54 }
0x3c24   :  { %v17125_v13 = vsub.f32 %v33124_v54, %v33127_v55 }
0x3c26   :  { %v33131_v18 = vand.u32 4294901760, %v17125_v13 }
0x3c28   :  { %26424 = vmatmul.mubr.f32.vlgmr.msra.gmra.mrb[80].mxu1 %v33131_v18 }
0x3c29   :  { %28205 = vmatpush3.bf16.msra.mxu1 %v32996_v37  ;;  %26434 = vmatprep.mubr.msk.f32.mxu1 %vm29704_vm1, %v34802_v34 }
0x3c2a   :  { %28206 = vmatprep.subr.bf16.mxu1 %v34789_v61 }
0x3c2d   :  { %28208 = vmatpush3.bf16.msra.mxu1 %v32998_v4 }
0x3c2e   :  { %28209 = vmatprep.subr.bf16.mxu1 %v34789_v61 }
0x3c30   :  { %26435 = vmatmul.mubr.f32.vlgmr.msra.gmra.mrb[80].mxu1 %v33121_v42 }
0x3c31   :  { %28211 = vmatpush3.bf16.msra.mxu1 %v33000_v16  ;;  %26445 = vmatprep.mubr.msk.f32.mxu1 %vm29704_vm1, %v34802_v34 }
0x3c32   :  { %28212 = vmatprep.subr.bf16.mxu1 %v34789_v61 }
0x3c35   :  { %28214 = vmatpush3.bf16.msra.mxu1 %v33002_v30 }
0x3c36   :  { %28215 = vmatprep.subr.bf16.mxu1 %v34789_v61 }
0x3c38   :  { %26446 = vmatmul.mubr.f32.vlgmr.msra.gmra.mrb[80].mxu1 %v33124_v54 }
0x3c39   :  { %28217 = vmatpush3.bf16.msra.mxu1 %v32984_v58  ;;  %26456 = vmatprep.mubr.msk.f32.mxu1 %vm29704_vm1, %v34802_v34 }
0x3c3a   :  { %28218 = vmatprep.subr.bf16.mxu1 %v34789_v61 }
0x3c3d   :  { %28220 = vmatpush3.bf16.msra.mxu1 %v32987_v48 }
0x3c3e   :  { %28221 = vmatprep.subr.bf16.mxu1 %v34789_v61 }
0x3c40   :  { %26457 = vmatmul.mubr.f32.vlgmr.msra.gmra.mrb[80].mxu1 %v33127_v55 }
0x3c41   :  { %28223 = vmatpush3.bf16.msra.mxu1 %v33004_v23  ;;  %26467 = vmatprep.mubr.msk.f32.mxu1 %vm29704_vm1, %v34802_v34 }
0x3c42   :  { %28224 = vmatprep.subr.bf16.mxu1 %v34789_v61 }
0x3c45   :  { %28226 = vmatpush3.bf16.msra.mxu1 %v33006_v62 }
0x3c46   :  { %28227 = vmatprep.subr.bf16.mxu1 %v34789_v61 }
0x3c48   :  { %26468 = vmatmul.mubr.f32.vlgmr.msra.gmra.mrb[80].mxu1 %v33121_v42 }
0x3c49   :  { %28229 = vmatpush3.bf16.msra.mxu1 %v32984_v58  ;;  %26478 = vmatprep.mubr.msk.f32.mxu1 %vm29704_vm1, %v34802_v34 }
0x3c4a   :  { %28230 = vmatprep.subr.bf16.mxu1 %v34789_v61 }
0x3c4d   :  { %28232 = vmatpush3.bf16.msra.mxu1 %v32987_v48 }
0x3c4e   :  { %28269 = vmatprep.subr.bf16.mxu1 %v34789_v61 }
0x3c50   :  { %26479 = vmatmul.mubr.f32.vlgmr.msra.gmra.mrb[80].mxu1 %v33121_v42 }
0x3c51   :  { %28271 = vmatpush3.bf16.msra.mxu1 %v32984_v58  ;;  %26555 = vmatprep.mubr.msk.f32.mxu1 %vm29704_vm1, %v34802_v34 }
0x3c52   :  { %28272 = vmatprep.subr.bf16.mxu1 %v34789_v61 }
0x3c55   :  { %28274 = vmatpush3.bf16.msra.mxu1 %v32987_v48 }
0x3c56   :  { %28275 = vmatprep.subr.bf16.mxu1 %v34789_v61 }
0x3d23   :  { %v17534_v17 = vpop.f32.mrb[80].mxu1 }
0x3d24   :  { %v17538_v52 = vadd.f32 %v17534_v17, %v32052_v5  ;;  %v26480_v31 = vpop.f32.mrb[81].mxu1 }
0x3d26   :  { %v22367_v3 = vmul.f32 -1.442695, %v17538_v52 }
0x3d28   :  { %29571 = vpow2.f32 %v22367_v3 }
0x3d32   :  { %v29572_v39 = vpop.eup %29571 }
0x3d33   :  { %v17542_v11 = vadd.f32 1.0, %v29572_v39 }
0x3d35   :  { %29573 = vrcp.f32 %v17542_v11 }
0x3d3f   :  { %v29574_v59 = vpop.eup %29573 }
0x3d40   :  { %v17545_v49 = vmul.f32 2.0, %v29574_v59  ;;  %v17547_v24 = vmul.f32 %v29574_v59, %v33115_v53 }
0x3d42   :  { %v22368_v45 = vadd.f32 -1.0, %v17545_v49 }
0x3d44   :  { %17549 = vrot.lane.b32.xlu0 %v22368_v45, %s29706_s11 }
0x3db6   :  { %v17550_v33 = vpop.permute.xlu0 %17549 }
0x3db7   :  { %v17552_v43 = vmul.f32 %v29574_v59, %v17550_v33 }
0x3db9   :  { %17554 = vrot.lane.b32.xlu1 %v17552_v43, %s29707_s12 }
0x3e2b   :  { %v17555_v12 = vpop.permute.xlu1 %17554 }
0x3e2c   :  { %v33179_v60 = vadd.f32 %v17555_v12, %v17547_v24 }
0x3e2e   :  { %29575 = vtanh.f32 %v33179_v60 }
0x3e38   :  { %v29576_v5 = vpop.eup %29575 }
0x3e39   :  { %17560 = vrot.lane.b32.xlu0 %v29576_v5, %s29706_s11 }
0x3eab   :  { %v17561_v7 = vpop.permute.xlu0 %17560 }
0x3eac   :  { %v17563_v27 = vmul.f32 %v29574_v59, %v17561_v7 }
0x3eae   :  { %17565 = vrot.lane.b32.xlu1 %v17563_v27, %s29707_s12 }
0x3f20   :  { %v17566_v2 = vpop.permute.xlu1 %17565 }
0x3f21   :  { %v17567_v56 = vsel %vm4260_vm3, %v17566_v2, 0 }
0x3f22   :  { %v33185_v19 = vand.u32 4294901760, %v17567_v56 }
0x3f24   :  { %v33188_v6 = vsub.f32 %v17567_v56, %v33185_v19 }
0x3f26   :  { %v33191_v22 = vand.u32 4294901760, %v33188_v6 }
0x3f28   :  { %v17641_v25 = vsub.f32 %v33188_v6, %v33191_v22 }
0x3f2a   :  { %v33195_v40 = vand.u32 4294901760, %v17641_v25 }
0x3f2c   :  { %26490 = vmatmul.mubr.f32.vlgmr.msra.gmra.mrb[64].mxu0 %v33195_v40 }
0x3f2d   :  { %28241 = vmatpush3.bf16.msra.mxu0 %v32996_v37  ;;  %26500 = vmatprep.mubr.msk.f32.mxu0 %vm29704_vm1, %v34802_v34 }
0x3f2e   :  { %28242 = vmatprep.subr.bf16.mxu0 %v34789_v61 }
0x3f31   :  { %28244 = vmatpush3.bf16.msra.mxu0 %v32998_v4 }
0x3f32   :  { %28245 = vmatprep.subr.bf16.mxu0 %v34789_v61 }
0x3f34   :  { %26501 = vmatmul.mubr.f32.vlgmr.msra.gmra.mrb[64].mxu0 %v33185_v19 }
0x3f35   :  { %28247 = vmatpush3.bf16.msra.mxu0 %v33000_v16  ;;  %26511 = vmatprep.mubr.msk.f32.mxu0 %vm29704_vm1, %v34802_v34 }
0x3f36   :  { %28248 = vmatprep.subr.bf16.mxu0 %v34789_v61 }
0x3f39   :  { %28250 = vmatpush3.bf16.msra.mxu0 %v33002_v30 }
0x3f3a   :  { %28251 = vmatprep.subr.bf16.mxu0 %v34789_v61 }
0x3f3c   :  { %26512 = vmatmul.mubr.f32.vlgmr.msra.gmra.mrb[64].mxu0 %v33188_v6 }
0x3f3d   :  { %28253 = vmatpush3.bf16.msra.mxu0 %v32984_v58  ;;  %26522 = vmatprep.mubr.msk.f32.mxu0 %vm29704_vm1, %v34802_v34 }
0x3f3e   :  { %28254 = vmatprep.subr.bf16.mxu0 %v34789_v61 }
0x3f41   :  { %28256 = vmatpush3.bf16.msra.mxu0 %v32987_v48 }
0x3f42   :  { %28257 = vmatprep.subr.bf16.mxu0 %v34789_v61 }
0x3f44   :  { %26523 = vmatmul.mubr.f32.vlgmr.msra.gmra.mrb[64].mxu0 %v33191_v22 }
0x3f45   :  { %28259 = vmatpush3.bf16.msra.mxu0 %v33004_v23  ;;  %26533 = vmatprep.mubr.msk.f32.mxu0 %vm29704_vm1, %v34802_v34 }
0x3f46   :  { %28260 = vmatprep.subr.bf16.mxu0 %v34789_v61 }
0x3f49   :  { %28262 = vmatpush3.bf16.msra.mxu0 %v33006_v62 }
0x3f4a   :  { %28263 = vmatprep.subr.bf16.mxu0 %v34789_v61 }
0x3f4c   :  { %26534 = vmatmul.mubr.f32.vlgmr.msra.gmra.mrb[64].mxu0 %v33185_v19 }
0x3f4d   :  { %28265 = vmatpush3.bf16.msra.mxu0 %v32984_v58  ;;  %26544 = vmatprep.mubr.msk.f32.mxu0 %vm29704_vm1, %v34802_v34 }
0x3f4e   :  { %28266 = vmatprep.subr.bf16.mxu0 %v34789_v61 }
0x3f51   :  { %28268 = vmatpush3.bf16.msra.mxu0 %v32987_v48 }
0x3f52   :  { %28305 = vmatprep.subr.bf16.mxu0 %v34789_v61 }
0x3f54   :  { %26545 = vmatmul.mubr.f32.vlgmr.msra.gmra.mrb[64].mxu0 %v33185_v19 }
0x3f55   :  { %28307 = vmatpush3.bf16.msra.mxu0 %v32984_v58  ;;  %26621 = vmatprep.mubr.msk.f32.mxu0 %vm29704_vm1, %v34802_v34 }
0x3f56   :  { %28308 = vmatprep.subr.bf16.mxu0 %v34789_v61 }
0x3f59   :  { %28310 = vmatpush3.bf16.msra.mxu0 %v32987_v48 }
0x3f5a   :  { %28311 = vmatprep.subr.bf16.mxu0 %v34789_v61 }
0x4027   :  { %v18050_v26 = vpop.f32.mrb[64].mxu0 }
0x4028   :  { %v18054_v38 = vadd.f32 %v18050_v26, %v32050_v57  ;;  %v26546_v47 = vpop.f32.mrb[65].mxu0 }
0x402a   :  { %v22369_v29 = vmul.f32 -1.442695, %v18054_v38 }
0x402c   :  { %29577 = vpow2.f32 %v22369_v29 }
0x4036   :  { %v29578_v0 = vpop.eup %29577 }
0x4037   :  { %v18058_v36 = vadd.f32 1.0, %v29578_v0 }
0x4039   :  { %29579 = vrcp.f32 %v18058_v36 }
0x4043   :  { %v29580_v15 = vpop.eup %29579 }
0x4044   :  { %v18061_v50 = vmul.f32 2.0, %v29580_v15  ;;  %v18063_v28 = vmul.f32 %v29580_v15, %v33179_v60 }
0x4046   :  { %v22370_v8 = vadd.f32 -1.0, %v18061_v50 }
0x4048   :  { %18065 = vrot.lane.b32.xlu0 %v22370_v8, %s29706_s11 }
0x40ba   :  { %v18066_v20 = vpop.permute.xlu0 %18065 }
0x40bb   :  { %v18068_v53 = vmul.f32 %v29580_v15, %v18066_v20 }
0x40bd   :  { %18070 = vrot.lane.b32.xlu1 %v18068_v53, %s29707_s12 }
0x412f   :  { %v18071_v51 = vpop.permute.xlu1 %18070 }
0x4130   :  { %v33243_v35 = vadd.f32 %v18071_v51, %v18063_v28 }
0x4132   :  { %29581 = vtanh.f32 %v33243_v35 }
0x413c   :  { %v29582_v57 = vpop.eup %29581 }
0x413d   :  { %18076 = vrot.lane.b32.xlu0 %v29582_v57, %s29706_s11 }
0x41af   :  { %v18077_v10 = vpop.permute.xlu0 %18076 }
0x41b0   :  { %v18079_v9 = vmul.f32 %v29580_v15, %v18077_v10 }
0x41b2   :  { %18081 = vrot.lane.b32.xlu1 %v18079_v9, %s29707_s12 }
0x4224   :  { %v18082_v13 = vpop.permute.xlu1 %18081 }
0x4225   :  { %v18083_v17 = vsel %vm4260_vm3, %v18082_v13, 0 }
0x4226   :  { %v33249_v52 = vand.u32 4294901760, %v18083_v17 }
0x4228   :  { %v33252_v31 = vsub.f32 %v18083_v17, %v33249_v52 }
0x422a   :  { %v33255_v3 = vand.u32 4294901760, %v33252_v31 }
0x422c   :  { %v18157_v39 = vsub.f32 %v33252_v31, %v33255_v3 }
0x422e   :  { %v33259_v11 = vand.u32 4294901760, %v18157_v39 }
0x4230   :  { %26556 = vmatmul.mubr.f32.vlgmr.msra.gmra.mrb[82].mxu1 %v33259_v11 }
0x4231   :  { %28277 = vmatpush3.bf16.msra.mxu1 %v32996_v37  ;;  %26566 = vmatprep.mubr.msk.f32.mxu1 %vm29704_vm1, %v34802_v34 }
0x4232   :  { %28278 = vmatprep.subr.bf16.mxu1 %v34789_v61 }
0x4235   :  { %28280 = vmatpush3.bf16.msra.mxu1 %v32998_v4 }
0x4236   :  { %28281 = vmatprep.subr.bf16.mxu1 %v34789_v61 }
0x4238   :  { %26567 = vmatmul.mubr.f32.vlgmr.msra.gmra.mrb[82].mxu1 %v33249_v52 }
0x4239   :  { %28283 = vmatpush3.bf16.msra.mxu1 %v33000_v16  ;;  %26577 = vmatprep.mubr.msk.f32.mxu1 %vm29704_vm1, %v34802_v34 }
0x423a   :  { %28284 = vmatprep.subr.bf16.mxu1 %v34789_v61 }
0x423d   :  { %28286 = vmatpush3.bf16.msra.mxu1 %v33002_v30 }
0x423e   :  { %28287 = vmatprep.subr.bf16.mxu1 %v34789_v61 }
0x4240   :  { %26578 = vmatmul.mubr.f32.vlgmr.msra.gmra.mrb[82].mxu1 %v33252_v31 }
0x4241   :  { %28289 = vmatpush3.bf16.msra.mxu1 %v32984_v58  ;;  %26588 = vmatprep.mubr.msk.f32.mxu1 %vm29704_vm1, %v34802_v34 }
0x4242   :  { %28290 = vmatprep.subr.bf16.mxu1 %v34789_v61 }
0x4245   :  { %28292 = vmatpush3.bf16.msra.mxu1 %v32987_v48 }
0x4246   :  { %28293 = vmatprep.subr.bf16.mxu1 %v34789_v61 }
0x4248   :  { %26589 = vmatmul.mubr.f32.vlgmr.msra.gmra.mrb[82].mxu1 %v33255_v3 }
0x4249   :  { %28295 = vmatpush3.bf16.msra.mxu1 %v33004_v23  ;;  %26599 = vmatprep.mubr.msk.f32.mxu1 %vm29704_vm1, %v34802_v34 }
0x424a   :  { %28296 = vmatprep.subr.bf16.mxu1 %v34789_v61 }
0x424d   :  { %28298 = vmatpush3.bf16.msra.mxu1 %v33006_v62 }
0x424e   :  { %28299 = vmatprep.subr.bf16.mxu1 %v34789_v61 }
0x4250   :  { %26600 = vmatmul.mubr.f32.vlgmr.msra.gmra.mrb[82].mxu1 %v33249_v52 }
0x4251   :  { %28301 = vmatpush3.bf16.msra.mxu1 %v32984_v58  ;;  %26610 = vmatprep.mubr.msk.f32.mxu1 %vm29704_vm1, %v34802_v34 }
0x4252   :  { %28302 = vmatprep.subr.bf16.mxu1 %v34789_v61 }
0x4255   :  { %28304 = vmatpush3.bf16.msra.mxu1 %v32987_v48 }
0x4256   :  { %28341 = vmatprep.subr.bf16.mxu1 %v34789_v61 }
0x4258   :  { %26611 = vmatmul.mubr.f32.vlgmr.msra.gmra.mrb[82].mxu1 %v33249_v52 }
0x4259   :  { %28343 = vmatpush3.bf16.msra.mxu1 %v32984_v58  ;;  %26687 = vmatprep.mubr.msk.f32.mxu1 %vm29704_vm1, %v34802_v34 }
0x425a   :  { %28344 = vmatprep.subr.bf16.mxu1 %v34789_v61 }
0x425d   :  { %28346 = vmatpush3.bf16.msra.mxu1 %v32987_v48 }
0x425e   :  { %28347 = vmatprep.subr.bf16.mxu1 %v34789_v61 }
0x432b   :  { %v18566_v59 = vpop.f32.mrb[82].mxu1 }
0x432c   :  { %v18570_v49 = vadd.f32 %v18566_v59, %v32056_v63  ;;  %v26612_v45 = vpop.f32.mrb[83].mxu1 }
0x432e   :  { %v22371_v33 = vmul.f32 -1.442695, %v18570_v49 }
0x4330   :  { %29583 = vpow2.f32 %v22371_v33 }
0x433a   :  { %v29584_v43 = vpop.eup %29583 }
0x433b   :  { %v18574_v24 = vadd.f32 1.0, %v29584_v43 }
0x433d   :  { %29585 = vrcp.f32 %v18574_v24 }
0x4347   :  { %v29586_v12 = vpop.eup %29585 }
0x4348   :  { %v18577_v60 = vmul.f32 2.0, %v29586_v12  ;;  %v18579_v2 = vmul.f32 %v29586_v12, %v33243_v35 }
0x434a   :  { %v22372_v5 = vadd.f32 -1.0, %v18577_v60 }
0x434c   :  { %18581 = vrot.lane.b32.xlu0 %v22372_v5, %s29706_s11 }
0x43be   :  { %v18582_v7 = vpop.permute.xlu0 %18581 }
0x43bf   :  { %v18584_v27 = vmul.f32 %v29586_v12, %v18582_v7 }
0x43c1   :  { %18586 = vrot.lane.b32.xlu1 %v18584_v27, %s29707_s12 }
0x4433   :  { %v18587_v56 = vpop.permute.xlu1 %18586 }
0x4434   :  { %v33307_v25 = vadd.f32 %v18587_v56, %v18579_v2  ;;  %v33415_v56 = vld [vmem:[%s34335_s3 + $0x110] sm:$0xff] }
0x4436   :  { %29587 = vtanh.f32 %v33307_v25 }
0x4440   :  { %v29588_v63 = vpop.eup %29587 }
0x4441   :  { %18592 = vrot.lane.b32.xlu0 %v29588_v63, %s29706_s11  ;;  %v20159_v63 = vand.u32 4294901760, %v33415_v56 }
0x44b3   :  { %v18593_v26 = vpop.permute.xlu0 %18592 }
0x44b4   :  { %v18595_v38 = vmul.f32 %v29586_v12, %v18593_v26 }
0x44b6   :  { %18597 = vrot.lane.b32.xlu1 %v18595_v38, %s29707_s12  ;;  %v33429_v38 = vld [vmem:[%s34335_s3 + $0x120] sm:$0xff] }
0x4528   :  { %v18598_v47 = vpop.permute.xlu1 %18597 }
0x4529   :  { %v18599_v29 = vsel %vm4260_vm3, %v18598_v47, 0  ;;  %v33434_v47 = vld [vmem:[%s34335_s3 + $0x128] sm:$0xff] }
0x452a   :  { %v33313_v0 = vand.u32 4294901760, %v18599_v29 }
0x452c   :  { %v33316_v36 = vsub.f32 %v18599_v29, %v33313_v0 }
0x452e   :  { %v33319_v15 = vand.u32 4294901760, %v33316_v36 }
0x4530   :  { %v18673_v50 = vsub.f32 %v33316_v36, %v33319_v15 }
0x4532   :  { %v33323_v8 = vand.u32 4294901760, %v18673_v50  ;;  %v20165_v50 = vand.u32 4294901760, %v33429_v38 }
0x4534   :  { %26622 = vmatmul.mubr.f32.vlgmr.msra.gmra.mrb[66].mxu0 %v33323_v8 }
0x4535   :  { %28313 = vmatpush3.bf16.msra.mxu0 %v32996_v37  ;;  %26632 = vmatprep.mubr.msk.f32.mxu0 %vm29704_vm1, %v34802_v34 }
0x4536   :  { %28314 = vmatprep.subr.bf16.mxu0 %v34789_v61 }
0x4539   :  { %28316 = vmatpush3.bf16.msra.mxu0 %v32998_v4 }
0x453a   :  { %28317 = vmatprep.subr.bf16.mxu0 %v34789_v61 }
0x453c   :  { %26633 = vmatmul.mubr.f32.vlgmr.msra.gmra.mrb[66].mxu0 %v33313_v0 }
0x453d   :  { %28319 = vmatpush3.bf16.msra.mxu0 %v33000_v16  ;;  %26643 = vmatprep.mubr.msk.f32.mxu0 %vm29704_vm1, %v34802_v34 }
0x453e   :  { %28320 = vmatprep.subr.bf16.mxu0 %v34789_v61 }
0x4541   :  { %28322 = vmatpush3.bf16.msra.mxu0 %v33002_v30 }
0x4542   :  { %28323 = vmatprep.subr.bf16.mxu0 %v34789_v61 }
0x4544   :  { %26644 = vmatmul.mubr.f32.vlgmr.msra.gmra.mrb[66].mxu0 %v33316_v36 }
0x4545   :  { %28325 = vmatpush3.bf16.msra.mxu0 %v32984_v58  ;;  %26654 = vmatprep.mubr.msk.f32.mxu0 %vm29704_vm1, %v34802_v34 }
0x4546   :  { %28326 = vmatprep.subr.bf16.mxu0 %v34789_v61 }
0x4549   :  { %28328 = vmatpush3.bf16.msra.mxu0 %v32987_v48 }
0x454a   :  { %28329 = vmatprep.subr.bf16.mxu0 %v34789_v61 }
0x454c   :  { %26655 = vmatmul.mubr.f32.vlgmr.msra.gmra.mrb[66].mxu0 %v33319_v15 }
0x454d   :  { %28331 = vmatpush3.bf16.msra.mxu0 %v33004_v23  ;;  %26665 = vmatprep.mubr.msk.f32.mxu0 %vm29704_vm1, %v34802_v34 }
0x454e   :  { %28332 = vmatprep.subr.bf16.mxu0 %v34789_v61 }
0x4551   :  { %28334 = vmatpush3.bf16.msra.mxu0 %v33006_v62 }
0x4552   :  { %28335 = vmatprep.subr.bf16.mxu0 %v34789_v61 }
0x4554   :  { %26666 = vmatmul.mubr.f32.vlgmr.msra.gmra.mrb[66].mxu0 %v33313_v0 }
0x4555   :  { %28337 = vmatpush3.bf16.msra.mxu0 %v32984_v58  ;;  %26676 = vmatprep.mubr.msk.f32.mxu0 %vm29704_vm1, %v34802_v34 }
0x4556   :  { %28338 = vmatprep.subr.bf16.mxu0 %v34789_v61 }
0x4559   :  { %28340 = vmatpush3.bf16.msra.mxu0 %v32987_v48 }
0x455a   :  { %28377 = vmatprep.subr.bf16.mxu0 %v34789_v61 }
0x455c   :  { %26677 = vmatmul.mubr.f32.vlgmr.msra.gmra.mrb[66].mxu0 %v33313_v0 }
0x455d   :  { %28379 = vmatpush3.bf16.msra.mxu0 %v32984_v58  ;;  %26753 = vmatprep.mubr.msk.f32.mxu0 %vm29704_vm1, %v34802_v34 }
0x455e   :  { %28380 = vmatprep.subr.bf16.mxu0 %v34789_v61 }
0x4561   :  { %28382 = vmatpush3.bf16.msra.mxu0 %v32987_v48 }
0x4562   :  { %28383 = vmatprep.subr.bf16.mxu0 %v34789_v61 }
0x462f   :  { %v19082_v20 = vpop.f32.mrb[66].mxu0 }
0x4630   :  { %v19086_v53 = vadd.f32 %v19082_v20, %v32054_v1  ;;  %v26678_v28 = vpop.f32.mrb[67].mxu0  ;;  %v20168_v20 = vand.u32 4294901760, %v33434_v47 }
0x4632   :  { %v22373_v51 = vmul.f32 -1.442695, %v19086_v53  ;;  %v33455_v53 = vpack.c.bf16 %v20168_v20, %v20165_v50 }
0x4634   :  { %29589 = vpow2.f32 %v22373_v51 }
0x463e   :  { %v29590_v35 = vpop.eup %29589 }
0x463f   :  { %v19090_v57 = vadd.f32 1.0, %v29590_v35 }
0x4641   :  { %29591 = vrcp.f32 %v19090_v57 }
0x464b   :  { %v29592_v10 = vpop.eup %29591 }
0x464c   :  { %v19093_v9 = vmul.f32 2.0, %v29592_v10  ;;  %v19095_v59 = vmul.f32 %v29592_v10, %v33307_v25  ;;  %v33420_v25 = vld [vmem:[%s34335_s3 + $0x118] sm:$0xff] }
0x464d   :  { %v20162_v26 = vand.u32 4294901760, %v33420_v25 }
0x464e   :  { %v22374_v13 = vadd.f32 -1.0, %v19093_v9 }
0x464f   :  { %v33445_v29 = vpack.c.bf16 %v20162_v26, %v20159_v63 }
0x4650   :  { %19097 = vrot.lane.b32.xlu0 %v22374_v13, %s29706_s11 }
0x46c2   :  { %v19098_v17 = vpop.permute.xlu0 %19097 }
0x46c3   :  { %v19100_v39 = vmul.f32 %v29592_v10, %v19098_v17 }
0x46c5   :  { %19102 = vrot.lane.b32.xlu1 %v19100_v39, %s29707_s12 }
0x4737   :  { %v19103_v49 = vpop.permute.xlu1 %19102 }
0x4738   :  { %v33371_v45 = vadd.f32 %v19103_v49, %v19095_v59 }
0x473a   :  { %29593 = vtanh.f32 %v33371_v45 }
0x4744   :  { %v29594_v1 = vpop.eup %29593 }
0x4745   :  { %19108 = vrot.lane.b32.xlu0 %v29594_v1, %s29706_s11 }
0x47b7   :  { %v19109_v33 = vpop.permute.xlu0 %19108 }
0x47b8   :  { %v19111_v43 = vmul.f32 %v29592_v10, %v19109_v33 }
0x47ba   :  { %19113 = vrot.lane.b32.xlu1 %v19111_v43, %s29707_s12 }
0x482c   :  { %v19114_v24 = vpop.permute.xlu1 %19113 }
0x482d   :  { %v19115_v12 = vsel %vm4260_vm3, %v19114_v24, 0 }
0x482e   :  { %v33377_v60 = vand.u32 4294901760, %v19115_v12 }
0x4830   :  { %v33380_v5 = vsub.f32 %v19115_v12, %v33377_v60 }
0x4832   :  { %v33383_v7 = vand.u32 4294901760, %v33380_v5 }
0x4834   :  { %v19189_v27 = vsub.f32 %v33380_v5, %v33383_v7 }
0x4836   :  { %v19190_v2 = vand.u32 4294901760, %v19189_v27 }
0x4838   :  { %26688 = vmatmul.mubr.f32.vlgmr.msra.gmra.mrb[84].mxu1 %v19190_v2 }
0x4839   :  { %28349 = vmatpush3.bf16.msra.mxu1 %v32996_v37  ;;  %26698 = vmatprep.mubr.msk.f32.mxu1 %vm29704_vm1, %v34802_v34 }
0x483a   :  { %28350 = vmatprep.subr.bf16.mxu1 %v34789_v61 }
0x483d   :  { %28352 = vmatpush3.bf16.msra.mxu1 %v32998_v4 }
0x483e   :  { %28353 = vmatprep.subr.bf16.mxu1 %v34789_v61 }
0x4840   :  { %26699 = vmatmul.mubr.f32.vlgmr.msra.gmra.mrb[84].mxu1 %v33377_v60 }
0x4841   :  { %28355 = vmatpush3.bf16.msra.mxu1 %v33000_v16  ;;  %26709 = vmatprep.mubr.msk.f32.mxu1 %vm29704_vm1, %v34802_v34 }
0x4842   :  { %28356 = vmatprep.subr.bf16.mxu1 %v34789_v61 }
0x4845   :  { %28358 = vmatpush3.bf16.msra.mxu1 %v33002_v30 }
0x4846   :  { %28359 = vmatprep.subr.bf16.mxu1 %v34789_v61 }
0x4848   :  { %26710 = vmatmul.mubr.f32.vlgmr.msra.gmra.mrb[84].mxu1 %v33380_v5 }
0x4849   :  { %28361 = vmatpush3.bf16.msra.mxu1 %v32984_v58  ;;  %26720 = vmatprep.mubr.msk.f32.mxu1 %vm29704_vm1, %v34802_v34 }
0x484a   :  { %28362 = vmatprep.subr.bf16.mxu1 %v34789_v61 }
0x484d   :  { %28364 = vmatpush3.bf16.msra.mxu1 %v32987_v48 }
0x484e   :  { %28365 = vmatprep.subr.bf16.mxu1 %v34789_v61 }
0x4850   :  { %26721 = vmatmul.mubr.f32.vlgmr.msra.gmra.mrb[84].mxu1 %v33383_v7 }
0x4851   :  { %28367 = vmatpush3.bf16.msra.mxu1 %v33004_v23  ;;  %26731 = vmatprep.mubr.msk.f32.mxu1 %vm29704_vm1, %v34802_v34 }
0x4852   :  { %28368 = vmatprep.subr.bf16.mxu1 %v34789_v61 }
0x4855   :  { %28370 = vmatpush3.bf16.msra.mxu1 %v33006_v62 }
0x4856   :  { %28371 = vmatprep.subr.bf16.mxu1 %v34789_v61 }
0x4858   :  { %26732 = vmatmul.mubr.f32.vlgmr.msra.gmra.mrb[84].mxu1 %v33377_v60 }
0x4859   :  { %28373 = vmatpush3.bf16.msra.mxu1 %v32984_v58  ;;  %26742 = vmatprep.mubr.msk.f32.mxu1 %vm29704_vm1, %v34802_v34 }
0x485a   :  { %28374 = vmatprep.subr.bf16.mxu1 %v34789_v61 }
0x485d   :  { %28376 = vmatpush3.bf16.msra.mxu1 %v32987_v48 }
0x485e   :  { %28414 = vmatprep.subr.bf16.mxu1 %v33445_v29 }
0x4860   :  { %26743 = vmatmul.mubr.f32.vlgmr.msra.gmra.mrb[84].mxu1 %v33377_v60 }
0x4861   :  { %28416 = vmatpush3.bf16.msra.mxu1 %v33445_v29  ;;  %26819 = vmatprep.mubr.f32.mxu1 %v33067_v14 }
0x4862   :  { %28418 = vmatprep.subr.bf16.mxu1 %v33455_v53 }
0x4865   :  { %28420 = vmatpush3.bf16.msra.mxu1 %v33455_v53 }
0x4868   :  { %26820 = vmatmul.mubr.f32.vlgmr.msra.gmra.mrb[86].mxu1 %v33131_v18 }
0x4869   :  { %26822 = vmatprep.mubr.f32.mxu1 %v33195_v40 }
0x486c   :  { %26823 = vmatmul.mubr.f32.gmra.mrb[88].mxu1 %v33259_v11 }
0x486d   :  { %26825 = vmatprep.mubr.f32.mxu1 %v33323_v8 }
0x4870   :  { %26826 = vmatmul.mubr.f32.gmra.mrb[90].mxu1 %v19190_v2 }
0x4933   :  { %v19598_v28 = vpop.f32.mrb[84].mxu1 }
0x4934   :  { %v19602_v51 = vadd.f32 %v19598_v28, %v32060_v32  ;;  %v26744_v35 = vpop.f32.mrb[85].mxu1 }
0x4936   :  { %v22375_v57 = vmul.f32 -1.442695, %v19602_v51 }
0x4938   :  { %29595 = vpow2.f32 %v22375_v57  ;;  %v33528_v57 = vsub.f32 %v33420_v25, %v20162_v26  ;;  %v20323_v25 = vsub.f32 %v33429_v38, %v20165_v50  ;;  %v20330_v26 = vsub.f32 %v33434_v47, %v20168_v20  ;;  %v33551_v47 = vld [vmem:[%s34335_s3 + $0x138] sm:$0xff]  ;;  %v33556_v20 = vld [vmem:[%s34335_s3 + $0x140] sm:$0xff] }
0x493a   :  { %v28433_v50 = vpack.c.bf16 %v20330_v26, %v20323_v25 }
0x4942   :  { %v29596_v14 = vpop.eup %29595 }
0x4943   :  { %v19606_v10 = vadd.f32 1.0, %v29596_v14 }
0x4945   :  { %29597 = vrcp.f32 %v19606_v10  ;;  %v20317_v10 = vand.u32 4294901760, %v33528_v57 }
0x494f   :  { %v29598_v9 = vpop.eup %29597 }
0x4950   :  { %v19609_v13 = vmul.f32 2.0, %v29598_v9  ;;  %v19611_v11 = vmul.f32 %v29598_v9, %v33371_v45 }
0x4952   :  { %v22376_v17 = vadd.f32 -1.0, %v19609_v13  ;;  %v20318_v13 = vsub.f32 %v33528_v57, %v20317_v10 }
0x4954   :  { %19613 = vrot.lane.b32.xlu0 %v22376_v17, %s29706_s11 }
0x49c6   :  { %v19614_v18 = vpop.permute.xlu0 %19613 }
0x49c7   :  { %v19616_v40 = vmul.f32 %v29598_v9, %v19614_v18 }
0x49c9   :  { %19618 = vrot.lane.b32.xlu1 %v19616_v40, %s29707_s12  ;;  %v20324_v40 = vand.u32 4294901760, %v20323_v25 }
0x4a3b   :  { %v19619_v8 = vpop.permute.xlu1 %19618 }
0x4a3c   :  { %v19621_v39 = vadd.f32 %v19619_v8, %v19611_v11  ;;  %v20331_v11 = vand.u32 4294901760, %v20330_v26  ;;  %v20325_v8 = vsub.f32 %v20323_v25, %v20324_v40 }
0x4a3e   :  { %29599 = vtanh.f32 %v19621_v39 }
0x4a48   :  { %v29600_v32 = vpop.eup %29599 }
0x4a49   :  { %19624 = vrot.lane.b32.xlu0 %v29600_v32, %s29706_s11  ;;  %v20326_v32 = vand.u32 4294901760, %v20325_v8 }
0x4abb   :  { %v19625_v59 = vpop.permute.xlu0 %19624 }
0x4abc   :  { %v19627_v49 = vmul.f32 %v29598_v9, %v19625_v59 }
0x4abe   :  { %19629 = vrot.lane.b32.xlu1 %v19627_v49, %s29707_s12 }
0x4b30   :  { %v19630_v1 = vpop.permute.xlu1 %19629 }
0x4b31   :  { %v19631_v33 = vsel %vm4260_vm3, %v19630_v1, 0 }
0x4b32   :  { %v33473_v43 = vand.u32 4294901760, %v19631_v33 }
0x4b34   :  { %v33476_v24 = vsub.f32 %v19631_v33, %v33473_v43 }
0x4b36   :  { %v33479_v45 = vand.u32 4294901760, %v33476_v24 }
0x4b38   :  { %v19705_v12 = vsub.f32 %v33476_v24, %v33479_v45 }
0x4b3a   :  { %v19706_v27 = vand.u32 4294901760, %v19705_v12  ;;  %v28449_v12 = vpack.c.bf16 %v20331_v11, %v20324_v40 }
0x4b3c   :  { %26754 = vmatmul.mubr.f32.vlgmr.msra.gmra.mrb[68].mxu0 %v19706_v27  ;;  %26828 = vmatprep.mubr.f32.mxu1 %v19706_v27  ;;  %v33561_v27 = vld [vmem:[%s34335_s3 + $0x148] sm:$0xff] }
0x4b3d   :  { %28385 = vmatpush3.bf16.msra.mxu0 %v32996_v37  ;;  %26764 = vmatprep.mubr.msk.f32.mxu0 %vm29704_vm1, %v34802_v34 }
0x4b3e   :  { %28386 = vmatprep.subr.bf16.mxu0 %v34789_v61 }
0x4b41   :  { %28388 = vmatpush3.bf16.msra.mxu0 %v32998_v4 }
0x4b42   :  { %28389 = vmatprep.subr.bf16.mxu0 %v34789_v61 }
0x4b44   :  { %26765 = vmatmul.mubr.f32.vlgmr.msra.gmra.mrb[68].mxu0 %v33473_v43 }
0x4b45   :  { %28391 = vmatpush3.bf16.msra.mxu0 %v33000_v16  ;;  %26775 = vmatprep.mubr.msk.f32.mxu0 %vm29704_vm1, %v34802_v34 }
0x4b46   :  { %28392 = vmatprep.subr.bf16.mxu0 %v34789_v61 }
0x4b49   :  { %28394 = vmatpush3.bf16.msra.mxu0 %v33002_v30 }
0x4b4a   :  { %28395 = vmatprep.subr.bf16.mxu0 %v34789_v61 }
0x4b4c   :  { %26776 = vmatmul.mubr.f32.vlgmr.msra.gmra.mrb[68].mxu0 %v33476_v24 }
0x4b4d   :  { %28397 = vmatpush3.bf16.msra.mxu0 %v32984_v58  ;;  %26786 = vmatprep.mubr.msk.f32.mxu0 %vm29704_vm1, %v34802_v34 }
0x4b4e   :  { %28398 = vmatprep.subr.bf16.mxu0 %v34789_v61 }
0x4b51   :  { %28400 = vmatpush3.bf16.msra.mxu0 %v32987_v48 }
0x4b52   :  { %28401 = vmatprep.subr.bf16.mxu0 %v34789_v61 }
0x4b54   :  { %26787 = vmatmul.mubr.f32.vlgmr.msra.gmra.mrb[68].mxu0 %v33479_v45 }
0x4b55   :  { %28403 = vmatpush3.bf16.msra.mxu0 %v33004_v23  ;;  %26797 = vmatprep.mubr.msk.f32.mxu0 %vm29704_vm1, %v34802_v34 }
0x4b56   :  { %28404 = vmatprep.subr.bf16.mxu0 %v34789_v61 }
0x4b59   :  { %28406 = vmatpush3.bf16.msra.mxu0 %v33006_v62 }
0x4b5a   :  { %28407 = vmatprep.subr.bf16.mxu0 %v34789_v61 }
0x4b5c   :  { %26798 = vmatmul.mubr.f32.vlgmr.msra.gmra.mrb[68].mxu0 %v33473_v43 }
0x4b5d   :  { %28409 = vmatpush3.bf16.msra.mxu0 %v32984_v58  ;;  %26808 = vmatprep.mubr.msk.f32.mxu0 %vm29704_vm1, %v34802_v34 }
0x4b5e   :  { %28410 = vmatprep.subr.bf16.mxu0 %v34789_v61 }
0x4b61   :  { %28412 = vmatpush3.bf16.msra.mxu0 %v32987_v48 }
0x4b64   :  { %26809 = vmatmul.mubr.f32.vlgmr.msra.gmra.mrb[68].mxu0 %v33473_v43 }
0x4c37   :  { %v20114_v37 = vpop.f32.mrb[68].mxu0 }
0x4c38   :  { %v20118_v4 = vadd.f32 %v20114_v37, %v32058_v44  ;;  %v26810_v16 = vpop.f32.mrb[69].mxu0  ;;  %v33523_v44 = vsub.f32 %v33415_v56, %v20159_v63  ;;  %v20319_v56 = vand.u32 4294901760, %v20318_v13  ;;  %v20996_v37 = vand.u32 4294901760, %v33551_v47 }
0x4c39   :  { %v33568_v16 = vld [vmem:[%s34335_s3 + $0x150] sm:$0xff] }
0x4c3a   :  { %v22377_v30 = vmul.f32 -1.442695, %v20118_v4  ;;  %v20310_v14 = vand.u32 4294901760, %v33523_v44  ;;  %v28429_v38 = vpack.c.bf16 %v33528_v57, %v33523_v44  ;;  %v20999_v4 = vand.u32 4294901760, %v33556_v20 }
0x4c3c   :  { %29601 = vpow2.f32 %v22377_v30  ;;  %v20311_v9 = vsub.f32 %v33523_v44, %v20310_v14  ;;  %v21002_v30 = vand.u32 4294901760, %v33561_v27 }
0x4c3e   :  { %v20312_v17 = vand.u32 4294901760, %v20311_v9 }
0x4c40   :  { %v28421_v63 = vpack.c.bf16 %v20319_v56, %v20312_v17 }
0x4c42   :  { %28422 = vmatprep.subr.bf16.mxu1 %v28421_v63 }
0x4c43   :  { %28424 = vmatpush3.bf16.msra.mxu1 %v28421_v63 }
0x4c46   :  { %v29602_v23 = vpop.eup %29601 }
0x4c47   :  { %v20122_v62 = vadd.f32 1.0, %v29602_v23  ;;  %v33574_v23 = vld [vmem:[%s34335_s3 + $0x158] sm:$0xff] }
0x4c49   :  { %29603 = vrcp.f32 %v20122_v62  ;;  %v33579_v62 = vld [vmem:[%s34335_s3 + $0x160] sm:$0xff] }
0x4c53   :  { %v29604_v2 = vpop.eup %29603 }
0x4c54   :  { %v20125_v58 = vmul.f32 2.0, %v29604_v2  ;;  %v20127_v48 = vmul.f32 %v29604_v2, %v19621_v39  ;;  %v20332_v39 = vsub.f32 %v20330_v26, %v20331_v11 }
0x4c56   :  { %v22378_v28 = vadd.f32 -1.0, %v20125_v58  ;;  %v20333_v59 = vand.u32 4294901760, %v20332_v39  ;;  %v33586_v58 = vpack.c.bf16 %v20999_v4, %v20996_v37 }
0x4c58   :  { %20129 = vrot.lane.b32.xlu0 %v22378_v28, %s29706_s11  ;;  %v28425_v33 = vpack.c.bf16 %v20333_v59, %v20326_v32  ;;  %v21008_v28 = vand.u32 4294901760, %v33574_v23  ;;  %28462 = vmatprep.subr.bf16.mxu0 %v33586_v58 }
0x4c59   :  { %28464 = vmatpush3.bf16.msra.mxu0 %v33586_v58 }
0x4c5a   :  { %28426 = vmatprep.subr.bf16.mxu1 %v28425_v33 }
0x4c5b   :  { %28428 = vmatpush3.bf16.msra.mxu1 %v28425_v33 }
0x4c5c   :  { %28430 = vmatprep.subr.bf16.mxu1 %v28429_v38 }
0x4cca   :  { %v20130_v34 = vpop.permute.xlu0 %20129 }
0x4ccb   :  { %v20132_v61 = vmul.f32 %v29604_v2, %v20130_v34  ;;  %v21011_v34 = vand.u32 4294901760, %v33579_v62 }
0x4ccd   :  { %20134 = vrot.lane.b32.xlu1 %v20132_v61, %s29707_s12 }
0x4d3f   :  { %v20135_v51 = vpop.permute.xlu1 %20134 }
0x4d40   :  { %v20137_v35 = vadd.f32 %v20135_v51, %v20127_v48  ;;  %v33603_v48 = vpack.c.bf16 %v21011_v34, %v21008_v28 }
0x4d42   :  { %29605 = vtanh.f32 %v20137_v35 }
0x4d4c   :  { %v29606_v18 = vpop.eup %29605 }
0x4d4d   :  { %20140 = vrot.lane.b32.xlu0 %v29606_v18, %s29706_s11  ;;  %v28445_v18 = vpack.c.bf16 %v20317_v10, %v20310_v14 }
0x4dbf   :  { %v20141_v49 = vpop.permute.xlu0 %20140 }
0x4dc0   :  { %v20143_v1 = vmul.f32 %v29604_v2, %v20141_v49  ;;  %v21005_v2 = vand.u32 4294901760, %v33568_v16 }
0x4dc2   :  { %20154 = vrot.lane.b32.xlu1 %v20143_v1, %s29707_s12  ;;  %v33594_v61 = vpack.c.bf16 %v21005_v2, %v21002_v30 }
0x4dc4   :  { %28466 = vmatprep.subr.bf16.mxu0 %v33594_v61 }
0x4dc5   :  { %28468 = vmatpush3.bf16.msra.mxu0 %v33594_v61 }
0x4dc6   :  { %28470 = vmatprep.subr.bf16.mxu0 %v33603_v48 }
0x4dc9   :  { %28472 = vmatpush3.bf16.msra.mxu0 %v33603_v48 }
0x4e34   :  { %v20155_v51 = vpop.permute.xlu1 %20154 }
0x4e35   :  { %v20156_v35 = vsel %vm4260_vm3, %v20155_v51, 0  ;;  %vm22310_vm3 = vcmask 97280  }
0x4e36   :  { %v20297_v9 = vand.u32 4294901760, %v20156_v35 }
0x4e38   :  { %v20298_v13 = vsub.f32 %v20156_v35, %v20297_v9 }
0x4e3a   :  { %v20299_v17 = vand.u32 4294901760, %v20298_v13 }
0x4e3c   :  { %v20300_v56 = vsub.f32 %v20298_v13, %v20299_v17 }
0x4e3e   :  { %v20301_v63 = vand.u32 4294901760, %v20300_v56 }
0x4e40   :  { %26829 = vmatmul.mubr.f32.gmra.mrb[92].mxu1 %v20301_v63 }
0x4e41   :  { %26839 = vmatprep.mubr.f32.mxu1 %v33057_v21 }
0x4e44   :  { %26840 = vmatmul.mubr.f32.vlgmr.msra.gmra.mrb[86].mxu1 %v33121_v42 }
0x4e45   :  { %26842 = vmatprep.mubr.f32.mxu1 %v33185_v19  ;;  %28432 = vmatpush3.bf16.msra.mxu1 %v28429_v38 }
0x4e46   :  { %28434 = vmatprep.subr.bf16.mxu1 %v28433_v50 }
0x4e48   :  { %26843 = vmatmul.mubr.f32.gmra.mrb[88].mxu1 %v33249_v52 }
0x4e49   :  { %26845 = vmatprep.mubr.f32.mxu1 %v33313_v0  ;;  %28436 = vmatpush3.bf16.msra.mxu1 %v28433_v50 }
0x4e4a   :  { %28438 = vmatprep.subr.bf16.mxu1 %v33445_v29 }
0x4e4c   :  { %26846 = vmatmul.mubr.f32.gmra.mrb[90].mxu1 %v33377_v60 }
0x4e4d   :  { %26848 = vmatprep.mubr.f32.mxu1 %v33473_v43 }
0x4e50   :  { %26849 = vmatmul.mubr.f32.gmra.mrb[92].mxu1 %v20297_v9 }
0x4e51   :  { %26859 = vmatprep.mubr.f32.mxu1 %v33060_v46  ;;  %v20958_v46 = vld [vmem:[%s34335_s3 + $0x168] sm:$0xff] }
0x4e54   :  { %26860 = vmatmul.mubr.f32.vlgmr.msra.gmra.mrb[86].mxu1 %v33124_v54 }
0x4e55   :  { %26862 = vmatprep.mubr.f32.mxu1 %v33188_v6  ;;  %28440 = vmatpush3.bf16.msra.mxu1 %v33445_v29 }
0x4e56   :  { %28442 = vmatprep.subr.bf16.mxu1 %v33455_v53 }
0x4e58   :  { %26863 = vmatmul.mubr.f32.gmra.mrb[88].mxu1 %v33252_v31  ;;  %v20962_v31 = vld [vmem:[%s34335_s3 + $0x188] sm:$0xff] }
0x4e59   :  { %26865 = vmatprep.mubr.f32.mxu1 %v33316_v36  ;;  %28444 = vmatpush3.bf16.msra.mxu1 %v33455_v53 }
0x4e5a   :  { %28446 = vmatprep.subr.bf16.mxu1 %v28445_v18 }
0x4e5c   :  { %26866 = vmatmul.mubr.f32.gmra.mrb[90].mxu1 %v33380_v5 }
0x4e5d   :  { %26868 = vmatprep.mubr.f32.mxu1 %v33476_v24  ;;  %v33707_v24 = vld [vmem:[%s34335_s3 + $0x198] sm:$0xff] }
0x4e60   :  { %26869 = vmatmul.mubr.f32.gmra.mrb[92].mxu1 %v20298_v13 }
0x4e61   :  { %26879 = vmatprep.mubr.f32.mxu1 %v33063_v41  ;;  %v21014_v41 = vand.u32 4294901760, %v20958_v46 }
0x4e63   :  { %v33717_v10 = vsub.f32 %v20958_v46, %v21014_v41 }
0x4e64   :  { %26880 = vmatmul.mubr.f32.vlgmr.msra.gmra.mrb[86].mxu1 %v33127_v55  ;;  %v20960_v55 = vld [vmem:[%s34335_s3 + $0x178] sm:$0xff] }
0x4e65   :  { %26882 = vmatprep.mubr.f32.mxu1 %v33191_v22  ;;  %28448 = vmatpush3.bf16.msra.mxu1 %v28445_v18  ;;  %v21020_v6 = vand.u32 4294901760, %v20960_v55  ;;  %v34544_v26 = vand.u32 4294901760, %v33717_v10 }
0x4e66   :  { %28450 = vmatprep.subr.bf16.mxu1 %v28449_v12 }
0x4e67   :  { %v21199_v11 = vsub.f32 %v33717_v10, %v34544_v26  ;;  %v33729_v39 = vsub.f32 %v20960_v55, %v21020_v6  ;;  %v33778_v55 = vsub.f32 %v33561_v27, %v21002_v30 }
0x4e68   :  { %26883 = vmatmul.mubr.f32.gmra.mrb[88].mxu1 %v33255_v3  ;;  %v20963_v3 = vld [vmem:[%s34335_s3 + $0x190] sm:$0xff] }
0x4e69   :  { %26885 = vmatprep.mubr.f32.mxu1 %v33319_v15  ;;  %28452 = vmatpush3.bf16.msra.mxu1 %v28449_v12  ;;  %v21029_v36 = vand.u32 4294901760, %v20963_v3  ;;  %v33684_v15 = vsub.f32 %v33551_v47, %v20996_v37  ;;  %v21200_v59 = vand.u32 4294901760, %v21199_v11  ;;  %v34542_v1 = vand.u32 4294901760, %v33729_v39 }
0x4e6a   :  { %28454 = vmatprep.subr.bf16.mxu1 %v33445_v29 }
0x4e6b   :  { %v21213_v50 = vsub.f32 %v33729_v39, %v34542_v1  ;;  %v33742_v47 = vsub.f32 %v20963_v3, %v21029_v36 }
0x4e6c   :  { %26886 = vmatmul.mubr.f32.gmra.mrb[90].mxu1 %v33383_v7  ;;  %v21156_v7 = vand.u32 4294901760, %v33684_v15 }
0x4e6d   :  { %26888 = vmatprep.mubr.f32.mxu1 %v33479_v45  ;;  %v33710_v45 = vand.u32 4294901760, %v33707_v24  ;;  %v21214_v37 = vand.u32 4294901760, %v21213_v50  ;;  %v34539_v51 = vand.u32 4294901760, %v33742_v47 }
0x4e6f   :  { %v21234_v13 = vsub.f32 %v33742_v47, %v34539_v51 }
0x4e70   :  { %26889 = vmatmul.mubr.f32.gmra.mrb[92].mxu1 %v20299_v17 }
0x4e71   :  { %26899 = vmatprep.mubr.f32.mxu1 %v33057_v21  ;;  %v21235_v63 = vand.u32 4294901760, %v21234_v13 }
0x4e74   :  { %26900 = vmatmul.mubr.f32.vlgmr.msra.gmra.mrb[86].mxu1 %v33121_v42 }
0x4e75   :  { %26902 = vmatprep.mubr.f32.mxu1 %v33185_v19  ;;  %28456 = vmatpush3.bf16.msra.mxu1 %v33445_v29 }
0x4e76   :  { %28458 = vmatprep.subr.bf16.mxu1 %v33455_v53 }
0x4e78   :  { %26903 = vmatmul.mubr.f32.gmra.mrb[88].mxu1 %v33249_v52 }
0x4e79   :  { %26905 = vmatprep.mubr.f32.mxu1 %v33313_v0  ;;  %28460 = vmatpush3.bf16.msra.mxu1 %v33455_v53  ;;  %v21157_v53 = vsub.f32 %v33684_v15, %v21156_v7 }
0x4e7b   :  { %v21158_v44 = vand.u32 4294901760, %v21157_v53 }
0x4e7c   :  { %26906 = vmatmul.mubr.f32.gmra.mrb[90].mxu1 %v33377_v60 }
0x4e7d   :  { %26908 = vmatprep.mubr.f32.mxu1 %v33473_v43 }
0x4e80   :  { %26909 = vmatmul.mubr.f32.gmra.mrb[92].mxu1 %v20297_v9 }
0x4e81   :  { %26919 = vmatprep.mubr.f32.mxu1 %v33057_v21  ;;  %v20959_v21 = vld [vmem:[%s34335_s3 + $0x170] sm:$0xff] }
0x4e84   :  { %26920 = vmatmul.mubr.f32.vlgmr.msra.gmra.mrb[86].mxu1 %v33121_v42  ;;  %v21017_v42 = vand.u32 4294901760, %v20959_v21 }
0x4e85   :  { %26922 = vmatprep.mubr.f32.mxu1 %v33185_v19  ;;  %v20961_v19 = vld [vmem:[%s34335_s3 + $0x180] sm:$0xff] }
0x4e86   :  { %v33662_v54 = vpack.c.bf16 %v21017_v42, %v21014_v41  ;;  %v21023_v22 = vand.u32 4294901760, %v20961_v19  ;;  %v33719_v25 = vsub.f32 %v20959_v21, %v21017_v42 }
0x4e88   :  { %26923 = vmatmul.mubr.f32.gmra.mrb[88].mxu1 %v33249_v52  ;;  %28474 = vmatprep.subr.bf16.mxu0 %v33662_v54  ;;  %v33672_v52 = vpack.c.bf16 %v21023_v22, %v21020_v6  ;;  %v34543_v40 = vand.u32 4294901760, %v33719_v25  ;;  %v33731_v32 = vsub.f32 %v20961_v19, %v21023_v22  ;;  %v33765_v21 = vpack.c.bf16 %v33719_v25, %v33717_v10  ;;  %v22379_v6 = vld [vmem:[%s34335_s3 + $0x130] ss:$0 sm:$0xff] }
0x4e89   :  { %26925 = vmatprep.mubr.f32.mxu1 %v33313_v0  ;;  %28476 = vmatpush3.bf16.msra.mxu0 %v33662_v54  ;;  %v21026_v0 = vand.u32 4294901760, %v20962_v31  ;;  %v33783_v19 = vsub.f32 %v33568_v16, %v21005_v2  ;;  %v21170_v22 = vand.u32 4294901760, %v33778_v55  ;;  %v33798_v16 = vsub.f32 %v33579_v62, %v21011_v34 }
0x4e8a   :  { %28478 = vmatprep.subr.bf16.mxu0 %v33672_v52  ;;  %v21206_v8 = vsub.f32 %v33719_v25, %v34543_v40  ;;  %v34541_v33 = vand.u32 4294901760, %v33731_v32  ;;  %v33769_v41 = vpack.c.bf16 %v33731_v32, %v33729_v39 }
0x4e8b   :  { %v33692_v5 = vpack.c.bf16 %v21029_v36, %v21026_v0  ;;  %v33740_v12 = vsub.f32 %v20962_v31, %v21026_v0  ;;  %v21177_v31 = vand.u32 4294901760, %v33783_v19  ;;  %v33793_v0 = vsub.f32 %v33574_v23, %v21008_v28 }
0x4e8c   :  { %26926 = vmatmul.mubr.f32.gmra.mrb[90].mxu1 %v33377_v60  ;;  %v33689_v60 = vsub.f32 %v33556_v20, %v20999_v4  ;;  %v21207_v49 = vand.u32 4294901760, %v21206_v8  ;;  %v21220_v20 = vsub.f32 %v33731_v32, %v34541_v33  ;;  %v21171_v53 = vsub.f32 %v33778_v55, %v21170_v22 }
0x4e8d   :  { %26928 = vmatprep.mubr.f32.mxu1 %v33473_v43  ;;  %28480 = vmatpush3.bf16.msra.mxu0 %v33672_v52  ;;  %v34540_v4 = vand.u32 4294901760, %v33740_v12  ;;  %v33773_v42 = vpack.c.bf16 %v33742_v47, %v33740_v12  ;;  %v34545_v34 = vand.u32 4294901760, %v33798_v16 }
0x4e8e   :  { %v21163_v29 = vand.u32 4294901760, %v33689_v60  ;;  %28482 = vmatprep.subr.bf16.mxu0 %v33692_v5  ;;  %v33735_v38 = vpack.c.bf16 %v21207_v49, %v21200_v59  ;;  %v21221_v35 = vand.u32 4294901760, %v21220_v20  ;;  %v33761_v46 = vpack.c.bf16 %v33689_v60, %v33684_v15 }
0x4e8f   :  { %v34805_v15 = vand.u32 4294901760, %v33793_v0 }
0x4e90   :  { %26929 = vmatmul.mubr.f32.gmra.mrb[92].mxu1 %v20297_v9  ;;  %v21164_v43 = vsub.f32 %v33689_v60, %v21163_v29  ;;  %v21227_v9 = vsub.f32 %v33740_v12, %v34540_v4  ;;  %v33755_v17 = vpack.c.bf16 %v21221_v35, %v21214_v37  ;;  %v21172_v37 = vand.u32 4294901760, %v21171_v53 }
0x4e91   :  { %28484 = vmatpush3.bf16.msra.mxu0 %v33692_v5  ;;  %v34806_v60 = vand.u32 4294901760, %v33798_v16 }
0x4e92   :  { %v21165_v57 = vand.u32 4294901760, %v21164_v43  ;;  %26955 = vmatprep.subr.mxu0 %v33710_v45  ;;  %v21228_v56 = vand.u32 4294901760, %v21227_v9  ;;  %v21178_v43 = vsub.f32 %v33783_v19, %v21177_v31 }
0x4e94   :  { %v33713_v14 = vpack.c.bf16 %v21165_v57, %v21158_v44  ;;  %v33757_v18 = vpack.c.bf16 %v21235_v63, %v21228_v56  ;;  %v34546_v44 = vand.u32 4294901760, %v33793_v0  ;;  %v21179_v35 = vand.u32 4294901760, %v21178_v43 }
0x4e95   :  { %26956 = vmatpush3.msra.mxu0 %v33710_v45 }
0x4e96   :  { %28486 = vmatprep.subr.bf16.mxu0 %v33713_v14  ;;  %v21185_v63 = vsub.f32 %v33793_v0, %v34546_v44 }
0x4e98   :  { %v21186_v4 = vand.u32 4294901760, %v21185_v63 }
0x4f57   :  { %v26921_v3 = vpop.f32.mrb[86].mxu1 }
0x4f58   :  { %v28684_v27 = vadd.f32 %v26921_v3, %v22379_v6  ;;  %v20898_v30 = vpop.f32.mrb[87].mxu1 }
0x4f59   :  { %v28685_v2 = vadd.f32 %v22379_v6, %v20898_v30 }
0x4f5a   :  { %v20945_v36 = vmax.f32 %v28684_v27, 0.0 }
0x4f5b   :  { %v20944_v23 = vmax.f32 %v28685_v2, 0.0  ;;  %v26924_v28 = vpop.f32.mrb[88].mxu1 }
0x4f5c   :  { %v20975_v57 = vsel %vm20970_vm5, %v20945_v36, 0  ;;  %v28686_v11 = vadd.f32 %v26924_v28, %v22379_v6  ;;  %v20910_v62 = vpop.f32.mrb[89].mxu1  ;;  %v21192_v36 = vsub.f32 %v33798_v16, %v34545_v34 }
0x4f5d   :  { %v33809_v8 = vand.u32 4294901760, %v20975_v57  ;;  %v20972_v59 = vsel %vm20970_vm5, %v20944_v23, 0  ;;  %v28687_v49 = vadd.f32 %v22379_v6, %v20910_v62 }
0x4f5e   :  { %v33812_v50 = vand.u32 4294901760, %v20972_v59  ;;  %v20947_v20 = vmax.f32 %v28686_v11, 0.0  ;;  %v21193_v1 = vand.u32 4294901760, %v21192_v36 }
0x4f5f   :  { %v33815_v9 = vsub.f32 %v20975_v57, %v33809_v8  ;;  %v20946_v13 = vmax.f32 %v28687_v49, 0.0  ;;  %v26927_v56 = vpop.f32.mrb[90].mxu1 }
0x4f60   :  { %v33821_v3 = vsub.f32 %v20972_v59, %v33812_v50  ;;  %v20981_v27 = vsel %vm20970_vm5, %v20947_v20, 0  ;;  %v28688_v30 = vadd.f32 %v26927_v56, %v22379_v6  ;;  %v20922_v2 = vpop.f32.mrb[91].mxu1  ;;  %v28489_v59 = vpack.c.bf16 %v21179_v35, %v21172_v37 }
0x4f61   :  { %v34547_v53 = vand.u32 4294901760, %v33815_v9  ;;  %v33828_v43 = vand.u32 4294901760, %v20981_v27  ;;  %v20978_v23 = vsel %vm20970_vm5, %v20946_v13, 0  ;;  %v28689_v28 = vadd.f32 %v22379_v6, %v20922_v2 }
0x4f62   :  { %v33831_v57 = vand.u32 4294901760, %v20978_v23  ;;  %v20949_v11 = vmax.f32 %v28688_v30, 0.0  ;;  %v21075_v62 = vand.u32 4294901760, %v33821_v3 }
0x4f63   :  { %v33835_v49 = vsub.f32 %v20981_v27, %v33828_v43  ;;  %v20948_v20 = vmax.f32 %v28689_v28, 0.0  ;;  %v26930_v56 = vpop.f32.mrb[92].mxu1  ;;  %v21086_v51 = vsub.f32 %v33815_v9, %v34547_v53 }
0x4f64   :  { %v33841_v33 = vsub.f32 %v20978_v23, %v33831_v57  ;;  %v20987_v13 = vsel %vm20970_vm5, %v20949_v11, 0  ;;  %v28690_v2 = vadd.f32 %v26930_v56, %v22379_v6  ;;  %v20934_v30 = vpop.f32.mrb[93].mxu1  ;;  %v21076_v37 = vsub.f32 %v33821_v3, %v21075_v62 }
0x4f65   :  { %v33847_v35 = vand.u32 4294901760, %v20987_v13  ;;  %v20984_v27 = vsel %vm20970_vm5, %v20948_v20, 0  ;;  %v28691_v28 = vadd.f32 %v22379_v6, %v20934_v30  ;;  %v21087_v34 = vand.u32 4294901760, %v21086_v51 }
0x4f66   :  { %v33850_v40 = vand.u32 4294901760, %v20984_v27  ;;  %v20951_v63 = vmax.f32 %v28690_v2, 0.0  ;;  %v21077_v26 = vand.u32 4294901760, %v21076_v37  ;;  %v21095_v23 = vand.u32 4294901760, %v33841_v33 }
0x4f67   :  { %v33854_v11 = vsub.f32 %v20987_v13, %v33847_v35  ;;  %v20950_v56 = vmax.f32 %v28691_v28, 0.0  ;;  %v21105_v44 = vand.u32 4294901760, %v33835_v49 }
0x4f68   :  { %v33858_v53 = vsub.f32 %v20984_v27, %v33850_v40  ;;  %v20993_v20 = vsel %vm20970_vm5, %v20951_v63, 0  ;;  %26957 = vmatprep.mubr.f32.mxu0 %v21077_v26  ;;  %v21096_v6 = vsub.f32 %v33841_v33, %v21095_v23  ;;  %v28493_v63 = vpack.c.bf16 %v21193_v1, %v21186_v4 }
0x4f69   :  { %v33864_v36 = vand.u32 4294901760, %v20993_v20  ;;  %v20990_v2 = vsel %vm20970_vm5, %v20950_v56, 0  ;;  %26958 = vmatmul.mubr.f32.vlgmr.msra.gmra.mrb[70].mxu0 %v21087_v34  ;;  %v21106_v51 = vsub.f32 %v33835_v49, %v21105_v44  ;;  %v21125_v13 = vand.u32 4294901760, %v33854_v11 }
0x4f6a   :  { %v33871_v30 = vand.u32 4294901760, %v20990_v2  ;;  %28488 = vmatpush3.bf16.msra.mxu0 %v33713_v14  ;;  %v21097_v26 = vand.u32 4294901760, %v21096_v6  ;;  %v21115_v37 = vand.u32 4294901760, %v33858_v53 }
0x4f6b   :  { %v33876_v27 = vsub.f32 %v20993_v20, %v33864_v36  ;;  %28490 = vmatprep.subr.bf16.mxu0 %v28489_v59  ;;  %v21107_v28 = vand.u32 4294901760, %v21106_v51  ;;  %v21126_v34 = vsub.f32 %v33854_v11, %v21125_v13 }
0x4f6c   :  { %v33882_v56 = vsub.f32 %v20990_v2, %v33871_v30  ;;  %26960 = vmatprep.mubr.f32.mxu0 %v21097_v26  ;;  %v21116_v14 = vsub.f32 %v33858_v53, %v21115_v37  ;;  %v21239_v2 = vsub.f32 %v33707_v24, %v33710_v45 }
0x4f6d   :  { %26961 = vmatmul.mubr.f32.gmra.mrb[72].mxu0 %v21107_v28  ;;  %v21145_v6 = vand.u32 4294901760, %v33876_v27  ;;  %v21127_v1 = vand.u32 4294901760, %v21126_v34  ;;  %v28513_v34 = vpack.c.bf16 %v33783_v19, %v33778_v55 }
0x4f6e   :  { %28492 = vmatpush3.bf16.msra.mxu0 %v28489_v59  ;;  %v21117_v20 = vand.u32 4294901760, %v21116_v14  ;;  %v21135_v51 = vand.u32 4294901760, %v33882_v56  ;;  %v33898_v14 = vand.u32 4294901760, %v21239_v2 }
0x4f6f   :  { %28494 = vmatprep.subr.bf16.mxu0 %v28493_v63  ;;  %v21146_v4 = vsub.f32 %v33876_v27, %v21145_v6 }
0x4f70   :  { %26963 = vmatprep.mubr.f32.mxu0 %v21117_v20  ;;  %v21136_v26 = vsub.f32 %v33882_v56, %v21135_v51  ;;  %v21241_v24 = vsub.f32 %v21239_v2, %v33898_v14 }
0x4f71   :  { %26964 = vmatmul.mubr.f32.gmra.mrb[74].mxu0 %v21127_v1  ;;  %v21147_v28 = vand.u32 4294901760, %v21146_v4 }
0x4f72   :  { %28496 = vmatpush3.bf16.msra.mxu0 %v28493_v63  ;;  %v21137_v59 = vand.u32 4294901760, %v21136_v26  ;;  %v21242_v63 = vand.u32 4294901760, %v21241_v24 }
0x4f73   :  { %28498 = vmatprep.subr.bf16.mxu0 %v33735_v38 }
0x4f74   :  { %26966 = vmatprep.mubr.f32.mxu0 %v21137_v59 }
0x4f75   :  { %26967 = vmatmul.mubr.f32.gmra.mrb[76].mxu0 %v21147_v28 }
0x4f76   :  { %28500 = vmatpush3.bf16.msra.mxu0 %v33735_v38  ;;  %26995 = vmatprep.mubr.f32.mxu0 %v33812_v50  ;;  %v28517_v38 = vpack.c.bf16 %v33798_v16, %v33793_v0 }
0x4f77   :  { %28502 = vmatprep.subr.bf16.mxu0 %v33755_v17 }
0x4f7a   :  { %28504 = vmatpush3.bf16.msra.mxu0 %v33755_v17  ;;  %v28557_v17 = vpack.c.bf16 %v21163_v29, %v21156_v7  ;;  %v28565_v7 = vpack.c.bf16 %v34806_v60, %v34805_v15  ;;  %v34807_v29 = vand.u32 4294901760, %v33717_v10  ;;  %v34811_v10 = vand.u32 4294901760, %v33740_v12 }
0x4f7b   :  { %28506 = vmatprep.subr.bf16.mxu0 %v33757_v18 }
0x4f7e   :  { %28508 = vmatpush3.bf16.msra.mxu0 %v33757_v18  ;;  %v28561_v18 = vpack.c.bf16 %v21177_v31, %v21170_v22 }
0x4f7f   :  { %26993 = vmatprep.subr.mxu0 %v21242_v63 }
0x4f82   :  { %26994 = vmatpush3.msra.mxu0 %v21242_v63 }
0x4f83   :  { %26996 = vmatmul.mubr.f32.vlgmr.msra.gmra.mrb[70].mxu0 %v33809_v8  ;;  %28510 = vmatprep.subr.bf16.mxu0 %v33761_v46 }
0x4f84   :  { %26998 = vmatprep.mubr.f32.mxu0 %v33831_v57  ;;  %28512 = vmatpush3.bf16.msra.mxu0 %v33761_v46  ;;  %v34804_v46 = vand.u32 4294901760, %v33815_v9 }
0x4f85   :  { %28514 = vmatprep.subr.bf16.mxu0 %v28513_v34 }
0x4f87   :  { %26999 = vmatmul.mubr.f32.gmra.mrb[72].mxu0 %v33828_v43 }
0x4f88   :  { %27001 = vmatprep.mubr.f32.mxu0 %v33850_v40  ;;  %28516 = vmatpush3.bf16.msra.mxu0 %v28513_v34 }
0x4f89   :  { %28518 = vmatprep.subr.bf16.mxu0 %v28517_v38 }
0x4f8b   :  { %27002 = vmatmul.mubr.f32.gmra.mrb[74].mxu0 %v33847_v35 }
0x4f8c   :  { %27004 = vmatprep.mubr.f32.mxu0 %v33871_v30  ;;  %28520 = vmatpush3.bf16.msra.mxu0 %v28517_v38 }
0x4f8d   :  { %28522 = vmatprep.subr.bf16.mxu0 %v33765_v21 }
0x4f8f   :  { %27005 = vmatmul.mubr.f32.gmra.mrb[76].mxu0 %v33864_v36 }
0x4f90   :  { %28524 = vmatpush3.bf16.msra.mxu0 %v33765_v21  ;;  %27033 = vmatprep.mubr.f32.mxu0 %v33821_v3 }
0x4f91   :  { %28526 = vmatprep.subr.bf16.mxu0 %v33769_v41 }
0x4f94   :  { %28528 = vmatpush3.bf16.msra.mxu0 %v33769_v41  ;;  %v34809_v41 = vand.u32 4294901760, %v33729_v39 }
0x4f95   :  { %28530 = vmatprep.subr.bf16.mxu0 %v33773_v42 }
0x4f98   :  { %28532 = vmatpush3.bf16.msra.mxu0 %v33773_v42  ;;  %v34810_v42 = vand.u32 4294901760, %v33731_v32 }
0x4f99   :  { %27031 = vmatprep.subr.mxu0 %v21239_v2 }
0x4f9a   :  { %v28573_v55 = vpack.c.bf16 %v34810_v42, %v34809_v41 }
0x4f9c   :  { %27032 = vmatpush3.msra.mxu0 %v21239_v2 }
0x4f9d   :  { %27034 = vmatmul.mubr.f32.vlgmr.msra.gmra.mrb[70].mxu0 %v33815_v9  ;;  %28534 = vmatprep.subr.bf16.mxu0 %v33586_v58 }
0x4f9e   :  { %27036 = vmatprep.mubr.f32.mxu0 %v33841_v33  ;;  %28536 = vmatpush3.bf16.msra.mxu0 %v33586_v58  ;;  %v34808_v33 = vand.u32 4294901760, %v33719_v25  ;;  %v34812_v25 = vand.u32 4294901760, %v33742_v47 }
0x4f9f   :  { %28538 = vmatprep.subr.bf16.mxu0 %v33594_v61 }
0x4fa0   :  { %v28569_v21 = vpack.c.bf16 %v34808_v33, %v34807_v29  ;;  %v28577_v19 = vpack.c.bf16 %v34812_v25, %v34811_v10 }
0x4fa1   :  { %27037 = vmatmul.mubr.f32.gmra.mrb[72].mxu0 %v33835_v49 }
0x4fa2   :  { %27039 = vmatprep.mubr.f32.mxu0 %v33858_v53  ;;  %28540 = vmatpush3.bf16.msra.mxu0 %v33594_v61 }
0x4fa3   :  { %28542 = vmatprep.subr.bf16.mxu0 %v33603_v48 }
0x4fa5   :  { %27040 = vmatmul.mubr.f32.gmra.mrb[74].mxu0 %v33854_v11 }
0x4fa6   :  { %27042 = vmatprep.mubr.f32.mxu0 %v33882_v56  ;;  %28544 = vmatpush3.bf16.msra.mxu0 %v33603_v48 }
0x4fa7   :  { %28546 = vmatprep.subr.bf16.mxu0 %v33662_v54 }
0x4fa9   :  { %27043 = vmatmul.mubr.f32.gmra.mrb[76].mxu0 %v33876_v27 }
0x4faa   :  { %28548 = vmatpush3.bf16.msra.mxu0 %v33662_v54  ;;  %27071 = vmatprep.mubr.f32.mxu0 %v21075_v62 }
0x4fab   :  { %28550 = vmatprep.subr.bf16.mxu0 %v33672_v52 }
0x4fae   :  { %28552 = vmatpush3.bf16.msra.mxu0 %v33672_v52 }
0x4faf   :  { %28554 = vmatprep.subr.bf16.mxu0 %v33692_v5 }
0x4fb2   :  { %28556 = vmatpush3.bf16.msra.mxu0 %v33692_v5 }
0x4fb3   :  { %27069 = vmatprep.subr.mxu0 %v33710_v45 }
0x4fb6   :  { %27070 = vmatpush3.msra.mxu0 %v33710_v45 }
0x4fb7   :  { %27072 = vmatmul.mubr.f32.vlgmr.msra.gmra.mrb[70].mxu0 %v34804_v46  ;;  %28558 = vmatprep.subr.bf16.mxu0 %v28557_v17 }
0x4fb8   :  { %27074 = vmatprep.mubr.f32.mxu0 %v21095_v23  ;;  %28560 = vmatpush3.bf16.msra.mxu0 %v28557_v17 }
0x4fb9   :  { %28562 = vmatprep.subr.bf16.mxu0 %v28561_v18 }
0x4fbb   :  { %27075 = vmatmul.mubr.f32.gmra.mrb[72].mxu0 %v21105_v44 }
0x4fbc   :  { %27077 = vmatprep.mubr.f32.mxu0 %v21115_v37  ;;  %28564 = vmatpush3.bf16.msra.mxu0 %v28561_v18 }
0x4fbd   :  { %28566 = vmatprep.subr.bf16.mxu0 %v28565_v7 }
0x4fbf   :  { %27078 = vmatmul.mubr.f32.gmra.mrb[74].mxu0 %v21125_v13 }
0x4fc0   :  { %27080 = vmatprep.mubr.f32.mxu0 %v21135_v51  ;;  %28568 = vmatpush3.bf16.msra.mxu0 %v28565_v7 }
0x4fc1   :  { %28570 = vmatprep.subr.bf16.mxu0 %v28569_v21 }
0x4fc3   :  { %27081 = vmatmul.mubr.f32.gmra.mrb[76].mxu0 %v21145_v6 }
0x4fc4   :  { %28572 = vmatpush3.bf16.msra.mxu0 %v28569_v21  ;;  %27109 = vmatprep.mubr.f32.mxu0 %v33812_v50 }
0x4fc5   :  { %28574 = vmatprep.subr.bf16.mxu0 %v28573_v55 }
0x4fc8   :  { %28576 = vmatpush3.bf16.msra.mxu0 %v28573_v55 }
0x4fc9   :  { %28578 = vmatprep.subr.bf16.mxu0 %v28577_v19 }
0x4fcc   :  { %28580 = vmatpush3.bf16.msra.mxu0 %v28577_v19 }
0x4fcd   :  { %27107 = vmatprep.subr.mxu0 %v33898_v14 }
0x4fd0   :  { %27108 = vmatpush3.msra.mxu0 %v33898_v14 }
0x4fd1   :  { %27110 = vmatmul.mubr.f32.vlgmr.msra.gmra.mrb[70].mxu0 %v33809_v8  ;;  %28582 = vmatprep.subr.bf16.mxu0 %v33586_v58 }
0x4fd2   :  { %27112 = vmatprep.mubr.f32.mxu0 %v33831_v57  ;;  %28584 = vmatpush3.bf16.msra.mxu0 %v33586_v58  ;;  %v22380_v58 = vld [vmem:[%s34335_s3 + $0x1a0] ss:$0 sm:$0xff]  ;;  %s29709_s3 = smov 119  }
0x4fd3   :  { %28586 = vmatprep.subr.bf16.mxu0 %v33594_v61 }
0x4fd5   :  { %27113 = vmatmul.mubr.f32.gmra.mrb[72].mxu0 %v33828_v43 }
0x4fd6   :  { %27115 = vmatprep.mubr.f32.mxu0 %v33850_v40  ;;  %28588 = vmatpush3.bf16.msra.mxu0 %v33594_v61 }
0x4fd7   :  { %28590 = vmatprep.subr.bf16.mxu0 %v33603_v48 }
0x4fd9   :  { %27116 = vmatmul.mubr.f32.gmra.mrb[74].mxu0 %v33847_v35 }
0x4fda   :  { %27118 = vmatprep.mubr.f32.mxu0 %v33871_v30  ;;  %28592 = vmatpush3.bf16.msra.mxu0 %v33603_v48 }
0x4fdb   :  { %28594 = vmatprep.subr.bf16.mxu0 %v33662_v54 }
0x4fdd   :  { %27119 = vmatmul.mubr.f32.gmra.mrb[76].mxu0 %v33864_v36 }
0x4fde   :  { %28596 = vmatpush3.bf16.msra.mxu0 %v33662_v54  ;;  %27147 = vmatprep.mubr.f32.mxu0 %v33812_v50 }
0x4fdf   :  { %28598 = vmatprep.subr.bf16.mxu0 %v33672_v52 }
0x4fe2   :  { %28600 = vmatpush3.bf16.msra.mxu0 %v33672_v52 }
0x4fe3   :  { %28602 = vmatprep.subr.bf16.mxu0 %v33692_v5 }
0x4fe6   :  { %28604 = vmatpush3.bf16.msra.mxu0 %v33692_v5 }
0x4fe7   :  { %27145 = vmatprep.subr.mxu0 %v33710_v45 }
0x4fea   :  { %27146 = vmatpush3.msra.mxu0 %v33710_v45 }
0x4feb   :  { %27148 = vmatmul.mubr.f32.vlgmr.msra.gmra.mrb[70].mxu0 %v33809_v8 }
0x4fec   :  { %27150 = vmatprep.mubr.f32.mxu0 %v33831_v57 }
0x4fef   :  { %27151 = vmatmul.mubr.f32.gmra.mrb[72].mxu0 %v33828_v43 }
0x4ff0   :  { %27153 = vmatprep.mubr.f32.mxu0 %v33850_v40 }
0x4ff3   :  { %27154 = vmatmul.mubr.f32.gmra.mrb[74].mxu0 %v33847_v35 }
0x4ff4   :  { %27156 = vmatprep.mubr.f32.mxu0 %v33871_v30 }
0x4ff7   :  { %27157 = vmatmul.mubr.f32.gmra.mrb[76].mxu0 %v33864_v36 }
0x50be   :  { %v27149_v61 = vpop.f32.mrb[70].mxu0 }
0x50bf   :  { %v34023_v48 = vadd.f32 %v27149_v61, %v22380_v58  ;;  %v21852_v54 = vpop.f32.mrb[71].mxu0 }
0x50c0   :  { %v34025_v52 = vadd.f32 %v22380_v58, %v21852_v54 }
0x50c1   :  { %v22078_v5 = vsel %vm22074_vm6, %v34023_v48, -inf }
0x50c2   :  { %22079 = vmax.xlane.f32.xlu1 %v22078_v5  ;;  %v27152_v45 = vpop.f32.mrb[72].mxu0  ;;  %v22075_v40 = vsel %vm22074_vm6, %v34025_v52, -inf }
0x50c3   :  { %v21864_v39 = vpop.f32.mrb[73].mxu0  ;;  %22076 = vmax.xlane.f32.xlu0 %v22075_v40  ;;  %v34031_v32 = vadd.f32 %v27152_v45, %v22380_v58 }
0x50c4   :  { %v34037_v44 = vadd.f32 %v22380_v58, %v21864_v39 }
0x50c5   :  { %v22084_v22 = vsel %vm22074_vm6, %v34031_v32, -inf }
0x50c6   :  { %v27155_v12 = vpop.f32.mrb[74].mxu0  ;;  %v22081_v9 = vsel %vm22074_vm6, %v34037_v44, -inf }
0x50c7   :  { %v21876_v47 = vpop.f32.mrb[75].mxu0  ;;  %22085 = vmax.xlane.f32.xlu0 %v22084_v22  ;;  %v34045_v3 = vadd.f32 %v27155_v12, %v22380_v58  ;;  %v34104_v22 = vmul.f32 2.0, %v34023_v48 }
0x50c8   :  { %v34035_v16 = vadd.f32 %v22380_v58, %v21876_v47 }
0x50c9   :  { %v22090_v57 = vsel %vm22074_vm6, %v34045_v3, -inf  ;;  %vm21923_vm10 = vcmp.ne.f32.partialorder %v34104_v22, %v34104_v22  ;;  %vm21907_vm13 = vcmp.gt.f32.partialorder %v34104_v22, 20.0 }
0x50ca   :  { %v27158_v31 = vpop.f32.mrb[76].mxu0  ;;  %v22087_v8 = vsel %vm22074_vm6, %v34035_v16, -inf }
0x50cb   :  { %v21888_v0 = vpop.f32.mrb[77].mxu0  ;;  %22088 = vmax.xlane.f32.xlu1 %v22087_v8  ;;  %22082 = vmax.xlane.f32.xlu0 %v22081_v9  ;;  %v34049_v43 = vadd.f32 %v27158_v31, %v22380_v58  ;;  %v34107_v31 = vmul.f32 2.0, %v34025_v52  ;;  %v34112_v9 = vmul.f32 2.0, %v34031_v32 }
0x50cc   :  { %v34041_v50 = vadd.f32 %v22380_v58, %v21888_v0  ;;  %v21939_v0 = vand.u32 2147483647, %v34104_v22 }
0x50cd   :  { %v22096_v62 = vsel %vm22074_vm6, %v34049_v43, -inf  ;;  %v21938_v8 = vand.u32 2147483647, %v34107_v31  ;;  %vm21922_vm12 = vcmp.ne.f32.partialorder %v34107_v31, %v34107_v31  ;;  %vm21925_vm14 = vcmp.ne.f32.partialorder %v34112_v9, %v34112_v9 }
0x50ce   :  { %v22093_v53 = vsel %vm22074_vm6, %v34041_v50, -inf  ;;  %vm21906_vm15 = vcmp.gt.f32.partialorder %v34107_v31, 20.0  ;;  %vm21909_vm1 = vcmp.gt.f32.partialorder %v34112_v9, 20.0 }
0x50cf   :  { %22094 = vmax.xlane.f32.xlu1 %v22093_v53  ;;  %22091 = vmax.xlane.f32.xlu0 %v22090_v57  ;;  %v21947_v53 = vsub.f32 0.0, %v21939_v0  ;;  %v21946_v57 = vsub.f32 0.0, %v21938_v8 }
0x50d3   :  { %22097 = vmax.xlane.f32.xlu0 %v22096_v62  ;;  %v21941_v62 = vand.u32 2147483647, %v34112_v9 }
0x514f   :  { %v22080_v49 = vpop.xlane.xlu1 %22079 }
0x5150   :  { %v22100_v35 = vsub.f32 %v34023_v48, %v22080_v49  ;;  %v22077_v23 = vpop.xlane.xlu0 %22076  ;;  %v21956_v49 = vmul.f32 1.442695, %v21947_v53 }
0x5151   :  { %v22099_v11 = vsub.f32 %v34025_v52, %v22077_v23  ;;  %v21949_v23 = vsub.f32 0.0, %v21941_v62 }
0x5152   :  { %v22109_v36 = vmul.f32 1.442695, %v22100_v35  ;;  %v21954_v35 = vmul.f32 1.442695, %v21946_v57 }
0x5153   :  { %v22107_v13 = vmul.f32 1.442695, %v22099_v11  ;;  %v21960_v11 = vmul.f32 1.442695, %v21949_v23  ;;  %v21915_v23 = vmax.f32 %v34104_v22, 0.0 }
0x5154   :  { %29607 = vpow2.f32 %v22109_v36  ;;  %v22086_v30 = vpop.xlane.xlu0 %22085 }
0x5155   :  { %29609 = vpow2.f32 %v22107_v13  ;;  %v22102_v37 = vsub.f32 %v34031_v32, %v22086_v30 }
0x5157   :  { %v22113_v27 = vmul.f32 1.442695, %v22102_v37 }
0x5158   :  { %v22089_v51 = vpop.xlane.xlu1 %22088  ;;  %v22083_v4 = vpop.xlane.xlu0 %22082 }
0x5159   :  { %29611 = vpow2.f32 %v22113_v27  ;;  %v22103_v1 = vsub.f32 %v34035_v16, %v22089_v51  ;;  %v22101_v26 = vsub.f32 %v34037_v44, %v22083_v4  ;;  %v34118_v51 = vmul.f32 2.0, %v34035_v16 }
0x515a   :  { %v22381_v4 = vmul.f32 -1.442695, %v34025_v52 }
0x515b   :  { %v22115_v2 = vmul.f32 1.442695, %v22103_v1  ;;  %v22111_v59 = vmul.f32 1.442695, %v22101_v26  ;;  %v22382_v1 = vmul.f32 -1.442695, %v34023_v48 }
0x515c   :  { %v22095_v28 = vpop.xlane.xlu1 %22094  ;;  %v22092_v24 = vpop.xlane.xlu0 %22091 }
0x515d   :  { %29613 = vpow2.f32 %v22115_v2  ;;  %v22105_v14 = vsub.f32 %v34041_v50, %v22095_v28  ;;  %v22104_v34 = vsub.f32 %v34045_v3, %v22092_v24  ;;  %v34123_v2 = vmul.f32 2.0, %v34037_v44 }
0x515e   :  { %v34058_v56 = vpop.eup %29607  ;;  %29615 = vpow2.f32 %v22111_v59  ;;  %v34127_v59 = vmul.f32 2.0, %v34045_v3  ;;  %v21942_v28 = vand.u32 2147483647, %v34118_v51 }
0x515f   :  { %v34060_v6 = vpop.eup %29609  ;;  %22133 = vrot.lane.b32.xlu0 %v34058_v56, %s29709_s3  ;;  %v22119_v63 = vmul.f32 1.442695, %v22105_v14  ;;  %v22117_v38 = vmul.f32 1.442695, %v22104_v34  ;;  %v34131_v14 = vmul.f32 2.0, %v34041_v50 }
0x5160   :  { %22131 = vrot.lane.b32.xlu1 %v34060_v6, %s29709_s3  ;;  %v22098_v17 = vpop.xlane.xlu0 %22097  ;;  %v21940_v24 = vand.u32 2147483647, %v34123_v2  ;;  %v22384_v34 = vmul.f32 -1.442695, %v34031_v32 }
0x5161   :  { %29617 = vpow2.f32 %v22119_v63  ;;  %v22106_v18 = vsub.f32 %v34049_v43, %v22098_v17  ;;  %v21943_v17 = vand.u32 2147483647, %v34127_v59 }
0x5162   :  { %29619 = vpow2.f32 %v22117_v38 }
0x5163   :  { %v34066_v20 = vpop.eup %29611  ;;  %v22121_v46 = vmul.f32 1.442695, %v22106_v18  ;;  %v21950_v18 = vsub.f32 0.0, %v21942_v28 }
0x5164   :  { %22137 = vrot.lane.b32.xlu1 %v34066_v20, %s29709_s3 }
0x5165   :  { %29621 = vpow2.f32 %v22121_v46  ;;  %v21944_v46 = vand.u32 2147483647, %v34131_v14 }
0x5166   :  { %29623 = vpow2.f32 %v21956_v49 }
0x5167   :  { %v34075_v15 = vpop.eup %29613  ;;  %29625 = vpow2.f32 %v21954_v35 }
0x5168   :  { %22139 = vrot.lane.b32.xlu0 %v34075_v15, %s29709_s3  ;;  %v34079_v60 = vpop.eup %29615  ;;  %29627 = vpow2.f32 %v21960_v11 }
0x5169   :  { %22135 = vrot.lane.b32.xlu1 %v34079_v60, %s29709_s3 }
0x516b   :  { %v34083_v7 = vpop.eup %29617 }
0x516c   :  { %22143 = vrot.lane.b32.xlu0 %v34083_v7, %s29709_s3  ;;  %v34087_v29 = vpop.eup %29619 }
0x516d   :  { %22141 = vrot.lane.b32.xlu1 %v34087_v29, %s29709_s3 }
0x516f   :  { %v34091_v33 = vpop.eup %29621 }
0x5170   :  { %v29624_v36 = vpop.eup %29623 }
0x5171   :  { %22145 = vrot.lane.b32.xlu1 %v34091_v33, %s29709_s3  ;;  %v29626_v13 = vpop.eup %29625  ;;  %v21979_v30 = vadd.f32 1.0, %v29624_v36  ;;  %v21982_v63 = vmul.f32 -0.5, %v29624_v36 }
0x5172   :  { %v21970_v37 = vadd.f32 1.0, %v29626_v13  ;;  %v34115_v27 = vpop.eup %29627  ;;  %v21973_v38 = vmul.f32 -0.5, %v29626_v13 }
0x5173   :  { %29629 = vlog2.f32 %v21979_v30  ;;  %v21997_v26 = vadd.f32 1.0, %v34115_v27  ;;  %v22003_v28 = vand.u32 2147483647, %v34115_v27 }
0x5174   :  { %29631 = vlog2.f32 %v21970_v37 }
0x5175   :  { %29633 = vpow2.f32 %v22382_v1  ;;  %vm22004_vm11 = vcmp.lt.f32.partialorder %v22003_v28, 0.0004427343 }
0x5176   :  { %29635 = vpow2.f32 %v22381_v4  ;;  %v21914_v4 = vmax.f32 %v34107_v31, 0.0 }
0x5177   :  { %29637 = vlog2.f32 %v21997_v26 }
0x5178   :  { %29639 = vpow2.f32 %v22384_v34 }
0x51d1   :  { %v22134_v21 = vpop.permute.xlu0 %22133 }
0x51d2   :  { %v22159_v41 = vsel %vm22155_vm7, %v22134_v21, 0.0  ;;  %v22132_v42 = vpop.permute.xlu1 %22131  ;;  %v29630_v21 = vpop.eup %29629 }
0x51d3   :  { %v22156_v55 = vsel %vm22155_vm7, %v22132_v42, 0.0  ;;  %22160 = vadd.xlane.f32.xlu1 %v22159_v41  ;;  %v21948_v41 = vsub.f32 0.0, %v21940_v24  ;;  %v29632_v42 = vpop.eup %29631 }
0x51d4   :  { %22157 = vadd.xlane.f32.xlu0 %v22156_v55  ;;  %v21983_v55 = vadd.f32 1.0, %v21982_v63 }
0x51d6   :  { %v22138_v10 = vpop.permute.xlu1 %22137  ;;  %v21984_v0 = vmul.f32 %v29624_v36, %v21983_v55  ;;  %v21917_v55 = vmax.f32 %v34112_v9, 0.0 }
0x51d7   :  { %v22165_v25 = vsel %vm22155_vm7, %v22138_v10, 0.0  ;;  %v34138_v10 = vmul.f32 2.0, %v34049_v43 }
0x51d8   :  { %22166 = vadd.xlane.f32.xlu0 %v22165_v25  ;;  %v21985_v25 = vand.u32 2147483647, %v29624_v36 }
0x51d9   :  { %v21945_v8 = vand.u32 2147483647, %v34138_v10 }
0x51da   :  { %v22140_v19 = vpop.permute.xlu0 %22139  ;;  %vm34142_vm8 = vcmp.lt.f32.partialorder %v21985_v25, 0.0004427343 }
0x51db   :  { %v22168_v58 = vsel %vm22155_vm7, %v22140_v19, 0.0  ;;  %v22136_v61 = vpop.permute.xlu1 %22135  ;;  %v21974_v19 = vadd.f32 1.0, %v21973_v38 }
0x51dc   :  { %22169 = vadd.xlane.f32.xlu1 %v22168_v58  ;;  %v22162_v54 = vsel %vm22155_vm7, %v22136_v61, 0.0  ;;  %v21951_v58 = vsub.f32 0.0, %v21943_v17  ;;  %v21962_v61 = vmul.f32 1.442695, %v21950_v18 }
0x51dd   :  { %22163 = vadd.xlane.f32.xlu0 %v22162_v54  ;;  %v21981_v54 = vmul.f32 0.6931472, %v29630_v21  ;;  %v21975_v62 = vmul.f32 %v29626_v13, %v21974_v19 }
0x51de   :  { %v22144_v5 = vpop.permute.xlu0 %22143  ;;  %v21964_v49 = vmul.f32 1.442695, %v21951_v58  ;;  %29641 = vpow2.f32 %v21962_v61 }
0x51df   :  { %v22174_v45 = vsel %vm22155_vm7, %v22144_v5, 0.0  ;;  %v22142_v40 = vpop.permute.xlu1 %22141  ;;  %v21976_v5 = vand.u32 2147483647, %v29626_v13  ;;  %v21987_v11 = vsel %vm34142_vm8, %v21984_v0, %v21981_v54  ;;  %v21953_v13 = vsub.f32 0.0, %v21945_v8 }
0x51e0   :  { %22175 = vadd.xlane.f32.xlu1 %v22174_v45  ;;  %v22171_v39 = vsel %vm22155_vm7, %v22142_v40, 0.0  ;;  %v21952_v45 = vsub.f32 0.0, %v21944_v46  ;;  %v21972_v40 = vmul.f32 0.6931472, %v29632_v42  ;;  %v22043_v24 = vadd.f32 %v21987_v11, %v21915_v23 }
0x51e1   :  { %22172 = vadd.xlane.f32.xlu0 %v22171_v39  ;;  %v22000_v39 = vmul.f32 -0.5, %v34115_v27  ;;  %vm21977_vm9 = vcmp.lt.f32.partialorder %v21976_v5, 0.0004427343  ;;  %v21968_v18 = vmul.f32 1.442695, %v21953_v13 }
0x51e2   :  { %v21966_v30 = vmul.f32 1.442695, %v21952_v45  ;;  %v21978_v36 = vsel %vm21977_vm9, %v21975_v62, %v21972_v40  ;;  %v22051_v46 = vsel %vm21923_vm10, %v34104_v22, %v22043_v24  ;;  %v22383_v22 = vmul.f32 -1.442695, %v34037_v44 }
0x51e3   :  { %v22146_v12 = vpop.permute.xlu1 %22145  ;;  %v22001_v1 = vadd.f32 1.0, %v22000_v39  ;;  %v22042_v38 = vadd.f32 %v21978_v36, %v21914_v4  ;;  %v22059_v58 = vmul.f32 0.5, %v22051_v46  ;;  %v22385_v39 = vmul.f32 -1.442695, %v34035_v16 }
0x51e4   :  { %v22177_v47 = vsel %vm22155_vm7, %v22146_v12, 0.0  ;;  %v21958_v12 = vmul.f32 1.442695, %v21948_v41  ;;  %v22386_v4 = vmul.f32 -1.442695, %v34045_v3  ;;  %vm21926_vm9 = vcmp.ne.f32.partialorder %v34118_v51, %v34118_v51 }
0x51e5   :  { %22178 = vadd.xlane.f32.xlu0 %v22177_v47  ;;  %v29634_v47 = vpop.eup %29633  ;;  %v22002_v17 = vmul.f32 %v34115_v27, %v22001_v1  ;;  %v22050_v42 = vsel %vm21922_vm12, %v34107_v31, %v22042_v38  ;;  %vm21924_vm10 = vcmp.ne.f32.partialorder %v34123_v2, %v34123_v2  ;;  %vm21927_vm12 = vcmp.ne.f32.partialorder %v34127_v59, %v34127_v59 }
0x51e6   :  { %v29636_v53 = vpop.eup %29635  ;;  %v22229_v37 = vadd.f32 1.0, %v29634_v47  ;;  %29643 = vpow2.f32 %v21958_v12  ;;  %v22058_v5 = vmul.f32 0.5, %v22050_v42  ;;  %v22067_v47 = vsel %vm21907_vm13, %v34023_v48, %v22059_v58 }
0x51e7   :  { %v29638_v35 = vpop.eup %29637  ;;  %v22228_v26 = vadd.f32 1.0, %v29636_v53  ;;  %29645 = vpow2.f32 %v21964_v49  ;;  %v22197_v23 = vadd.f32 1e-05, %v22067_v47  ;;  %vm21928_vm13 = vcmp.ne.f32.partialorder %v34131_v14, %v34131_v14 }
0x51e8   :  { %v21999_v63 = vmul.f32 0.6931472, %v29638_v35  ;;  %v29640_v34 = vpop.eup %29639  ;;  %29647 = vpow2.f32 %v21966_v30  ;;  %v22066_v62 = vsel %vm21906_vm15, %v34025_v52, %v22058_v5  ;;  %vm21908_vm15 = vcmp.gt.f32.partialorder %v34123_v2, 20.0 }
0x51e9   :  { %29649 = vrcp.f32 %v22229_v37  ;;  %v22231_v25 = vadd.f32 1.0, %v29640_v34  ;;  %v34159_v19 = vpop.eup %29641  ;;  %v22196_v37 = vadd.f32 1e-05, %v22066_v62 }
0x51ea   :  { %29651 = vrcp.f32 %v22228_v26  ;;  %v22005_v21 = vsel %vm22004_vm11, %v22002_v17, %v21999_v63  ;;  %v22006_v45 = vadd.f32 1.0, %v34159_v19  ;;  %v22009_v24 = vmul.f32 -0.5, %v34159_v19 }
0x51eb   :  { %v22045_v61 = vadd.f32 %v22005_v21, %v21917_v55  ;;  %v22387_v63 = vmul.f32 -1.442695, %v34041_v50 }
0x51ed   :  { %v22053_v0 = vsel %vm21925_vm14, %v34112_v9, %v22045_v61  ;;  %v22285_v9 = vsel %vm22155_vm7, %v34023_v48, %v22197_v23  ;;  %vm21910_vm14 = vcmp.gt.f32.partialorder %v34118_v51, 20.0 }
0x51ee   :  { %v22061_v11 = vmul.f32 0.5, %v22053_v0 }
0x51f0   :  { %v34161_v54 = vpop.eup %29643  ;;  %v22069_v38 = vsel %vm21909_vm1, %v34031_v32, %v22061_v11  ;;  %vm21929_vm1 = vcmp.ne.f32.partialorder %v34138_v10, %v34138_v10 }
0x51f1   :  { %v34164_v40 = vpop.eup %29645  ;;  %v21988_v8 = vadd.f32 1.0, %v34161_v54 }
0x51f2   :  { %v34170_v12 = vpop.eup %29647  ;;  %v22015_v35 = vadd.f32 1.0, %v34164_v40  ;;  %v22018_v11 = vmul.f32 -0.5, %v34164_v40 }
0x51f3   :  { %v29650_v57 = vpop.eup %29649  ;;  %v22024_v31 = vadd.f32 1.0, %v34170_v12 }
0x51f4   :  { %v29652_v49 = vpop.eup %29651  ;;  %v22253_v36 = vmul.f32 0.99999, %v29650_v57 }
0x51f5   :  { %v22252_v28 = vmul.f32 0.99999, %v29652_v49  ;;  %v22027_v49 = vmul.f32 -0.5, %v34170_v12 }
0x51f6   :  { %v22261_v46 = vadd.f32 1e-05, %v22253_v36  ;;  %v21994_v36 = vand.u32 2147483647, %v34161_v54 }
0x51f7   :  { %v22260_v55 = vadd.f32 1e-05, %v22252_v28 }
0x51f8   :  { %v22294_v48 = vsel %vm22292_vm0, %v22285_v9, %v22261_v46  ;;  %v22028_v9 = vadd.f32 1.0, %v22027_v49  ;;  %vm34231_vm5 = vcmp.lt.f32.partialorder %v21994_v36, 0.0004427343 }
0x5260   :  { %v22161_v41 = vpop.xlane.xlu1 %22160 }
0x5261   :  { %29653 = vrcp.f32 %v22161_v41  ;;  %v22158_v27 = vpop.xlane.xlu0 %22157 }
0x5262   :  { %29655 = vrcp.f32 %v22158_v27 }
0x5263   :  { %29657 = vpow2.f32 %v21968_v18 }
0x5264   :  { %29659 = vrcp.f32 %v22231_v25  ;;  %v21991_v25 = vmul.f32 -0.5, %v34161_v54 }
0x5265   :  { %v22167_v53 = vpop.xlane.xlu0 %22166 }
0x5266   :  { %29661 = vrcp.f32 %v22167_v53  ;;  %v22388_v53 = vmul.f32 -1.442695, %v34049_v43  ;;  %v21992_v23 = vadd.f32 1.0, %v21991_v25 }
0x5267   :  { %29663 = vlog2.f32 %v22006_v45 }
0x5268   :  { %29665 = vpow2.f32 %v22385_v39 }
0x5269   :  { %29667 = vlog2.f32 %v21988_v8  ;;  %v22010_v8 = vadd.f32 1.0, %v22009_v24 }
0x526a   :  { %29669 = vpow2.f32 %v22383_v22  ;;  %v22012_v22 = vand.u32 2147483647, %v34159_v19  ;;  %v22164_v36 = vpop.xlane.xlu0 %22163 }
0x526b   :  { %v29654_v30 = vpop.eup %29653  ;;  %29671 = vlog2.f32 %v22015_v35 }
0x526c   :  { %v29656_v1 = vpop.eup %29655  ;;  %v22183_v26 = vmul.f32 %v29654_v30, %v34058_v56  ;;  %29673 = vlog2.f32 %v22024_v31  ;;  %v22284_v56 = vsel %vm22155_vm7, %v34025_v52, %v22196_v37  ;;  %vm34218_vm4 = vcmp.lt.f32.partialorder %v22012_v22, 0.0004427343 }
0x526d   :  { %v34183_v13 = vpop.eup %29657  ;;  %v22181_v34 = vmul.f32 %v29656_v1, %v34060_v6  ;;  %v22199_v6 = vadd.f32 1e-05, %v22069_v38  ;;  %29675 = vpow2.f32 %v22387_v63  ;;  %v22293_v52 = vsel %vm22292_vm0, %v22284_v56, %v22260_v55 }
0x526e   :  { %v22269_v17 = vmul.f32 0.99999, %v22183_v26  ;;  %v29660_v18 = vpop.eup %29659  ;;  %v22033_v41 = vadd.f32 1.0, %v34183_v13  ;;  %29677 = vpow2.f32 %v22386_v4  ;;  %v22021_v63 = vand.u32 2147483647, %v34164_v40 }
0x526f   :  { %v22268_v21 = vmul.f32 0.99999, %v22181_v34  ;;  %v22255_v5 = vmul.f32 0.99999, %v29660_v18  ;;  %v22287_v62 = vsel %vm22155_vm7, %v34031_v32, %v22199_v6  ;;  %v22011_v32 = vmul.f32 %v34159_v19, %v22010_v8 }
0x5270   :  { %v22277_v42 = vadd.f32 1e-05, %v22269_v17  ;;  %v29662_v58 = vpop.eup %29661  ;;  %29679 = vlog2.f32 %v22033_v41  ;;  %v21993_v17 = vmul.f32 %v34161_v54, %v21992_v23  ;;  %v22019_v18 = vadd.f32 1.0, %v22018_v11 }
0x5271   :  { %v22276_v27 = vadd.f32 1e-05, %v22268_v21  ;;  %v29664_v45 = vpop.eup %29663  ;;  %v22187_v47 = vmul.f32 %v29662_v58, %v34066_v20  ;;  %v22263_v30 = vadd.f32 1e-05, %v22255_v5  ;;  %29681 = vpow2.f32 %v22388_v53 }
0x5272   :  { %v22303_v61 = vsel %vm22301_vm2, %v22294_v48, %v22277_v42  ;;  %v29666_v0 = vpop.eup %29665  ;;  %v22008_v31 = vmul.f32 0.6931472, %v29664_v45  ;;  %v22030_v19 = vand.u32 2147483647, %v34170_v12  ;;  %v21918_v21 = vmax.f32 %v34118_v51, 0.0 }
0x5273   :  { %22312 = vst.msk [vmem:[%s34339_s4 + $0x8] sm:$0xff] %vm22310_vm3, %v22303_v61  ;;  %v22302_v39 = vsel %vm22301_vm2, %v22293_v52, %v22276_v27  ;;  %v29668_v57 = vpop.eup %29667  ;;  %v22271_v35 = vmul.f32 0.99999, %v22187_v47  ;;  %v22232_v1 = vadd.f32 1.0, %v29666_v0  ;;  %v22296_v24 = vsel %vm22292_vm0, %v22287_v62, %v22263_v30 }
0x5274   :  { %22311 = vst.msk [vmem:[%s34339_s4] sm:$0xff] %vm22310_vm3, %v22302_v39  ;;  %v29670_v20 = vpop.eup %29669  ;;  %v21990_v28 = vmul.f32 0.6931472, %v29668_v57  ;;  %v22014_v56 = vsel %vm34218_vm4, %v22011_v32, %v22008_v31  ;;  %v22036_v41 = vmul.f32 -0.5, %v34183_v13  ;;  %v21916_v48 = vmax.f32 %v34123_v2, 0.0 }
0x5275   :  { %v29672_v37 = vpop.eup %29671  ;;  %v22279_v4 = vadd.f32 1e-05, %v22271_v35  ;;  %v22230_v27 = vadd.f32 1.0, %v29670_v20  ;;  %v22046_v58 = vadd.f32 %v22014_v56, %v21918_v21  ;;  %v22029_v61 = vmul.f32 %v34170_v12, %v22028_v9  ;;  %v22170_v35 = vpop.xlane.xlu1 %22169 }
0x5276   :  { %v29674_v26 = vpop.eup %29673  ;;  %v21996_v55 = vsel %vm34231_vm5, %v21993_v17, %v21990_v28  ;;  %v22017_v6 = vmul.f32 0.6931472, %v29672_v37  ;;  %v22020_v5 = vmul.f32 %v34164_v40, %v22019_v18  ;;  %vm34242_vm6 = vcmp.lt.f32.partialorder %v22021_v63, 0.0004427343  ;;  %v22173_v18 = vpop.xlane.xlu0 %22172 }
0x5277   :  { %v22305_v38 = vsel %vm22301_vm2, %v22296_v24, %v22279_v4  ;;  %v22026_v54 = vmul.f32 0.6931472, %v29674_v26  ;;  %v29676_v42 = vpop.eup %29675  ;;  %29683 = vrcp.f32 %v22232_v1  ;;  %vm34246_vm8 = vcmp.lt.f32.partialorder %v22030_v19, 0.0004427343 }
0x5278   :  { %22314 = vst.msk [vmem:[%s34339_s4 + $0x18] sm:$0xff] %vm22310_vm3, %v22305_v38  ;;  %v29678_v25 = vpop.eup %29677  ;;  %v22044_v47 = vadd.f32 %v21996_v55, %v21916_v48  ;;  %v22037_v0 = vadd.f32 1.0, %v22036_v41  ;;  %v22234_v53 = vadd.f32 1.0, %v29676_v42  ;;  %v22023_v12 = vsel %vm34242_vm6, %v22020_v5, %v22017_v6 }
0x5279   :  { %v22032_v8 = vsel %vm34246_vm8, %v22029_v61, %v22026_v54  ;;  %v22039_v40 = vand.u32 2147483647, %v34183_v13  ;;  %v21920_v57 = vmax.f32 %v34131_v14, 0.0  ;;  %29685 = vrcp.f32 %v22230_v27  ;;  %v22176_v63 = vpop.xlane.xlu1 %22175 }
0x527a   :  { %v29680_v52 = vpop.eup %29679  ;;  %v21919_v62 = vmax.f32 %v34127_v59, 0.0  ;;  %v22054_v22 = vsel %vm21926_vm9, %v34118_v51, %v22046_v58  ;;  %v22233_v23 = vadd.f32 1.0, %v29678_v25  ;;  %29687 = vrcp.f32 %v22170_v35 }
0x527b   :  { %v22035_v49 = vmul.f32 0.6931472, %v29680_v52  ;;  %v29682_v20 = vpop.eup %29681  ;;  %v22048_v11 = vadd.f32 %v22032_v8, %v21920_v57  ;;  %v22052_v31 = vsel %vm21924_vm10, %v34123_v2, %v22044_v47  ;;  %v22038_v37 = vmul.f32 %v34183_v13, %v22037_v0  ;;  %v22179_v2 = vpop.xlane.xlu0 %22178 }
0x527c   :  { %v22047_v30 = vadd.f32 %v22023_v12, %v21919_v62  ;;  %29689 = vrcp.f32 %v22234_v53  ;;  %v22062_v1 = vmul.f32 0.5, %v22054_v22  ;;  %vm34264_vm11 = vcmp.lt.f32.partialorder %v22039_v40, 0.0004427343 }
0x527d   :  { %29691 = vrcp.f32 %v22164_v36  ;;  %v21921_v26 = vmax.f32 %v34138_v10, 0.0  ;;  %v22041_v28 = vsel %vm34264_vm11, %v22038_v37, %v22035_v49  ;;  %v22060_v13 = vmul.f32 0.5, %v22052_v31 }
0x527e   :  { %29693 = vrcp.f32 %v22233_v23  ;;  %v22235_v32 = vadd.f32 1.0, %v29682_v20  ;;  %v22056_v24 = vsel %vm21928_vm13, %v34131_v14, %v22048_v11  ;;  %v22055_v34 = vsel %vm21927_vm12, %v34127_v59, %v22047_v30 }
0x527f   :  { %29695 = vrcp.f32 %v22176_v63  ;;  %v22070_v38 = vsel %vm21910_vm14, %v34035_v16, %v22062_v1  ;;  %v22049_v17 = vadd.f32 %v22041_v28, %v21921_v26  ;;  %v22064_v56 = vmul.f32 0.5, %v22056_v24 }
0x5280   :  { %29697 = vrcp.f32 %v22173_v18  ;;  %v22068_v19 = vsel %vm21908_vm15, %v34037_v44, %v22060_v13  ;;  %v22063_v46 = vmul.f32 0.5, %v22055_v34  ;;  %v22200_v41 = vadd.f32 1e-05, %v22070_v38 }
0x5281   :  { %v29684_v9 = vpop.eup %29683  ;;  %29699 = vrcp.f32 %v22235_v32  ;;  %vm21911_vm4 = vcmp.gt.f32.partialorder %v34127_v59, 20.0  ;;  %v22057_v54 = vsel %vm21929_vm1, %v34138_v10, %v22049_v17  ;;  %vm21912_vm5 = vcmp.gt.f32.partialorder %v34131_v14, 20.0 }
0x5282   :  { %v22256_v42 = vmul.f32 0.99999, %v29684_v9  ;;  %v22198_v6 = vadd.f32 1e-05, %v22068_v19  ;;  %v22072_v25 = vsel %vm21912_vm5, %v34041_v50, %v22064_v56  ;;  %29701 = vrcp.f32 %v22179_v2 }
0x5283   :  { %v29686_v21 = vpop.eup %29685  ;;  %v22071_v58 = vsel %vm21911_vm4, %v34045_v3, %v22063_v46  ;;  %v22288_v59 = vsel %vm22155_vm7, %v34035_v16, %v22200_v41  ;;  %v22065_v52 = vmul.f32 0.5, %v22057_v54  ;;  %vm21913_vm6 = vcmp.gt.f32.partialorder %v34138_v10, 20.0 }
0x5284   :  { %v29688_v51 = vpop.eup %29687  ;;  %v22254_v61 = vmul.f32 0.99999, %v29686_v21  ;;  %v22202_v39 = vadd.f32 1e-05, %v22072_v25  ;;  %v22264_v47 = vadd.f32 1e-05, %v22256_v42 }
0x5285   :  { %v22189_v48 = vmul.f32 %v29688_v51, %v34075_v15  ;;  %v22286_v15 = vsel %vm22155_vm7, %v34037_v44, %v22198_v6  ;;  %v22201_v40 = vadd.f32 1e-05, %v22071_v58 }
0x5286   :  { %v29690_v55 = vpop.eup %29689  ;;  %v22297_v57 = vsel %vm22292_vm0, %v22288_v59, %v22264_v47  ;;  %v22262_v16 = vadd.f32 1e-05, %v22254_v61  ;;  %v22290_v44 = vsel %vm22155_vm7, %v34041_v50, %v22202_v39 }
0x5287   :  { %v29692_v27 = vpop.eup %29691  ;;  %v22272_v5 = vmul.f32 0.99999, %v22189_v48  ;;  %v22258_v12 = vmul.f32 0.99999, %v29690_v55  ;;  %v22289_v37 = vsel %vm22155_vm7, %v34045_v3, %v22201_v40 }
0x5288   :  { %v22185_v14 = vmul.f32 %v29692_v27, %v34079_v60  ;;  %v29694_v45 = vpop.eup %29693  ;;  %v22073_v60 = vsel %vm21913_vm6, %v34049_v43, %v22065_v52  ;;  %v22295_v23 = vsel %vm22292_vm0, %v22286_v15, %v22262_v16 }
0x5289   :  { %v29696_v0 = vpop.eup %29695  ;;  %v22280_v8 = vadd.f32 1e-05, %v22272_v5  ;;  %v22257_v35 = vmul.f32 0.99999, %v29694_v45  ;;  %v22266_v30 = vadd.f32 1e-05, %v22258_v12 }
0x528a   :  { %v22270_v53 = vmul.f32 0.99999, %v22185_v14  ;;  %v22193_v62 = vmul.f32 %v29696_v0, %v34083_v7  ;;  %v29698_v22 = vpop.eup %29697  ;;  %v22203_v36 = vadd.f32 1e-05, %v22073_v60 }
0x528b   :  { %v22306_v10 = vsel %vm22301_vm2, %v22297_v57, %v22280_v8  ;;  %v29700_v20 = vpop.eup %29699  ;;  %v22191_v7 = vmul.f32 %v29698_v22, %v34087_v29  ;;  %v22299_v26 = vsel %vm22292_vm0, %v22290_v44, %v22266_v30  ;;  %v22265_v28 = vadd.f32 1e-05, %v22257_v35 }
0x528c   :  { %v22278_v49 = vadd.f32 1e-05, %v22270_v53  ;;  %22315 = vst.msk [vmem:[%s34339_s4 + $0x20] sm:$0xff] %vm22310_vm3, %v22306_v10  ;;  %v22274_v11 = vmul.f32 0.99999, %v22193_v62  ;;  %v29702_v4 = vpop.eup %29701  ;;  %v22291_v63 = vsel %vm22155_vm7, %v34049_v43, %v22203_v36 }
0x528d   :  { %v22273_v1 = vmul.f32 0.99999, %v22191_v7  ;;  %v22259_v13 = vmul.f32 0.99999, %v29700_v20  ;;  %v22195_v24 = vmul.f32 %v29702_v4, %v34091_v33  ;;  %v22298_v3 = vsel %vm22292_vm0, %v22289_v37, %v22265_v28 }
0x528e   :  { %v22304_v31 = vsel %vm22301_vm2, %v22295_v23, %v22278_v49  ;;  %v22282_v50 = vadd.f32 1e-05, %v22274_v11 }
0x528f   :  { %22313 = vst.msk [vmem:[%s34339_s4 + $0x10] sm:$0xff] %vm22310_vm3, %v22304_v31  ;;  %v22281_v32 = vadd.f32 1e-05, %v22273_v1  ;;  %v22275_v9 = vmul.f32 0.99999, %v22195_v24 }
0x5290   :  { %v22308_v29 = vsel %vm22301_vm2, %v22299_v26, %v22282_v50  ;;  %v22267_v38 = vadd.f32 1e-05, %v22259_v13 }
0x5291   :  { %22317 = vst.msk [vmem:[%s34339_s4 + $0x30] sm:$0xff] %vm22310_vm3, %v22308_v29  ;;  %v22307_v34 = vsel %vm22301_vm2, %v22298_v3, %v22281_v32  ;;  %v22283_v33 = vadd.f32 1e-05, %v22275_v9 }
0x5292   :  { %22316 = vst.msk [vmem:[%s34339_s4 + $0x28] sm:$0xff] %vm22310_vm3, %v22307_v34  ;;  %v22300_v17 = vsel %vm22292_vm0, %v22291_v63, %v22267_v38 }
0x5293   :  { %v22309_v18 = vsel %vm22301_vm2, %v22300_v17, %v22283_v33 }
0x5294   :  { %22318 = vst.msk [vmem:[%s34339_s4 + $0x38] sm:$0xff] %vm22310_vm3, %v22309_v18 }

</bundles_post_ra>
